<compile_context>
chip_gen: v7x
topology: tpu7x:2x2x1
jax: 0.10.0
libtpu: 0.0.40
codegen_flags: <defaults>
</compile_context>

<pallas_src>
import functools

import jax
import jax.numpy as jnp
from jax.experimental import pallas as pl
from jax.experimental.pallas import tpu as pltpu

KSIZE = 7
PAD = 3
LN_EPS = 1e-6


def _round_up(x, m):
    return (x + m - 1) // m * m


def _tpu_generation():
    """Best-effort TPU generation (5 / 6 / 7); 0 if unknown."""
    try:
        kind = jax.devices()[0].device_kind.lower()
    except Exception:
        return 0
    for gen in (7, 6, 5, 4):
        if f"v{gen}" in kind:
            return gen
    return 0


def _vmem_cap_bytes(gen):
    """Per-generation VMEM request cap (leave headroom for compiler scratch)."""
    if gen >= 7:
        return 56 << 20      # v7x: 64 MiB physical per TC
    if gen in (5, 6):
        return 100 << 20     # v5e/v6e: 128 MiB physical
    return 64 << 20


def _supports_single_buffering():
    """True if this JAX build accepts pipeline_mode=pl.Buffered(1)."""
    buffered = getattr(pl, "Buffered", None)
    if buffered is None:
        return False
    try:
        pl.BlockSpec((8, 128), lambda i, j: (0, 0), pipeline_mode=buffered(1))
        return True
    except TypeError:
        return False


def _const_spec(shape, single_buffer):
    """BlockSpec for a grid-invariant operand (weights / biases)."""
    index_map = lambda b, r: (0,) * len(shape)
    if single_buffer:
        return pl.BlockSpec(shape, index_map, pipeline_mode=pl.Buffered(1))
    return pl.BlockSpec(shape, index_map)


def _vmem_need_bytes(th, *, w, wp, cp, chp, dw_bytes, out_bytes, weight_bufs):
    """Honest per-step VMEM estimate for a row tile of height th."""
    hsz = th + 2 * PAD
    slab = hsz * wp * cp
    tile = th * w * cp
    hidt = th * w * chp
    return (
        slab * 4                          # f32 halo slab (scratch)
        + slab * dw_bytes                 # working copy in the depthwise dtype
        + 2 * hsz * w * cp * dw_bytes     # live sublane-shifted column slabs
        + 4 * tile * 4                    # acc / centered / xn / y (f32)
        + tile * 2                        # bf16 activations for matmul 1
        + hidt * 4 + hidt * 2             # hidden f32 + bf16
        + 2 * tile * out_bytes            # double-buffered output block
        + weight_bufs * 2 * cp * chp * 2  # two bf16 pointwise weights
        + (KSIZE * KSIZE + 8) * cp * 4 + chp * 4
    )


def _pick_tile_h(h, need_fn, cap_bytes):
    """Largest divisor of h whose per-step VMEM estimate fits the budget.

    Keeps at least two row tiles per image when h allows (so the row grid
    axis can be sharded across both v7x TensorCores at batch 1).
    """
    limit = h if h <= 8 else max(1, h // 2)
    limit = min(limit, 64)
    best = 1
    for th in range(1, h + 1):
        if h % th == 0 and th <= limit and need_fn(th) <= 0.85 * cap_bytes:
            best = th
    # TODO(synk): prime H > 8 degrades to th=1 (7x halo overhead); pad H or
    # mask the last tile to avoid this.
    return best


def _convnext_kernel(x_hbm, dww_ref, dwb_ref, w1_ref, b1_ref, w2_ref, b2_ref,
                     out_ref, xbuf, sem, *, c, inv_c, dw_dtype, bf16_act):
    # Refs per grid step = one row-tile of one image:
    #   x_hbm   : (N, H+6, Wp, Cp) f32  padded NHWC input, stays in HBM (ANY)
    #   dww_ref : (7, 7, Cp)  dw_dtype  depthwise weights
    #   dwb_ref : (1, Cp)     f32       depthwise bias
    #   w1_ref  : (Cp, Chp)   bf16      pwconv1 (LayerNorm affine folded in)
    #   b1_ref  : (1, Chp)    f32
    #   w2_ref  : (Chp, Cp)   bf16      pwconv2 (layer-scale gamma folded in)
    #   b2_ref  : (1, Cp)     f32
    #   out_ref : (1, TH, W, Cp)
    #   xbuf    : (TH+6, Wp, Cp) f32    VMEM scratch for the halo slab
    th = out_ref.shape[1]
    w = out_ref.shape[2]
    cp = out_ref.shape[3]
    hsz = th + 2 * PAD

    b = pl.program_id(0)
    row0 = pl.multiple_of(pl.program_id(1) * th, th)

    # Manual halo DMA: fetch only the (TH + 6)-row slab this tile needs.
    # TODO(synk): this copy is synchronous (a few % exposed); a 2-deep manual
    # prefetch across row tiles would require an "arbitrary" row axis and
    # lose megacore sharding, so it is left single-shot.
    copy_in = pltpu.make_async_copy(x_hbm.at[b, pl.ds(row0, hsz)], xbuf,
                                    sem.at[0])
    copy_in.start()
    copy_in.wait()

    xp32 = xbuf[...]                                    # (TH+6, Wp, Cp) f32
    xp = xp32 if dw_dtype == jnp.float32 else xp32.astype(dw_dtype)
    dww = dww_ref[...]                                  # (7, 7, Cp)

    # Depthwise 7x7: one sublane (W) shift per kernel column; the 7-term
    # column sum is one expression, so the f32 accumulator is updated only
    # 7 times (not 49).  Products run in bf16 on v6e/v7x, f32 on v5e.
    acc = dwb_ref[0]                                    # (Cp,) f32, broadcasts
    for j in range(KSIZE):
        xp_j = xp[:, j:j + w, :]                        # (TH+6, W, Cp)
        col = xp_j[0:th] * dww[0, j]
        for i in range(1, KSIZE):
            col = col + xp_j[i:i + th] * dww[i, j]
        acc = acc + col                                 # f32 accumulation

    # LayerNorm over channels: two-pass (mean, then centered sum of squares)
    # to avoid E[x^2]-E[x]^2 cancellation; padded lanes are masked to zero so
    # they contribute nothing (divide by the true C).
    mean = jnp.sum(acc, axis=-1, keepdims=True) * inv_c
    d = acc - mean
    if cp != c:
        lane = jax.lax.broadcasted_iota(jnp.int32, (1, 1, cp), 2)
        d = d * (lane < c).astype(jnp.float32)
    var = jnp.sum(d * d, axis=-1, keepdims=True) * inv_c
    xn = d * jax.lax.rsqrt(var + LN_EPS)                # affine folded into w1/b1

    # Pointwise convs as native bf16 MXU matmuls with f32 accumulation.
    x2d = xn.reshape(th * w, cp).astype(jnp.bfloat16)
    hid = jnp.dot(x2d, w1_ref[...], preferred_element_type=jnp.float32)
    hid = hid + b1_ref[0]
    # tanh-approximate GELU (EUP) instead of exact erf (VPU polynomial).
    if bf16_act:
        act = jax.nn.gelu(hid.astype(jnp.bfloat16), approximate=True)
    else:
        act = jax.nn.gelu(hid, approximate=True).astype(jnp.bfloat16)
    y = jnp.dot(act, w2_ref[...], preferred_element_type=jnp.float32)
    y = (y + b2_ref[0]).reshape(th, w, cp)              # gamma folded into w2/b2

    # Residual from the already-resident f32 halo slab (no extra HBM stream).
    resid = xbuf[PAD:PAD + th, PAD:PAD + w, :]
    out_ref[0] = (resid + y).astype(out_ref.dtype)


def convnext_block_nhwc(x_nhwc, params):
    """ConvNeXtBlock forward in the kernel-native NHWC layout.

    x_nhwc: (N, H, W, C) f32.  Returns (N, H, W, C).
    Models that can stay NHWC (and channel-padded) end-to-end should call
    this entry point directly and skip the NCHW transposes.
    """
    n, h, w, c = x_nhwc.shape
    ch = params["w1"].shape[1]

    cp = _round_up(c, 128)                    # channel (lane) padding
    chp = _round_up(ch, 128)
    wp = _round_up(w + 2 * PAD, 8)            # padded-width (sublane) padding

    gen = _tpu_generation()
    use_bf16_dw = gen >= 6                    # bf16 VALU native on v6e/v7x only
    dw_dtype = jnp.bfloat16 if use_bf16_dw else jnp.float32

    single_buffer = _supports_single_buffering()
    weight_bufs = 1 if single_buffer else 2

    cap = _vmem_cap_bytes(gen)
    need_fn = functools.partial(
        _vmem_need_bytes, w=w, wp=wp, cp=cp, chp=chp,
        dw_bytes=(2 if use_bf16_dw else 4),
        out_bytes=jnp.dtype(x_nhwc.dtype).itemsize,
        weight_bufs=weight_bufs)
    th = _pick_tile_h(h, need_fn, cap)
    vmem_limit = int(min(cap, max(need_fn(th) * 1.3, 32 << 20)))

    # Fold LayerNorm affine into pwconv1 and layer-scale gamma into pwconv2.
    w1_eff = params["ln_g"][:, None] * params["w1"]
    b1_eff = params["ln_b"] @ params["w1"] + params["b1"]
    w2_eff = params["w2"] * params["gamma"][None, :]
    b2_eff = params["b2"] * params["gamma"]

    # Conv padding + lane/sublane alignment padding (zeros); keep f32 so the
    # residual path is bit-exact.  This array stays in HBM (pl.ANY).
    x_pad = jnp.pad(
        x_nhwc, ((0, 0), (PAD, PAD), (PAD, wp - w - PAD), (0, cp - c)))

    dww = jnp.pad(params["dw_w"], ((0, 0), (0, 0), (0, cp - c))).astype(dw_dtype)
    dwb = jnp.pad(params["dw_b"], (0, cp - c)).reshape(1, cp).astype(jnp.float32)
    w1p = jnp.pad(w1_eff, ((0, cp - c), (0, chp - ch))).astype(jnp.bfloat16)
    b1p = jnp.pad(b1_eff, (0, chp - ch)).reshape(1, chp).astype(jnp.float32)
    w2p = jnp.pad(w2_eff, ((0, chp - ch), (0, cp - c))).astype(jnp.bfloat16)
    b2p = jnp.pad(b2_eff, (0, cp - c)).reshape(1, cp).astype(jnp.float32)

    kernel = functools.partial(_convnext_kernel, c=c, inv_c=1.0 / c,
                               dw_dtype=dw_dtype, bf16_act=use_bf16_dw)

    out_padded = pl.pallas_call(
        kernel,
        out_shape=jax.ShapeDtypeStruct((n, h, w, cp), x_nhwc.dtype),
        grid_spec=pltpu.PrefetchScalarGridSpec(
            num_scalar_prefetch=0,
            grid=(n, h // th),
            in_specs=[
                pl.BlockSpec(memory_space=pl.ANY),   # padded input stays in HBM
                _const_spec((KSIZE, KSIZE, cp), single_buffer),
                _const_spec((1, cp), single_buffer),
                _const_spec((cp, chp), single_buffer),
                _const_spec((1, chp), single_buffer),
                _const_spec((chp, cp), single_buffer),
                _const_spec((1, cp), single_buffer),
            ],
            out_specs=pl.BlockSpec((1, th, w, cp), lambda b, r: (b, r, 0, 0)),
            scratch_shapes=[
                pltpu.VMEM((th + 2 * PAD, wp, cp), jnp.float32),  # halo slab
                pltpu.SemaphoreType.DMA((1,)),
            ]),
        compiler_params=pltpu.CompilerParams(
            dimension_semantics=("parallel", "parallel"),
            vmem_limit_bytes=vmem_limit),
    )(x_pad, dww, dwb, w1p, b1p, w2p, b2p)

    return out_padded[..., :c]


def convnext_block_nchw(x_nchw, params):
    """ConvNeXtBlock forward. x_nchw: (N, C, H, W) f32. Returns (N, C, H, W).

    Note: the NCHW<->NHWC transposes here are extra full-tensor HBM passes
    outside the kernel; prefer convnext_block_nhwc if the surrounding model
    can stay NHWC end-to-end.
    """
    x_nhwc = jnp.transpose(x_nchw, (0, 2, 3, 1))
    out_nhwc = convnext_block_nhwc(x_nhwc, params)
    return jnp.transpose(out_nhwc, (0, 3, 1, 2))


def convnext_block_ref(x_nchw, params):
    """Pure-JAX f32 reference (unfused, unfolded, exact-erf GELU)."""
    x_nhwc = jnp.transpose(x_nchw, (0, 2, 3, 1))
    c = x_nhwc.shape[-1]
    k = params["dw_w"].reshape(KSIZE, KSIZE, 1, c)   # HWIO, depthwise
    y = jax.lax.conv_general_dilated(
        x_nhwc, k, window_strides=(1, 1), padding=((PAD, PAD), (PAD, PAD)),
        dimension_numbers=("NHWC", "HWIO", "NHWC"), feature_group_count=c)
    y = y + params["dw_b"]
    mean = jnp.mean(y, axis=-1, keepdims=True)
    var = jnp.mean((y - mean) ** 2, axis=-1, keepdims=True)
    y = (y - mean) * jax.lax.rsqrt(var + LN_EPS)
    y = y * params["ln_g"] + params["ln_b"]
    y = jnp.dot(y, params["w1"]) + params["b1"]
    y = jax.nn.gelu(y, approximate=False)
    y = jnp.dot(y, params["w2"]) + params["b2"]
    y = y * params["gamma"]
    out = x_nhwc + y
    return jnp.transpose(out, (0, 3, 1, 2))


def make_params(key, dim_in, dim_hidden, dim_out, layer_scale_init_value=1e-6):
    ks = jax.random.split(key, 6)
    scale = 0.02
    return {
        # depthwise conv weight stored as (K, K, C)
        "dw_w": scale * jax.random.normal(ks[0], (KSIZE, KSIZE, dim_in), jnp.float32),
        "dw_b": scale * jax.random.normal(ks[1], (dim_in,), jnp.float32),
        # LayerNorm affine (PyTorch default init: ones / zeros)
        "ln_g": jnp.ones((dim_in,), jnp.float32),
        "ln_b": jnp.zeros((dim_in,), jnp.float32),
        # pwconv1 / pwconv2 as Linear layers: x @ W + b, W stored (in, out)
        "w1": scale * jax.random.normal(ks[2], (dim_in, dim_hidden), jnp.float32),
        "b1": scale * jax.random.normal(ks[3], (dim_hidden,), jnp.float32),
        "w2": scale * jax.random.normal(ks[4], (dim_hidden, dim_out), jnp.float32),
        "b2": scale * jax.random.normal(ks[5], (dim_out,), jnp.float32),
        "gamma": layer_scale_init_value * jnp.ones((dim_out,), jnp.float32),
    }


if __name__ == "__main__":
    # Residual add in the 4-D path requires dim_out == dim_in.
    N, C, H, W = 2, 32, 16, 16
    dim_hidden = 64

    key = jax.random.PRNGKey(0)
    kx, kp = jax.random.split(key)
    x = jax.random.normal(kx, (N, C, H, W), jnp.float32)
    # layer_scale_init_value=0.1 (instead of the 1e-6 default) so the block's
    # contribution is numerically visible in the validation below.
    params = make_params(kp, C, dim_hidden, C, layer_scale_init_value=0.1)

    out = jax.block_until_ready(convnext_block_nchw(x, params))
    ref = convnext_block_ref(x, params)

    assert out.shape == (N, C, H, W)
    # bf16 depthwise MAC (v6e/v7x), bf16 MXU matmuls and tanh-approximate GELU
    # vs the pure-f32 / exact-erf reference -> bf16-appropriate tolerance.
    assert jnp.allclose(out, ref, atol=2e-3, rtol=2e-3), "mismatch vs reference"

    print("KERNEL_OK")
</pallas_src>

<mosaic_0001>
module attributes {stable_mosaic.version = 11 : i64} {
  func.func @_convnext_kernel(%arg0: i32, %arg1: i32, %arg2: memref<2x22x24x128xf32, #tpu.memory_space<any>>, %arg3: memref<7x7x128xf32, #tpu.memory_space<vmem>>, %arg4: memref<1x128xf32, #tpu.memory_space<vmem>>, %arg5: memref<128x128xbf16, #tpu.memory_space<vmem>>, %arg6: memref<1x128xf32, #tpu.memory_space<vmem>>, %arg7: memref<128x128xbf16, #tpu.memory_space<vmem>>, %arg8: memref<1x128xf32, #tpu.memory_space<vmem>>, %arg9: memref<1x8x16x128xf32, #tpu.memory_space<vmem>>, %arg10: memref<14x24x128xf32, #tpu.memory_space<vmem>>, %arg11: memref<1x!tpu.dma_semaphore, #tpu.memory_space<semaphore_mem>>) attributes {dimension_semantics = [#tpu.dimension_semantics<parallel>, #tpu.dimension_semantics<parallel>], iteration_bounds = array<i64: 2, 2>, scalar_prefetch = 0 : i64, scratch_operands = 2 : i64, tpu.core_type = #tpu.core_type<tc>, window_params = [{}, {pipeline_mode = #tpu.pipeline_mode<synchronous>, transform_indices = @transform_1, window_bounds = array<i64: 7, 7, 128>}, {pipeline_mode = #tpu.pipeline_mode<synchronous>, transform_indices = @transform_2, window_bounds = array<i64: 1, 128>}, {pipeline_mode = #tpu.pipeline_mode<synchronous>, transform_indices = @transform_3, window_bounds = array<i64: 128, 128>}, {pipeline_mode = #tpu.pipeline_mode<synchronous>, transform_indices = @transform_4, window_bounds = array<i64: 1, 128>}, {pipeline_mode = #tpu.pipeline_mode<synchronous>, transform_indices = @transform_5, window_bounds = array<i64: 128, 128>}, {pipeline_mode = #tpu.pipeline_mode<synchronous>, transform_indices = @transform_6, window_bounds = array<i64: 1, 128>}, {transform_indices = @transform_7, window_bounds = array<i64: 1, 8, 16, 128>}]} {
    %c8_i32 = arith.constant 8 : i32
    %0 = arith.muli %arg1, %c8_i32 : i32
    %1 = tpu.assume_multiple %0, 8 : i32
    %c0_i32 = arith.constant 0 : i32
    %c0_i32_0 = arith.constant 0 : i32
    %c0_i32_1 = arith.constant 0 : i32
    %2 = tpu.memref_slice %arg2[%arg0, %1, %c0_i32_0, %c0_i32_1] : memref<2x22x24x128xf32, #tpu.memory_space<any>> -> memref<1x14x24x128xf32, #tpu.memory_space<any>>
    %3 = tpu.memref_squeeze %2 : memref<1x14x24x128xf32, #tpu.memory_space<any>> -> memref<14x24x128xf32, #tpu.memory_space<any>>
    %4 = tpu.memref_slice %arg11[%c0_i32] : memref<1x!tpu.dma_semaphore, #tpu.memory_space<semaphore_mem>> -> memref<1x!tpu.dma_semaphore, #tpu.memory_space<semaphore_mem>>
    %5 = tpu.memref_squeeze %4 : memref<1x!tpu.dma_semaphore, #tpu.memory_space<semaphore_mem>> -> memref<!tpu.dma_semaphore, #tpu.memory_space<semaphore_mem>>
    tpu.enqueue_dma source(%3 : memref<14x24x128xf32, #tpu.memory_space<any>>) target(%arg10 : memref<14x24x128xf32, #tpu.memory_space<vmem>>) target_semaphore(%5 : memref<!tpu.dma_semaphore, #tpu.memory_space<semaphore_mem>>)
    %c0_i32_2 = arith.constant 0 : i32
    %c0_i32_3 = arith.constant 0 : i32
    %c0_i32_4 = arith.constant 0 : i32
    %6 = tpu.memref_slice %arg2[%arg0, %1, %c0_i32_3, %c0_i32_4] : memref<2x22x24x128xf32, #tpu.memory_space<any>> -> memref<1x14x24x128xf32, #tpu.memory_space<any>>
    %7 = tpu.memref_squeeze %6 : memref<1x14x24x128xf32, #tpu.memory_space<any>> -> memref<14x24x128xf32, #tpu.memory_space<any>>
    %8 = tpu.memref_slice %arg11[%c0_i32_2] : memref<1x!tpu.dma_semaphore, #tpu.memory_space<semaphore_mem>> -> memref<1x!tpu.dma_semaphore, #tpu.memory_space<semaphore_mem>>
    %9 = tpu.memref_squeeze %8 : memref<1x!tpu.dma_semaphore, #tpu.memory_space<semaphore_mem>> -> memref<!tpu.dma_semaphore, #tpu.memory_space<semaphore_mem>>
    tpu.wait_dma2 semaphore(%9 : memref<!tpu.dma_semaphore, #tpu.memory_space<semaphore_mem>>) src(%7 : memref<14x24x128xf32, #tpu.memory_space<any>>) dst(%arg10 : memref<14x24x128xf32, #tpu.memory_space<vmem>>)
    %c0 = arith.constant 0 : index
    %c0_5 = arith.constant 0 : index
    %c0_6 = arith.constant 0 : index
    %10 = vector.load %arg10[%c0, %c0_5, %c0_6] : memref<14x24x128xf32, #tpu.memory_space<vmem>>, vector<14x24x128xf32>
    %c0_7 = arith.constant 0 : index
    %c0_8 = arith.constant 0 : index
    %c0_9 = arith.constant 0 : index
    %11 = vector.load %arg3[%c0_7, %c0_8, %c0_9] : memref<7x7x128xf32, #tpu.memory_space<vmem>>, vector<7x7x128xf32>
    %c0_10 = arith.constant 0 : index
    %c0_11 = arith.constant 0 : index
    %12 = vector.load %arg4[%c0_10, %c0_11] : memref<1x128xf32, #tpu.memory_space<vmem>>, vector<1x128xf32>
    %13 = vector.shape_cast %12 : vector<1x128xf32> to vector<128xf32>
    %14 = vector.extract_strided_slice %10 {offsets = [0, 0, 0], sizes = [14, 16, 128], strides = [1, 1, 1]} : vector<14x24x128xf32> to vector<14x16x128xf32>
    %15 = vector.extract_strided_slice %14 {offsets = [0, 0, 0], sizes = [8, 16, 128], strides = [1, 1, 1]} : vector<14x16x128xf32> to vector<8x16x128xf32>
    %16 = vector.extract_strided_slice %11 {offsets = [0, 0, 0], sizes = [1, 1, 128], strides = [1, 1, 1]} : vector<7x7x128xf32> to vector<1x1x128xf32>
    %17 = vector.shape_cast %16 : vector<1x1x128xf32> to vector<128xf32>
    %18 = vector.shape_cast %17 : vector<128xf32> to vector<1x1x128xf32>
    %19 = vector.broadcast %18 : vector<1x1x128xf32> to vector<8x16x128xf32>
    %20 = arith.mulf %15, %19 : vector<8x16x128xf32>
    %21 = vector.extract_strided_slice %14 {offsets = [1, 0, 0], sizes = [8, 16, 128], strides = [1, 1, 1]} : vector<14x16x128xf32> to vector<8x16x128xf32>
    %22 = vector.extract_strided_slice %11 {offsets = [1, 0, 0], sizes = [1, 1, 128], strides = [1, 1, 1]} : vector<7x7x128xf32> to vector<1x1x128xf32>
    %23 = vector.shape_cast %22 : vector<1x1x128xf32> to vector<128xf32>
    %24 = vector.shape_cast %23 : vector<128xf32> to vector<1x1x128xf32>
    %25 = vector.broadcast %24 : vector<1x1x128xf32> to vector<8x16x128xf32>
    %26 = arith.mulf %21, %25 : vector<8x16x128xf32>
    %27 = arith.addf %20, %26 : vector<8x16x128xf32>
    %28 = vector.extract_strided_slice %14 {offsets = [2, 0, 0], sizes = [8, 16, 128], strides = [1, 1, 1]} : vector<14x16x128xf32> to vector<8x16x128xf32>
    %29 = vector.extract_strided_slice %11 {offsets = [2, 0, 0], sizes = [1, 1, 128], strides = [1, 1, 1]} : vector<7x7x128xf32> to vector<1x1x128xf32>
    %30 = vector.shape_cast %29 : vector<1x1x128xf32> to vector<128xf32>
    %31 = vector.shape_cast %30 : vector<128xf32> to vector<1x1x128xf32>
    %32 = vector.broadcast %31 : vector<1x1x128xf32> to vector<8x16x128xf32>
    %33 = arith.mulf %28, %32 : vector<8x16x128xf32>
    %34 = arith.addf %27, %33 : vector<8x16x128xf32>
    %35 = vector.extract_strided_slice %14 {offsets = [3, 0, 0], sizes = [8, 16, 128], strides = [1, 1, 1]} : vector<14x16x128xf32> to vector<8x16x128xf32>
    %36 = vector.extract_strided_slice %11 {offsets = [3, 0, 0], sizes = [1, 1, 128], strides = [1, 1, 1]} : vector<7x7x128xf32> to vector<1x1x128xf32>
    %37 = vector.shape_cast %36 : vector<1x1x128xf32> to vector<128xf32>
    %38 = vector.shape_cast %37 : vector<128xf32> to vector<1x1x128xf32>
    %39 = vector.broadcast %38 : vector<1x1x128xf32> to vector<8x16x128xf32>
    %40 = arith.mulf %35, %39 : vector<8x16x128xf32>
    %41 = arith.addf %34, %40 : vector<8x16x128xf32>
    %42 = vector.extract_strided_slice %14 {offsets = [4, 0, 0], sizes = [8, 16, 128], strides = [1, 1, 1]} : vector<14x16x128xf32> to vector<8x16x128xf32>
    %43 = vector.extract_strided_slice %11 {offsets = [4, 0, 0], sizes = [1, 1, 128], strides = [1, 1, 1]} : vector<7x7x128xf32> to vector<1x1x128xf32>
    %44 = vector.shape_cast %43 : vector<1x1x128xf32> to vector<128xf32>
    %45 = vector.shape_cast %44 : vector<128xf32> to vector<1x1x128xf32>
    %46 = vector.broadcast %45 : vector<1x1x128xf32> to vector<8x16x128xf32>
    %47 = arith.mulf %42, %46 : vector<8x16x128xf32>
    %48 = arith.addf %41, %47 : vector<8x16x128xf32>
    %49 = vector.extract_strided_slice %14 {offsets = [5, 0, 0], sizes = [8, 16, 128], strides = [1, 1, 1]} : vector<14x16x128xf32> to vector<8x16x128xf32>
    %50 = vector.extract_strided_slice %11 {offsets = [5, 0, 0], sizes = [1, 1, 128], strides = [1, 1, 1]} : vector<7x7x128xf32> to vector<1x1x128xf32>
    %51 = vector.shape_cast %50 : vector<1x1x128xf32> to vector<128xf32>
    %52 = vector.shape_cast %51 : vector<128xf32> to vector<1x1x128xf32>
    %53 = vector.broadcast %52 : vector<1x1x128xf32> to vector<8x16x128xf32>
    %54 = arith.mulf %49, %53 : vector<8x16x128xf32>
    %55 = arith.addf %48, %54 : vector<8x16x128xf32>
    %56 = vector.extract_strided_slice %14 {offsets = [6, 0, 0], sizes = [8, 16, 128], strides = [1, 1, 1]} : vector<14x16x128xf32> to vector<8x16x128xf32>
    %57 = vector.extract_strided_slice %11 {offsets = [6, 0, 0], sizes = [1, 1, 128], strides = [1, 1, 1]} : vector<7x7x128xf32> to vector<1x1x128xf32>
    %58 = vector.shape_cast %57 : vector<1x1x128xf32> to vector<128xf32>
    %59 = vector.shape_cast %58 : vector<128xf32> to vector<1x1x128xf32>
    %60 = vector.broadcast %59 : vector<1x1x128xf32> to vector<8x16x128xf32>
    %61 = arith.mulf %56, %60 : vector<8x16x128xf32>
    %62 = arith.addf %55, %61 : vector<8x16x128xf32>
    %63 = vector.shape_cast %13 : vector<128xf32> to vector<1x1x128xf32>
    %64 = vector.broadcast %63 : vector<1x1x128xf32> to vector<8x16x128xf32>
    %65 = arith.addf %64, %62 : vector<8x16x128xf32>
    %66 = vector.extract_strided_slice %10 {offsets = [0, 1, 0], sizes = [14, 16, 128], strides = [1, 1, 1]} : vector<14x24x128xf32> to vector<14x16x128xf32>
    %67 = vector.extract_strided_slice %66 {offsets = [0, 0, 0], sizes = [8, 16, 128], strides = [1, 1, 1]} : vector<14x16x128xf32> to vector<8x16x128xf32>
    %68 = vector.extract_strided_slice %11 {offsets = [0, 1, 0], sizes = [1, 1, 128], strides = [1, 1, 1]} : vector<7x7x128xf32> to vector<1x1x128xf32>
    %69 = vector.shape_cast %68 : vector<1x1x128xf32> to vector<128xf32>
    %70 = vector.shape_cast %69 : vector<128xf32> to vector<1x1x128xf32>
    %71 = vector.broadcast %70 : vector<1x1x128xf32> to vector<8x16x128xf32>
    %72 = arith.mulf %67, %71 : vector<8x16x128xf32>
    %73 = vector.extract_strided_slice %66 {offsets = [1, 0, 0], sizes = [8, 16, 128], strides = [1, 1, 1]} : vector<14x16x128xf32> to vector<8x16x128xf32>
    %74 = vector.extract_strided_slice %11 {offsets = [1, 1, 0], sizes = [1, 1, 128], strides = [1, 1, 1]} : vector<7x7x128xf32> to vector<1x1x128xf32>
    %75 = vector.shape_cast %74 : vector<1x1x128xf32> to vector<128xf32>
    %76 = vector.shape_cast %75 : vector<128xf32> to vector<1x1x128xf32>
    %77 = vector.broadcast %76 : vector<1x1x128xf32> to vector<8x16x128xf32>
    %78 = arith.mulf %73, %77 : vector<8x16x128xf32>
    %79 = arith.addf %72, %78 : vector<8x16x128xf32>
    %80 = vector.extract_strided_slice %66 {offsets = [2, 0, 0], sizes = [8, 16, 128], strides = [1, 1, 1]} : vector<14x16x128xf32> to vector<8x16x128xf32>
    %81 = vector.extract_strided_slice %11 {offsets = [2, 1, 0], sizes = [1, 1, 128], strides = [1, 1, 1]} : vector<7x7x128xf32> to vector<1x1x128xf32>
    %82 = vector.shape_cast %81 : vector<1x1x128xf32> to vector<128xf32>
    %83 = vector.shape_cast %82 : vector<128xf32> to vector<1x1x128xf32>
    %84 = vector.broadcast %83 : vector<1x1x128xf32> to vector<8x16x128xf32>
    %85 = arith.mulf %80, %84 : vector<8x16x128xf32>
    %86 = arith.addf %79, %85 : vector<8x16x128xf32>
    %87 = vector.extract_strided_slice %66 {offsets = [3, 0, 0], sizes = [8, 16, 128], strides = [1, 1, 1]} : vector<14x16x128xf32> to vector<8x16x128xf32>
    %88 = vector.extract_strided_slice %11 {offsets = [3, 1, 0], sizes = [1, 1, 128], strides = [1, 1, 1]} : vector<7x7x128xf32> to vector<1x1x128xf32>
    %89 = vector.shape_cast %88 : vector<1x1x128xf32> to vector<128xf32>
    %90 = vector.shape_cast %89 : vector<128xf32> to vector<1x1x128xf32>
    %91 = vector.broadcast %90 : vector<1x1x128xf32> to vector<8x16x128xf32>
    %92 = arith.mulf %87, %91 : vector<8x16x128xf32>
    %93 = arith.addf %86, %92 : vector<8x16x128xf32>
    %94 = vector.extract_strided_slice %66 {offsets = [4, 0, 0], sizes = [8, 16, 128], strides = [1, 1, 1]} : vector<14x16x128xf32> to vector<8x16x128xf32>
    %95 = vector.extract_strided_slice %11 {offsets = [4, 1, 0], sizes = [1, 1, 128], strides = [1, 1, 1]} : vector<7x7x128xf32> to vector<1x1x128xf32>
    %96 = vector.shape_cast %95 : vector<1x1x128xf32> to vector<128xf32>
    %97 = vector.shape_cast %96 : vector<128xf32> to vector<1x1x128xf32>
    %98 = vector.broadcast %97 : vector<1x1x128xf32> to vector<8x16x128xf32>
    %99 = arith.mulf %94, %98 : vector<8x16x128xf32>
    %100 = arith.addf %93, %99 : vector<8x16x128xf32>
    %101 = vector.extract_strided_slice %66 {offsets = [5, 0, 0], sizes = [8, 16, 128], strides = [1, 1, 1]} : vector<14x16x128xf32> to vector<8x16x128xf32>
    %102 = vector.extract_strided_slice %11 {offsets = [5, 1, 0], sizes = [1, 1, 128], strides = [1, 1, 1]} : vector<7x7x128xf32> to vector<1x1x128xf32>
    %103 = vector.shape_cast %102 : vector<1x1x128xf32> to vector<128xf32>
    %104 = vector.shape_cast %103 : vector<128xf32> to vector<1x1x128xf32>
    %105 = vector.broadcast %104 : vector<1x1x128xf32> to vector<8x16x128xf32>
    %106 = arith.mulf %101, %105 : vector<8x16x128xf32>
    %107 = arith.addf %100, %106 : vector<8x16x128xf32>
    %108 = vector.extract_strided_slice %66 {offsets = [6, 0, 0], sizes = [8, 16, 128], strides = [1, 1, 1]} : vector<14x16x128xf32> to vector<8x16x128xf32>
    %109 = vector.extract_strided_slice %11 {offsets = [6, 1, 0], sizes = [1, 1, 128], strides = [1, 1, 1]} : vector<7x7x128xf32> to vector<1x1x128xf32>
    %110 = vector.shape_cast %109 : vector<1x1x128xf32> to vector<128xf32>
    %111 = vector.shape_cast %110 : vector<128xf32> to vector<1x1x128xf32>
    %112 = vector.broadcast %111 : vector<1x1x128xf32> to vector<8x16x128xf32>
    %113 = arith.mulf %108, %112 : vector<8x16x128xf32>
    %114 = arith.addf %107, %113 : vector<8x16x128xf32>
    %115 = arith.addf %65, %114 : vector<8x16x128xf32>
    %116 = vector.extract_strided_slice %10 {offsets = [0, 2, 0], sizes = [14, 16, 128], strides = [1, 1, 1]} : vector<14x24x128xf32> to vector<14x16x128xf32>
    %117 = vector.extract_strided_slice %116 {offsets = [0, 0, 0], sizes = [8, 16, 128], strides = [1, 1, 1]} : vector<14x16x128xf32> to vector<8x16x128xf32>
    %118 = vector.extract_strided_slice %11 {offsets = [0, 2, 0], sizes = [1, 1, 128], strides = [1, 1, 1]} : vector<7x7x128xf32> to vector<1x1x128xf32>
    %119 = vector.shape_cast %118 : vector<1x1x128xf32> to vector<128xf32>
    %120 = vector.shape_cast %119 : vector<128xf32> to vector<1x1x128xf32>
    %121 = vector.broadcast %120 : vector<1x1x128xf32> to vector<8x16x128xf32>
    %122 = arith.mulf %117, %121 : vector<8x16x128xf32>
    %123 = vector.extract_strided_slice %116 {offsets = [1, 0, 0], sizes = [8, 16, 128], strides = [1, 1, 1]} : vector<14x16x128xf32> to vector<8x16x128xf32>
    %124 = vector.extract_strided_slice %11 {offsets = [1, 2, 0], sizes = [1, 1, 128], strides = [1, 1, 1]} : vector<7x7x128xf32> to vector<1x1x128xf32>
    %125 = vector.shape_cast %124 : vector<1x1x128xf32> to vector<128xf32>
    %126 = vector.shape_cast %125 : vector<128xf32> to vector<1x1x128xf32>
    %127 = vector.broadcast %126 : vector<1x1x128xf32> to vector<8x16x128xf32>
    %128 = arith.mulf %123, %127 : vector<8x16x128xf32>
    %129 = arith.addf %122, %128 : vector<8x16x128xf32>
    %130 = vector.extract_strided_slice %116 {offsets = [2, 0, 0], sizes = [8, 16, 128], strides = [1, 1, 1]} : vector<14x16x128xf32> to vector<8x16x128xf32>
    %131 = vector.extract_strided_slice %11 {offsets = [2, 2, 0], sizes = [1, 1, 128], strides = [1, 1, 1]} : vector<7x7x128xf32> to vector<1x1x128xf32>
    %132 = vector.shape_cast %131 : vector<1x1x128xf32> to vector<128xf32>
    %133 = vector.shape_cast %132 : vector<128xf32> to vector<1x1x128xf32>
    %134 = vector.broadcast %133 : vector<1x1x128xf32> to vector<8x16x128xf32>
    %135 = arith.mulf %130, %134 : vector<8x16x128xf32>
    %136 = arith.addf %129, %135 : vector<8x16x128xf32>
    %137 = vector.extract_strided_slice %116 {offsets = [3, 0, 0], sizes = [8, 16, 128], strides = [1, 1, 1]} : vector<14x16x128xf32> to vector<8x16x128xf32>
    %138 = vector.extract_strided_slice %11 {offsets = [3, 2, 0], sizes = [1, 1, 128], strides = [1, 1, 1]} : vector<7x7x128xf32> to vector<1x1x128xf32>
    %139 = vector.shape_cast %138 : vector<1x1x128xf32> to vector<128xf32>
    %140 = vector.shape_cast %139 : vector<128xf32> to vector<1x1x128xf32>
    %141 = vector.broadcast %140 : vector<1x1x128xf32> to vector<8x16x128xf32>
    %142 = arith.mulf %137, %141 : vector<8x16x128xf32>
    %143 = arith.addf %136, %142 : vector<8x16x128xf32>
    %144 = vector.extract_strided_slice %116 {offsets = [4, 0, 0], sizes = [8, 16, 128], strides = [1, 1, 1]} : vector<14x16x128xf32> to vector<8x16x128xf32>
    %145 = vector.extract_strided_slice %11 {offsets = [4, 2, 0], sizes = [1, 1, 128], strides = [1, 1, 1]} : vector<7x7x128xf32> to vector<1x1x128xf32>
    %146 = vector.shape_cast %145 : vector<1x1x128xf32> to vector<128xf32>
    %147 = vector.shape_cast %146 : vector<128xf32> to vector<1x1x128xf32>
    %148 = vector.broadcast %147 : vector<1x1x128xf32> to vector<8x16x128xf32>
    %149 = arith.mulf %144, %148 : vector<8x16x128xf32>
    %150 = arith.addf %143, %149 : vector<8x16x128xf32>
    %151 = vector.extract_strided_slice %116 {offsets = [5, 0, 0], sizes = [8, 16, 128], strides = [1, 1, 1]} : vector<14x16x128xf32> to vector<8x16x128xf32>
    %152 = vector.extract_strided_slice %11 {offsets = [5, 2, 0], sizes = [1, 1, 128], strides = [1, 1, 1]} : vector<7x7x128xf32> to vector<1x1x128xf32>
    %153 = vector.shape_cast %152 : vector<1x1x128xf32> to vector<128xf32>
    %154 = vector.shape_cast %153 : vector<128xf32> to vector<1x1x128xf32>
    %155 = vector.broadcast %154 : vector<1x1x128xf32> to vector<8x16x128xf32>
    %156 = arith.mulf %151, %155 : vector<8x16x128xf32>
    %157 = arith.addf %150, %156 : vector<8x16x128xf32>
    %158 = vector.extract_strided_slice %116 {offsets = [6, 0, 0], sizes = [8, 16, 128], strides = [1, 1, 1]} : vector<14x16x128xf32> to vector<8x16x128xf32>
    %159 = vector.extract_strided_slice %11 {offsets = [6, 2, 0], sizes = [1, 1, 128], strides = [1, 1, 1]} : vector<7x7x128xf32> to vector<1x1x128xf32>
    %160 = vector.shape_cast %159 : vector<1x1x128xf32> to vector<128xf32>
    %161 = vector.shape_cast %160 : vector<128xf32> to vector<1x1x128xf32>
    %162 = vector.broadcast %161 : vector<1x1x128xf32> to vector<8x16x128xf32>
    %163 = arith.mulf %158, %162 : vector<8x16x128xf32>
    %164 = arith.addf %157, %163 : vector<8x16x128xf32>
    %165 = arith.addf %115, %164 : vector<8x16x128xf32>
    %166 = vector.extract_strided_slice %10 {offsets = [0, 3, 0], sizes = [14, 16, 128], strides = [1, 1, 1]} : vector<14x24x128xf32> to vector<14x16x128xf32>
    %167 = vector.extract_strided_slice %166 {offsets = [0, 0, 0], sizes = [8, 16, 128], strides = [1, 1, 1]} : vector<14x16x128xf32> to vector<8x16x128xf32>
    %168 = vector.extract_strided_slice %11 {offsets = [0, 3, 0], sizes = [1, 1, 128], strides = [1, 1, 1]} : vector<7x7x128xf32> to vector<1x1x128xf32>
    %169 = vector.shape_cast %168 : vector<1x1x128xf32> to vector<128xf32>
    %170 = vector.shape_cast %169 : vector<128xf32> to vector<1x1x128xf32>
    %171 = vector.broadcast %170 : vector<1x1x128xf32> to vector<8x16x128xf32>
    %172 = arith.mulf %167, %171 : vector<8x16x128xf32>
    %173 = vector.extract_strided_slice %166 {offsets = [1, 0, 0], sizes = [8, 16, 128], strides = [1, 1, 1]} : vector<14x16x128xf32> to vector<8x16x128xf32>
    %174 = vector.extract_strided_slice %11 {offsets = [1, 3, 0], sizes = [1, 1, 128], strides = [1, 1, 1]} : vector<7x7x128xf32> to vector<1x1x128xf32>
    %175 = vector.shape_cast %174 : vector<1x1x128xf32> to vector<128xf32>
    %176 = vector.shape_cast %175 : vector<128xf32> to vector<1x1x128xf32>
    %177 = vector.broadcast %176 : vector<1x1x128xf32> to vector<8x16x128xf32>
    %178 = arith.mulf %173, %177 : vector<8x16x128xf32>
    %179 = arith.addf %172, %178 : vector<8x16x128xf32>
    %180 = vector.extract_strided_slice %166 {offsets = [2, 0, 0], sizes = [8, 16, 128], strides = [1, 1, 1]} : vector<14x16x128xf32> to vector<8x16x128xf32>
    %181 = vector.extract_strided_slice %11 {offsets = [2, 3, 0], sizes = [1, 1, 128], strides = [1, 1, 1]} : vector<7x7x128xf32> to vector<1x1x128xf32>
    %182 = vector.shape_cast %181 : vector<1x1x128xf32> to vector<128xf32>
    %183 = vector.shape_cast %182 : vector<128xf32> to vector<1x1x128xf32>
    %184 = vector.broadcast %183 : vector<1x1x128xf32> to vector<8x16x128xf32>
    %185 = arith.mulf %180, %184 : vector<8x16x128xf32>
    %186 = arith.addf %179, %185 : vector<8x16x128xf32>
    %187 = vector.extract_strided_slice %166 {offsets = [3, 0, 0], sizes = [8, 16, 128], strides = [1, 1, 1]} : vector<14x16x128xf32> to vector<8x16x128xf32>
    %188 = vector.extract_strided_slice %11 {offsets = [3, 3, 0], sizes = [1, 1, 128], strides = [1, 1, 1]} : vector<7x7x128xf32> to vector<1x1x128xf32>
    %189 = vector.shape_cast %188 : vector<1x1x128xf32> to vector<128xf32>
    %190 = vector.shape_cast %189 : vector<128xf32> to vector<1x1x128xf32>
    %191 = vector.broadcast %190 : vector<1x1x128xf32> to vector<8x16x128xf32>
    %192 = arith.mulf %187, %191 : vector<8x16x128xf32>
    %193 = arith.addf %186, %192 : vector<8x16x128xf32>
    %194 = vector.extract_strided_slice %166 {offsets = [4, 0, 0], sizes = [8, 16, 128], strides = [1, 1, 1]} : vector<14x16x128xf32> to vector<8x16x128xf32>
    %195 = vector.extract_strided_slice %11 {offsets = [4, 3, 0], sizes = [1, 1, 128], strides = [1, 1, 1]} : vector<7x7x128xf32> to vector<1x1x128xf32>
    %196 = vector.shape_cast %195 : vector<1x1x128xf32> to vector<128xf32>
    %197 = vector.shape_cast %196 : vector<128xf32> to vector<1x1x128xf32>
    %198 = vector.broadcast %197 : vector<1x1x128xf32> to vector<8x16x128xf32>
    %199 = arith.mulf %194, %198 : vector<8x16x128xf32>
    %200 = arith.addf %193, %199 : vector<8x16x128xf32>
    %201 = vector.extract_strided_slice %166 {offsets = [5, 0, 0], sizes = [8, 16, 128], strides = [1, 1, 1]} : vector<14x16x128xf32> to vector<8x16x128xf32>
    %202 = vector.extract_strided_slice %11 {offsets = [5, 3, 0], sizes = [1, 1, 128], strides = [1, 1, 1]} : vector<7x7x128xf32> to vector<1x1x128xf32>
    %203 = vector.shape_cast %202 : vector<1x1x128xf32> to vector<128xf32>
    %204 = vector.shape_cast %203 : vector<128xf32> to vector<1x1x128xf32>
    %205 = vector.broadcast %204 : vector<1x1x128xf32> to vector<8x16x128xf32>
    %206 = arith.mulf %201, %205 : vector<8x16x128xf32>
    %207 = arith.addf %200, %206 : vector<8x16x128xf32>
    %208 = vector.extract_strided_slice %166 {offsets = [6, 0, 0], sizes = [8, 16, 128], strides = [1, 1, 1]} : vector<14x16x128xf32> to vector<8x16x128xf32>
    %209 = vector.extract_strided_slice %11 {offsets = [6, 3, 0], sizes = [1, 1, 128], strides = [1, 1, 1]} : vector<7x7x128xf32> to vector<1x1x128xf32>
    %210 = vector.shape_cast %209 : vector<1x1x128xf32> to vector<128xf32>
    %211 = vector.shape_cast %210 : vector<128xf32> to vector<1x1x128xf32>
    %212 = vector.broadcast %211 : vector<1x1x128xf32> to vector<8x16x128xf32>
    %213 = arith.mulf %208, %212 : vector<8x16x128xf32>
    %214 = arith.addf %207, %213 : vector<8x16x128xf32>
    %215 = arith.addf %165, %214 : vector<8x16x128xf32>
    %216 = vector.extract_strided_slice %10 {offsets = [0, 4, 0], sizes = [14, 16, 128], strides = [1, 1, 1]} : vector<14x24x128xf32> to vector<14x16x128xf32>
    %217 = vector.extract_strided_slice %216 {offsets = [0, 0, 0], sizes = [8, 16, 128], strides = [1, 1, 1]} : vector<14x16x128xf32> to vector<8x16x128xf32>
    %218 = vector.extract_strided_slice %11 {offsets = [0, 4, 0], sizes = [1, 1, 128], strides = [1, 1, 1]} : vector<7x7x128xf32> to vector<1x1x128xf32>
    %219 = vector.shape_cast %218 : vector<1x1x128xf32> to vector<128xf32>
    %220 = vector.shape_cast %219 : vector<128xf32> to vector<1x1x128xf32>
    %221 = vector.broadcast %220 : vector<1x1x128xf32> to vector<8x16x128xf32>
    %222 = arith.mulf %217, %221 : vector<8x16x128xf32>
    %223 = vector.extract_strided_slice %216 {offsets = [1, 0, 0], sizes = [8, 16, 128], strides = [1, 1, 1]} : vector<14x16x128xf32> to vector<8x16x128xf32>
    %224 = vector.extract_strided_slice %11 {offsets = [1, 4, 0], sizes = [1, 1, 128], strides = [1, 1, 1]} : vector<7x7x128xf32> to vector<1x1x128xf32>
    %225 = vector.shape_cast %224 : vector<1x1x128xf32> to vector<128xf32>
    %226 = vector.shape_cast %225 : vector<128xf32> to vector<1x1x128xf32>
    %227 = vector.broadcast %226 : vector<1x1x128xf32> to vector<8x16x128xf32>
    %228 = arith.mulf %223, %227 : vector<8x16x128xf32>
    %229 = arith.addf %222, %228 : vector<8x16x128xf32>
    %230 = vector.extract_strided_slice %216 {offsets = [2, 0, 0], sizes = [8, 16, 128], strides = [1, 1, 1]} : vector<14x16x128xf32> to vector<8x16x128xf32>
    %231 = vector.extract_strided_slice %11 {offsets = [2, 4, 0], sizes = [1, 1, 128], strides = [1, 1, 1]} : vector<7x7x128xf32> to vector<1x1x128xf32>
    %232 = vector.shape_cast %231 : vector<1x1x128xf32> to vector<128xf32>
    %233 = vector.shape_cast %232 : vector<128xf32> to vector<1x1x128xf32>
    %234 = vector.broadcast %233 : vector<1x1x128xf32> to vector<8x16x128xf32>
    %235 = arith.mulf %230, %234 : vector<8x16x128xf32>
    %236 = arith.addf %229, %235 : vector<8x16x128xf32>
    %237 = vector.extract_strided_slice %216 {offsets = [3, 0, 0], sizes = [8, 16, 128], strides = [1, 1, 1]} : vector<14x16x128xf32> to vector<8x16x128xf32>
    %238 = vector.extract_strided_slice %11 {offsets = [3, 4, 0], sizes = [1, 1, 128], strides = [1, 1, 1]} : vector<7x7x128xf32> to vector<1x1x128xf32>
    %239 = vector.shape_cast %238 : vector<1x1x128xf32> to vector<128xf32>
    %240 = vector.shape_cast %239 : vector<128xf32> to vector<1x1x128xf32>
    %241 = vector.broadcast %240 : vector<1x1x128xf32> to vector<8x16x128xf32>
    %242 = arith.mulf %237, %241 : vector<8x16x128xf32>
    %243 = arith.addf %236, %242 : vector<8x16x128xf32>
    %244 = vector.extract_strided_slice %216 {offsets = [4, 0, 0], sizes = [8, 16, 128], strides = [1, 1, 1]} : vector<14x16x128xf32> to vector<8x16x128xf32>
    %245 = vector.extract_strided_slice %11 {offsets = [4, 4, 0], sizes = [1, 1, 128], strides = [1, 1, 1]} : vector<7x7x128xf32> to vector<1x1x128xf32>
    %246 = vector.shape_cast %245 : vector<1x1x128xf32> to vector<128xf32>
    %247 = vector.shape_cast %246 : vector<128xf32> to vector<1x1x128xf32>
    %248 = vector.broadcast %247 : vector<1x1x128xf32> to vector<8x16x128xf32>
    %249 = arith.mulf %244, %248 : vector<8x16x128xf32>
    %250 = arith.addf %243, %249 : vector<8x16x128xf32>
    %251 = vector.extract_strided_slice %216 {offsets = [5, 0, 0], sizes = [8, 16, 128], strides = [1, 1, 1]} : vector<14x16x128xf32> to vector<8x16x128xf32>
    %252 = vector.extract_strided_slice %11 {offsets = [5, 4, 0], sizes = [1, 1, 128], strides = [1, 1, 1]} : vector<7x7x128xf32> to vector<1x1x128xf32>
    %253 = vector.shape_cast %252 : vector<1x1x128xf32> to vector<128xf32>
    %254 = vector.shape_cast %253 : vector<128xf32> to vector<1x1x128xf32>
    %255 = vector.broadcast %254 : vector<1x1x128xf32> to vector<8x16x128xf32>
    %256 = arith.mulf %251, %255 : vector<8x16x128xf32>
    %257 = arith.addf %250, %256 : vector<8x16x128xf32>
    %258 = vector.extract_strided_slice %216 {offsets = [6, 0, 0], sizes = [8, 16, 128], strides = [1, 1, 1]} : vector<14x16x128xf32> to vector<8x16x128xf32>
    %259 = vector.extract_strided_slice %11 {offsets = [6, 4, 0], sizes = [1, 1, 128], strides = [1, 1, 1]} : vector<7x7x128xf32> to vector<1x1x128xf32>
    %260 = vector.shape_cast %259 : vector<1x1x128xf32> to vector<128xf32>
    %261 = vector.shape_cast %260 : vector<128xf32> to vector<1x1x128xf32>
    %262 = vector.broadcast %261 : vector<1x1x128xf32> to vector<8x16x128xf32>
    %263 = arith.mulf %258, %262 : vector<8x16x128xf32>
    %264 = arith.addf %257, %263 : vector<8x16x128xf32>
    %265 = arith.addf %215, %264 : vector<8x16x128xf32>
    %266 = vector.extract_strided_slice %10 {offsets = [0, 5, 0], sizes = [14, 16, 128], strides = [1, 1, 1]} : vector<14x24x128xf32> to vector<14x16x128xf32>
    %267 = vector.extract_strided_slice %266 {offsets = [0, 0, 0], sizes = [8, 16, 128], strides = [1, 1, 1]} : vector<14x16x128xf32> to vector<8x16x128xf32>
    %268 = vector.extract_strided_slice %11 {offsets = [0, 5, 0], sizes = [1, 1, 128], strides = [1, 1, 1]} : vector<7x7x128xf32> to vector<1x1x128xf32>
    %269 = vector.shape_cast %268 : vector<1x1x128xf32> to vector<128xf32>
    %270 = vector.shape_cast %269 : vector<128xf32> to vector<1x1x128xf32>
    %271 = vector.broadcast %270 : vector<1x1x128xf32> to vector<8x16x128xf32>
    %272 = arith.mulf %267, %271 : vector<8x16x128xf32>
    %273 = vector.extract_strided_slice %266 {offsets = [1, 0, 0], sizes = [8, 16, 128], strides = [1, 1, 1]} : vector<14x16x128xf32> to vector<8x16x128xf32>
    %274 = vector.extract_strided_slice %11 {offsets = [1, 5, 0], sizes = [1, 1, 128], strides = [1, 1, 1]} : vector<7x7x128xf32> to vector<1x1x128xf32>
    %275 = vector.shape_cast %274 : vector<1x1x128xf32> to vector<128xf32>
    %276 = vector.shape_cast %275 : vector<128xf32> to vector<1x1x128xf32>
    %277 = vector.broadcast %276 : vector<1x1x128xf32> to vector<8x16x128xf32>
    %278 = arith.mulf %273, %277 : vector<8x16x128xf32>
    %279 = arith.addf %272, %278 : vector<8x16x128xf32>
    %280 = vector.extract_strided_slice %266 {offsets = [2, 0, 0], sizes = [8, 16, 128], strides = [1, 1, 1]} : vector<14x16x128xf32> to vector<8x16x128xf32>
    %281 = vector.extract_strided_slice %11 {offsets = [2, 5, 0], sizes = [1, 1, 128], strides = [1, 1, 1]} : vector<7x7x128xf32> to vector<1x1x128xf32>
    %282 = vector.shape_cast %281 : vector<1x1x128xf32> to vector<128xf32>
    %283 = vector.shape_cast %282 : vector<128xf32> to vector<1x1x128xf32>
    %284 = vector.broadcast %283 : vector<1x1x128xf32> to vector<8x16x128xf32>
    %285 = arith.mulf %280, %284 : vector<8x16x128xf32>
    %286 = arith.addf %279, %285 : vector<8x16x128xf32>
    %287 = vector.extract_strided_slice %266 {offsets = [3, 0, 0], sizes = [8, 16, 128], strides = [1, 1, 1]} : vector<14x16x128xf32> to vector<8x16x128xf32>
    %288 = vector.extract_strided_slice %11 {offsets = [3, 5, 0], sizes = [1, 1, 128], strides = [1, 1, 1]} : vector<7x7x128xf32> to vector<1x1x128xf32>
    %289 = vector.shape_cast %288 : vector<1x1x128xf32> to vector<128xf32>
    %290 = vector.shape_cast %289 : vector<128xf32> to vector<1x1x128xf32>
    %291 = vector.broadcast %290 : vector<1x1x128xf32> to vector<8x16x128xf32>
    %292 = arith.mulf %287, %291 : vector<8x16x128xf32>
    %293 = arith.addf %286, %292 : vector<8x16x128xf32>
    %294 = vector.extract_strided_slice %266 {offsets = [4, 0, 0], sizes = [8, 16, 128], strides = [1, 1, 1]} : vector<14x16x128xf32> to vector<8x16x128xf32>
    %295 = vector.extract_strided_slice %11 {offsets = [4, 5, 0], sizes = [1, 1, 128], strides = [1, 1, 1]} : vector<7x7x128xf32> to vector<1x1x128xf32>
    %296 = vector.shape_cast %295 : vector<1x1x128xf32> to vector<128xf32>
    %297 = vector.shape_cast %296 : vector<128xf32> to vector<1x1x128xf32>
    %298 = vector.broadcast %297 : vector<1x1x128xf32> to vector<8x16x128xf32>
    %299 = arith.mulf %294, %298 : vector<8x16x128xf32>
    %300 = arith.addf %293, %299 : vector<8x16x128xf32>
    %301 = vector.extract_strided_slice %266 {offsets = [5, 0, 0], sizes = [8, 16, 128], strides = [1, 1, 1]} : vector<14x16x128xf32> to vector<8x16x128xf32>
    %302 = vector.extract_strided_slice %11 {offsets = [5, 5, 0], sizes = [1, 1, 128], strides = [1, 1, 1]} : vector<7x7x128xf32> to vector<1x1x128xf32>
    %303 = vector.shape_cast %302 : vector<1x1x128xf32> to vector<128xf32>
    %304 = vector.shape_cast %303 : vector<128xf32> to vector<1x1x128xf32>
    %305 = vector.broadcast %304 : vector<1x1x128xf32> to vector<8x16x128xf32>
    %306 = arith.mulf %301, %305 : vector<8x16x128xf32>
    %307 = arith.addf %300, %306 : vector<8x16x128xf32>
    %308 = vector.extract_strided_slice %266 {offsets = [6, 0, 0], sizes = [8, 16, 128], strides = [1, 1, 1]} : vector<14x16x128xf32> to vector<8x16x128xf32>
    %309 = vector.extract_strided_slice %11 {offsets = [6, 5, 0], sizes = [1, 1, 128], strides = [1, 1, 1]} : vector<7x7x128xf32> to vector<1x1x128xf32>
    %310 = vector.shape_cast %309 : vector<1x1x128xf32> to vector<128xf32>
    %311 = vector.shape_cast %310 : vector<128xf32> to vector<1x1x128xf32>
    %312 = vector.broadcast %311 : vector<1x1x128xf32> to vector<8x16x128xf32>
    %313 = arith.mulf %308, %312 : vector<8x16x128xf32>
    %314 = arith.addf %307, %313 : vector<8x16x128xf32>
    %315 = arith.addf %265, %314 : vector<8x16x128xf32>
    %316 = vector.extract_strided_slice %10 {offsets = [0, 6, 0], sizes = [14, 16, 128], strides = [1, 1, 1]} : vector<14x24x128xf32> to vector<14x16x128xf32>
    %317 = vector.extract_strided_slice %316 {offsets = [0, 0, 0], sizes = [8, 16, 128], strides = [1, 1, 1]} : vector<14x16x128xf32> to vector<8x16x128xf32>
    %318 = vector.extract_strided_slice %11 {offsets = [0, 6, 0], sizes = [1, 1, 128], strides = [1, 1, 1]} : vector<7x7x128xf32> to vector<1x1x128xf32>
    %319 = vector.shape_cast %318 : vector<1x1x128xf32> to vector<128xf32>
    %320 = vector.shape_cast %319 : vector<128xf32> to vector<1x1x128xf32>
    %321 = vector.broadcast %320 : vector<1x1x128xf32> to vector<8x16x128xf32>
    %322 = arith.mulf %317, %321 : vector<8x16x128xf32>
    %323 = vector.extract_strided_slice %316 {offsets = [1, 0, 0], sizes = [8, 16, 128], strides = [1, 1, 1]} : vector<14x16x128xf32> to vector<8x16x128xf32>
    %324 = vector.extract_strided_slice %11 {offsets = [1, 6, 0], sizes = [1, 1, 128], strides = [1, 1, 1]} : vector<7x7x128xf32> to vector<1x1x128xf32>
    %325 = vector.shape_cast %324 : vector<1x1x128xf32> to vector<128xf32>
    %326 = vector.shape_cast %325 : vector<128xf32> to vector<1x1x128xf32>
    %327 = vector.broadcast %326 : vector<1x1x128xf32> to vector<8x16x128xf32>
    %328 = arith.mulf %323, %327 : vector<8x16x128xf32>
    %329 = arith.addf %322, %328 : vector<8x16x128xf32>
    %330 = vector.extract_strided_slice %316 {offsets = [2, 0, 0], sizes = [8, 16, 128], strides = [1, 1, 1]} : vector<14x16x128xf32> to vector<8x16x128xf32>
    %331 = vector.extract_strided_slice %11 {offsets = [2, 6, 0], sizes = [1, 1, 128], strides = [1, 1, 1]} : vector<7x7x128xf32> to vector<1x1x128xf32>
    %332 = vector.shape_cast %331 : vector<1x1x128xf32> to vector<128xf32>
    %333 = vector.shape_cast %332 : vector<128xf32> to vector<1x1x128xf32>
    %334 = vector.broadcast %333 : vector<1x1x128xf32> to vector<8x16x128xf32>
    %335 = arith.mulf %330, %334 : vector<8x16x128xf32>
    %336 = arith.addf %329, %335 : vector<8x16x128xf32>
    %337 = vector.extract_strided_slice %316 {offsets = [3, 0, 0], sizes = [8, 16, 128], strides = [1, 1, 1]} : vector<14x16x128xf32> to vector<8x16x128xf32>
    %338 = vector.extract_strided_slice %11 {offsets = [3, 6, 0], sizes = [1, 1, 128], strides = [1, 1, 1]} : vector<7x7x128xf32> to vector<1x1x128xf32>
    %339 = vector.shape_cast %338 : vector<1x1x128xf32> to vector<128xf32>
    %340 = vector.shape_cast %339 : vector<128xf32> to vector<1x1x128xf32>
    %341 = vector.broadcast %340 : vector<1x1x128xf32> to vector<8x16x128xf32>
    %342 = arith.mulf %337, %341 : vector<8x16x128xf32>
    %343 = arith.addf %336, %342 : vector<8x16x128xf32>
    %344 = vector.extract_strided_slice %316 {offsets = [4, 0, 0], sizes = [8, 16, 128], strides = [1, 1, 1]} : vector<14x16x128xf32> to vector<8x16x128xf32>
    %345 = vector.extract_strided_slice %11 {offsets = [4, 6, 0], sizes = [1, 1, 128], strides = [1, 1, 1]} : vector<7x7x128xf32> to vector<1x1x128xf32>
    %346 = vector.shape_cast %345 : vector<1x1x128xf32> to vector<128xf32>
    %347 = vector.shape_cast %346 : vector<128xf32> to vector<1x1x128xf32>
    %348 = vector.broadcast %347 : vector<1x1x128xf32> to vector<8x16x128xf32>
    %349 = arith.mulf %344, %348 : vector<8x16x128xf32>
    %350 = arith.addf %343, %349 : vector<8x16x128xf32>
    %351 = vector.extract_strided_slice %316 {offsets = [5, 0, 0], sizes = [8, 16, 128], strides = [1, 1, 1]} : vector<14x16x128xf32> to vector<8x16x128xf32>
    %352 = vector.extract_strided_slice %11 {offsets = [5, 6, 0], sizes = [1, 1, 128], strides = [1, 1, 1]} : vector<7x7x128xf32> to vector<1x1x128xf32>
    %353 = vector.shape_cast %352 : vector<1x1x128xf32> to vector<128xf32>
    %354 = vector.shape_cast %353 : vector<128xf32> to vector<1x1x128xf32>
    %355 = vector.broadcast %354 : vector<1x1x128xf32> to vector<8x16x128xf32>
    %356 = arith.mulf %351, %355 : vector<8x16x128xf32>
    %357 = arith.addf %350, %356 : vector<8x16x128xf32>
    %358 = vector.extract_strided_slice %316 {offsets = [6, 0, 0], sizes = [8, 16, 128], strides = [1, 1, 1]} : vector<14x16x128xf32> to vector<8x16x128xf32>
    %359 = vector.extract_strided_slice %11 {offsets = [6, 6, 0], sizes = [1, 1, 128], strides = [1, 1, 1]} : vector<7x7x128xf32> to vector<1x1x128xf32>
    %360 = vector.shape_cast %359 : vector<1x1x128xf32> to vector<128xf32>
    %361 = vector.shape_cast %360 : vector<128xf32> to vector<1x1x128xf32>
    %362 = vector.broadcast %361 : vector<1x1x128xf32> to vector<8x16x128xf32>
    %363 = arith.mulf %358, %362 : vector<8x16x128xf32>
    %364 = arith.addf %357, %363 : vector<8x16x128xf32>
    %365 = arith.addf %315, %364 : vector<8x16x128xf32>
    %cst = arith.constant dense<0.000000e+00> : vector<8x16xf32>
    %366 = vector.multi_reduction <add>, %365, %cst [2] : vector<8x16x128xf32> to vector<8x16xf32>
    %367 = vector.shape_cast %366 : vector<8x16xf32> to vector<8x16x1xf32>
    %cst_12 = arith.constant 3.125000e-02 : f32
    %368 = vector.broadcast %cst_12 : f32 to vector<8x16x1xf32>
    %369 = arith.mulf %367, %368 : vector<8x16x1xf32>
    %370 = vector.broadcast %369 : vector<8x16x1xf32> to vector<8x16x128xf32>
    %371 = arith.subf %365, %370 : vector<8x16x128xf32>
    %372 = tpu.iota {dimensions = array<i32: 2>} : vector<1x1x128xi32>
    %c32_i32 = arith.constant 32 : i32
    %373 = vector.broadcast %c32_i32 : i32 to vector<1x1x128xi32>
    %374 = arith.cmpi slt, %372, %373 : vector<1x1x128xi32>
    %375 = arith.extui %374 : vector<1x1x128xi1> to vector<1x1x128xi32>
    %376 = arith.sitofp %375 : vector<1x1x128xi32> to vector<1x1x128xf32>
    %377 = vector.broadcast %376 : vector<1x1x128xf32> to vector<8x16x128xf32>
    %378 = arith.mulf %371, %377 : vector<8x16x128xf32>
    %379 = arith.mulf %378, %378 : vector<8x16x128xf32>
    %cst_13 = arith.constant dense<0.000000e+00> : vector<8x16xf32>
    %380 = vector.multi_reduction <add>, %379, %cst_13 [2] : vector<8x16x128xf32> to vector<8x16xf32>
    %381 = vector.shape_cast %380 : vector<8x16xf32> to vector<8x16x1xf32>
    %cst_14 = arith.constant 3.125000e-02 : f32
    %382 = vector.broadcast %cst_14 : f32 to vector<8x16x1xf32>
    %383 = arith.mulf %381, %382 : vector<8x16x1xf32>
    %cst_15 = arith.constant 9.99999997E-7 : f32
    %384 = vector.broadcast %cst_15 : f32 to vector<8x16x1xf32>
    %385 = arith.addf %383, %384 : vector<8x16x1xf32>
    %386 = math.rsqrt %385 : vector<8x16x1xf32>
    %387 = vector.broadcast %386 : vector<8x16x1xf32> to vector<8x16x128xf32>
    %388 = arith.mulf %378, %387 : vector<8x16x128xf32>
    %389 = vector.shape_cast %388 : vector<8x16x128xf32> to vector<128x128xf32>
    %390 = arith.truncf %389 : vector<128x128xf32> to vector<128x128xbf16>
    %c0_16 = arith.constant 0 : index
    %c0_17 = arith.constant 0 : index
    %391 = vector.load %arg5[%c0_16, %c0_17] : memref<128x128xbf16, #tpu.memory_space<vmem>>, vector<128x128xbf16>
    %cst_18 = arith.constant dense<0.000000e+00> : vector<128x128xf32>
    %392 = tpu.matmul %390, %391, %cst_18 {dimension_numbers = #tpu.dot_dimension_numbers<[1], [0], [0], [1], [0, 0, 1, 1], [], []>} : vector<128x128xbf16>, vector<128x128xbf16>, vector<128x128xf32> -> vector<128x128xf32>
    %c0_19 = arith.constant 0 : index
    %c0_20 = arith.constant 0 : index
    %393 = vector.load %arg6[%c0_19, %c0_20] : memref<1x128xf32, #tpu.memory_space<vmem>>, vector<1x128xf32>
    %394 = vector.shape_cast %393 : vector<1x128xf32> to vector<128xf32>
    %395 = vector.shape_cast %394 : vector<128xf32> to vector<1x128xf32>
    %396 = vector.broadcast %395 : vector<1x128xf32> to vector<128x128xf32>
    %397 = arith.addf %392, %396 : vector<128x128xf32>
    %398 = arith.mulf %397, %397 : vector<128x128xf32>
    %399 = arith.mulf %397, %398 : vector<128x128xf32>
    %cst_21 = arith.constant 4.471500e-02 : f32
    %400 = vector.broadcast %cst_21 : f32 to vector<128x128xf32>
    %401 = arith.mulf %400, %399 : vector<128x128xf32>
    %402 = arith.addf %397, %401 : vector<128x128xf32>
    %cst_22 = arith.constant 0.797884583 : f32
    %403 = vector.broadcast %cst_22 : f32 to vector<128x128xf32>
    %404 = arith.mulf %403, %402 : vector<128x128xf32>
    %405 = math.tanh %404 : vector<128x128xf32>
    %cst_23 = arith.constant 1.000000e+00 : f32
    %406 = vector.broadcast %cst_23 : f32 to vector<128x128xf32>
    %407 = arith.addf %406, %405 : vector<128x128xf32>
    %cst_24 = arith.constant 5.000000e-01 : f32
    %408 = vector.broadcast %cst_24 : f32 to vector<128x128xf32>
    %409 = arith.mulf %408, %407 : vector<128x128xf32>
    %410 = arith.mulf %397, %409 : vector<128x128xf32>
    %411 = arith.truncf %410 : vector<128x128xf32> to vector<128x128xbf16>
    %c0_25 = arith.constant 0 : index
    %c0_26 = arith.constant 0 : index
    %412 = vector.load %arg7[%c0_25, %c0_26] : memref<128x128xbf16, #tpu.memory_space<vmem>>, vector<128x128xbf16>
    %cst_27 = arith.constant dense<0.000000e+00> : vector<128x128xf32>
    %413 = tpu.matmul %411, %412, %cst_27 {dimension_numbers = #tpu.dot_dimension_numbers<[1], [0], [0], [1], [0, 0, 1, 1], [], []>} : vector<128x128xbf16>, vector<128x128xbf16>, vector<128x128xf32> -> vector<128x128xf32>
    %c0_28 = arith.constant 0 : index
    %c0_29 = arith.constant 0 : index
    %414 = vector.load %arg8[%c0_28, %c0_29] : memref<1x128xf32, #tpu.memory_space<vmem>>, vector<1x128xf32>
    %415 = vector.shape_cast %414 : vector<1x128xf32> to vector<128xf32>
    %416 = vector.shape_cast %415 : vector<128xf32> to vector<1x128xf32>
    %417 = vector.broadcast %416 : vector<1x128xf32> to vector<128x128xf32>
    %418 = arith.addf %413, %417 : vector<128x128xf32>
    %419 = vector.shape_cast %418 : vector<128x128xf32> to vector<8x16x128xf32>
    %c3 = arith.constant 3 : index
    %c3_30 = arith.constant 3 : index
    %c0_31 = arith.constant 0 : index
    %420 = vector.load %arg10[%c3, %c3_30, %c0_31] : memref<14x24x128xf32, #tpu.memory_space<vmem>>, vector<8x16x128xf32>
    %421 = arith.addf %420, %419 : vector<8x16x128xf32>
    %c0_32 = arith.constant 0 : index
    %c0_33 = arith.constant 0 : index
    %c0_34 = arith.constant 0 : index
    %c0_35 = arith.constant 0 : index
    %422 = vector.load %arg9[%c0_32, %c0_33, %c0_34, %c0_35] : memref<1x8x16x128xf32, #tpu.memory_space<vmem>>, vector<1x8x16x128xf32>
    %423 = vector.shape_cast %422 : vector<1x8x16x128xf32> to vector<8x16x128xf32>
    %424 = vector.shape_cast %421 : vector<8x16x128xf32> to vector<1x8x16x128xf32>
    tpu.vector_store %arg9[%c0_32, %c0_33, %c0_34, %c0_35], %424 {strides = array<i32>} : memref<1x8x16x128xf32, #tpu.memory_space<vmem>>, vector<1x8x16x128xf32>,
    return
  }
  func.func @transform_1(%arg0: i32, %arg1: i32) -> (i32, i32, i32) {
    %c0_i32 = arith.constant 0 : i32
    %c0_i32_0 = arith.constant 0 : i32
    %c0_i32_1 = arith.constant 0 : i32
    %c0_i32_2 = arith.constant 0 : i32
    return %c0_i32, %c0_i32_0, %c0_i32_1 : i32, i32, i32
  }
  func.func @transform_2(%arg0: i32, %arg1: i32) -> (i32, i32) {
    %c0_i32 = arith.constant 0 : i32
    %c0_i32_0 = arith.constant 0 : i32
    %c0_i32_1 = arith.constant 0 : i32
    return %c0_i32, %c0_i32_0 : i32, i32
  }
  func.func @transform_3(%arg0: i32, %arg1: i32) -> (i32, i32) {
    %c0_i32 = arith.constant 0 : i32
    %c0_i32_0 = arith.constant 0 : i32
    %c0_i32_1 = arith.constant 0 : i32
    return %c0_i32, %c0_i32_0 : i32, i32
  }
  func.func @transform_4(%arg0: i32, %arg1: i32) -> (i32, i32) {
    %c0_i32 = arith.constant 0 : i32
    %c0_i32_0 = arith.constant 0 : i32
    %c0_i32_1 = arith.constant 0 : i32
    return %c0_i32, %c0_i32_0 : i32, i32
  }
  func.func @transform_5(%arg0: i32, %arg1: i32) -> (i32, i32) {
    %c0_i32 = arith.constant 0 : i32
    %c0_i32_0 = arith.constant 0 : i32
    %c0_i32_1 = arith.constant 0 : i32
    return %c0_i32, %c0_i32_0 : i32, i32
  }
  func.func @transform_6(%arg0: i32, %arg1: i32) -> (i32, i32) {
    %c0_i32 = arith.constant 0 : i32
    %c0_i32_0 = arith.constant 0 : i32
    %c0_i32_1 = arith.constant 0 : i32
    return %c0_i32, %c0_i32_0 : i32, i32
  }
  func.func @transform_7(%arg0: i32, %arg1: i32) -> (i32, i32, i32, i32) {
    %c0_i32 = arith.constant 0 : i32
    %c0_i32_0 = arith.constant 0 : i32
    %c0_i32_1 = arith.constant 0 : i32
    return %arg0, %arg1, %c0_i32, %c0_i32_0 : i32, i32, i32, i32
  }
}

</mosaic_0001>

<bundles_post_ra>
// kernel: tpu_custom_call.1
= control target key start
LH: loop header
LB: loop body
LE: loop exit
PB: predicated region body
PF: predicated region fallthrough
CT: control target
= control target key end

     0   :  { %12 = vsyncpa [#allocation5], 0  ;;  %s8417_s0 = inlined_call_operand.hbm [shape: f32[2,22,24,128], index: 0, kind: input, shape index: {}]   ;;  %s8418_s1 = inlined_call_operand.hbm [shape: f32[7,7,128], index: 1, kind: input, shape index: {}]   ;;  %s8419_s2 = inlined_call_operand.vmem [shape: f32[1,128], index: 2, kind: input, shape index: {}]   ;;  %s8420_s3 = inlined_call_operand.hbm [shape: bf16[128,128], index: 3, kind: input, shape index: {}]   ;;  %s8421_s4 = inlined_call_operand.vmem [shape: f32[1,128], index: 4, kind: input, shape index: {}]   ;;  %s8422_s5 = inlined_call_operand.hbm [shape: bf16[128,128], index: 5, kind: input, shape index: {}]   ;;  %s8423_s6 = inlined_call_operand.vmem [shape: f32[1,128], index: 6, kind: input, shape index: {}]   ;;  %s8424_s7 = inlined_call_operand.hbm [shape: f32[2,16,16,128], index: 7, kind: output, shape index: {}]  }
   0x1   :  { %13 = vsyncpa [#allocation8], 0 }
   0x2   :  { %14 = vsyncpa [#allocation6], 0 }
   0x3   :  { %16 = vsyncpa [#allocation6 + $0x1], 0  ;;  %s4760_s24 = smov 0   ;;  %s4762_s25 = smov 0  }
   0x4   :  { %s4764_s26 = smov 0   ;;  %s4766_s27 = smov 0  }
   0x5   :  { %s4768_s28 = smov 0   ;;  %s4770_s29 = smov 0  }
   0x6   :  { %s4772_s30 = smov 0   ;;  %s4774_s8 = smov 0  }
   0x7 LB: > { %8918 = sst [smem:[#allocation19_spill]] %s4678_s24  ;;  %s4107_s9 = sadd.s32 4294967295, %s4706_s8   ;;  %s4706_s8 = sphi %s4774_s8, %s22_s8   ;;  %s4702_s30 = sphi %s4772_s30, %s9609_s30   ;;  %s4698_s29 = sphi %s4770_s29, %s9608_s29   ;;  %s4694_s28 = sphi %s4768_s28, %s9612_s28   ;;  %s4690_s27 = sphi %s4766_s27, %s9606_s27   ;;  %s4686_s26 = sphi %s4764_s26, %s9605_s26   ;;  %s4682_s25 = sphi %s4762_s25, %s9611_s25   ;;  %s4678_s24 = sphi %s4760_s24, %s9610_s24  }
   0x8   : > { %8919 = sst [smem:[#allocation20_spill]] %s4686_s26  ;;  %s4108_s10 = sadd.s32 4294967294, %s4706_s8  }
   0x9   : > { %8920 = sst [smem:[#allocation21_spill]] %s4698_s29  ;;  %s31_s11 = sadd.s32 1, %s4698_s29 }
   0xa   : > { %8921 = sst [smem:[#allocation22_spill]] %s4702_s30  ;;  %s34_s12 = sadd.s32 1, %s4702_s30 }
   0xb   : > { %p32_p0 = scmp.ge.s32.totalorder %s31_s11, 2  ;;  %s169_s13 = sadd.s32 1, %s4686_s26 }
   0xc   : > { %p179_p1 = scmp.ne.s32.totalorder %s4686_s26, %s4682_s25  ;;  %p180_p2 = scmp.eq.s32.totalorder %s4107_s9, 3 }
   0xd   : > { %s9614_s11 = smov (%p32_p0, %s31_s11), 0  ;;  %s9616_s12 = smov (!%p32_p0, %s34_s12), %s4702_s30 }
   0xe   : > { %8922 = sst [smem:[#allocation23_spill]] %s9614_s11  ;;  %s165_s14 = ssub.s32 %s4698_s29, %s9614_s11 }
   0xf   : > { %p4812_p3 = por %p180_p2, %p179_p1  ;;  %p36_p4 = scmp.ge.s32.totalorder %s9616_s12, 2 }
  0x10   : > { %p185_p5 = scmp.ne.s32.totalorder %s4682_s25, %s4678_s24  ;;  %p186_p6 = scmp.eq.s32.totalorder %s4108_s10, 3 }
  0x11   : > { %s8923_s15 = scalar_select %p4812_p3, 1, 0 }
  0x12   : > { %p4109_p7 = scmp.ge.s32.totalorder %s4706_s8, 1  ;;  %s9618_s12 = smov (%p36_p4, %s9616_s12), 0 }
  0x13   : > { %8924 = sst [smem:[#allocation24_spill]] %s9618_s12  ;;  %p4821_p8 = por %p186_p6, %p185_p5 }
  0x14   : > { %p193_p9 = scmp.lt.s32.totalorder %s4706_s8, 5  ;;  %s164_s17 = ssub.s32 %s4702_s30, %s9618_s12 }
  0x15   : > { %s8925_s16 = scalar_select %p4821_p8, 1, 0 }
  0x16   : > { %s166_s18 = sor.u32 %s165_s14, %s164_s17  ;;  %p4828_p10 = pnand %p4109_p7, %p193_p9 }
  0x17   : > { %8926 = sst [smem:[#allocation25_spill]] %s8925_s16  ;;  %p167_p11 = scmp.eq.s32.totalorder %s166_s18, 0 }
  0x18   : > { %s8927_s19 = scalar_select %p4828_p10, 1, 0 }
  0x19   : > { %p4832_p12 = scmp.eq.s32.totalorder %s4107_s9, 0  ;;  %p4260_p13 = pneg %p4828_p10 }
  0x1a   : > { %s4839_s21 = scalar_select %p167_p11, %s4686_s26, %s169_s13  }
  0x1b   : > { %s8928_s20 = scalar_select %p4832_p12, 1, 0 }
  0x1c   : > { %8929 = sst [smem:[#allocation26_spill]] %s4839_s21  ;;  %p4843_p0 = pnand %p4832_p12, %p4260_p13 }
  0x1d   : > { %s4708_s23 = smov [#allocation7]   ;;  %s4494_s9 = scalar_lea.hbm %s8420_s3, 1024 }
  0x1e   : > { %s221_s10 = sshll.u32 %s4708_s23, 4  ;;  %p4495_p1 = scmp.ne.s32.totalorder %s8420_s3, %s4494_s9  ;;  %s222_s10 = int_to_ptr.vmem [resolvable:$true] %s221_s10 }
  0x1f   : > { %p4855_p2 = pneg %p4843_p0  ;;  %p4501_p6 = scmp.lt.u32.totalorder %s4494_s9, %s8420_s3 }
  0x21   : > { %p4497_p4 = pnand %p4855_p2, %p4495_p1 }
  0x23   : > { %p4498_p5 = pneg %p4497_p4 }
  0x25   : > { %p4503_p7 = pnand %p4501_p6, %p4498_p5 }
  0x27   : > { %4506 = shalt.err (!%p4503_p7)
}
  0x28   : > { %s4507_s14 = scalar_lea.vmem %s222_s10, 1024  ;;  %p4515_p8 = scmp.lt.s32.totalorder %s222_s10, %s222_s10 }
  0x29   : > { %p4508_p9 = scmp.ne.s32.totalorder %s222_s10, %s4507_s14  ;;  %p4516_p3 = scmp.lt.s32.totalorder %s4507_s14, %s4507_s14 }
  0x2b   : > { %p4510_p11 = pnand %p4508_p9, %p4855_p2  ;;  %p4517_p12 = por %p4516_p3, %p4515_p8 }
  0x2d   : > { %p4511_p13 = pneg %p4510_p11 }
  0x2f   : > { %p4518_p10 = pnand %p4517_p12, %p4511_p13 }
  0x31   : > { %4521 = shalt.err (!%p4518_p10)
}
  0x32   : > { %s8436_s12 = smov 64   ;;  %s8437_s17 = smov 4  }
  0x33   : > { %4266 = dma.hbm_to_vmem [thread:$0]  (!%p4843_p0), %s8420_s3, 1024, %s222_s10, [#allocation8], %s8436_s12, %s8436_s12, %s8437_s17  }
  0x34   : > { %s4711_s18 = smov [#allocation4]   ;;  %s4522_s29 = scalar_lea.hbm %s8418_s1, 896 }
  0x35   : > { %s205_s23 = sshll.u32 %s4711_s18, 4  ;;  %p4523_p3 = scmp.ne.s32.totalorder %s8418_s1, %s4522_s29  ;;  %s206_s23 = int_to_ptr.vmem [resolvable:$true] %s205_s23 }
  0x36   : > { %p4529_p12 = scmp.lt.u32.totalorder %s4522_s29, %s8418_s1 }
  0x37   : > { %p4525_p8 = pnand %p4523_p3, %p4855_p2 }
  0x39   : > { %p4526_p10 = pneg %p4525_p8 }
  0x3b   : > { %p4531_p1 = pnand %p4529_p12, %p4526_p10 }
  0x3d   : > { %4534 = shalt.err (!%p4531_p1)
}
  0x3e   : > { %s4535_s10 = scalar_lea.vmem %s206_s23, 896  ;;  %p4543_p7 = scmp.lt.s32.totalorder %s206_s23, %s206_s23 }
  0x3f   : > { %p4536_p4 = scmp.ne.s32.totalorder %s206_s23, %s4535_s10  ;;  %p4544_p9 = scmp.lt.s32.totalorder %s4535_s10, %s4535_s10 }
  0x41   : > { %p4538_p5 = pnand %p4536_p4, %p4855_p2  ;;  %p4545_p11 = por %p4544_p9, %p4543_p7 }
  0x43   : > { %p4539_p6 = pneg %p4538_p5 }
  0x45   : > { %p4546_p13 = pnand %p4545_p11, %p4539_p6 }
  0x47   : > { %4549 = shalt.err (!%p4546_p13)
}
  0x48   : > { %s4712_s26 = smov 128   ;;  %s4713_s30 = smov 8  }
  0x49   : > { %4263 = dma.hbm_to_vmem [thread:$0]  (!%p4843_p0), %s8418_s1, 896, %s206_s23, [#allocation5], %s4712_s26, %s4712_s26, %s4713_s30  }
  0x4a   : > { %s4714_s16 = smov [#allocation9]   ;;  %s4550_s18 = scalar_lea.hbm %s8422_s5, 1024 }
  0x4b   : > { %s237_s21 = sshll.u32 %s4714_s16, 4  ;;  %p4551_p3 = scmp.ne.s32.totalorder %s8422_s5, %s4550_s18  ;;  %s238_s21 = int_to_ptr.vmem [resolvable:$true] %s237_s21 }
  0x4c   : > { %p4557_p12 = scmp.lt.u32.totalorder %s4550_s18, %s8422_s5 }
  0x4d   : > { %p4553_p8 = pnand %p4551_p3, %p4855_p2 }
  0x4f   : > { %p4554_p10 = pneg %p4553_p8 }
  0x51   : > { %p4559_p1 = pnand %p4557_p12, %p4554_p10 }
  0x53   : > { %4562 = shalt.err (!%p4559_p1)
}
  0x54   : > { %s4563_s23 = scalar_lea.vmem %s238_s21, 1024  ;;  %p4571_p7 = scmp.lt.s32.totalorder %s238_s21, %s238_s21 }
  0x55   : > { %p4564_p4 = scmp.ne.s32.totalorder %s238_s21, %s4563_s23  ;;  %p4572_p9 = scmp.lt.s32.totalorder %s4563_s23, %s4563_s23 }
  0x57   : > { %p4566_p5 = pnand %p4564_p4, %p4855_p2  ;;  %p4573_p11 = por %p4572_p9, %p4571_p7 }
  0x59   : > { %p4567_p6 = pneg %p4566_p5 }
  0x5b   : > { %p4574_p13 = pnand %p4573_p11, %p4567_p6 }
  0x5d   : > { %4577 = shalt.err (!%p4574_p13)
}
  0x5e   : > { %s8932_s26 = smov 4   ;;  %s8933_s30 = smov 64  }
  0x5f   : > { %4269 = dma.hbm_to_vmem [thread:$0]  (!%p4843_p0), %s8422_s5, 1024, %s238_s21, [#allocation8], %s8933_s30, %s8933_s30, %s8932_s26  }
  0x60   : > { %p8934_p3 = scmp.ne.s32.totalorder %s8927_s19, 0 }
  0x62   : > { %256 = sbr.rel (%p8934_p3) target bundleno = 1584 (0x630), region = 44 }
  0x69   : > { %p8935_p2 = scmp.ne.s32.totalorder %s8928_s20, 0 }
  0x6b   : > { %4663 = dma.done.wait (%p8935_p2), [#allocation5], 896  }
  0x6c   : > { %4665 = vsyncadd (%p8935_p2), [#allocation5], 4294966400 }
  0x6d   : > { %4667 = dma.done.wait (%p8935_p2), [#allocation8], 2048  }
  0x6e   : > { %4669 = vsyncadd (%p8935_p2), [#allocation8], 4294965248  ;;  %s286_s22 = sand.u32 1, %s4682_s25   ;;  %s4119_s13 = smul.u32 192, %s4690_s27 }
  0x6f   : > { %s4117_s19 = sshll.u32 %s286_s22, 7  ;;  %s293_s24 = smul.u32 528, %s4694_s28 }
  0x70   : > { %s4715_s16 = smov [#allocation2]   ;;  %s4580_s26 = scalar_lea.hbm %s8417_s0, 16896 }
  0x71   : > { %s294_s29 = sadd.s32 %s4119_s13, %s293_s24  ;;  %s304_s21 = sshll.u32 %s4715_s16, 4  ;;  %s305_s21 = int_to_ptr.vmem [resolvable:$true] %s304_s21 }
  0x72   : > { %s4120_s11 = sshll.u32 %s294_s29, 4 }
  0x73   : > { %s296_s14 = scalar_lea.hbm %s8417_s0, %s4120_s11 }
  0x74   : > { %s4578_s20 = scalar_lea.hbm %s296_s14, 5376  ;;  %p4581_p8 = scmp.lt.u32.totalorder %s296_s14, %s8417_s0 }
  0x75   : > { %p4579_p0 = scmp.ne.s32.totalorder %s296_s14, %s4578_s20  ;;  %p4582_p10 = scmp.lt.u32.totalorder %s4580_s26, %s4578_s20 }
  0x76   : > { %p4584_p1 = scmp.lt.u32.totalorder %s4578_s20, %s296_s14 }
  0x77   : > { %p4583_p12 = por %p4582_p10, %p4581_p8 }
  0x79   : > { %p4585_p4 = por %p4584_p1, %p4583_p12 }
  0x7b   : > { %p4586_p5 = pnand %p4585_p4, %p4579_p0 }
  0x7d   : > { %4589 = shalt.err (!%p4586_p5)  }
  0x7e   : > { %s4590_s17 = scalar_lea.vmem %s305_s21, 5376  ;;  %p4595_p7 = scmp.lt.s32.totalorder %s305_s21, %s305_s21 }
  0x7f   : > { %p4591_p6 = scmp.ne.s32.totalorder %s305_s21, %s4590_s17  ;;  %p4596_p9 = scmp.lt.s32.totalorder %s4590_s17, %s4590_s17 }
  0x81   : > { %p4597_p11 = por %p4596_p9, %p4595_p7 }
  0x83   : > { %p4598_p13 = pnand %p4597_p11, %p4591_p6 }
  0x85   : > { %4601 = shalt.err (!%p4598_p13)  }
  0x86   : > { %307 = dma.hbm_to_vmem [thread:$0]  %s296_s14, 5376, %s305_s21, [#allocation3] }
  0x87   : > { %s4937_s13 = scalar_lea.vmem [#allocation10], %s4117_s19 }
  0x88   : > { %4670 = dma.done.wait [#allocation3], 5376 }
  0x89   : > { %4671 = vsyncadd [#allocation3], 4294961920  ;;  %v8438_v0 = vlaneseq  ;;  %v4944_v6 = vld [vmem:[#allocation2] sm:$0xff]  ;;  %v4946_v7 = vld [vmem:[#allocation2 + $0x18] sm:$0xff]  ;;  %vm984_vm0 = vcmask 1046528   ;;  %vm1421_vm1 = vcmask 1045504  }
  0x8a   : > { %v4948_v8 = vld [vmem:[#allocation2 + $0x30] sm:$0xff]  ;;  %v4950_v9 = vld [vmem:[#allocation2 + $0x48] sm:$0xff]  ;;  %v4956_v12 = vld [vmem:[#allocation2 + $0x60] sm:$0xff]  ;;  %vm1858_vm2 = vcmask 1044480   ;;  %vm2295_vm3 = vcmask 1043456   ;;  %vm2732_vm4 = vcmask 1042432  }
  0x8b   : > { %v363_v1 = vshrl.u32 %v8438_v0, 7  ;;  %v4954_v11 = vld [vmem:[#allocation2 + $0x8] sm:$0xff]  ;;  %v4958_v13 = vld [vmem:[#allocation2 + $0x78] sm:$0xff]  ;;  %v4960_v14 = vld [vmem:[#allocation2 + $0x90] sm:$0xff]  ;;  %vm3169_vm5 = vcmask 1041408   ;;  %s4149_s12 = sshll.u32 %s4690_s27, 4 }
  0x8c   : > { %8936 = vst [vmem:[#allocation27_spill] sm:$0xff] %v4954_v11  ;;  %v4962_v15 = vld [vmem:[#allocation4] sm:$0x7f]  ;;  %v4968_v18 = vld [vmem:[#allocation4 + $0x8] sm:$0x7f]  ;;  %v5006_v32 = vld [vmem:[#allocation2 + $0x20] sm:$0xff] }
  0x8d   : > { %v364_v2 = vsub.s32 0, %v363_v1  ;;  %v622_v3 = vsub.s32 1, %v363_v1  ;;  %v4940_v4 = vsub.s32 2, %v363_v1  ;;  %v4942_v5 = vsub.s32 3, %v363_v1  ;;  %v4970_v19 = vld [vmem:[#allocation4 + $0x10] sm:$0x7f] }
  0x8e   : > { %v4952_v10 = vsub.s32 4, %v363_v1  ;;  %v4964_v16 = vsub.s32 5, %v363_v1  ;;  %v4966_v17 = vsub.s32 6, %v363_v1  ;;  %v4972_v20 = vld [vmem:[#allocation4 + $0x18] sm:$0x7f]  ;;  %v5027_v41 = vld [vmem:[#allocation2 + $0x38] sm:$0xff] }
  0x8f   : > { %v4975_v21 = vrot.slane %v4962_v15, %v364_v2  ;;  %v4978_v22 = vrot.slane %v4962_v15, %v622_v3  ;;  %v4982_v23 = vrot.slane %v4962_v15, %v4940_v4  ;;  %v4986_v24 = vrot.slane %v4962_v15, %v4942_v5  ;;  %v4988_v25 = vld [vmem:[#allocation4 + $0x20] sm:$0x7f]  ;;  %v4990_v26 = vld [vmem:[#allocation4 + $0x28] sm:$0x7f]  ;;  %v4992_v27 = vld [vmem:[#allocation4 + $0x30] sm:$0x7f] }
  0x90   : > { %v4995_v28 = vrot.slane %v4968_v18, %v364_v2  ;;  %v4998_v29 = vrot.slane %v4970_v19, %v364_v2  ;;  %v5001_v30 = vrot.slane %v4972_v20, %v364_v2  ;;  %v5004_v31 = vrot.slane %v4968_v18, %v622_v3  ;;  %v5029_v42 = vld [vmem:[#allocation2 + $0x50] sm:$0xff]  ;;  %v5031_v43 = vld [vmem:[#allocation2 + $0x68] sm:$0xff]  ;;  %v5041_v48 = vld [vmem:[#allocation2 + $0x80] sm:$0xff]  ;;  %s4144_s17 = sshll.u32 %s4694_s28, 5  ;;  %s4001_s29 = sshll.u32 %s4937_s13, 4  ;;  %s8358_s29 = int_to_ptr.vmem [resolvable:$true] %s4001_s29 }
  0x91   : > { %8937 = vst [vmem:[#allocation28_spill] sm:$0xff] %v4978_v22  ;;  %8938 = vst [vmem:[#allocation29_spill] sm:$0xff] %v4982_v23  ;;  %v366_v33 = vmul.f32 %v4975_v21, %v4944_v6  ;;  %v5011_v34 = vrot.slane %v4988_v25, %v364_v2  ;;  %v5014_v35 = vrot.slane %v4990_v26, %v364_v2  ;;  %v5043_v49 = vld [vmem:[#allocation2 + $0x98] sm:$0xff]  ;;  %s3998_s19 = sadd.s32 %s4149_s12, %s4144_s17  ;;  %s8365_s21 = scalar_lea.sflag [#allocation6], %s286_s22 }
  0x92   : > { %8939 = vst [vmem:[#allocation30_spill] sm:$0xff] %v4986_v24  ;;  %8940 = vst [vmem:[#allocation31_spill] sm:$0xff] %v4998_v29  ;;  %v5017_v36 = vrot.slane %v4992_v27, %v364_v2  ;;  %v386_v37 = vmul.f32 %v4995_v28, %v4946_v7  ;;  %v422_v38 = vmul.f32 %v4998_v29, %v4948_v8  ;;  %s4145_s24 = sshll.u32 %s3998_s19, 7  ;;  %s4602_s11 = scalar_lea.vmem %s8358_s29, 2048 }
  0x93   : > { %8941 = vst [vmem:[#allocation32_spill] sm:$0xff] %v5001_v30  ;;  %8942 = vst [vmem:[#allocation33_spill] sm:$0xff] %v5004_v31  ;;  %v458_v39 = vmul.f32 %v5001_v30, %v4950_v9  ;;  %v624_v40 = vmul.f32 %v4978_v22, %v4944_v6  ;;  %v494_v44 = vmul.f32 %v5011_v34, %v4956_v12  ;;  %s8356_s16 = scalar_lea.hbm %s8424_s7, %s4145_s24  ;;  %p4603_p3 = scmp.ne.s32.totalorder %s8358_s29, %s4602_s11 }
  0x94   : > { %8943 = vst [vmem:[#allocation34_spill] sm:$0xff] %v5011_v34  ;;  %8944 = vst [vmem:[#allocation35_spill] sm:$0xff] %v5014_v35  ;;  %v530_v45 = vmul.f32 %v5014_v35, %v4958_v13  ;;  %v566_v46 = vmul.f32 %v5017_v36, %v4960_v14  ;;  %v625_v47 = vmul.f32 %v4978_v22, %v4954_v11  ;;  %p9600_p2 = scmp.ne.s32.totalorder %s8923_s15, 0  ;;  %s4717_s9 = smov [#allocation10]  }
  0x95   : > { %8945 = vst [vmem:[#allocation36_spill] sm:$0xff] %v5017_v36  ;;  %v402_v50 = vadd.f32 %v386_v37, %v366_v33  ;;  %v652_v51 = vmul.f32 %v5004_v31, %v4946_v7  ;;  %v653_v52 = vmul.f32 %v5004_v31, %v5006_v32  ;;  %v5050_v53 = vrot.slane %v4970_v19, %v622_v3  ;;  %s4606_s18 = sshll.u32 %s4717_s9, 4  ;;  %s4607_s18 = int_to_ptr.vmem [resolvable:$false] %s4606_s18 }
  0x96   : > { %v5053_v54 = vrot.slane %v4972_v20, %v622_v3  ;;  %v5056_v55 = vrot.slane %v4988_v25, %v622_v3  ;;  %v5059_v56 = vrot.slane %v4990_v26, %v622_v3  ;;  %v5062_v57 = vrot.slane %v4992_v27, %v622_v3  ;;  %p4604_p0 = pnand %p4603_p3, %p9600_p2  ;;  %s4608_s14 = scalar_lea.vmem %s4607_s18, 4096 }
  0x97   : > { %8946 = vst [vmem:[#allocation37_spill] sm:$0xff] %v5050_v53  ;;  %v438_v58 = vadd.f32 %v422_v38, %v402_v50  ;;  %v676_v59 = vadd.f32 %v652_v51, %v624_v40  ;;  %v677_v60 = vadd.f32 %v653_v52, %v625_v47  ;;  %v704_v61 = vmul.f32 %v5050_v53, %v4948_v8  ;;  %p4609_p10 = scmp.lt.s32.totalorder %s8358_s29, %s4607_s18  ;;  %p4610_p12 = scmp.lt.s32.totalorder %s4608_s14, %s4602_s11 }
  0x98   : > { %8947 = vst [vmem:[#allocation38_spill] sm:$0xff] %v5053_v54  ;;  %8948 = vst [vmem:[#allocation39_spill] sm:$0xff] %v5056_v55  ;;  %v705_v62 = vmul.f32 %v5050_v53, %v5027_v41  ;;  %v756_v63 = vmul.f32 %v5053_v54, %v4950_v9  ;;  %v757_v1 = vmul.f32 %v5053_v54, %v5029_v42  ;;  %p4605_p8 = pneg %p4604_p0 }
  0x99   : > { %8949 = vst [vmem:[#allocation40_spill] sm:$0xff] %v5059_v56  ;;  %8950 = vst [vmem:[#allocation41_spill] sm:$0xff] %v5062_v57  ;;  %v808_v2 = vmul.f32 %v5056_v55, %v4956_v12  ;;  %v474_v3 = vadd.f32 %v458_v39, %v438_v58  ;;  %v728_v33 = vadd.f32 %v704_v61, %v676_v59  ;;  %v5091_v59 = vld [vmem:[%s8419_s2] ss:$0 sm:$0xff]  ;;  %p4611_p1 = por %p4610_p12, %p4609_p10 }
  0x9a   : > { %v809_v37 = vmul.f32 %v5056_v55, %v5031_v43  ;;  %v860_v38 = vmul.f32 %v5059_v56, %v4958_v13  ;;  %v729_v40 = vadd.f32 %v705_v62, %v677_v60  ;;  %v861_v47 = vmul.f32 %v5059_v56, %v5041_v48  ;;  %8951 = vst [vmem:[#allocation42_spill] sm:$0xff] %v5091_v59 }
  0x9b   : > { %v912_v50 = vmul.f32 %v5062_v57, %v4960_v14  ;;  %v913_v51 = vmul.f32 %v5062_v57, %v5043_v49  ;;  %v510_v52 = vadd.f32 %v494_v44, %v474_v3  ;;  %v780_v0 = vadd.f32 %v756_v63, %v728_v33  ;;  %p4612_p4 = pnand %p4611_p1, %p4605_p8 }
  0x9c   : > { %v1061_v39 = vmul.f32 %v4982_v23, %v4944_v6  ;;  %v1062_v58 = vmul.f32 %v4982_v23, %v4954_v11  ;;  %v781_v60 = vadd.f32 %v757_v1, %v729_v40  ;;  %v5095_v61 = vrot.slane %v4968_v18, %v4940_v4 }
  0x9d   : > { %v5099_v44 = vrot.slane %v4970_v19, %v4940_v4  ;;  %v5103_v62 = vrot.slane %v4972_v20, %v4940_v4  ;;  %v546_v63 = vadd.f32 %v530_v45, %v510_v52  ;;  %v832_v3 = vadd.f32 %v808_v2, %v780_v0 }
  0x9e   : > { %8952 = vst [vmem:[#allocation43_spill] sm:$0xff] %v5095_v61  ;;  %v5107_v33 = vrot.slane %v4988_v25, %v4940_v4  ;;  %v5111_v1 = vrot.slane %v4990_v26, %v4940_v4  ;;  %v833_v40 = vadd.f32 %v809_v37, %v781_v60  ;;  %v1089_v23 = vmul.f32 %v5095_v61, %v4946_v7 }
  0x9f   : > { %8953 = vst [vmem:[#allocation44_spill] sm:$0xff] %v5099_v44  ;;  %8954 = vst [vmem:[#allocation45_spill] sm:$0xff] %v5103_v62  ;;  %v1090_v57 = vmul.f32 %v5095_v61, %v5006_v32  ;;  %v1141_v56 = vmul.f32 %v5099_v44, %v4948_v8  ;;  %v582_v45 = vadd.f32 %v566_v46, %v546_v63 }
  0xa0   : > { %8955 = vst [vmem:[#allocation46_spill] sm:$0xff] %v5107_v33  ;;  %8956 = vst [vmem:[#allocation47_spill] sm:$0xff] %v5111_v1  ;;  %v884_v0 = vadd.f32 %v860_v38, %v832_v3  ;;  %v1142_v2 = vmul.f32 %v5099_v44, %v5027_v41  ;;  %v1193_v52 = vmul.f32 %v5103_v62, %v4950_v9 }
  0xa1   : > { %v885_v55 = vadd.f32 %v861_v47, %v833_v40  ;;  %v1113_v54 = vadd.f32 %v1089_v23, %v1061_v39  ;;  %v1114_v37 = vadd.f32 %v1090_v57, %v1062_v58  ;;  %v1194_v60 = vmul.f32 %v5103_v62, %v5029_v42 }
  0xa2   : > { %v604_v53 = vadd.f32 %v5091_v59, %v582_v45  ;;  %v936_v61 = vadd.f32 %v912_v50, %v884_v0  ;;  %v1245_v31 = vmul.f32 %v5107_v33, %v4956_v12  ;;  %v1246_v46 = vmul.f32 %v5107_v33, %v5031_v43 }
  0xa3   : > { %v5130_v38 = vadd.f32 %v913_v51, %v885_v55  ;;  %v1165_v63 = vadd.f32 %v1141_v56, %v1113_v54  ;;  %v1166_v3 = vadd.f32 %v1142_v2, %v1114_v37  ;;  %v1297_v23 = vmul.f32 %v5111_v1, %v4958_v13 }
  0xa4   : > { %v985_v57 = vrot.slane %v936_v61, 1  ;;  %v1298_v47 = vmul.f32 %v5111_v1, %v5041_v48  ;;  %v5138_v50 = vrot.slane %v4992_v27, %v4940_v4  ;;  %v1498_v39 = vmul.f32 %v4986_v24, %v4944_v6 }
  0xa5   : > { %8957 = vst [vmem:[#allocation48_spill] sm:$0xff] %v5130_v38  ;;  %v8458_v55 = vrot.slane %v5130_v38, 1  ;;  %v1217_v51 = vadd.f32 %v1193_v52, %v1165_v63  ;;  %v1218_v54 = vadd.f32 %v1194_v60, %v1166_v3  ;;  %v1499_v56 = vmul.f32 %v4986_v24, %v4954_v11 }
  0xa6   : > { %8958 = vst [vmem:[#allocation49_spill] sm:$0xff] %v5138_v50  ;;  %v1349_v58 = vmul.f32 %v5138_v50, %v4960_v14  ;;  %v1350_v61 = vmul.f32 %v5138_v50, %v5043_v49  ;;  %v5151_v4 = vrot.slane %v4968_v18, %v4942_v5  ;;  %v5155_v40 = vrot.slane %v4970_v19, %v4942_v5 }
  0xa7   : > { %v987_v45 = vsel %vm984_vm0, %v985_v57, %v8458_v55  ;;  %v1269_v0 = vadd.f32 %v1245_v31, %v1217_v51  ;;  %v1270_v2 = vadd.f32 %v1246_v46, %v1218_v54  ;;  %v5162_v52 = vrot.slane %v4972_v20, %v4942_v5 }
  0xa8   : > { %8959 = vst [vmem:[#allocation50_spill] sm:$0xff] %v5151_v4  ;;  %8960 = vst [vmem:[#allocation51_spill] sm:$0xff] %v5155_v40  ;;  %v1041_v37 = vadd.f32 %v987_v45, %v604_v53  ;;  %v1526_v60 = vmul.f32 %v5151_v4, %v4946_v7  ;;  %v1527_v63 = vmul.f32 %v5151_v4, %v5006_v32 }
  0xa9   : > { %8961 = vst [vmem:[#allocation52_spill] sm:$0xff] %v5162_v52  ;;  %v1578_v3 = vmul.f32 %v5155_v40, %v4948_v8  ;;  %v1321_v24 = vadd.f32 %v1297_v23, %v1269_v0  ;;  %v1322_v38 = vadd.f32 %v1298_v47, %v1270_v2  ;;  %v1579_v31 = vmul.f32 %v5155_v40, %v5027_v41 }
  0xaa   : > { %v1630_v46 = vmul.f32 %v5162_v52, %v4950_v9  ;;  %v1550_v57 = vadd.f32 %v1526_v60, %v1498_v39  ;;  %v1551_v51 = vadd.f32 %v1527_v63, %v1499_v56  ;;  %v1631_v53 = vmul.f32 %v5162_v52, %v5029_v42 }
  0xab   : > { %v5178_v54 = vrot.slane %v4988_v25, %v4942_v5  ;;  %v1373_v45 = vadd.f32 %v1349_v58, %v1321_v24  ;;  %v5180_v55 = vadd.f32 %v1350_v61, %v1322_v38  ;;  %v5184_v23 = vrot.slane %v4990_v26, %v4942_v5 }
  0xac   : > { %v5188_v47 = vrot.slane %v4992_v27, %v4942_v5  ;;  %v1602_v39 = vadd.f32 %v1578_v3, %v1550_v57  ;;  %v1603_v56 = vadd.f32 %v1579_v31, %v1551_v51  ;;  %v5208_v57 = vrot.slane %v4962_v15, %v4952_v10 }
  0xad   : > { %8962 = vst [vmem:[#allocation53_spill] sm:$0xff] %v5178_v54  ;;  %8963 = vst [vmem:[#allocation54_spill] sm:$0xff] %v5180_v55  ;;  %v1682_v0 = vmul.f32 %v5178_v54, %v4956_v12  ;;  %v1683_v2 = vmul.f32 %v5178_v54, %v5031_v43  ;;  %v1422_v60 = vrot.slane %v1373_v45, 2  ;;  %v8459_v24 = vrot.slane %v5180_v55, 2 }
  0xae   : > { %8964 = vst [vmem:[#allocation55_spill] sm:$0xff] %v5184_v23  ;;  %8965 = vst [vmem:[#allocation56_spill] sm:$0xff] %v5188_v47  ;;  %v1734_v38 = vmul.f32 %v5184_v23, %v4958_v13  ;;  %v1735_v58 = vmul.f32 %v5184_v23, %v5041_v48  ;;  %v1654_v5 = vadd.f32 %v1630_v46, %v1602_v39 }
  0xaf   : > { %v1655_v61 = vadd.f32 %v1631_v53, %v1603_v56  ;;  %v1786_v63 = vmul.f32 %v5188_v47, %v4960_v14  ;;  %v1787_v3 = vmul.f32 %v5188_v47, %v5043_v49  ;;  %v1424_v31 = vsel %vm1421_vm1, %v1422_v60, %v8459_v24  ;;  %8966 = vst [vmem:[#allocation57_spill] sm:$0xff] %v5208_v57 }
  0xb0   : > { %v5212_v51 = vrot.slane %v4968_v18, %v4952_v10  ;;  %v5216_v46 = vrot.slane %v4970_v19, %v4952_v10  ;;  %v1478_v53 = vadd.f32 %v1424_v31, %v1041_v37  ;;  %v1706_v45 = vadd.f32 %v1682_v0, %v1654_v5 }
  0xb1   : > { %v1707_v39 = vadd.f32 %v1683_v2, %v1655_v61  ;;  %v5220_v56 = vrot.slane %v4972_v20, %v4952_v10  ;;  %v1935_v60 = vmul.f32 %v5208_v57, %v4944_v6  ;;  %v1936_v24 = vmul.f32 %v5208_v57, %v4954_v11 }
  0xb2   : > { %8967 = vst [vmem:[#allocation58_spill] sm:$0xff] %v5212_v51  ;;  %8968 = vst [vmem:[#allocation59_spill] sm:$0xff] %v5216_v46  ;;  %v1963_v55 = vmul.f32 %v5212_v51, %v4946_v7  ;;  %v1964_v47 = vmul.f32 %v5212_v51, %v5006_v32  ;;  %v1758_v23 = vadd.f32 %v1734_v38, %v1706_v45 }
  0xb3   : > { %8969 = vst [vmem:[#allocation60_spill] sm:$0xff] %v5220_v56  ;;  %v1759_v37 = vadd.f32 %v1735_v58, %v1707_v39  ;;  %v2015_v0 = vmul.f32 %v5216_v46, %v4948_v8  ;;  %v2016_v2 = vmul.f32 %v5216_v46, %v5027_v41  ;;  %v2067_v31 = vmul.f32 %v5220_v56, %v4950_v9 }
  0xb4   : > { %v1987_v5 = vadd.f32 %v1963_v55, %v1935_v60  ;;  %v1988_v61 = vadd.f32 %v1964_v47, %v1936_v24  ;;  %v2068_v57 = vmul.f32 %v5220_v56, %v5029_v42  ;;  %v1810_v54 = vadd.f32 %v1786_v63, %v1758_v23 }
  0xb5   : > { %v5238_v52 = vadd.f32 %v1787_v3, %v1759_v37  ;;  %v5242_v38 = vrot.slane %v4988_v25, %v4952_v10  ;;  %v5246_v58 = vrot.slane %v4990_v26, %v4952_v10  ;;  %v5250_v47 = vrot.slane %v4992_v27, %v4952_v10 }
  0xb6   : > { %v2039_v45 = vadd.f32 %v2015_v0, %v1987_v5  ;;  %v2040_v55 = vadd.f32 %v2016_v2, %v1988_v61  ;;  %v5254_v24 = vrot.slane %v4962_v15, %v4964_v16  ;;  %v1859_v23 = vrot.slane %v1810_v54, 3 }
  0xb7   : > { %8970 = vst [vmem:[#allocation61_spill] sm:$0xff] %v5238_v52  ;;  %8971 = vst [vmem:[#allocation62_spill] sm:$0xff] %v5242_v38  ;;  %v8472_v63 = vrot.slane %v5238_v52, 3  ;;  %v2119_v3 = vmul.f32 %v5242_v38, %v4956_v12  ;;  %v2120_v39 = vmul.f32 %v5242_v38, %v5031_v43  ;;  %v2171_v10 = vmul.f32 %v5246_v58, %v4958_v13 }
  0xb8   : > { %8972 = vst [vmem:[#allocation63_spill] sm:$0xff] %v5246_v58  ;;  %8973 = vst [vmem:[#allocation64_spill] sm:$0xff] %v5250_v47  ;;  %v2091_v60 = vadd.f32 %v2067_v31, %v2039_v45  ;;  %v2092_v37 = vadd.f32 %v2068_v57, %v2040_v55  ;;  %v2172_v0 = vmul.f32 %v5246_v58, %v5041_v48 }
  0xb9   : > { %8974 = vst [vmem:[#allocation65_spill] sm:$0xff] %v5254_v24  ;;  %v1861_v54 = vsel %vm1858_vm2, %v1859_v23, %v8472_v63  ;;  %v2223_v2 = vmul.f32 %v5250_v47, %v4960_v14  ;;  %v2224_v5 = vmul.f32 %v5250_v47, %v5043_v49  ;;  %v2372_v61 = vmul.f32 %v5254_v24, %v4944_v6 }
  0xba   : > { %v1915_v57 = vadd.f32 %v1861_v54, %v1478_v53  ;;  %v2143_v31 = vadd.f32 %v2119_v3, %v2091_v60  ;;  %v2144_v45 = vadd.f32 %v2120_v39, %v2092_v37  ;;  %v2373_v55 = vmul.f32 %v5254_v24, %v4954_v11 }
  0xbb   : > { %v5278_v52 = vrot.slane %v4968_v18, %v4964_v16  ;;  %v5282_v23 = vrot.slane %v4970_v19, %v4964_v16  ;;  %v5286_v63 = vrot.slane %v4972_v20, %v4964_v16  ;;  %v5290_v53 = vrot.slane %v4988_v25, %v4964_v16 }
  0xbc   : > { %v2195_v3 = vadd.f32 %v2171_v10, %v2143_v31  ;;  %v2196_v39 = vadd.f32 %v2172_v0, %v2144_v45  ;;  %v5294_v60 = vrot.slane %v4990_v26, %v4964_v16  ;;  %v5298_v37 = vrot.slane %v4992_v27, %v4964_v16 }
  0xbd   : > { %8975 = vst [vmem:[#allocation66_spill] sm:$0xff] %v5278_v52  ;;  %8976 = vst [vmem:[#allocation67_spill] sm:$0xff] %v5282_v23  ;;  %v2400_v54 = vmul.f32 %v5278_v52, %v4946_v7  ;;  %v2401_v24 = vmul.f32 %v5278_v52, %v5006_v32  ;;  %v2452_v47 = vmul.f32 %v5282_v23, %v4948_v8 }
  0xbe   : > { %8977 = vst [vmem:[#allocation68_spill] sm:$0xff] %v5286_v63  ;;  %v2453_v10 = vmul.f32 %v5282_v23, %v5027_v41  ;;  %v2247_v0 = vadd.f32 %v2223_v2, %v2195_v3  ;;  %v5308_v31 = vadd.f32 %v2224_v5, %v2196_v39  ;;  %v2504_v45 = vmul.f32 %v5286_v63, %v4950_v9 }
  0xbf   : > { %v2505_v16 = vmul.f32 %v5286_v63, %v5029_v42  ;;  %v2424_v58 = vadd.f32 %v2400_v54, %v2372_v61  ;;  %v2425_v38 = vadd.f32 %v2401_v24, %v2373_v55  ;;  %v2556_v52 = vmul.f32 %v5290_v53, %v4956_v12 }
  0xc0   : > { %8978 = vst [vmem:[#allocation69_spill] sm:$0xff] %v5308_v31  ;;  %v2557_v56 = vmul.f32 %v5290_v53, %v5031_v43  ;;  %v2296_v46 = vrot.slane %v2247_v0, 4  ;;  %v8490_v23 = vrot.slane %v5308_v31, 4  ;;  %v2608_v2 = vmul.f32 %v5294_v60, %v4958_v13 }
  0xc1   : > { %v2609_v5 = vmul.f32 %v5294_v60, %v5041_v48  ;;  %v2476_v3 = vadd.f32 %v2452_v47, %v2424_v58  ;;  %v2477_v39 = vadd.f32 %v2453_v10, %v2425_v38  ;;  %v2660_v24 = vmul.f32 %v5298_v37, %v4960_v14 }
  0xc2   : > { %v2661_v61 = vmul.f32 %v5298_v37, %v5043_v49  ;;  %v2298_v55 = vsel %vm2295_vm3, %v2296_v46, %v8490_v23  ;;  %v5332_v54 = vrot.slane %v4962_v15, %v4966_v17  ;;  %v5336_v0 = vrot.slane %v4968_v18, %v4966_v17 }
  0xc3   : > { %v5340_v38 = vrot.slane %v4970_v19, %v4966_v17  ;;  %v2352_v58 = vadd.f32 %v2298_v55, %v1915_v57  ;;  %v2528_v47 = vadd.f32 %v2504_v45, %v2476_v3  ;;  %v2529_v10 = vadd.f32 %v2505_v16, %v2477_v39 }
  0xc4   : > { %v5344_v31 = vrot.slane %v4972_v20, %v4966_v17  ;;  %v2809_v46 = vmul.f32 %v5332_v54, %v4944_v6  ;;  %v2810_v15 = vmul.f32 %v5332_v54, %v4954_v11  ;;  %v2837_v18 = vmul.f32 %v5336_v0, %v4946_v7 }
  0xc5   : > { %v2838_v19 = vmul.f32 %v5336_v0, %v5006_v32  ;;  %v2580_v23 = vadd.f32 %v2556_v52, %v2528_v47  ;;  %v2581_v57 = vadd.f32 %v2557_v56, %v2529_v10  ;;  %v2889_v45 = vmul.f32 %v5340_v38, %v4948_v8 }
  0xc6   : > { %v2890_v20 = vmul.f32 %v5340_v38, %v5027_v41  ;;  %v2861_v16 = vadd.f32 %v2837_v18, %v2809_v46  ;;  %v2941_v6 = vmul.f32 %v5344_v31, %v4950_v9  ;;  %v2942_v39 = vmul.f32 %v5344_v31, %v5029_v42 }
  0xc7   : > { %v2862_v3 = vadd.f32 %v2838_v19, %v2810_v15  ;;  %v2632_v55 = vadd.f32 %v2608_v2, %v2580_v23  ;;  %v2633_v11 = vadd.f32 %v2609_v5, %v2581_v57  ;;  %v5364_v52 = vrot.slane %v4988_v25, %v4966_v17 }
  0xc8   : > { %v5368_v56 = vrot.slane %v4990_v26, %v4966_v17  ;;  %v2913_v47 = vadd.f32 %v2889_v45, %v2861_v16  ;;  %v5372_v46 = vrot.slane %v4992_v27, %v4966_v17  ;;  %v368_v15 = vmul.f32 %v4975_v21, %v4946_v7 }
  0xc9   : > { %v2914_v10 = vadd.f32 %v2890_v20, %v2862_v3  ;;  %v2684_v18 = vadd.f32 %v2660_v24, %v2632_v55  ;;  %v5376_v23 = vadd.f32 %v2661_v61, %v2633_v11  ;;  %v2993_v25 = vmul.f32 %v5364_v52, %v4956_v12  ;;  %v5391_v20 = vld [vmem:[#allocation2 + $0xa8] sm:$0xff] }
  0xca   : > { %v2994_v2 = vmul.f32 %v5364_v52, %v5031_v43  ;;  %v2965_v26 = vadd.f32 %v2941_v6, %v2913_v47  ;;  %v3045_v19 = vmul.f32 %v5368_v56, %v4958_v13  ;;  %v3046_v17 = vmul.f32 %v5368_v56, %v5041_v48  ;;  %8980 = vst [vmem:[#allocation71_spill] sm:$0xff] %v5391_v20 }
  0xcb   : > { %8979 = vst [vmem:[#allocation70_spill] sm:$0xff] %v5376_v23  ;;  %v2966_v5 = vadd.f32 %v2942_v39, %v2914_v10  ;;  %v2733_v27 = vrot.slane %v2684_v18, 5  ;;  %v8492_v24 = vrot.slane %v5376_v23, 5  ;;  %v3097_v11 = vmul.f32 %v5372_v46, %v4960_v14 }
  0xcc   : > { %v3098_v61 = vmul.f32 %v5372_v46, %v5043_v49  ;;  %v3017_v57 = vadd.f32 %v2993_v25, %v2965_v26  ;;  %v388_v16 = vmul.f32 %v4995_v28, %v4948_v8  ;;  %v424_v3 = vmul.f32 %v4998_v29, %v4950_v9 }
  0xcd   : > { %v3018_v45 = vadd.f32 %v2994_v2, %v2966_v5  ;;  %v2735_v6 = vsel %vm2732_vm4, %v2733_v27, %v8492_v24  ;;  %v460_v39 = vmul.f32 %v5001_v30, %v4956_v12  ;;  %v496_v55 = vmul.f32 %v5011_v34, %v4958_v13  ;;  %v8981_v24 = vld [vmem:[#allocation33_spill] sm:$0xff] }
  0xce   : > { %v532_v47 = vmul.f32 %v5014_v35, %v4960_v14  ;;  %v2789_v10 = vadd.f32 %v2735_v6, %v2352_v58  ;;  %v3069_v18 = vadd.f32 %v3045_v19, %v3017_v57  ;;  %v404_v2 = vadd.f32 %v388_v16, %v368_v15  ;;  %v8983_v19 = vld [vmem:[#allocation37_spill] sm:$0xff] }
  0xcf   : > { %v3070_v25 = vadd.f32 %v3046_v17, %v3018_v45  ;;  %v568_v26 = vmul.f32 %v5017_v36, %v5391_v20  ;;  %v627_v5 = vmul.f32 %v4978_v22, %v4946_v7  ;;  %v628_v27 = vmul.f32 %v4978_v22, %v5006_v32  ;;  %v8984_v45 = vld [vmem:[#allocation38_spill] sm:$0xff] }
  0xd0   : > { %v655_v23 = vmul.f32 %v8981_v24, %v4948_v8  ;;  %v3121_v34 = vadd.f32 %v3097_v11, %v3069_v18  ;;  %v440_v35 = vadd.f32 %v424_v3, %v404_v2  ;;  %v656_v58 = vmul.f32 %v8981_v24, %v5027_v41  ;;  %v5425_v18 = vld [vmem:[#allocation2 + $0xb0] sm:$0xff] }
  0xd1   : > { %v5414_v30 = vadd.f32 %v3098_v61, %v3070_v25  ;;  %v707_v17 = vmul.f32 %v8983_v19, %v4950_v9  ;;  %v708_v57 = vmul.f32 %v8983_v19, %v5029_v42  ;;  %v759_v16 = vmul.f32 %v8984_v45, %v4956_v12  ;;  %8985 = vst [vmem:[#allocation73_spill] sm:$0xff] %v5425_v18  ;;  %v8986_v25 = vld [vmem:[#allocation39_spill] sm:$0xff] }
  0xd2   : > { %v679_v15 = vadd.f32 %v655_v23, %v627_v5  ;;  %v3170_v6 = vrot.slane %v3121_v34, 6  ;;  %v476_v11 = vadd.f32 %v460_v39, %v440_v35  ;;  %v680_v61 = vadd.f32 %v656_v58, %v628_v27  ;;  %v8987_v35 = vld [vmem:[#allocation40_spill] sm:$0xff] }
  0xd3   : > { %8982 = vst [vmem:[#allocation72_spill] sm:$0xff] %v5414_v30  ;;  %v8509_v22 = vrot.slane %v5414_v30, 6  ;;  %v760_v23 = vmul.f32 %v8984_v45, %v5031_v43  ;;  %v811_v2 = vmul.f32 %v8986_v25, %v4958_v13  ;;  %v812_v5 = vmul.f32 %v8986_v25, %v5041_v48 }
  0xd4   : > { %v731_v3 = vadd.f32 %v707_v17, %v679_v15  ;;  %v512_v19 = vadd.f32 %v496_v55, %v476_v11  ;;  %v732_v24 = vadd.f32 %v708_v57, %v680_v61  ;;  %v863_v39 = vmul.f32 %v8987_v35, %v4960_v14  ;;  %v8989_v17 = vld [vmem:[#allocation41_spill] sm:$0xff] }
  0xd5   : > { %v3172_v34 = vsel %vm3169_vm5, %v3170_v6, %v8509_v22  ;;  %v864_v15 = vmul.f32 %v8987_v35, %v5043_v49  ;;  %v915_v45 = vmul.f32 %v8989_v17, %v5391_v20  ;;  %v916_v30 = vmul.f32 %v8989_v17, %v5425_v18  ;;  %v8990_v55 = vld [vmem:[#allocation29_spill] sm:$0xff] }
  0xd6   : > { %v5438_v27 = vadd.f32 %v3172_v34, %v2789_v10  ;;  %v783_v58 = vadd.f32 %v759_v16, %v731_v3  ;;  %v548_v36 = vadd.f32 %v532_v47, %v512_v19  ;;  %v784_v25 = vadd.f32 %v760_v23, %v732_v24  ;;  %v8991_v16 = vld [vmem:[#allocation43_spill] sm:$0xff] }
  0xd7   : > { %v1064_v57 = vmul.f32 %v8990_v55, %v4946_v7  ;;  %v1065_v10 = vmul.f32 %v8990_v55, %v5006_v32  ;;  %v1092_v11 = vmul.f32 %v8991_v16, %v4948_v8  ;;  %v1093_v61 = vmul.f32 %v8991_v16, %v5027_v41 }
  0xd8   : > { %8988 = vst [vmem:[#allocation74_spill] sm:$0xff] %v5438_v27  ;;  %3242 = vadd.xlane.f32.xlu0 %v5438_v27  ;;  %v835_v6 = vadd.f32 %v811_v2, %v783_v58  ;;  %v584_v47 = vadd.f32 %v568_v26, %v548_v36  ;;  %v836_v24 = vadd.f32 %v812_v5, %v784_v25 }
  0xd9   : > { %v1144_v19 = vmul.f32 %v5099_v44, %v4950_v9  ;;  %v1145_v3 = vmul.f32 %v5099_v44, %v5029_v42  ;;  %v1116_v34 = vadd.f32 %v1092_v11, %v1064_v57  ;;  %v1117_v2 = vadd.f32 %v1093_v61, %v1065_v10 }
  0xda   : > { %v887_v23 = vadd.f32 %v863_v39, %v835_v6  ;;  %v1196_v58 = vmul.f32 %v5103_v62, %v4956_v12  ;;  %v606_v22 = vadd.f32 %v5091_v59, %v584_v47  ;;  %v888_v27 = vadd.f32 %v864_v15, %v836_v24 }
  0xdb   : > { %v1197_v16 = vmul.f32 %v5103_v62, %v5031_v43  ;;  %v1248_v36 = vmul.f32 %v5107_v33, %v4958_v13  ;;  %v1168_v25 = vadd.f32 %v1144_v19, %v1116_v34  ;;  %v1169_v5 = vadd.f32 %v1145_v3, %v1117_v2 }
  0xdc   : > { %v939_v26 = vadd.f32 %v915_v45, %v887_v23  ;;  %v1249_v39 = vmul.f32 %v5107_v33, %v5041_v48  ;;  %v5468_v57 = vadd.f32 %v916_v30, %v888_v27  ;;  %v1300_v6 = vmul.f32 %v5111_v1, %v4960_v14  ;;  %v8993_v30 = vld [vmem:[#allocation30_spill] sm:$0xff] }
  0xdd   : > { %v1301_v15 = vmul.f32 %v5111_v1, %v5043_v49  ;;  %v1352_v10 = vmul.f32 %v5138_v50, %v5391_v20  ;;  %v1220_v61 = vadd.f32 %v1196_v58, %v1168_v25  ;;  %v1221_v47 = vadd.f32 %v1197_v16, %v1169_v5  ;;  %v8994_v5 = vld [vmem:[#allocation52_spill] sm:$0xff] }
  0xde   : > { %8992 = vst [vmem:[#allocation75_spill] sm:$0xff] %v5468_v57  ;;  %v990_v11 = vrot.slane %v939_v26, 1  ;;  %v1353_v45 = vmul.f32 %v5138_v50, %v5425_v18  ;;  %v8519_v24 = vrot.slane %v5468_v57, 1  ;;  %v1501_v27 = vmul.f32 %v8993_v30, %v4946_v7  ;;  %v8995_v50 = vld [vmem:[#allocation53_spill] sm:$0xff] }
  0xdf   : > { %v1502_v19 = vmul.f32 %v8993_v30, %v5006_v32  ;;  %v1529_v3 = vmul.f32 %v5151_v4, %v4948_v8  ;;  %v1272_v23 = vadd.f32 %v1248_v36, %v1220_v61  ;;  %v1273_v34 = vadd.f32 %v1249_v39, %v1221_v47 }
  0xe0   : > { %v1530_v2 = vmul.f32 %v5151_v4, %v5027_v41  ;;  %v1581_v16 = vmul.f32 %v5155_v40, %v4950_v9  ;;  %v992_v58 = vsel %vm984_vm0, %v990_v11, %v8519_v24  ;;  %v1582_v25 = vmul.f32 %v5155_v40, %v5029_v42  ;;  %v8997_v40 = vld [vmem:[#allocation55_spill] sm:$0xff] }
  0xe1   : > { %v1553_v26 = vadd.f32 %v1529_v3, %v1501_v27  ;;  %v1633_v59 = vmul.f32 %v8994_v5, %v4956_v12  ;;  %v1043_v30 = vadd.f32 %v992_v58, %v606_v22  ;;  %v1324_v36 = vadd.f32 %v1300_v6, %v1272_v23 }
  0xe2   : > { %v1325_v39 = vadd.f32 %v1301_v15, %v1273_v34  ;;  %v1554_v61 = vadd.f32 %v1530_v2, %v1502_v19  ;;  %v1634_v4 = vmul.f32 %v8994_v5, %v5031_v43  ;;  %v1685_v57 = vmul.f32 %v8995_v50, %v4958_v13  ;;  %v8998_v19 = vld [vmem:[#allocation56_spill] sm:$0xff] }
  0xe3   : > { %v1605_v47 = vadd.f32 %v1581_v16, %v1553_v26  ;;  %v1686_v11 = vmul.f32 %v8995_v50, %v5041_v48  ;;  %v1376_v27 = vadd.f32 %v1352_v10, %v1324_v36  ;;  %v1737_v22 = vmul.f32 %v8997_v40, %v4960_v14 }
  0xe4   : > { %v5502_v3 = vadd.f32 %v1353_v45, %v1325_v39  ;;  %v1606_v24 = vadd.f32 %v1582_v25, %v1554_v61  ;;  %v1738_v15 = vmul.f32 %v8997_v40, %v5043_v49  ;;  %v1789_v23 = vmul.f32 %v8998_v19, %v5391_v20  ;;  %v8999_v45 = vld [vmem:[#allocation57_spill] sm:$0xff]  ;;  %v9001_v40 = vld [vmem:[#allocation60_spill] sm:$0xff] }
  0xe5   : > { %v1657_v6 = vadd.f32 %v1633_v59, %v1605_v47  ;;  %v1790_v34 = vmul.f32 %v8998_v19, %v5425_v18  ;;  %v1427_v2 = vrot.slane %v1376_v27, 2  ;;  %v1938_v58 = vmul.f32 %v8999_v45, %v4946_v7 }
  0xe6   : > { %8996 = vst [vmem:[#allocation76_spill] sm:$0xff] %v5502_v3  ;;  %v8527_v16 = vrot.slane %v5502_v3, 2  ;;  %v1658_v10 = vadd.f32 %v1634_v4, %v1606_v24  ;;  %v1939_v59 = vmul.f32 %v8999_v45, %v5006_v32  ;;  %v1966_v25 = vmul.f32 %v5212_v51, %v4948_v8  ;;  %v9000_v4 = vld [vmem:[#allocation59_spill] sm:$0xff] }
  0xe7   : > { %v1709_v26 = vadd.f32 %v1685_v57, %v1657_v6  ;;  %v1967_v36 = vmul.f32 %v5212_v51, %v5027_v41  ;;  %v2018_v24 = vmul.f32 %v9000_v4, %v4950_v9  ;;  %v2019_v57 = vmul.f32 %v9000_v4, %v5029_v42 }
  0xe8   : > { %v1429_v39 = vsel %vm1421_vm1, %v1427_v2, %v8527_v16  ;;  %v1710_v61 = vadd.f32 %v1686_v11, %v1658_v10  ;;  %v1990_v6 = vadd.f32 %v1966_v25, %v1938_v58  ;;  %v2070_v50 = vmul.f32 %v9001_v40, %v4956_v12  ;;  %v9002_v2 = vld [vmem:[#allocation62_spill] sm:$0xff] }
  0xe9   : > { %v1480_v47 = vadd.f32 %v1429_v39, %v1043_v30  ;;  %v1761_v27 = vadd.f32 %v1737_v22, %v1709_v26  ;;  %v1991_v45 = vadd.f32 %v1967_v36, %v1939_v59  ;;  %v2071_v3 = vmul.f32 %v9001_v40, %v5031_v43  ;;  %v9004_v22 = vld [vmem:[#allocation63_spill] sm:$0xff]  ;;  %v9005_v26 = vld [vmem:[#allocation64_spill] sm:$0xff] }
  0xea   : > { %v1762_v19 = vadd.f32 %v1738_v15, %v1710_v61  ;;  %v2122_v11 = vmul.f32 %v9002_v2, %v4958_v13  ;;  %v2042_v16 = vadd.f32 %v2018_v24, %v1990_v6  ;;  %v2123_v4 = vmul.f32 %v9002_v2, %v5041_v48  ;;  %v9007_v24 = vld [vmem:[#allocation66_spill] sm:$0xff] }
  0xeb   : > { %v1813_v10 = vadd.f32 %v1789_v23, %v1761_v27  ;;  %v2043_v51 = vadd.f32 %v2019_v57, %v1991_v45  ;;  %v2174_v15 = vmul.f32 %v9004_v22, %v4960_v14  ;;  %v2175_v58 = vmul.f32 %v9004_v22, %v5043_v49 }
  0xec   : > { %v5536_v30 = vadd.f32 %v1790_v34, %v1762_v19  ;;  %v2226_v59 = vmul.f32 %v9005_v26, %v5391_v20  ;;  %v2094_v36 = vadd.f32 %v2070_v50, %v2042_v16  ;;  %v2227_v23 = vmul.f32 %v9005_v26, %v5425_v18  ;;  %v9006_v19 = vld [vmem:[#allocation65_spill] sm:$0xff] }
  0xed   : > { %v1864_v25 = vrot.slane %v1813_v10, 3  ;;  %v2095_v39 = vadd.f32 %v2071_v3, %v2043_v51  ;;  %v2375_v34 = vmul.f32 %v9006_v19, %v4946_v7  ;;  %v2376_v61 = vmul.f32 %v9006_v19, %v5006_v32  ;;  %v9008_v51 = vld [vmem:[#allocation67_spill] sm:$0xff] }
  0xee   : > { %9003 = vst [vmem:[#allocation77_spill] sm:$0xff] %v5536_v30  ;;  %v8536_v45 = vrot.slane %v5536_v30, 3  ;;  %v2403_v57 = vmul.f32 %v9007_v24, %v4948_v8  ;;  %v2146_v27 = vadd.f32 %v2122_v11, %v2094_v36  ;;  %v2404_v50 = vmul.f32 %v9007_v24, %v5027_v41 }
  0xef   : > { %v2147_v6 = vadd.f32 %v2123_v4, %v2095_v39  ;;  %v2455_v3 = vmul.f32 %v9008_v51, %v4950_v9  ;;  %v2456_v26 = vmul.f32 %v9008_v51, %v5029_v42  ;;  %v2507_v19 = vmul.f32 %v5286_v63, %v4956_v12 }
  0xf0   : > { %v1866_v16 = vsel %vm1858_vm2, %v1864_v25, %v8536_v45  ;;  %v2427_v10 = vadd.f32 %v2403_v57, %v2375_v34  ;;  %v2198_v11 = vadd.f32 %v2174_v15, %v2146_v27  ;;  %v2428_v36 = vadd.f32 %v2404_v50, %v2376_v61 }
  0xf1   : > { %v1917_v22 = vadd.f32 %v1866_v16, %v1480_v47  ;;  %v2199_v4 = vadd.f32 %v2175_v58, %v2147_v6  ;;  %v2508_v24 = vmul.f32 %v5286_v63, %v5031_v43  ;;  %v2559_v30 = vmul.f32 %v5290_v53, %v4958_v13 }
  0xf2   : > { %v2479_v39 = vadd.f32 %v2455_v3, %v2427_v10  ;;  %v2560_v25 = vmul.f32 %v5290_v53, %v5041_v48  ;;  %v2250_v34 = vadd.f32 %v2226_v59, %v2198_v11  ;;  %v2480_v45 = vadd.f32 %v2456_v26, %v2428_v36 }
  0xf3   : > { %v5570_v57 = vadd.f32 %v2227_v23, %v2199_v4  ;;  %v2611_v47 = vmul.f32 %v5294_v60, %v4960_v14  ;;  %v2612_v58 = vmul.f32 %v5294_v60, %v5043_v49  ;;  %v2663_v61 = vmul.f32 %v5298_v37, %v5391_v20 }
  0xf4   : > { %v2531_v15 = vadd.f32 %v2507_v19, %v2479_v39  ;;  %v2664_v27 = vmul.f32 %v5298_v37, %v5425_v18  ;;  %v2301_v6 = vrot.slane %v2250_v34, 4  ;;  %v2532_v59 = vadd.f32 %v2508_v24, %v2480_v45 }
  0xf5   : > { %9009 = vst [vmem:[#allocation78_spill] sm:$0xff] %v5570_v57  ;;  %v8537_v50 = vrot.slane %v5570_v57, 4  ;;  %v2812_v26 = vmul.f32 %v5332_v54, %v4946_v7  ;;  %v2813_v19 = vmul.f32 %v5332_v54, %v5006_v32  ;;  %v2840_v3 = vmul.f32 %v5336_v0, %v4948_v8 }
  0xf6   : > { %v2583_v23 = vadd.f32 %v2559_v30, %v2531_v15  ;;  %v2841_v16 = vmul.f32 %v5336_v0, %v5027_v41  ;;  %v2584_v11 = vadd.f32 %v2560_v25, %v2532_v59  ;;  %v2892_v45 = vmul.f32 %v5340_v38, %v4950_v9 }
  0xf7   : > { %v2303_v10 = vsel %vm2295_vm3, %v2301_v6, %v8537_v50  ;;  %v2893_v7 = vmul.f32 %v5340_v38, %v5029_v42  ;;  %v2864_v4 = vadd.f32 %v2840_v3, %v2812_v26  ;;  %v2944_v8 = vmul.f32 %v5344_v31, %v4956_v12  ;;  %v5615_v3 = vld [vmem:[#allocation2 + $0x10] sm:$0xff]  ;;  %v5644_v50 = vld [vmem:[#allocation2 + $0xa0] sm:$0xff] }
  0xf8   : > { %v2354_v30 = vadd.f32 %v2303_v10, %v1917_v22  ;;  %v2635_v24 = vadd.f32 %v2611_v47, %v2583_v23  ;;  %v2865_v36 = vadd.f32 %v2841_v16, %v2813_v19  ;;  %v2636_v39 = vadd.f32 %v2612_v58, %v2584_v11  ;;  %9019 = vst [vmem:[#allocation82_spill] sm:$0xff] %v5644_v50 }
  0xf9   : > { %v2945_v34 = vmul.f32 %v5344_v31, %v5031_v43  ;;  %v2996_v25 = vmul.f32 %v5364_v52, %v4958_v13  ;;  %v2916_v6 = vadd.f32 %v2892_v45, %v2864_v4  ;;  %v2997_v59 = vmul.f32 %v5364_v52, %v5041_v48  ;;  %v5627_v4 = vld [vmem:[#allocation2 + $0x58] sm:$0xff] }
  0xfa   : > { %v2687_v15 = vadd.f32 %v2663_v61, %v2635_v24  ;;  %v2917_v9 = vadd.f32 %v2893_v7, %v2865_v36  ;;  %v5604_v22 = vadd.f32 %v2664_v27, %v2636_v39  ;;  %v3048_v47 = vmul.f32 %v5368_v56, %v4960_v14  ;;  %v9011_v27 = vld [vmem:[#allocation27_spill] sm:$0xff]  ;;  %v5625_v24 = vld [vmem:[#allocation2 + $0x40] sm:$0xff]  ;;  %v9013_v36 = vld [vmem:[#allocation32_spill] sm:$0xff] }
  0xfb   : > { %v3049_v12 = vmul.f32 %v5368_v56, %v5043_v49  ;;  %v3100_v58 = vmul.f32 %v5372_v46, %v5391_v20  ;;  %v2968_v23 = vadd.f32 %v2944_v8, %v2916_v6  ;;  %v3101_v61 = vmul.f32 %v5372_v46, %v5425_v18  ;;  %v5623_v7 = vld [vmem:[#allocation2 + $0x28] sm:$0xff]  ;;  %9012 = vst [vmem:[#allocation27_spill] sm:$0xff] %v5627_v4  ;;  %v9014_v8 = vld [vmem:[#allocation34_spill] sm:$0xff] }
  0xfc   : > { %9010 = vst [vmem:[#allocation79_spill] sm:$0xff] %v5604_v22  ;;  %v2738_v26 = vrot.slane %v2687_v15, 5  ;;  %v2969_v13 = vadd.f32 %v2945_v34, %v2917_v9  ;;  %v8539_v19 = vrot.slane %v5604_v22, 5  ;;  %v367_v16 = vmul.f32 %v4975_v21, %v9011_v27  ;;  %v5636_v15 = vld [vmem:[#allocation2 + $0x70] sm:$0xff]  ;;  %v9017_v6 = vld [vmem:[#allocation35_spill] sm:$0xff] }
  0xfd   : > { %v387_v14 = vmul.f32 %v4995_v28, %v5006_v32  ;;  %v423_v10 = vmul.f32 %v4998_v29, %v5027_v41  ;;  %v3020_v11 = vadd.f32 %v2996_v25, %v2968_v23  ;;  %v459_v39 = vmul.f32 %v9013_v36, %v5029_v42  ;;  %9015 = vst [vmem:[#allocation80_spill] sm:$0xff] %v5636_v15  ;;  %v5638_v41 = vld [vmem:[#allocation2 + $0x88] sm:$0xff] }
  0xfe   : > { %v3021_v45 = vadd.f32 %v2997_v59, %v2969_v13  ;;  %v495_v34 = vmul.f32 %v9014_v8, %v5031_v43  ;;  %v2740_v32 = vsel %vm2732_vm4, %v2738_v26, %v8539_v19  ;;  %9016 = vst [vmem:[#allocation81_spill] sm:$0xff] %v5638_v41  ;;  %v531_v9 = vmul.f32 %v9017_v6, %v5041_v48  ;;  %v9018_v59 = vld [vmem:[#allocation36_spill] sm:$0xff]  ;;  %v9021_v19 = vld [vmem:[#allocation33_spill] sm:$0xff]  ;;  %v9023_v48 = vld [vmem:[#allocation38_spill] sm:$0xff] }
  0xff   : > { %v403_v25 = vadd.f32 %v387_v14, %v367_v16  ;;  %v567_v23 = vmul.f32 %v9018_v59, %v5043_v49  ;;  %v2791_v13 = vadd.f32 %v2740_v32, %v2354_v30  ;;  %v3072_v42 = vadd.f32 %v3048_v47, %v3020_v11  ;;  %v9020_v43 = vld [vmem:[#allocation28_spill] sm:$0xff]  ;;  %v9022_v16 = vld [vmem:[#allocation37_spill] sm:$0xff]  ;;  %v9025_v30 = vld [vmem:[#allocation39_spill] sm:$0xff] }
 0x100   : > { %v3073_v27 = vadd.f32 %v3049_v12, %v3021_v45  ;;  %v626_v22 = vmul.f32 %v9020_v43, %v5615_v3  ;;  %v654_v57 = vmul.f32 %v9021_v19, %v5623_v7  ;;  %v706_v14 = vmul.f32 %v9022_v16, %v5625_v24 }
 0x101   : > { %v439_v26 = vadd.f32 %v423_v10, %v403_v25  ;;  %v758_v20 = vmul.f32 %v9023_v48, %v5627_v4  ;;  %v3124_v18 = vadd.f32 %v3100_v58, %v3072_v42  ;;  %v810_v47 = vmul.f32 %v9025_v30, %v5636_v15  ;;  %v9026_v58 = vld [vmem:[#allocation43_spill] sm:$0xff] }
 0x102   : > { %v5654_v49 = vadd.f32 %v3101_v61, %v3073_v27  ;;  %v862_v12 = vmul.f32 %v8987_v35, %v5638_v41  ;;  %v678_v10 = vadd.f32 %v654_v57, %v626_v22  ;;  %v914_v45 = vmul.f32 %v8989_v17, %v5644_v50 }
 0x103   : > { %v475_v11 = vadd.f32 %v459_v39, %v439_v26  ;;  %v1063_v32 = vmul.f32 %v8990_v55, %v5615_v3  ;;  %v3175_v25 = vrot.slane %v3124_v18, 6  ;;  %v1091_v61 = vmul.f32 %v9026_v58, %v5623_v7  ;;  %v9027_v58 = vld [vmem:[#allocation49_spill] sm:$0xff] }
 0x104   : > { %9024 = vst [vmem:[#allocation83_spill] sm:$0xff] %v5654_v49  ;;  %v8553_v48 = vrot.slane %v5654_v49, 6  ;;  %v1143_v42 = vmul.f32 %v5099_v44, %v5625_v24  ;;  %v730_v30 = vadd.f32 %v706_v14, %v678_v10  ;;  %v1195_v57 = vmul.f32 %v5103_v62, %v5627_v4 }
 0x105   : > { %v511_v27 = vadd.f32 %v495_v34, %v475_v11  ;;  %v1247_v22 = vmul.f32 %v5107_v33, %v5636_v15  ;;  %v1115_v39 = vadd.f32 %v1091_v61, %v1063_v32  ;;  %v1299_v26 = vmul.f32 %v5111_v1, %v5638_v41  ;;  %v9029_v11 = vld [vmem:[#allocation30_spill] sm:$0xff] }
 0x106   : > { %v3177_v18 = vsel %vm3169_vm5, %v3175_v25, %v8553_v48  ;;  %v1351_v55 = vmul.f32 %v9027_v58, %v5644_v50  ;;  %v782_v14 = vadd.f32 %v758_v20, %v730_v30  ;;  %v1500_v10 = vmul.f32 %v9029_v11, %v5615_v3  ;;  %v9030_v33 = vld [vmem:[#allocation50_spill] sm:$0xff]  ;;  %v9031_v25 = vld [vmem:[#allocation51_spill] sm:$0xff] }
 0x107   : > { %v5680_v44 = vadd.f32 %v3177_v18, %v2791_v13  ;;  %v547_v34 = vadd.f32 %v531_v9, %v511_v27  ;;  %v1167_v62 = vadd.f32 %v1143_v42, %v1115_v39  ;;  %v1528_v49 = vmul.f32 %v9030_v33, %v5623_v7  ;;  %v9032_v9 = vld [vmem:[#allocation53_spill] sm:$0xff]  ;;  %v9033_v30 = vld [vmem:[#allocation55_spill] sm:$0xff]  ;;  %v9034_v39 = vld [vmem:[#allocation56_spill] sm:$0xff] }
 0x108   : > { %v1580_v32 = vmul.f32 %v9031_v25, %v5625_v24  ;;  %v1632_v61 = vmul.f32 %v8994_v5, %v5627_v4  ;;  %v834_v13 = vadd.f32 %v810_v47, %v782_v14  ;;  %v1684_v20 = vmul.f32 %v9032_v9, %v5636_v15  ;;  %v9035_v25 = vld [vmem:[#allocation57_spill] sm:$0xff]  ;;  %v9036_v58 = vld [vmem:[#allocation42_spill] sm:$0xff] }
 0x109   : > { %9028 = vst [vmem:[#allocation84_spill] sm:$0xff] %v5680_v44  ;;  %3246 = vadd.xlane.f32.xlu1 %v5680_v44  ;;  %v583_v48 = vadd.f32 %v567_v23, %v547_v34  ;;  %v1736_v27 = vmul.f32 %v9033_v30, %v5638_v41  ;;  %v1219_v42 = vadd.f32 %v1195_v57, %v1167_v62  ;;  %v9037_v23 = vld [vmem:[#allocation58_spill] sm:$0xff]  ;;  %v9038_v34 = vld [vmem:[#allocation59_spill] sm:$0xff] }
 0x10a   : > { %v1552_v18 = vadd.f32 %v1528_v49, %v1500_v10  ;;  %v1788_v33 = vmul.f32 %v9034_v39, %v5644_v50  ;;  %v1937_v11 = vmul.f32 %v9035_v25, %v5615_v3  ;;  %v886_v1 = vadd.f32 %v862_v12, %v834_v13  ;;  %v9039_v25 = vld [vmem:[#allocation63_spill] sm:$0xff]  ;;  %v9040_v12 = vld [vmem:[#allocation64_spill] sm:$0xff] }
 0x10b   : > { %v605_v5 = vadd.f32 %v9036_v58, %v583_v48  ;;  %v1965_v47 = vmul.f32 %v9037_v23, %v5623_v7  ;;  %v2017_v14 = vmul.f32 %v9038_v34, %v5625_v24  ;;  %v1271_v44 = vadd.f32 %v1247_v22, %v1219_v42  ;;  %v9041_v34 = vld [vmem:[#allocation65_spill] sm:$0xff] }
 0x10c   : > { %v1604_v9 = vadd.f32 %v1580_v32, %v1552_v18  ;;  %v2069_v62 = vmul.f32 %v9001_v40, %v5627_v4  ;;  %v2121_v49 = vmul.f32 %v9002_v2, %v5636_v15  ;;  %v938_v57 = vadd.f32 %v914_v45, %v886_v1  ;;  %v9042_v32 = vld [vmem:[#allocation66_spill] sm:$0xff] }
 0x10d   : > { %v1989_v10 = vadd.f32 %v1965_v47, %v1937_v11  ;;  %v2173_v48 = vmul.f32 %v9039_v25, %v5638_v41  ;;  %v2225_v58 = vmul.f32 %v9040_v12, %v5644_v50  ;;  %v1323_v13 = vadd.f32 %v1299_v26, %v1271_v44  ;;  %v9043_v26 = vld [vmem:[#allocation48_spill] sm:$0xff] }
 0x10e   : > { %v1656_v23 = vadd.f32 %v1632_v61, %v1604_v9  ;;  %v2374_v22 = vmul.f32 %v9041_v34, %v5615_v3  ;;  %v2402_v42 = vmul.f32 %v9042_v32, %v5623_v7  ;;  %v988_v18 = vrot.slane %v938_v57, 1 }
 0x10f   : > { %v2041_v40 = vadd.f32 %v2017_v14, %v1989_v10  ;;  %v2454_v1 = vmul.f32 %v9008_v51, %v5625_v24  ;;  %v2506_v45 = vmul.f32 %v5286_v63, %v5627_v4  ;;  %v1375_v11 = vadd.f32 %v1351_v55, %v1323_v13 }
 0x110   : > { %v1708_v47 = vadd.f32 %v1684_v20, %v1656_v23  ;;  %v2426_v25 = vadd.f32 %v2402_v42, %v2374_v22  ;;  %v2558_v44 = vmul.f32 %v5290_v53, %v5636_v15  ;;  %v9044_v61 = vrot.slane %v9043_v26, 1 }
 0x111   : > { %v2093_v34 = vadd.f32 %v2069_v62, %v2041_v40  ;;  %v2610_v14 = vmul.f32 %v5294_v60, %v5638_v41  ;;  %v2662_v57 = vmul.f32 %v5298_v37, %v5644_v50  ;;  %v1425_v51 = vrot.slane %v1375_v11, 2  ;;  %v9045_v62 = vld [vmem:[#allocation54_spill] sm:$0xff] }
 0x112   : > { %v989_v9 = vsel %vm984_vm0, %v9044_v61, %v988_v18  ;;  %v1760_v63 = vadd.f32 %v1736_v27, %v1708_v47  ;;  %v2478_v55 = vadd.f32 %v2454_v1, %v2426_v25  ;;  %v2811_v23 = vmul.f32 %v5332_v54, %v5615_v3  ;;  %v5747_v61 = vld [vmem:[#allocation2 + $0x38] sm:$0xff] }
 0x113   : > { %v1042_v10 = vadd.f32 %v989_v9, %v605_v5  ;;  %v2145_v20 = vadd.f32 %v2121_v49, %v2093_v34  ;;  %v2839_v13 = vmul.f32 %v5336_v0, %v5623_v7  ;;  %v2891_v40 = vmul.f32 %v5340_v38, %v5625_v24  ;;  %v9047_v9 = vld [vmem:[#allocation61_spill] sm:$0xff] }
 0x114   : > { %v9046_v22 = vrot.slane %v9045_v62, 2  ;;  %v1812_v18 = vadd.f32 %v1788_v33, %v1760_v63  ;;  %v2530_v26 = vadd.f32 %v2506_v45, %v2478_v55  ;;  %v2943_v5 = vmul.f32 %v5344_v31, %v5627_v4  ;;  %v4436_v63 = vld [vmem:[#allocation2 + $0x20] sm:$0xff] }
 0x115   : > { %v2197_v27 = vadd.f32 %v2173_v48, %v2145_v20  ;;  %v2863_v34 = vadd.f32 %v2839_v13, %v2811_v23  ;;  %v2995_v3 = vmul.f32 %v5364_v52, %v5636_v15  ;;  %v3047_v11 = vmul.f32 %v5368_v56, %v5638_v41  ;;  %v5754_v20 = vld [vmem:[#allocation2 + $0x50] sm:$0xff] }
 0x116   : > { %v1426_v42 = vsel %vm1421_vm1, %v9046_v22, %v1425_v51  ;;  %v1862_v49 = vrot.slane %v1812_v18, 3  ;;  %v2582_v1 = vadd.f32 %v2558_v44, %v2530_v26  ;;  %v3099_v47 = vmul.f32 %v5372_v46, %v5644_v50  ;;  %9049 = vst [vmem:[#allocation42_spill] sm:$0xff] %v5754_v20  ;;  %v5762_v26 = vld [vmem:[#allocation2 + $0x80] sm:$0xff] }
 0x117   : > { %v1479_v25 = vadd.f32 %v1426_v42, %v1042_v10  ;;  %v2249_v51 = vadd.f32 %v2225_v58, %v2197_v27  ;;  %v2915_v33 = vadd.f32 %v2891_v40, %v2863_v34  ;;  %v369_v45 = vmul.f32 %v4436_v63, %v4975_v21  ;;  %v5758_v58 = vld [vmem:[#allocation2 + $0x68] sm:$0xff]  ;;  %9051 = vst [vmem:[#allocation54_spill] sm:$0xff] %v5762_v26  ;;  %v5766_v27 = vld [vmem:[#allocation2 + $0x98] sm:$0xff] }
 0x118   : > { %v389_v48 = vmul.f32 %v5747_v61, %v4995_v28  ;;  %v9048_v10 = vrot.slane %v9047_v9, 3  ;;  %v2634_v55 = vadd.f32 %v2610_v14, %v2582_v1  ;;  %v425_v23 = vmul.f32 %v5754_v20, %v4998_v29  ;;  %9050 = vst [vmem:[#allocation48_spill] sm:$0xff] %v5758_v58  ;;  %9052 = vst [vmem:[#allocation61_spill] sm:$0xff] %v5766_v27  ;;  %v9054_v63 = vld [vmem:[#allocation69_spill] sm:$0xff] }
 0x119   : > { %v461_v13 = vmul.f32 %v5758_v58, %v9013_v36  ;;  %v2299_v62 = vrot.slane %v2249_v51, 4  ;;  %v2967_v22 = vadd.f32 %v2943_v5, %v2915_v33  ;;  %v497_v14 = vmul.f32 %v5762_v26, %v9014_v8  ;;  %v5775_v51 = vld [vmem:[#allocation2 + $0xb8] sm:$0xff] }
 0x11a   : > { %v1863_v44 = vsel %vm1858_vm2, %v9048_v10, %v1862_v49  ;;  %v405_v42 = vadd.f32 %v389_v48, %v369_v45  ;;  %v2686_v18 = vadd.f32 %v2662_v57, %v2634_v55  ;;  %v533_v34 = vmul.f32 %v5766_v27, %v9017_v6  ;;  %v9053_v49 = vld [vmem:[#allocation73_spill] sm:$0xff]  ;;  %9056 = vst [vmem:[#allocation69_spill] sm:$0xff] %v5775_v51 }
 0x11b   : > { %v1916_v40 = vadd.f32 %v1863_v44, %v1479_v25  ;;  %v569_v1 = vmul.f32 %v9018_v59, %v9053_v49  ;;  %v9055_v9 = vrot.slane %v9054_v63, 4  ;;  %v3019_v5 = vadd.f32 %v2995_v3, %v2967_v22  ;;  %v9057_v63 = vld [vmem:[#allocation38_spill] sm:$0xff]  ;;  %v9058_v3 = vld [vmem:[#allocation39_spill] sm:$0xff] }
 0x11c   : > { %v441_v57 = vadd.f32 %v425_v23, %v405_v42  ;;  %v629_v33 = vmul.f32 %v9020_v43, %v5623_v7  ;;  %v2736_v48 = vrot.slane %v2686_v18, 5  ;;  %v657_v10 = vmul.f32 %v9021_v19, %v5625_v24  ;;  %v9059_v23 = vld [vmem:[#allocation70_spill] sm:$0xff] }
 0x11d   : > { %v2300_v25 = vsel %vm2295_vm3, %v9055_v9, %v2299_v62  ;;  %v709_v44 = vmul.f32 %v9022_v16, %v5627_v4  ;;  %v3071_v55 = vadd.f32 %v3047_v11, %v3019_v5  ;;  %v761_v62 = vmul.f32 %v9057_v63, %v5636_v15  ;;  %v9061_v5 = vld [vmem:[#allocation29_spill] sm:$0xff] }
 0x11e   : > { %v2353_v45 = vadd.f32 %v2300_v25, %v1916_v40  ;;  %v477_v49 = vadd.f32 %v461_v13, %v441_v57  ;;  %v813_v22 = vmul.f32 %v9058_v3, %v5638_v41  ;;  %v9060_v42 = vrot.slane %v9059_v23, 5  ;;  %v9062_v3 = vld [vmem:[#allocation43_spill] sm:$0xff]  ;;  %v9063_v23 = vld [vmem:[#allocation44_spill] sm:$0xff] }
 0x11f   : > { %v681_v40 = vadd.f32 %v657_v10, %v629_v33  ;;  %v865_v18 = vmul.f32 %v8987_v35, %v5644_v50  ;;  %v917_v25 = vmul.f32 %v8989_v17, %v5775_v51  ;;  %v3123_v11 = vadd.f32 %v3099_v47, %v3071_v55  ;;  %v9064_v33 = vld [vmem:[#allocation45_spill] sm:$0xff]  ;;  %v9065_v17 = vld [vmem:[#allocation46_spill] sm:$0xff]  ;;  %v9066_v47 = vld [vmem:[#allocation47_spill] sm:$0xff] }
 0x120   : > { %v2737_v9 = vsel %vm2732_vm4, %v9060_v42, %v2736_v48  ;;  %v513_v13 = vadd.f32 %v497_v14, %v477_v49  ;;  %v1066_v57 = vmul.f32 %v9061_v5, %v5623_v7  ;;  %v1094_v63 = vmul.f32 %v9062_v3, %v5625_v24 }
 0x121   : > { %v2790_v27 = vadd.f32 %v2737_v9, %v2353_v45  ;;  %v733_v26 = vadd.f32 %v709_v44, %v681_v40  ;;  %v1146_v48 = vmul.f32 %v9063_v23, %v5627_v4  ;;  %v1198_v10 = vmul.f32 %v9064_v33, %v5636_v15  ;;  %v9067_v44 = vld [vmem:[#allocation49_spill] sm:$0xff]  ;;  %v9068_v40 = vld [vmem:[#allocation30_spill] sm:$0xff]  ;;  %v9069_v23 = vld [vmem:[#allocation72_spill] sm:$0xff] }
 0x122   : > { %v3173_v42 = vrot.slane %v3123_v11, 6  ;;  %v549_v35 = vadd.f32 %v533_v34, %v513_v13  ;;  %v1250_v45 = vmul.f32 %v9065_v17, %v5638_v41  ;;  %v1302_v14 = vmul.f32 %v9066_v47, %v5644_v50  ;;  %v9071_v34 = vld [vmem:[#allocation50_spill] sm:$0xff]  ;;  %v9072_v17 = vld [vmem:[#allocation51_spill] sm:$0xff] }
 0x123   : > { %v785_v49 = vadd.f32 %v761_v62, %v733_v26  ;;  %v1118_v55 = vadd.f32 %v1094_v63, %v1066_v57  ;;  %v1354_v9 = vmul.f32 %v9067_v44, %v5775_v51  ;;  %v1503_v3 = vmul.f32 %v9068_v40, %v5623_v7  ;;  %v9074_v62 = vld [vmem:[#allocation52_spill] sm:$0xff] }
 0x124   : > { %v9070_v5 = vrot.slane %v9069_v23, 6  ;;  %v585_v11 = vadd.f32 %v569_v1, %v549_v35  ;;  %v1531_v13 = vmul.f32 %v9071_v34, %v5625_v24  ;;  %v1583_v58 = vmul.f32 %v9072_v17, %v5627_v4  ;;  %v5824_v23 = vld [vmem:[%s8419_s2] ss:$0 sm:$0xff]  ;;  %v9080_v17 = vld [vmem:[#allocation60_spill] sm:$0xff] }
 0x125   : > { %v837_v26 = vadd.f32 %v813_v22, %v785_v49  ;;  %v1170_v63 = vadd.f32 %v1146_v48, %v1118_v55  ;;  %v1635_v57 = vmul.f32 %v9074_v62, %v5636_v15  ;;  %9075 = vst [vmem:[#allocation72_spill] sm:$0xff] %v5824_v23  ;;  %v9077_v49 = vld [vmem:[#allocation57_spill] sm:$0xff] }
 0x126   : > { %v3174_v33 = vsel %vm3169_vm5, %v9070_v5, %v3173_v42  ;;  %v607_v35 = vadd.f32 %v5824_v23, %v585_v11  ;;  %v1555_v1 = vadd.f32 %v1531_v13, %v1503_v3  ;;  %v9076_v5 = vld [vmem:[#allocation53_spill] sm:$0xff]  ;;  %v1940_v55 = vmul.f32 %v9077_v49, %v5623_v7  ;;  %v9078_v11 = vld [vmem:[#allocation58_spill] sm:$0xff]  ;;  %v9079_v13 = vld [vmem:[#allocation59_spill] sm:$0xff] }
 0x127   : > { %v5817_v47 = vadd.f32 %v3174_v33, %v2790_v27  ;;  %v1687_v42 = vmul.f32 %v9076_v5, %v5638_v41  ;;  %v1739_v27 = vmul.f32 %v9033_v30, %v5644_v50  ;;  %v889_v22 = vadd.f32 %v865_v18, %v837_v26 }
 0x128   : > { %v1222_v48 = vadd.f32 %v1198_v10, %v1170_v63  ;;  %v1791_v33 = vmul.f32 %v9034_v39, %v5775_v51  ;;  %v1607_v62 = vadd.f32 %v1583_v58, %v1555_v1  ;;  %v1968_v3 = vmul.f32 %v9078_v11, %v5625_v24  ;;  %v9081_v10 = vld [vmem:[#allocation63_spill] sm:$0xff]  ;;  %v9082_v1 = vld [vmem:[#allocation65_spill] sm:$0xff] }
 0x129   : > { %9073 = vst [vmem:[#allocation70_spill] sm:$0xff] %v5817_v47  ;;  %3244 = vadd.xlane.f32.xlu0 %v5817_v47  ;;  %v2020_v5 = vmul.f32 %v9079_v13, %v5627_v4  ;;  %v2072_v30 = vmul.f32 %v9080_v17, %v5636_v15  ;;  %v941_v34 = vadd.f32 %v917_v25, %v889_v22 }
 0x12a   : > { %v1274_v47 = vadd.f32 %v1250_v45, %v1222_v48  ;;  %v2124_v18 = vmul.f32 %v9002_v2, %v5638_v41  ;;  %v2176_v26 = vmul.f32 %v9081_v10, %v5644_v50  ;;  %v1659_v63 = vadd.f32 %v1635_v57, %v1607_v62  ;;  %v9083_v45 = vld [vmem:[#allocation67_spill] sm:$0xff]  ;;  %v9084_v10 = vld [vmem:[#allocation68_spill] sm:$0xff] }
 0x12b   : > { %v1992_v49 = vadd.f32 %v1968_v3, %v1940_v55  ;;  %v2228_v58 = vmul.f32 %v9040_v12, %v5775_v51  ;;  %v2377_v11 = vmul.f32 %v9082_v1, %v5623_v7  ;;  %v993_v13 = vrot.slane %v941_v34, 1  ;;  %v9085_v55 = vld [vmem:[#allocation75_spill] sm:$0xff] }
 0x12c   : > { %v1326_v39 = vadd.f32 %v1302_v14, %v1274_v47  ;;  %v2405_v25 = vmul.f32 %v9042_v32, %v5625_v24  ;;  %v2457_v22 = vmul.f32 %v9083_v45, %v5627_v4  ;;  %v1711_v48 = vadd.f32 %v1687_v42, %v1659_v63 }
 0x12d   : > { %v2044_v2 = vadd.f32 %v2020_v5, %v1992_v49  ;;  %v2509_v62 = vmul.f32 %v9084_v10, %v5636_v15  ;;  %v2561_v57 = vmul.f32 %v5290_v53, %v5638_v41  ;;  %v9086_v3 = vrot.slane %v9085_v55, 1 }
 0x12e   : > { %v1378_v34 = vadd.f32 %v1354_v9, %v1326_v39  ;;  %v2429_v47 = vadd.f32 %v2405_v25, %v2377_v11  ;;  %v2613_v14 = vmul.f32 %v5294_v60, %v5644_v50  ;;  %v1763_v12 = vadd.f32 %v1739_v27, %v1711_v48 }
 0x12f   : > { %v994_v1 = vsel %vm984_vm0, %v9086_v3, %v993_v13  ;;  %v2096_v45 = vadd.f32 %v2072_v30, %v2044_v2  ;;  %v2665_v5 = vmul.f32 %v5298_v37, %v5775_v51  ;;  %v2814_v63 = vmul.f32 %v5332_v54, %v5623_v7  ;;  %v9087_v2 = vld [vmem:[#allocation76_spill] sm:$0xff] }
 0x130   : > { %v1044_v32 = vadd.f32 %v994_v1, %v607_v35  ;;  %v1430_v42 = vrot.slane %v1378_v34, 2  ;;  %v2481_v49 = vadd.f32 %v2457_v22, %v2429_v47  ;;  %v2842_v55 = vmul.f32 %v5336_v0, %v5625_v24  ;;  %v5882_v3 = vld [vmem:[#allocation2 + $0x30] sm:$0xff]  ;;  %v9089_v34 = vld [vmem:[#allocation77_spill] sm:$0xff] }
 0x131   : > { %v1815_v13 = vadd.f32 %v1791_v33, %v1763_v12  ;;  %v2148_v39 = vadd.f32 %v2124_v18, %v2096_v45  ;;  %v2894_v9 = vmul.f32 %v5340_v38, %v5627_v4  ;;  %v2946_v35 = vmul.f32 %v5344_v31, %v5636_v15 }
 0x132   : > { %v9088_v30 = vrot.slane %v9087_v2, 2  ;;  %v2533_v11 = vadd.f32 %v2509_v62, %v2481_v49  ;;  %v2866_v1 = vadd.f32 %v2842_v55, %v2814_v63  ;;  %v2998_v7 = vmul.f32 %v5364_v52, %v5638_v41  ;;  %v5889_v49 = vld [vmem:[#allocation2 + $0xc0] sm:$0xff]  ;;  %v5899_v2 = vld [vmem:[#allocation2 + $0x78] sm:$0xff] }
 0x133   : > { %v1867_v22 = vrot.slane %v1815_v13, 3  ;;  %v2200_v48 = vadd.f32 %v2176_v26, %v2148_v39  ;;  %v3050_v12 = vmul.f32 %v5368_v56, %v5644_v50  ;;  %v3102_v45 = vmul.f32 %v5372_v46, %v5775_v51  ;;  %v5891_v26 = vld [vmem:[#allocation2 + $0x48] sm:$0xff]  ;;  %v5895_v63 = vld [vmem:[#allocation2 + $0x60] sm:$0xff] }
 0x134   : > { %v1431_v27 = vsel %vm1421_vm1, %v9088_v30, %v1430_v42  ;;  %v2585_v33 = vadd.f32 %v2561_v57, %v2533_v11  ;;  %v2918_v18 = vadd.f32 %v2894_v9, %v2866_v1  ;;  %v370_v62 = vmul.f32 %v5882_v3, %v4975_v21  ;;  %v5903_v11 = vld [vmem:[#allocation2 + $0x90] sm:$0xff] }
 0x135   : > { %v1481_v25 = vadd.f32 %v1431_v27, %v1044_v32  ;;  %v9090_v47 = vrot.slane %v9089_v34, 3  ;;  %v2252_v32 = vadd.f32 %v2228_v58, %v2200_v48  ;;  %v390_v57 = vmul.f32 %v5891_v26, %v4995_v28 }
 0x136   : > { %v426_v55 = vmul.f32 %v5895_v63, %v4998_v29  ;;  %v2637_v39 = vadd.f32 %v2613_v14, %v2585_v33  ;;  %v2970_v9 = vadd.f32 %v2946_v35, %v2918_v18  ;;  %v462_v58 = vmul.f32 %v5899_v2, %v9013_v36 }
 0x137   : > { %v1868_v42 = vsel %vm1858_vm2, %v9090_v47, %v1867_v22  ;;  %v2304_v30 = vrot.slane %v2252_v32, 4  ;;  %v406_v27 = vadd.f32 %v390_v57, %v370_v62  ;;  %v498_v1 = vmul.f32 %v5903_v11, %v9014_v8  ;;  %v9091_v22 = vld [vmem:[#allocation71_spill] sm:$0xff] }
 0x138   : > { %v1918_v13 = vadd.f32 %v1868_v42, %v1481_v25  ;;  %v534_v48 = vmul.f32 %v9017_v6, %v9091_v22  ;;  %v2689_v34 = vadd.f32 %v2665_v5, %v2637_v39  ;;  %v3022_v47 = vadd.f32 %v2998_v7, %v2970_v9  ;;  %v9092_v25 = vld [vmem:[#allocation78_spill] sm:$0xff] }
 0x139   : > { %v570_v14 = vmul.f32 %v9018_v59, %v5889_v49  ;;  %v630_v35 = vmul.f32 %v5882_v3, %v9020_v43  ;;  %v9093_v33 = vrot.slane %v9092_v25, 4  ;;  %v442_v62 = vadd.f32 %v426_v55, %v406_v27  ;;  %v9095_v27 = vld [vmem:[#allocation79_spill] sm:$0xff] }
 0x13a   : > { %v631_v42 = vmul.f32 %v5747_v61, %v9020_v43  ;;  %v658_v32 = vmul.f32 %v5891_v26, %v9021_v19  ;;  %v2741_v5 = vrot.slane %v2689_v34, 5  ;;  %v3074_v7 = vadd.f32 %v3050_v12, %v3022_v47  ;;  %v5931_v47 = vld [vmem:[#allocation2 + $0xc8] sm:$0xff]  ;;  %v9118_v43 = vld [vmem:[#allocation53_spill] sm:$0xff] }
 0x13b   : > { %v2305_v18 = vsel %vm2295_vm3, %v9093_v33, %v2304_v30  ;;  %v659_v39 = vmul.f32 %v5754_v20, %v9021_v19  ;;  %v478_v9 = vadd.f32 %v462_v58, %v442_v62  ;;  %v710_v25 = vmul.f32 %v5895_v63, %v9022_v16  ;;  %v9094_v30 = vld [vmem:[#allocation48_spill] sm:$0xff]  ;;  %9098 = vst [vmem:[#allocation68_spill] sm:$0xff] %v5931_v47 }
 0x13c   : > { %v2355_v57 = vadd.f32 %v2305_v18, %v1918_v13  ;;  %v682_v51 = vadd.f32 %v658_v32, %v630_v35  ;;  %v711_v55 = vmul.f32 %v9094_v30, %v9022_v16  ;;  %v9096_v33 = vrot.slane %v9095_v27, 5  ;;  %v9097_v13 = vld [vmem:[#allocation38_spill] sm:$0xff]  ;;  %v9100_v16 = vld [vmem:[#allocation39_spill] sm:$0xff] }
 0x13d   : > { %v3126_v41 = vadd.f32 %v3102_v45, %v3074_v7  ;;  %v683_v15 = vadd.f32 %v659_v39, %v631_v42  ;;  %v762_v12 = vmul.f32 %v5899_v2, %v9097_v13  ;;  %v514_v58 = vadd.f32 %v498_v1, %v478_v9  ;;  %v9099_v18 = vld [vmem:[#allocation54_spill] sm:$0xff]  ;;  %v9102_v39 = vld [vmem:[#allocation40_spill] sm:$0xff] }
 0x13e   : > { %v2742_v50 = vsel %vm2732_vm4, %v9096_v33, %v2741_v5  ;;  %v734_v35 = vadd.f32 %v710_v25, %v682_v51  ;;  %v763_v62 = vmul.f32 %v9099_v18, %v9097_v13  ;;  %v814_v27 = vmul.f32 %v5903_v11, %v9100_v16  ;;  %v9101_v5 = vld [vmem:[#allocation61_spill] sm:$0xff]  ;;  %v9104_v51 = vld [vmem:[#allocation83_spill] sm:$0xff] }
 0x13f   : > { %v2792_v34 = vadd.f32 %v2742_v50, %v2355_v57  ;;  %v3178_v32 = vrot.slane %v3126_v41, 6  ;;  %v735_v19 = vadd.f32 %v711_v55, %v683_v15  ;;  %v815_v45 = vmul.f32 %v9101_v5, %v9100_v16  ;;  %v9103_v57 = vld [vmem:[#allocation73_spill] sm:$0xff] }
 0x140   : > { %v550_v42 = vadd.f32 %v534_v48, %v514_v58  ;;  %v786_v7 = vadd.f32 %v762_v12, %v734_v35  ;;  %v866_v50 = vmul.f32 %v9102_v39, %v9091_v22  ;;  %v867_v1 = vmul.f32 %v9102_v39, %v9103_v57  ;;  %v9106_v15 = vld [vmem:[#allocation41_spill] sm:$0xff]  ;;  %v9109_v39 = vld [vmem:[#allocation43_spill] sm:$0xff] }
 0x141   : > { %v9105_v9 = vrot.slane %v9104_v51, 6  ;;  %v787_v41 = vadd.f32 %v763_v62, %v735_v19  ;;  %v918_v55 = vmul.f32 %v9106_v15, %v5889_v49  ;;  %v919_v33 = vmul.f32 %v9106_v15, %v5931_v47  ;;  %v9108_v58 = vld [vmem:[#allocation29_spill] sm:$0xff] }
 0x142   : > { %v586_v48 = vadd.f32 %v570_v14, %v550_v42  ;;  %v838_v12 = vadd.f32 %v814_v27, %v786_v7  ;;  %v1067_v35 = vmul.f32 %v5882_v3, %v9108_v58  ;;  %v1068_v51 = vmul.f32 %v5747_v61, %v9108_v58  ;;  %v9110_v14 = vld [vmem:[#allocation44_spill] sm:$0xff] }
 0x143   : > { %v3179_v25 = vsel %vm3169_vm5, %v9105_v9, %v3178_v32  ;;  %v839_v13 = vadd.f32 %v815_v45, %v787_v41  ;;  %v1095_v19 = vmul.f32 %v5891_v26, %v9109_v39  ;;  %v1096_v62 = vmul.f32 %v5754_v20, %v9109_v39 }
 0x144   : > { %v5950_v16 = vadd.f32 %v3179_v25, %v2792_v34  ;;  %v608_v34 = vadd.f32 %v5824_v23, %v586_v48  ;;  %v890_v32 = vadd.f32 %v866_v50, %v838_v12  ;;  %v1147_v27 = vmul.f32 %v5895_v63, %v9110_v14  ;;  %v9111_v25 = vld [vmem:[#allocation45_spill] sm:$0xff] }
 0x145   : > { %v1148_v45 = vmul.f32 %v9094_v30, %v9110_v14  ;;  %v891_v42 = vadd.f32 %v867_v1, %v839_v13  ;;  %v1119_v7 = vadd.f32 %v1095_v19, %v1067_v35  ;;  %v1120_v9 = vadd.f32 %v1096_v62, %v1068_v51  ;;  %v9114_v13 = vld [vmem:[#allocation47_spill] sm:$0xff] }
 0x146   : > { %9107 = vst [vmem:[#allocation75_spill] sm:$0xff] %v5950_v16  ;;  %3248 = vadd.xlane.f32.xlu1 %v5950_v16  ;;  %v1199_v41 = vmul.f32 %v5899_v2, %v9111_v25  ;;  %v942_v58 = vadd.f32 %v918_v55, %v890_v32  ;;  %v1200_v39 = vmul.f32 %v9099_v18, %v9111_v25  ;;  %v9112_v16 = vld [vmem:[#allocation46_spill] sm:$0xff] }
 0x147   : > { %v1251_v48 = vmul.f32 %v5903_v11, %v9112_v16  ;;  %v1252_v50 = vmul.f32 %v9101_v5, %v9112_v16  ;;  %v5974_v12 = vadd.f32 %v919_v33, %v891_v42  ;;  %v1171_v23 = vadd.f32 %v1147_v27, %v1119_v7  ;;  %v9116_v7 = vld [vmem:[#allocation51_spill] sm:$0xff]  ;;  %v9117_v16 = vld [vmem:[#allocation52_spill] sm:$0xff] }
 0x148   : > { %v1172_v14 = vadd.f32 %v1148_v45, %v1120_v9  ;;  %v1303_v1 = vmul.f32 %v9114_v13, %v9091_v22  ;;  %v995_v35 = vrot.slane %v942_v58, 1  ;;  %v1304_v55 = vmul.f32 %v9114_v13, %v9103_v57  ;;  %v9115_v58 = vld [vmem:[#allocation50_spill] sm:$0xff] }
 0x149   : > { %9113 = vst [vmem:[#allocation76_spill] sm:$0xff] %v5974_v12  ;;  %v1355_v51 = vmul.f32 %v9067_v44, %v5889_v49  ;;  %v1356_v19 = vmul.f32 %v9067_v44, %v5931_v47  ;;  %v8606_v62 = vrot.slane %v5974_v12, 1  ;;  %v1223_v32 = vadd.f32 %v1199_v41, %v1171_v23 }
 0x14a   : > { %v1224_v33 = vadd.f32 %v1200_v39, %v1172_v14  ;;  %v1504_v27 = vmul.f32 %v5882_v3, %v9068_v40  ;;  %v1505_v22 = vmul.f32 %v5747_v61, %v9068_v40  ;;  %v1532_v45 = vmul.f32 %v5891_v26, %v9115_v58 }
 0x14b   : > { %v1533_v42 = vmul.f32 %v5754_v20, %v9115_v58  ;;  %v1584_v9 = vmul.f32 %v5895_v63, %v9116_v7  ;;  %v997_v23 = vsel %vm984_vm0, %v995_v35, %v8606_v62  ;;  %v1275_v39 = vadd.f32 %v1251_v48, %v1223_v32  ;;  %v6008_v32 = vld [vmem:[#allocation2 + $0xa8] sm:$0xff] }
 0x14c   : > { %v1276_v14 = vadd.f32 %v1252_v50, %v1224_v33  ;;  %v1585_v41 = vmul.f32 %v9094_v30, %v9116_v7  ;;  %v1045_v44 = vadd.f32 %v997_v23, %v608_v34  ;;  %v1556_v40 = vadd.f32 %v1532_v45, %v1504_v27  ;;  %v9119_v34 = vld [vmem:[#allocation55_spill] sm:$0xff] }
 0x14d   : > { %v1557_v13 = vadd.f32 %v1533_v42, %v1505_v22  ;;  %v1636_v25 = vmul.f32 %v5899_v2, %v9117_v16  ;;  %v1327_v15 = vadd.f32 %v1303_v1, %v1275_v39  ;;  %v1637_v4 = vmul.f32 %v9099_v18, %v9117_v16 }
 0x14e   : > { %v1328_v58 = vadd.f32 %v1304_v55, %v1276_v14  ;;  %v1688_v12 = vmul.f32 %v5903_v11, %v9118_v43  ;;  %v1608_v35 = vadd.f32 %v1584_v9, %v1556_v40  ;;  %v1689_v50 = vmul.f32 %v9101_v5, %v9118_v43  ;;  %v9121_v55 = vld [vmem:[#allocation56_spill] sm:$0xff]  ;;  %v9122_v9 = vld [vmem:[#allocation57_spill] sm:$0xff] }
 0x14f   : > { %v1609_v48 = vadd.f32 %v1585_v41, %v1557_v13  ;;  %v1740_v33 = vmul.f32 %v6008_v32, %v9119_v34  ;;  %v1379_v27 = vadd.f32 %v1355_v51, %v1327_v15  ;;  %v1741_v1 = vmul.f32 %v9119_v34, %v9103_v57  ;;  %v9123_v51 = vld [vmem:[#allocation58_spill] sm:$0xff] }
 0x150   : > { %v6012_v22 = vadd.f32 %v1356_v19, %v1328_v58  ;;  %v1792_v45 = vmul.f32 %v9121_v55, %v5889_v49  ;;  %v1660_v42 = vadd.f32 %v1636_v25, %v1608_v35  ;;  %v1793_v13 = vmul.f32 %v9121_v55, %v5931_v47  ;;  %v9124_v25 = vld [vmem:[#allocation59_spill] sm:$0xff]  ;;  %v9125_v55 = vld [vmem:[#allocation62_spill] sm:$0xff] }
 0x151   : > { %v1661_v40 = vadd.f32 %v1637_v4, %v1609_v48  ;;  %v1941_v23 = vmul.f32 %v5882_v3, %v9122_v9  ;;  %v1432_v39 = vrot.slane %v1379_v27, 2  ;;  %v1942_v15 = vmul.f32 %v5747_v61, %v9122_v9 }
 0x152   : > { %9120 = vst [vmem:[#allocation77_spill] sm:$0xff] %v6012_v22  ;;  %v8611_v14 = vrot.slane %v6012_v22, 2  ;;  %v1969_v57 = vmul.f32 %v5891_v26, %v9123_v51  ;;  %v1712_v19 = vadd.f32 %v1688_v12, %v1660_v42  ;;  %v1970_v4 = vmul.f32 %v5754_v20, %v9123_v51 }
 0x153   : > { %v1713_v58 = vadd.f32 %v1689_v50, %v1661_v40  ;;  %v2021_v41 = vmul.f32 %v5895_v63, %v9124_v25  ;;  %v2022_v27 = vmul.f32 %v9094_v30, %v9124_v25  ;;  %v2073_v62 = vmul.f32 %v5899_v2, %v9080_v17  ;;  %v9127_v25 = vld [vmem:[#allocation63_spill] sm:$0xff] }
 0x154   : > { %v1434_v35 = vsel %vm1421_vm1, %v1432_v39, %v8611_v14  ;;  %v1993_v48 = vadd.f32 %v1969_v57, %v1941_v23  ;;  %v1764_v12 = vadd.f32 %v1740_v33, %v1712_v19  ;;  %v1994_v42 = vadd.f32 %v1970_v4, %v1942_v15  ;;  %v9129_v19 = vld [vmem:[#allocation64_spill] sm:$0xff] }
 0x155   : > { %v1482_v9 = vadd.f32 %v1434_v35, %v1045_v44  ;;  %v1765_v50 = vadd.f32 %v1741_v1, %v1713_v58  ;;  %v2074_v51 = vmul.f32 %v9099_v18, %v9080_v17  ;;  %v2125_v22 = vmul.f32 %v5903_v11, %v9125_v55  ;;  %v6048_v1 = vld [vmem:[#allocation2 + $0xb0] sm:$0xff]  ;;  %v9130_v35 = vld [vmem:[#allocation65_spill] sm:$0xff] }
 0x156   : > { %v2045_v40 = vadd.f32 %v2021_v41, %v1993_v48  ;;  %v2126_v23 = vmul.f32 %v9101_v5, %v9125_v55  ;;  %v1816_v39 = vadd.f32 %v1792_v45, %v1764_v12  ;;  %v2046_v14 = vadd.f32 %v2022_v27, %v1994_v42  ;;  %9128 = vst [vmem:[#allocation78_spill] sm:$0xff] %v6048_v1  ;;  %v9131_v12 = vld [vmem:[#allocation66_spill] sm:$0xff] }
 0x157   : > { %v6044_v57 = vadd.f32 %v1793_v13, %v1765_v50  ;;  %v2177_v44 = vmul.f32 %v6008_v32, %v9127_v25  ;;  %v2178_v15 = vmul.f32 %v6048_v1, %v9127_v25  ;;  %v2229_v58 = vmul.f32 %v9129_v19, %v5889_v49 }
 0x158   : > { %v2097_v33 = vadd.f32 %v2073_v62, %v2045_v40  ;;  %v2230_v4 = vmul.f32 %v9129_v19, %v5931_v47  ;;  %v1869_v41 = vrot.slane %v1816_v39, 3  ;;  %v2098_v13 = vadd.f32 %v2074_v51, %v2046_v14  ;;  %v9132_v19 = vld [vmem:[#allocation67_spill] sm:$0xff] }
 0x159   : > { %9126 = vst [vmem:[#allocation71_spill] sm:$0xff] %v6044_v57  ;;  %v8619_v45 = vrot.slane %v6044_v57, 3  ;;  %v2378_v48 = vmul.f32 %v5882_v3, %v9130_v35  ;;  %v2379_v62 = vmul.f32 %v5747_v61, %v9130_v35  ;;  %v2406_v50 = vmul.f32 %v5891_v26, %v9131_v12 }
 0x15a   : > { %v2149_v27 = vadd.f32 %v2125_v22, %v2097_v33  ;;  %v2407_v42 = vmul.f32 %v5754_v20, %v9131_v12  ;;  %v2150_v39 = vadd.f32 %v2126_v23, %v2098_v13  ;;  %v2458_v14 = vmul.f32 %v5895_v63, %v9132_v19 }
 0x15b   : > { %v1871_v40 = vsel %vm1858_vm2, %v1869_v41, %v8619_v45  ;;  %v2459_v22 = vmul.f32 %v9094_v30, %v9132_v19  ;;  %v2430_v35 = vadd.f32 %v2406_v50, %v2378_v48  ;;  %v2510_v17 = vmul.f32 %v5899_v2, %v9084_v10 }
 0x15c   : > { %v1919_v51 = vadd.f32 %v1871_v40, %v1482_v9  ;;  %v2201_v33 = vadd.f32 %v2177_v44, %v2149_v27  ;;  %v2431_v25 = vadd.f32 %v2407_v42, %v2379_v62  ;;  %v2202_v55 = vadd.f32 %v2178_v15, %v2150_v39 }
 0x15d   : > { %v2511_v57 = vmul.f32 %v9099_v18, %v9084_v10  ;;  %v2562_v23 = vmul.f32 %v5903_v11, %v5290_v53  ;;  %v2482_v13 = vadd.f32 %v2458_v14, %v2430_v35  ;;  %v2563_v19 = vmul.f32 %v9101_v5, %v5290_v53 }
 0x15e   : > { %v2253_v41 = vadd.f32 %v2229_v58, %v2201_v33  ;;  %v2483_v45 = vadd.f32 %v2459_v22, %v2431_v25  ;;  %v6080_v9 = vadd.f32 %v2230_v4, %v2202_v55  ;;  %v2614_v44 = vmul.f32 %v6008_v32, %v5294_v60 }
 0x15f   : > { %v2615_v15 = vmul.f32 %v6048_v1, %v5294_v60  ;;  %v2666_v48 = vmul.f32 %v5298_v37, %v5889_v49  ;;  %v2534_v62 = vadd.f32 %v2510_v17, %v2482_v13  ;;  %v2667_v25 = vmul.f32 %v5298_v37, %v5931_v47 }
 0x160   : > { %9133 = vst [vmem:[#allocation79_spill] sm:$0xff] %v6080_v9  ;;  %v2306_v27 = vrot.slane %v2253_v41, 4  ;;  %v2535_v50 = vadd.f32 %v2511_v57, %v2483_v45  ;;  %v8621_v58 = vrot.slane %v6080_v9, 4  ;;  %v2815_v55 = vmul.f32 %v5882_v3, %v5332_v54 }
 0x161   : > { %v2816_v4 = vmul.f32 %v5747_v61, %v5332_v54  ;;  %v2843_v35 = vmul.f32 %v5891_v26, %v5336_v0  ;;  %v2586_v42 = vadd.f32 %v2562_v23, %v2534_v62  ;;  %v2844_v17 = vmul.f32 %v5754_v20, %v5336_v0 }
 0x162   : > { %v2587_v40 = vadd.f32 %v2563_v19, %v2535_v50  ;;  %v2895_v57 = vmul.f32 %v5895_v63, %v5340_v38  ;;  %v2308_v45 = vsel %vm2295_vm3, %v2306_v27, %v8621_v58  ;;  %v2896_v3 = vmul.f32 %v9094_v30, %v5340_v38 }
 0x163   : > { %v2867_v39 = vadd.f32 %v2843_v35, %v2815_v55  ;;  %v2947_v14 = vmul.f32 %v5899_v2, %v5344_v31  ;;  %v2356_v22 = vadd.f32 %v2308_v45, %v1919_v51  ;;  %v2638_v33 = vadd.f32 %v2614_v44, %v2586_v42 }
 0x164   : > { %v2639_v19 = vadd.f32 %v2615_v15, %v2587_v40  ;;  %v2868_v23 = vadd.f32 %v2844_v17, %v2816_v4  ;;  %v2948_v13 = vmul.f32 %v9099_v18, %v5344_v31  ;;  %v2999_v62 = vmul.f32 %v5903_v11, %v5364_v52 }
 0x165   : > { %v2919_v41 = vadd.f32 %v2895_v57, %v2867_v39  ;;  %v3000_v27 = vmul.f32 %v9101_v5, %v5364_v52  ;;  %v2690_v50 = vadd.f32 %v2666_v48, %v2638_v33  ;;  %v3051_v51 = vmul.f32 %v6008_v32, %v5368_v56 }
 0x166   : > { %v6114_v55 = vadd.f32 %v2667_v25, %v2639_v19  ;;  %v2920_v35 = vadd.f32 %v2896_v3, %v2868_v23  ;;  %v3052_v15 = vmul.f32 %v6048_v1, %v5368_v56  ;;  %v3103_v4 = vmul.f32 %v5372_v46, %v5889_v49 }
 0x167   : > { %v2971_v44 = vadd.f32 %v2947_v14, %v2919_v41  ;;  %v3104_v42 = vmul.f32 %v5372_v46, %v5931_v47  ;;  %v2743_v40 = vrot.slane %v2690_v50, 5  ;;  %v371_v25 = vmul.f32 %v5747_v61, %v4975_v21 }
 0x168   : > { %9134 = vst [vmem:[#allocation73_spill] sm:$0xff] %v6114_v55  ;;  %v8622_v17 = vrot.slane %v6114_v55, 5  ;;  %v2972_v48 = vadd.f32 %v2948_v13, %v2920_v35  ;;  %v391_v45 = vmul.f32 %v5754_v20, %v4995_v28  ;;  %v427_v39 = vmul.f32 %v9094_v30, %v4998_v29  ;;  %v6140_v13 = vld [vmem:[#allocation2 + $0xd0] sm:$0xff] }
 0x169   : > { %v3023_v57 = vadd.f32 %v2999_v62, %v2971_v44  ;;  %v463_v3 = vmul.f32 %v9099_v18, %v9013_v36  ;;  %v499_v19 = vmul.f32 %v9101_v5, %v9014_v8  ;;  %v535_v61 = vmul.f32 %v6048_v1, %v9017_v6  ;;  %9135 = vst [vmem:[#allocation83_spill] sm:$0xff] %v6140_v13  ;;  %v9136_v44 = vld [vmem:[#allocation28_spill] sm:$0xff]  ;;  %v9140_v5 = vld [vmem:[#allocation37_spill] sm:$0xff] }
 0x16a   : > { %v2745_v14 = vsel %vm2732_vm4, %v2743_v40, %v8622_v17  ;;  %v3024_v33 = vadd.f32 %v3000_v27, %v2972_v48  ;;  %v407_v62 = vadd.f32 %v391_v45, %v371_v25  ;;  %v571_v50 = vmul.f32 %v9018_v59, %v5931_v47  ;;  %v9137_v40 = vld [vmem:[#allocation27_spill] sm:$0xff]  ;;  %v9138_v27 = vld [vmem:[#allocation33_spill] sm:$0xff]  ;;  %v9139_v17 = vld [vmem:[#allocation80_spill] sm:$0xff] }
 0x16b   : > { %v2793_v23 = vadd.f32 %v2745_v14, %v2356_v22  ;;  %v3075_v41 = vadd.f32 %v3051_v51, %v3023_v57  ;;  %v632_v58 = vmul.f32 %v9136_v44, %v5625_v24  ;;  %v660_v48 = vmul.f32 %v9138_v27, %v9137_v40  ;;  %v9141_v22 = vld [vmem:[#allocation81_spill] sm:$0xff]  ;;  %v9142_v51 = vld [vmem:[#allocation38_spill] sm:$0xff]  ;;  %v9144_v25 = vld [vmem:[#allocation39_spill] sm:$0xff] }
 0x16c   : > { %v3076_v35 = vadd.f32 %v3052_v15, %v3024_v33  ;;  %v712_v55 = vmul.f32 %v9140_v5, %v9139_v17  ;;  %v443_v1 = vadd.f32 %v427_v39, %v407_v62  ;;  %v764_v57 = vmul.f32 %v9142_v51, %v9141_v22  ;;  %v9143_v14 = vld [vmem:[#allocation82_spill] sm:$0xff]  ;;  %v9145_v33 = vld [vmem:[#allocation69_spill] sm:$0xff]  ;;  %v9146_v47 = vld [vmem:[#allocation40_spill] sm:$0xff] }
 0x16d   : > { %v3127_v18 = vadd.f32 %v3103_v4, %v3075_v41  ;;  %v816_v45 = vmul.f32 %v9144_v25, %v9143_v14  ;;  %v684_v15 = vadd.f32 %v660_v48, %v632_v58  ;;  %v868_v20 = vmul.f32 %v9146_v47, %v9145_v33  ;;  %v9147_v44 = vld [vmem:[#allocation41_spill] sm:$0xff]  ;;  %v9149_v41 = vld [vmem:[#allocation43_spill] sm:$0xff] }
 0x16e   : > { %v6154_v30 = vadd.f32 %v3104_v42, %v3076_v35  ;;  %v920_v27 = vmul.f32 %v9147_v44, %v6140_v13  ;;  %v479_v9 = vadd.f32 %v463_v3, %v443_v1  ;;  %v9148_v4 = vld [vmem:[#allocation29_spill] sm:$0xff]  ;;  %v1097_v62 = vmul.f32 %v9149_v41, %v9137_v40  ;;  %v9150_v42 = vld [vmem:[#allocation44_spill] sm:$0xff]  ;;  %v9153_v3 = vld [vmem:[#allocation47_spill] sm:$0xff] }
 0x16f   : > { %v3180_v59 = vrot.slane %v3127_v18, 6  ;;  %v1069_v39 = vmul.f32 %v9148_v4, %v5625_v24  ;;  %v736_v25 = vadd.f32 %v712_v55, %v684_v15  ;;  %v1149_v58 = vmul.f32 %v9150_v42, %v9139_v17  ;;  %v9151_v35 = vld [vmem:[#allocation45_spill] sm:$0xff]  ;;  %v9152_v18 = vld [vmem:[#allocation46_spill] sm:$0xff] }
 0x170   : > { %v8636_v51 = vrot.slane %v6154_v30, 6  ;;  %v1201_v48 = vmul.f32 %v9151_v35, %v9141_v22  ;;  %v515_v47 = vadd.f32 %v499_v19, %v479_v9  ;;  %v1253_v1 = vmul.f32 %v9152_v18, %v9143_v14  ;;  %v9154_v55 = vld [vmem:[#allocation49_spill] sm:$0xff]  ;;  %v9155_v42 = vld [vmem:[#allocation30_spill] sm:$0xff] }
 0x171   : > { %v1121_v5 = vadd.f32 %v1097_v62, %v1069_v39  ;;  %v1305_v4 = vmul.f32 %v9153_v3, %v9145_v33  ;;  %v788_v44 = vadd.f32 %v764_v57, %v736_v25  ;;  %v1357_v15 = vmul.f32 %v9154_v55, %v6140_v13  ;;  %v9157_v39 = vld [vmem:[#allocation50_spill] sm:$0xff] }
 0x172   : > { %v3182_v41 = vsel %vm3169_vm5, %v3180_v59, %v8636_v51  ;;  %v1506_v6 = vmul.f32 %v9155_v42, %v5625_v24  ;;  %v551_v9 = vadd.f32 %v535_v61, %v515_v47  ;;  %v1534_v62 = vmul.f32 %v9157_v39, %v9137_v40  ;;  %v9158_v61 = vld [vmem:[#allocation56_spill] sm:$0xff]  ;;  %v9160_v51 = vld [vmem:[#allocation58_spill] sm:$0xff] }
 0x173   : > { %v6180_v35 = vadd.f32 %v3182_v41, %v2793_v23  ;;  %v1173_v19 = vadd.f32 %v1149_v58, %v1121_v5  ;;  %v840_v18 = vadd.f32 %v816_v45, %v788_v44  ;;  %v1586_v3 = vmul.f32 %v9116_v7, %v9139_v17  ;;  %v9159_v45 = vld [vmem:[#allocation57_spill] sm:$0xff]  ;;  %v9161_v7 = vld [vmem:[#allocation72_spill] sm:$0xff] }
 0x174   : > { %v1638_v59 = vmul.f32 %v9117_v16, %v9141_v22  ;;  %v1690_v57 = vmul.f32 %v9118_v43, %v9143_v14  ;;  %v587_v25 = vadd.f32 %v571_v50, %v551_v9  ;;  %v1558_v41 = vadd.f32 %v1534_v62, %v1506_v6  ;;  %v9162_v50 = vld [vmem:[#allocation59_spill] sm:$0xff] }
 0x175   : > { %9156 = vst [vmem:[#allocation27_spill] sm:$0xff] %v6180_v35  ;;  %3250 = vadd.xlane.f32.xlu0 %v6180_v35  ;;  %v1225_v23 = vadd.f32 %v1201_v48, %v1173_v19  ;;  %v1742_v47 = vmul.f32 %v9119_v34, %v9145_v33  ;;  %v892_v5 = vadd.f32 %v868_v20, %v840_v18  ;;  %v9163_v20 = vld [vmem:[#allocation60_spill] sm:$0xff]  ;;  %v9164_v19 = vld [vmem:[#allocation62_spill] sm:$0xff]  ;;  %v9165_v34 = vld [vmem:[#allocation63_spill] sm:$0xff] }
 0x176   : > { %v1794_v44 = vmul.f32 %v9158_v61, %v6140_v13  ;;  %v1943_v58 = vmul.f32 %v9159_v45, %v5625_v24  ;;  %v1971_v16 = vmul.f32 %v9160_v51, %v9137_v40  ;;  %v609_v43 = vadd.f32 %v9161_v7, %v587_v25  ;;  %v9166_v25 = vld [vmem:[#allocation64_spill] sm:$0xff] }
 0x177   : > { %v1277_v39 = vadd.f32 %v1253_v1, %v1225_v23  ;;  %v1610_v35 = vadd.f32 %v1586_v3, %v1558_v41  ;;  %v2023_v6 = vmul.f32 %v9162_v50, %v9139_v17  ;;  %v944_v48 = vadd.f32 %v920_v27, %v892_v5  ;;  %v9167_v41 = vld [vmem:[#allocation65_spill] sm:$0xff] }
 0x178   : > { %v1995_v9 = vadd.f32 %v1971_v16, %v1943_v58  ;;  %v2075_v18 = vmul.f32 %v9163_v20, %v9141_v22  ;;  %v2127_v62 = vmul.f32 %v9164_v19, %v9143_v14  ;;  %v2179_v51 = vmul.f32 %v9165_v34, %v9145_v33  ;;  %v9168_v19 = vld [vmem:[#allocation67_spill] sm:$0xff] }
 0x179   : > { %v1329_v61 = vadd.f32 %v1305_v4, %v1277_v39  ;;  %v1662_v45 = vadd.f32 %v1638_v59, %v1610_v35  ;;  %v2231_v1 = vmul.f32 %v9166_v25, %v6140_v13  ;;  %v998_v3 = vrot.slane %v944_v48, 1  ;;  %v9169_v39 = vld [vmem:[#allocation76_spill] sm:$0xff] }
 0x17a   : > { %v2047_v23 = vadd.f32 %v2023_v6, %v1995_v9  ;;  %v2380_v27 = vmul.f32 %v9167_v41, %v5625_v24  ;;  %v2408_v16 = vmul.f32 %v9131_v12, %v9137_v40  ;;  %v2460_v4 = vmul.f32 %v9168_v19, %v9139_v17 }
 0x17b   : > { %v1381_v5 = vadd.f32 %v1357_v15, %v1329_v61  ;;  %v1714_v58 = vadd.f32 %v1690_v57, %v1662_v45  ;;  %v2512_v35 = vmul.f32 %v9084_v10, %v9141_v22  ;;  %v9170_v59 = vrot.slane %v9169_v39, 1 }
 0x17c   : > { %v2099_v48 = vadd.f32 %v2075_v18, %v2047_v23  ;;  %v2432_v6 = vadd.f32 %v2408_v16, %v2380_v27  ;;  %v2564_v9 = vmul.f32 %v5290_v53, %v9143_v14  ;;  %v2616_v15 = vmul.f32 %v5294_v60, %v9145_v33  ;;  %v6232_v16 = vld [vmem:[#allocation2 + $0x58] sm:$0xff] }
 0x17d   : > { %v999_v25 = vsel %vm984_vm0, %v9170_v59, %v998_v3  ;;  %v1435_v34 = vrot.slane %v1381_v5, 2  ;;  %v1766_v40 = vadd.f32 %v1742_v47, %v1714_v58  ;;  %v2668_v22 = vmul.f32 %v5298_v37, %v6140_v13  ;;  %v9171_v3 = vld [vmem:[#allocation77_spill] sm:$0xff]  ;;  %9173 = vst [vmem:[#allocation80_spill] sm:$0xff] %v6232_v16  ;;  %v6238_v58 = vld [vmem:[#allocation2 + $0x88] sm:$0xff] }
 0x17e   : > { %v1046_v41 = vadd.f32 %v999_v25, %v609_v43  ;;  %v2151_v57 = vadd.f32 %v2127_v62, %v2099_v48  ;;  %v2484_v61 = vadd.f32 %v2460_v4, %v2432_v6  ;;  %v2817_v45 = vmul.f32 %v5332_v54, %v5625_v24  ;;  %9174 = vst [vmem:[#allocation81_spill] sm:$0xff] %v6238_v58 }
 0x17f   : > { %v9172_v18 = vrot.slane %v9171_v3, 2  ;;  %v1818_v27 = vadd.f32 %v1794_v44, %v1766_v40  ;;  %v2845_v43 = vmul.f32 %v6232_v16, %v5336_v0  ;;  %v2897_v47 = vmul.f32 %v5340_v38, %v9139_v17 }
 0x180   : > { %v2203_v25 = vadd.f32 %v2179_v51, %v2151_v57  ;;  %v2536_v5 = vadd.f32 %v2512_v35, %v2484_v61  ;;  %v2949_v24 = vmul.f32 %v6238_v58, %v5344_v31  ;;  %v3053_v44 = vmul.f32 %v5368_v56, %v9145_v33  ;;  %v6253_v57 = vld [vmem:[#allocation2 + $0xd8] sm:$0xff]  ;;  %v9186_v58 = vld [vmem:[#allocation54_spill] sm:$0xff] }
 0x181   : > { %v1436_v23 = vsel %vm1421_vm1, %v9172_v18, %v1435_v34  ;;  %v1872_v4 = vrot.slane %v1818_v27, 3  ;;  %v2869_v39 = vadd.f32 %v2845_v43, %v2817_v45  ;;  %v3001_v34 = vmul.f32 %v5364_v52, %v9143_v14  ;;  %v9177_v27 = vld [vmem:[#allocation35_spill] sm:$0xff] }
 0x182   : > { %v1483_v62 = vadd.f32 %v1436_v23, %v1046_v41  ;;  %v2255_v59 = vadd.f32 %v2231_v1, %v2203_v25  ;;  %v2588_v48 = vadd.f32 %v2564_v9, %v2536_v5  ;;  %v3105_v17 = vmul.f32 %v5372_v46, %v6140_v13  ;;  %v9175_v41 = vld [vmem:[#allocation71_spill] sm:$0xff] }
 0x183   : > { %v372_v51 = vmul.f32 %v5891_v26, %v4975_v21  ;;  %v9176_v35 = vrot.slane %v9175_v41, 3  ;;  %v2921_v40 = vadd.f32 %v2897_v47, %v2869_v39  ;;  %v392_v14 = vmul.f32 %v5895_v63, %v4995_v28  ;;  %v9178_v47 = vld [vmem:[#allocation79_spill] sm:$0xff]  ;;  %v9182_v41 = vld [vmem:[#allocation42_spill] sm:$0xff] }
 0x184   : > { %v428_v33 = vmul.f32 %v5899_v2, %v4998_v29  ;;  %v2309_v9 = vrot.slane %v2255_v59, 4  ;;  %v2640_v61 = vadd.f32 %v2616_v15, %v2588_v48  ;;  %v464_v45 = vmul.f32 %v5903_v11, %v9013_v36  ;;  %v9181_v15 = vld [vmem:[#allocation28_spill] sm:$0xff]  ;;  %v9193_v36 = vld [vmem:[#allocation78_spill] sm:$0xff] }
 0x185   : > { %v1873_v6 = vsel %vm1858_vm2, %v9176_v35, %v1872_v4  ;;  %v2973_v3 = vadd.f32 %v2949_v24, %v2921_v40  ;;  %v408_v18 = vadd.f32 %v392_v14, %v372_v51  ;;  %v500_v23 = vmul.f32 %v6008_v32, %v9014_v8  ;;  %v9183_v40 = vld [vmem:[#allocation33_spill] sm:$0xff]  ;;  %v6289_v8 = vld [vmem:[#allocation2 + $0xe0] sm:$0xff] }
 0x186   : > { %v1920_v1 = vadd.f32 %v1873_v6, %v1483_v62  ;;  %v536_v43 = vmul.f32 %v9177_v27, %v5889_v49  ;;  %v9179_v25 = vrot.slane %v9178_v47, 4  ;;  %v2692_v4 = vadd.f32 %v2668_v22, %v2640_v61  ;;  %v9180_v62 = vld [vmem:[#allocation36_spill] sm:$0xff]  ;;  %v9185_v22 = vld [vmem:[#allocation37_spill] sm:$0xff]  ;;  %9191 = vst [vmem:[#allocation82_spill] sm:$0xff] %v6289_v8 }
 0x187   : > { %v572_v39 = vmul.f32 %v9180_v62, %v6253_v57  ;;  %v633_v59 = vmul.f32 %v5891_v26, %v9181_v15  ;;  %v3025_v24 = vadd.f32 %v3001_v34, %v2973_v3  ;;  %v444_v51 = vadd.f32 %v428_v33, %v408_v18  ;;  %v9184_v47 = vld [vmem:[#allocation48_spill] sm:$0xff]  ;;  %v9187_v34 = vld [vmem:[#allocation38_spill] sm:$0xff]  ;;  %v9188_v3 = vld [vmem:[#allocation73_spill] sm:$0xff] }
 0x188   : > { %v2310_v5 = vsel %vm2295_vm3, %v9179_v25, %v2309_v9  ;;  %v634_v35 = vmul.f32 %v9182_v41, %v9181_v15  ;;  %v2746_v6 = vrot.slane %v2692_v4, 5  ;;  %v661_v14 = vmul.f32 %v5895_v63, %v9183_v40  ;;  %v9190_v15 = vld [vmem:[#allocation61_spill] sm:$0xff] }
 0x189   : > { %v2357_v48 = vadd.f32 %v2310_v5, %v1920_v1  ;;  %v662_v9 = vmul.f32 %v9184_v47, %v9183_v40  ;;  %v713_v61 = vmul.f32 %v5899_v2, %v9185_v22  ;;  %v3077_v25 = vadd.f32 %v3053_v44, %v3025_v24 }
 0x18a   : > { %v480_v13 = vadd.f32 %v464_v45, %v444_v51  ;;  %v714_v1 = vmul.f32 %v9186_v58, %v9185_v22  ;;  %v765_v33 = vmul.f32 %v5903_v11, %v9187_v34  ;;  %v9189_v18 = vrot.slane %v9188_v3, 5  ;;  %v9192_v45 = vld [vmem:[#allocation39_spill] sm:$0xff] }
 0x18b   : > { %v685_v4 = vadd.f32 %v661_v14, %v633_v59  ;;  %v686_v16 = vadd.f32 %v662_v9, %v634_v35  ;;  %v766_v40 = vmul.f32 %v9190_v15, %v9187_v34  ;;  %v3129_v27 = vadd.f32 %v3105_v17, %v3077_v25  ;;  %v9195_v9 = vld [vmem:[#allocation68_spill] sm:$0xff]  ;;  %v9196_v17 = vld [vmem:[#allocation41_spill] sm:$0xff] }
 0x18c   : > { %v2747_v5 = vsel %vm2732_vm4, %v9189_v18, %v2746_v6  ;;  %v516_v44 = vadd.f32 %v500_v23, %v480_v13  ;;  %v817_v24 = vmul.f32 %v6008_v32, %v9192_v45  ;;  %v818_v3 = vmul.f32 %v9193_v36, %v9192_v45  ;;  %v9194_v6 = vld [vmem:[#allocation40_spill] sm:$0xff] }
 0x18d   : > { %v2794_v62 = vadd.f32 %v2747_v5, %v2357_v48  ;;  %v737_v51 = vadd.f32 %v713_v61, %v685_v4  ;;  %v738_v22 = vadd.f32 %v714_v1, %v686_v16  ;;  %v869_v59 = vmul.f32 %v9194_v6, %v5889_v49  ;;  %v9197_v16 = vld [vmem:[#allocation29_spill] sm:$0xff]  ;;  %v9199_v4 = vld [vmem:[#allocation43_spill] sm:$0xff] }
 0x18e   : > { %v3183_v35 = vrot.slane %v3129_v27, 6  ;;  %v552_v14 = vadd.f32 %v536_v43, %v516_v44  ;;  %v870_v48 = vmul.f32 %v9194_v6, %v9195_v9  ;;  %v921_v25 = vmul.f32 %v9196_v17, %v6253_v57 }
 0x18f   : > { %v789_v13 = vadd.f32 %v765_v33, %v737_v51  ;;  %v790_v23 = vadd.f32 %v766_v40, %v738_v22  ;;  %v922_v61 = vmul.f32 %v9196_v17, %v6289_v8  ;;  %v1070_v1 = vmul.f32 %v5891_v26, %v9197_v16 }
 0x190   : > { %v9198_v18 = vrot.slane %v6154_v30, 6  ;;  %v588_v27 = vadd.f32 %v572_v39, %v552_v14  ;;  %v1071_v43 = vmul.f32 %v9182_v41, %v9197_v16  ;;  %v1098_v44 = vmul.f32 %v5895_v63, %v9199_v4  ;;  %v9201_v30 = vld [vmem:[#allocation44_spill] sm:$0xff] }
 0x191   : > { %v841_v40 = vadd.f32 %v817_v24, %v789_v13  ;;  %v842_v22 = vadd.f32 %v818_v3, %v790_v23  ;;  %v1099_v33 = vmul.f32 %v9184_v47, %v9199_v4  ;;  %v1151_v39 = vmul.f32 %v9186_v58, %v9201_v30 }
 0x192   : > { %v3184_v5 = vsel %vm3169_vm5, %v9198_v18, %v3183_v35  ;;  %v610_v51 = vadd.f32 %v9161_v7, %v588_v27  ;;  %v1122_v17 = vadd.f32 %v1098_v44, %v1070_v1  ;;  %v1150_v35 = vmul.f32 %v5899_v2, %v9201_v30  ;;  %v9203_v7 = vld [vmem:[#allocation46_spill] sm:$0xff] }
 0x193   : > { %v6312_v6 = vadd.f32 %v3184_v5, %v2794_v62  ;;  %v893_v14 = vadd.f32 %v869_v59, %v841_v40  ;;  %v894_v18 = vadd.f32 %v870_v48, %v842_v22  ;;  %v1123_v62 = vadd.f32 %v1099_v33, %v1071_v43  ;;  %v9202_v5 = vld [vmem:[#allocation45_spill] sm:$0xff]  ;;  %v9205_v59 = vld [vmem:[#allocation47_spill] sm:$0xff] }
 0x194   : > { %v1202_v24 = vmul.f32 %v5903_v11, %v9202_v5  ;;  %v1174_v3 = vadd.f32 %v1150_v35, %v1122_v17  ;;  %v1203_v13 = vmul.f32 %v9190_v15, %v9202_v5  ;;  %v1254_v23 = vmul.f32 %v6008_v32, %v9203_v7 }
 0x195   : > { %9200 = vst [vmem:[#allocation69_spill] sm:$0xff] %v6312_v6  ;;  %3252 = vadd.xlane.f32.xlu1 %v6312_v6  ;;  %v1255_v1 = vmul.f32 %v9193_v36, %v9203_v7  ;;  %v945_v27 = vadd.f32 %v921_v25, %v893_v14  ;;  %v6330_v44 = vadd.f32 %v922_v61, %v894_v18  ;;  %v9206_v18 = vld [vmem:[#allocation50_spill] sm:$0xff]  ;;  %v9208_v7 = vld [vmem:[#allocation52_spill] sm:$0xff] }
 0x196   : > { %v1175_v6 = vadd.f32 %v1151_v39, %v1123_v62  ;;  %v1306_v48 = vmul.f32 %v9205_v59, %v5889_v49  ;;  %v1226_v43 = vadd.f32 %v1202_v24, %v1174_v3  ;;  %v1307_v17 = vmul.f32 %v9205_v59, %v9195_v9 }
 0x197   : > { %9204 = vst [vmem:[#allocation72_spill] sm:$0xff] %v6330_v44  ;;  %v1358_v40 = vmul.f32 %v9154_v55, %v6253_v57  ;;  %v1359_v22 = vmul.f32 %v9154_v55, %v6289_v8  ;;  %v1000_v33 = vrot.slane %v945_v27, 1  ;;  %v8662_v35 = vrot.slane %v6330_v44, 1  ;;  %v9207_v55 = vld [vmem:[#allocation51_spill] sm:$0xff]  ;;  %v9209_v44 = vld [vmem:[#allocation53_spill] sm:$0xff] }
 0x198   : > { %v1227_v25 = vadd.f32 %v1203_v13, %v1175_v6  ;;  %v1507_v61 = vmul.f32 %v5891_v26, %v9155_v42  ;;  %v1278_v39 = vadd.f32 %v1254_v23, %v1226_v43  ;;  %v1508_v14 = vmul.f32 %v9182_v41, %v9155_v42 }
 0x199   : > { %v1535_v62 = vmul.f32 %v5895_v63, %v9206_v18  ;;  %v1536_v24 = vmul.f32 %v9184_v47, %v9206_v18  ;;  %v1002_v3 = vsel %vm984_vm0, %v1000_v33, %v8662_v35  ;;  %v1587_v6 = vmul.f32 %v5899_v2, %v9207_v55 }
 0x19a   : > { %v1279_v27 = vadd.f32 %v1255_v1, %v1227_v25  ;;  %v1588_v13 = vmul.f32 %v9186_v58, %v9207_v55  ;;  %v1047_v23 = vadd.f32 %v1002_v3, %v610_v51  ;;  %v1330_v43 = vadd.f32 %v1306_v48, %v1278_v39  ;;  %v9211_v48 = vld [vmem:[#allocation55_spill] sm:$0xff]  ;;  %v9212_v39 = vld [vmem:[#allocation56_spill] sm:$0xff]  ;;  %v9213_v3 = vld [vmem:[#allocation57_spill] sm:$0xff] }
 0x19b   : > { %v1559_v41 = vadd.f32 %v1535_v62, %v1507_v61  ;;  %v1560_v42 = vadd.f32 %v1536_v24, %v1508_v14  ;;  %v1639_v5 = vmul.f32 %v5903_v11, %v9208_v7  ;;  %v1640_v47 = vmul.f32 %v9190_v15, %v9208_v7 }
 0x19c   : > { %v1331_v59 = vadd.f32 %v1307_v17, %v1279_v27  ;;  %v1691_v1 = vmul.f32 %v6008_v32, %v9209_v44  ;;  %v1382_v33 = vadd.f32 %v1358_v40, %v1330_v43  ;;  %v1692_v58 = vmul.f32 %v9193_v36, %v9209_v44  ;;  %v6398_v44 = vld [vmem:[#allocation2 + $0x98] sm:$0xff] }
 0x19d   : > { %v1611_v25 = vadd.f32 %v1587_v6, %v1559_v41  ;;  %v1612_v35 = vadd.f32 %v1588_v13, %v1560_v42  ;;  %v1743_v17 = vmul.f32 %v9211_v48, %v5889_v49  ;;  %v1744_v61 = vmul.f32 %v9211_v48, %v9195_v9  ;;  %v9214_v6 = vld [vmem:[#allocation58_spill] sm:$0xff]  ;;  %9216 = vst [vmem:[#allocation71_spill] sm:$0xff] %v6398_v44 }
 0x19e   : > { %v6364_v51 = vadd.f32 %v1359_v22, %v1331_v59  ;;  %v1795_v15 = vmul.f32 %v9212_v39, %v6253_v57  ;;  %v1437_v14 = vrot.slane %v1382_v33, 2  ;;  %v1796_v42 = vmul.f32 %v9212_v39, %v6289_v8  ;;  %v6377_v22 = vld [vmem:[#allocation2 + $0x50] sm:$0xff]  ;;  %v6392_v39 = vld [vmem:[#allocation2 + $0x80] sm:$0xff] }
 0x19f   : > { %v1663_v62 = vadd.f32 %v1639_v5, %v1611_v25  ;;  %v1664_v24 = vadd.f32 %v1640_v47, %v1612_v35  ;;  %v1944_v59 = vmul.f32 %v5891_v26, %v9213_v3  ;;  %v1945_v27 = vmul.f32 %v6377_v22, %v9213_v3  ;;  %v6383_v5 = vld [vmem:[#allocation2 + $0x68] sm:$0xff]  ;;  %9215 = vst [vmem:[#allocation77_spill] sm:$0xff] %v6392_v39 }
 0x1a0   : > { %9210 = vst [vmem:[#allocation76_spill] sm:$0xff] %v6364_v51  ;;  %v8669_v40 = vrot.slane %v6364_v51, 2  ;;  %v1972_v13 = vmul.f32 %v5895_v63, %v9214_v6  ;;  %v1973_v35 = vmul.f32 %v6383_v5, %v9214_v6  ;;  %v2024_v47 = vmul.f32 %v5899_v2, %v9162_v50 }
 0x1a1   : > { %v1715_v43 = vadd.f32 %v1691_v1, %v1663_v62  ;;  %v1716_v41 = vadd.f32 %v1692_v58, %v1664_v24  ;;  %v2025_v3 = vmul.f32 %v6392_v39, %v9162_v50  ;;  %v2076_v1 = vmul.f32 %v5903_v11, %v9163_v20 }
 0x1a2   : > { %v1439_v33 = vsel %vm1421_vm1, %v1437_v14, %v8669_v40  ;;  %v1996_v25 = vadd.f32 %v1972_v13, %v1944_v59  ;;  %v1997_v6 = vadd.f32 %v1973_v35, %v1945_v27  ;;  %v2077_v51 = vmul.f32 %v6398_v44, %v9163_v20  ;;  %v9217_v14 = vld [vmem:[#allocation62_spill] sm:$0xff] }
 0x1a3   : > { %v1484_v58 = vadd.f32 %v1439_v33, %v1047_v23  ;;  %v1767_v62 = vadd.f32 %v1743_v17, %v1715_v43  ;;  %v1768_v24 = vadd.f32 %v1744_v61, %v1716_v41  ;;  %v2128_v59 = vmul.f32 %v6008_v32, %v9217_v14  ;;  %v9219_v23 = vld [vmem:[#allocation63_spill] sm:$0xff]  ;;  %v9220_v43 = vld [vmem:[#allocation64_spill] sm:$0xff] }
 0x1a4   : > { %v2048_v48 = vadd.f32 %v2024_v47, %v1996_v25  ;;  %v2129_v13 = vmul.f32 %v9193_v36, %v9217_v14  ;;  %v2049_v7 = vadd.f32 %v2025_v3, %v1997_v6  ;;  %v2180_v17 = vmul.f32 %v9219_v23, %v5889_v49 }
 0x1a5   : > { %v1819_v40 = vadd.f32 %v1795_v15, %v1767_v62  ;;  %v6406_v50 = vadd.f32 %v1796_v42, %v1768_v24  ;;  %v2181_v27 = vmul.f32 %v9219_v23, %v9195_v9  ;;  %v2232_v41 = vmul.f32 %v9220_v43, %v6253_v57  ;;  %v9221_v42 = vld [vmem:[#allocation65_spill] sm:$0xff] }
 0x1a6   : > { %v2100_v61 = vadd.f32 %v2076_v1, %v2048_v48  ;;  %v2233_v35 = vmul.f32 %v9220_v43, %v6289_v8  ;;  %v2101_v15 = vadd.f32 %v2077_v51, %v2049_v7  ;;  %v2381_v3 = vmul.f32 %v5891_v26, %v9221_v42 }
 0x1a7   : > { %9218 = vst [vmem:[#allocation79_spill] sm:$0xff] %v6406_v50  ;;  %v1874_v47 = vrot.slane %v1819_v40, 3  ;;  %v8676_v33 = vrot.slane %v6406_v50, 3  ;;  %v2382_v48 = vmul.f32 %v6377_v22, %v9221_v42  ;;  %v2409_v25 = vmul.f32 %v5895_v63, %v9131_v12 }
 0x1a8   : > { %v2152_v6 = vadd.f32 %v2128_v59, %v2100_v61  ;;  %v2410_v1 = vmul.f32 %v6383_v5, %v9131_v12  ;;  %v2153_v62 = vadd.f32 %v2129_v13, %v2101_v15  ;;  %v2461_v7 = vmul.f32 %v5899_v2, %v9168_v19 }
 0x1a9   : > { %v1876_v40 = vsel %vm1858_vm2, %v1874_v47, %v8676_v33  ;;  %v2462_v51 = vmul.f32 %v6392_v39, %v9168_v19  ;;  %v2433_v61 = vadd.f32 %v2409_v25, %v2381_v3  ;;  %v2513_v23 = vmul.f32 %v5903_v11, %v9084_v10 }
 0x1aa   : > { %v1921_v24 = vadd.f32 %v1876_v40, %v1484_v58  ;;  %v2204_v59 = vadd.f32 %v2180_v17, %v2152_v6  ;;  %v2434_v42 = vadd.f32 %v2410_v1, %v2382_v48  ;;  %v2205_v43 = vadd.f32 %v2181_v27, %v2153_v62 }
 0x1ab   : > { %v2514_v50 = vmul.f32 %v6398_v44, %v9084_v10  ;;  %v2565_v13 = vmul.f32 %v6008_v32, %v5290_v53  ;;  %v2485_v15 = vadd.f32 %v2461_v7, %v2433_v61  ;;  %v2566_v19 = vmul.f32 %v9193_v36, %v5290_v53 }
 0x1ac   : > { %v2256_v47 = vadd.f32 %v2232_v41, %v2204_v59  ;;  %v2486_v33 = vadd.f32 %v2462_v51, %v2434_v42  ;;  %v6440_v58 = vadd.f32 %v2233_v35, %v2205_v43  ;;  %v2617_v17 = vmul.f32 %v5294_v60, %v5889_v49 }
 0x1ad   : > { %v2618_v27 = vmul.f32 %v5294_v60, %v9195_v9  ;;  %v2669_v3 = vmul.f32 %v5298_v37, %v6253_v57  ;;  %v2537_v48 = vadd.f32 %v2513_v23, %v2485_v15  ;;  %v2670_v41 = vmul.f32 %v5298_v37, %v6289_v8 }
 0x1ae   : > { %v2311_v6 = vrot.slane %v2256_v47, 4  ;;  %v2538_v25 = vadd.f32 %v2514_v50, %v2486_v33  ;;  %v8678_v42 = vrot.slane %v6440_v58, 4  ;;  %v2818_v43 = vmul.f32 %v5891_v26, %v5332_v54 }
 0x1af   : > { %v2819_v35 = vmul.f32 %v6377_v22, %v5332_v54  ;;  %v2846_v1 = vmul.f32 %v5895_v63, %v5336_v0  ;;  %v2589_v40 = vadd.f32 %v2565_v13, %v2537_v48  ;;  %v2847_v23 = vmul.f32 %v6383_v5, %v5336_v0 }
 0x1b0   : > { %v2590_v62 = vadd.f32 %v2566_v19, %v2538_v25  ;;  %v2898_v50 = vmul.f32 %v5899_v2, %v5340_v38  ;;  %v2313_v33 = vsel %vm2295_vm3, %v2311_v6, %v8678_v42  ;;  %v2899_v26 = vmul.f32 %v6392_v39, %v5340_v38 }
 0x1b1   : > { %v2870_v7 = vadd.f32 %v2846_v1, %v2818_v43  ;;  %v2950_v51 = vmul.f32 %v5903_v11, %v5344_v31  ;;  %v2358_v63 = vadd.f32 %v2313_v33, %v1921_v24  ;;  %v2641_v59 = vadd.f32 %v2617_v17, %v2589_v40 }
 0x1b2   : > { %v2642_v19 = vadd.f32 %v2618_v27, %v2590_v62  ;;  %v2871_v61 = vadd.f32 %v2847_v23, %v2819_v35  ;;  %v2951_v47 = vmul.f32 %v6398_v44, %v5344_v31  ;;  %v3002_v2 = vmul.f32 %v6008_v32, %v5364_v52  ;;  %v9223_v62 = vld [vmem:[#allocation32_spill] sm:$0xff] }
 0x1b3   : > { %v2922_v13 = vadd.f32 %v2898_v50, %v2870_v7  ;;  %v3003_v15 = vmul.f32 %v9193_v36, %v5364_v52  ;;  %v2693_v6 = vadd.f32 %v2669_v3, %v2641_v59  ;;  %v3054_v11 = vmul.f32 %v5368_v56, %v5889_v49  ;;  %v9224_v7 = vld [vmem:[#allocation34_spill] sm:$0xff] }
 0x1b4   : > { %v6474_v48 = vadd.f32 %v2670_v41, %v2642_v19  ;;  %v2923_v25 = vadd.f32 %v2899_v26, %v2871_v61  ;;  %v3055_v17 = vmul.f32 %v5368_v56, %v9195_v9  ;;  %v3106_v27 = vmul.f32 %v5372_v46, %v6253_v57  ;;  %v6500_v61 = vld [vmem:[#allocation2 + $0xe8] sm:$0xff] }
 0x1b5   : > { %v2974_v24 = vadd.f32 %v2950_v51, %v2922_v13  ;;  %v3107_v32 = vmul.f32 %v5372_v46, %v6289_v8  ;;  %v2748_v43 = vrot.slane %v2693_v6, 5  ;;  %v373_v41 = vmul.f32 %v6377_v22, %v4975_v21  ;;  %v9225_v22 = vld [vmem:[#allocation35_spill] sm:$0xff]  ;;  %9226 = vst [vmem:[#allocation48_spill] sm:$0xff] %v6500_v61 }
 0x1b6   : > { %9222 = vst [vmem:[#allocation42_spill] sm:$0xff] %v6474_v48  ;;  %v8679_v35 = vrot.slane %v6474_v48, 5  ;;  %v2975_v3 = vadd.f32 %v2951_v47, %v2923_v25  ;;  %v393_v49 = vmul.f32 %v6383_v5, %v4995_v28  ;;  %v429_v40 = vmul.f32 %v6392_v39, %v4998_v29  ;;  %v9227_v47 = vld [vmem:[#allocation36_spill] sm:$0xff] }
 0x1b7   : > { %v3026_v1 = vadd.f32 %v3002_v2, %v2974_v24  ;;  %v465_v23 = vmul.f32 %v6398_v44, %v9223_v62  ;;  %v501_v26 = vmul.f32 %v9193_v36, %v9224_v7  ;;  %v537_v51 = vmul.f32 %v9225_v22, %v9195_v9  ;;  %v9228_v25 = vld [vmem:[#allocation28_spill] sm:$0xff] }
 0x1b8   : > { %v2750_v50 = vsel %vm2732_vm4, %v2748_v43, %v8679_v35  ;;  %v3027_v33 = vadd.f32 %v3003_v15, %v2975_v3  ;;  %v409_v13 = vadd.f32 %v393_v49, %v373_v41  ;;  %v573_v2 = vmul.f32 %v9227_v47, %v6289_v8  ;;  %v9229_v24 = vld [vmem:[#allocation80_spill] sm:$0xff]  ;;  %v9231_v15 = vld [vmem:[#allocation33_spill] sm:$0xff]  ;;  %v9236_v8 = vld [vmem:[#allocation83_spill] sm:$0xff] }
 0x1b9   : > { %v2795_v59 = vadd.f32 %v2750_v50, %v2358_v63  ;;  %v3078_v19 = vadd.f32 %v3054_v11, %v3026_v1  ;;  %v635_v42 = vmul.f32 %v9229_v24, %v9228_v25  ;;  %v6506_v43 = vld [vmem:[#allocation2 + $0x70] sm:$0xff]  ;;  %v9232_v3 = vld [vmem:[#allocation37_spill] sm:$0xff]  ;;  %v6512_v1 = vld [vmem:[#allocation2 + $0xa0] sm:$0xff] }
 0x1ba   : > { %v3079_v6 = vadd.f32 %v3055_v17, %v3027_v33  ;;  %9230 = vst [vmem:[#allocation54_spill] sm:$0xff] %v6506_v43  ;;  %v663_v36 = vmul.f32 %v6506_v43, %v9231_v15  ;;  %v9233_v35 = vld [vmem:[#allocation81_spill] sm:$0xff]  ;;  %v445_v11 = vadd.f32 %v429_v40, %v409_v13  ;;  %9234 = vst [vmem:[#allocation73_spill] sm:$0xff] %v6512_v1  ;;  %v9237_v48 = vld [vmem:[#allocation40_spill] sm:$0xff] }
 0x1bb   : > { %v715_v9 = vmul.f32 %v9233_v35, %v9232_v3  ;;  %v3130_v63 = vadd.f32 %v3106_v27, %v3078_v19  ;;  %v767_v41 = vmul.f32 %v6512_v1, %v9187_v34  ;;  %v6516_v49 = vld [vmem:[#allocation2 + $0xb8] sm:$0xff]  ;;  %v871_v44 = vmul.f32 %v9237_v48, %v9236_v8 }
 0x1bc   : > { %9235 = vst [vmem:[#allocation61_spill] sm:$0xff] %v6516_v49  ;;  %v819_v17 = vmul.f32 %v6516_v49, %v9192_v45  ;;  %v6520_v50 = vadd.f32 %v3107_v32, %v3079_v6  ;;  %v687_v33 = vadd.f32 %v663_v36, %v635_v42  ;;  %v9238_v3 = vld [vmem:[#allocation41_spill] sm:$0xff]  ;;  %v481_v19 = vadd.f32 %v465_v23, %v445_v11 }
 0x1bd   : > { %v923_v27 = vmul.f32 %v9238_v3, %v6500_v61  ;;  %v3185_v40 = vrot.slane %v3130_v63, 6  ;;  %v1072_v13 = vmul.f32 %v9229_v24, %v9197_v16  ;;  %v1100_v34 = vmul.f32 %v6506_v43, %v9199_v4  ;;  %v9239_v32 = vld [vmem:[#allocation45_spill] sm:$0xff]  ;;  %v9240_v3 = vld [vmem:[#allocation46_spill] sm:$0xff]  ;;  %v9241_v63 = vld [vmem:[#allocation47_spill] sm:$0xff] }
 0x1be   : > { %v8692_v39 = vrot.slane %v6520_v50, 6  ;;  %v739_v45 = vadd.f32 %v715_v9, %v687_v33  ;;  %v1152_v42 = vmul.f32 %v9233_v35, %v9201_v30  ;;  %v1204_v6 = vmul.f32 %v6512_v1, %v9239_v32  ;;  %v9242_v9 = vld [vmem:[#allocation49_spill] sm:$0xff]  ;;  %v9243_v30 = vld [vmem:[#allocation30_spill] sm:$0xff] }
 0x1bf   : > { %v517_v36 = vadd.f32 %v501_v26, %v481_v19  ;;  %v1124_v48 = vadd.f32 %v1100_v34, %v1072_v13  ;;  %v1256_v23 = vmul.f32 %v6516_v49, %v9240_v3  ;;  %v1308_v11 = vmul.f32 %v9241_v63, %v9236_v8  ;;  %v9245_v3 = vld [vmem:[#allocation52_spill] sm:$0xff] }
 0x1c0   : > { %v3187_v4 = vsel %vm3169_vm5, %v3185_v40, %v8692_v39  ;;  %v791_v16 = vadd.f32 %v767_v41, %v739_v45  ;;  %v1360_v33 = vmul.f32 %v9242_v9, %v6500_v61  ;;  %v1509_v15 = vmul.f32 %v9229_v24, %v9243_v30  ;;  %v9246_v41 = vld [vmem:[#allocation53_spill] sm:$0xff] }
 0x1c1   : > { %v6546_v32 = vadd.f32 %v3187_v4, %v2795_v59  ;;  %v553_v34 = vadd.f32 %v537_v51, %v517_v36  ;;  %v1176_v26 = vadd.f32 %v1152_v42, %v1124_v48  ;;  %v1537_v19 = vmul.f32 %v6506_v43, %v9206_v18  ;;  %v9247_v48 = vld [vmem:[#allocation55_spill] sm:$0xff]  ;;  %v9249_v36 = vld [vmem:[#allocation57_spill] sm:$0xff]  ;;  %v9250_v18 = vld [vmem:[#allocation58_spill] sm:$0xff] }
 0x1c2   : > { %v843_v13 = vadd.f32 %v819_v17, %v791_v16  ;;  %v1589_v63 = vmul.f32 %v9233_v35, %v9207_v55  ;;  %v1641_v45 = vmul.f32 %v6512_v1, %v9245_v3  ;;  %v1693_v40 = vmul.f32 %v6516_v49, %v9246_v41  ;;  %v9248_v16 = vld [vmem:[#allocation56_spill] sm:$0xff] }
 0x1c3   : > { %9244 = vst [vmem:[#allocation78_spill] sm:$0xff] %v6546_v32  ;;  %3254 = vadd.xlane.f32.xlu0 %v6546_v32  ;;  %v589_v39 = vadd.f32 %v573_v2, %v553_v34  ;;  %v1228_v4 = vadd.f32 %v1204_v6, %v1176_v26  ;;  %v1561_v59 = vadd.f32 %v1537_v19, %v1509_v15  ;;  %v6568_v32 = vld [vmem:[%s8419_s2] ss:$0 sm:$0xff]  ;;  %v9252_v34 = vld [vmem:[#allocation59_spill] sm:$0xff] }
 0x1c4   : > { %v1745_v51 = vmul.f32 %v9247_v48, %v9236_v8  ;;  %v895_v42 = vadd.f32 %v871_v44, %v843_v13  ;;  %v1797_v17 = vmul.f32 %v9248_v16, %v6500_v61  ;;  %v1946_v55 = vmul.f32 %v9229_v24, %v9249_v36  ;;  %9251 = vst [vmem:[#allocation68_spill] sm:$0xff] %v6568_v32  ;;  %v9253_v48 = vld [vmem:[#allocation63_spill] sm:$0xff] }
 0x1c5   : > { %v1974_v3 = vmul.f32 %v6506_v43, %v9250_v18  ;;  %v611_v2 = vadd.f32 %v6568_v32, %v589_v39  ;;  %v1280_v15 = vadd.f32 %v1256_v23, %v1228_v4  ;;  %v1613_v6 = vadd.f32 %v1589_v63, %v1561_v59  ;;  %v9254_v39 = vld [vmem:[#allocation64_spill] sm:$0xff]  ;;  %v9255_v59 = vld [vmem:[#allocation65_spill] sm:$0xff] }
 0x1c6   : > { %v2026_v44 = vmul.f32 %v9233_v35, %v9252_v34  ;;  %v947_v26 = vadd.f32 %v923_v27, %v895_v42  ;;  %v2078_v13 = vmul.f32 %v6512_v1, %v9163_v20  ;;  %v2130_v18 = vmul.f32 %v6516_v49, %v9217_v14  ;;  %v9256_v20 = vld [vmem:[#allocation67_spill] sm:$0xff] }
 0x1c7   : > { %v1998_v19 = vadd.f32 %v1974_v3, %v1946_v55  ;;  %v1332_v36 = vadd.f32 %v1308_v11, %v1280_v15  ;;  %v1665_v16 = vadd.f32 %v1641_v45, %v1613_v6  ;;  %v2182_v41 = vmul.f32 %v9253_v48, %v9236_v8  ;;  %v9257_v15 = vld [vmem:[#allocation72_spill] sm:$0xff] }
 0x1c8   : > { %v2234_v23 = vmul.f32 %v9254_v39, %v6500_v61  ;;  %v1003_v63 = vrot.slane %v947_v26, 1  ;;  %v2383_v27 = vmul.f32 %v9229_v24, %v9255_v59  ;;  %v2411_v55 = vmul.f32 %v6506_v43, %v9131_v12 }
 0x1c9   : > { %v2050_v4 = vadd.f32 %v2026_v44, %v1998_v19  ;;  %v1384_v3 = vadd.f32 %v1360_v33, %v1332_v36  ;;  %v1717_v42 = vadd.f32 %v1693_v40, %v1665_v16  ;;  %v2463_v11 = vmul.f32 %v9233_v35, %v9256_v20 }
 0x1ca   : > { %v2515_v45 = vmul.f32 %v6512_v1, %v9084_v10  ;;  %v9258_v6 = vrot.slane %v9257_v15, 1  ;;  %v2435_v44 = vadd.f32 %v2411_v55, %v2383_v27  ;;  %v2567_v19 = vmul.f32 %v6516_v49, %v5290_v53 }
 0x1cb   : > { %v2102_v26 = vadd.f32 %v2078_v13, %v2050_v4  ;;  %v1440_v48 = vrot.slane %v1384_v3, 2  ;;  %v1769_v12 = vadd.f32 %v1745_v51, %v1717_v42  ;;  %v2619_v33 = vmul.f32 %v5294_v60, %v9236_v8 }
 0x1cc   : > { %v1004_v39 = vsel %vm984_vm0, %v9258_v6, %v1003_v63  ;;  %v2487_v16 = vadd.f32 %v2463_v11, %v2435_v44  ;;  %v2671_v36 = vmul.f32 %v5298_v37, %v6500_v61  ;;  %v2820_v15 = vmul.f32 %v9229_v24, %v5332_v54  ;;  %v9259_v63 = vld [vmem:[#allocation76_spill] sm:$0xff] }
 0x1cd   : > { %v1048_v59 = vadd.f32 %v1004_v39, %v611_v2  ;;  %v2154_v40 = vadd.f32 %v2130_v18, %v2102_v26  ;;  %v9260_v13 = vrot.slane %v9259_v63, 2  ;;  %v1821_v27 = vadd.f32 %v1797_v17, %v1769_v12 }
 0x1ce   : > { %v2848_v2 = vmul.f32 %v6506_v43, %v5336_v0  ;;  %v2900_v51 = vmul.f32 %v9233_v35, %v5340_v38  ;;  %v2539_v55 = vadd.f32 %v2515_v45, %v2487_v16  ;;  %v2952_v3 = vmul.f32 %v6512_v1, %v5344_v31  ;;  %v6615_v35 = vld [vmem:[#allocation2 + $0x60] sm:$0xff]  ;;  %v6624_v16 = vld [vmem:[#allocation2 + $0x78] sm:$0xff]  ;;  %v6664_v43 = vld [vmem:[#allocation2 + $0xb0] sm:$0xff] }
 0x1cf   : > { %v1441_v4 = vsel %vm1421_vm1, %v9260_v13, %v1440_v48  ;;  %v2206_v18 = vadd.f32 %v2182_v41, %v2154_v40  ;;  %v1877_v42 = vrot.slane %v1821_v27, 3  ;;  %v3004_v24 = vmul.f32 %v6516_v49, %v5364_v52  ;;  %v6622_v40 = vld [vmem:[#allocation2 + $0xf0] sm:$0xff]  ;;  %v9267_v49 = vld [vmem:[#allocation71_spill] sm:$0xff]  ;;  %9271 = vst [vmem:[#allocation62_spill] sm:$0xff] %v6664_v43 }
 0x1d0   : > { %v1485_v39 = vadd.f32 %v1441_v4, %v1048_v59  ;;  %v2872_v11 = vadd.f32 %v2848_v2, %v2820_v15  ;;  %v3056_v12 = vmul.f32 %v5368_v56, %v9236_v8  ;;  %v2591_v17 = vadd.f32 %v2567_v19, %v2539_v55  ;;  %v9261_v59 = vld [vmem:[#allocation79_spill] sm:$0xff] }
 0x1d1   : > { %v2258_v48 = vadd.f32 %v2234_v23, %v2206_v18  ;;  %v3108_v6 = vmul.f32 %v5372_v46, %v6500_v61  ;;  %v374_v41 = vmul.f32 %v6615_v35, %v4975_v21  ;;  %v9262_v45 = vrot.slane %v9261_v59, 3  ;;  %v6628_v23 = vld [vmem:[#allocation2 + $0x90] sm:$0xff]  ;;  %v6632_v4 = vld [vmem:[#allocation2 + $0xa8] sm:$0xff]  ;;  %v6636_v18 = vld [vmem:[#allocation2 + $0xc0] sm:$0xff] }
 0x1d2   : > { %v2924_v44 = vadd.f32 %v2900_v51, %v2872_v11  ;;  %v394_v8 = vmul.f32 %v6624_v16, %v4995_v28  ;;  %v430_v19 = vmul.f32 %v6628_v23, %v4998_v29  ;;  %v2643_v13 = vadd.f32 %v2619_v33, %v2591_v17 }
 0x1d3   : > { %v1878_v26 = vsel %vm1858_vm2, %v9262_v45, %v1877_v42  ;;  %v2314_v63 = vrot.slane %v2258_v48, 4  ;;  %v466_v27 = vmul.f32 %v6632_v4, %v9223_v62  ;;  %v502_v55 = vmul.f32 %v6636_v18, %v9224_v7 }
 0x1d4   : > { %v1922_v15 = vadd.f32 %v1878_v26, %v1485_v39  ;;  %v2976_v2 = vadd.f32 %v2952_v3, %v2924_v44  ;;  %v410_v51 = vadd.f32 %v394_v8, %v374_v41  ;;  %v538_v42 = vmul.f32 %v9225_v22, %v6253_v57  ;;  %v9264_v44 = vld [vmem:[#allocation33_spill] sm:$0xff] }
 0x1d5   : > { %v9263_v11 = vrot.slane %v6440_v58, 4  ;;  %v2695_v33 = vadd.f32 %v2671_v36, %v2643_v13  ;;  %v574_v48 = vmul.f32 %v9227_v47, %v6622_v40  ;;  %v636_v3 = vmul.f32 %v6615_v35, %v9228_v25  ;;  %v9265_v58 = vld [vmem:[#allocation77_spill] sm:$0xff] }
 0x1d6   : > { %v3028_v41 = vadd.f32 %v3004_v24, %v2976_v2  ;;  %v446_v59 = vadd.f32 %v430_v19, %v410_v51  ;;  %v637_v45 = vmul.f32 %v6383_v5, %v9228_v25  ;;  %v664_v8 = vmul.f32 %v6624_v16, %v9264_v44  ;;  %v9266_v36 = vld [vmem:[#allocation37_spill] sm:$0xff]  ;;  %v9268_v24 = vld [vmem:[#allocation38_spill] sm:$0xff] }
 0x1d7   : > { %v2315_v39 = vsel %vm2295_vm3, %v9263_v11, %v2314_v63  ;;  %v2751_v26 = vrot.slane %v2695_v33, 5  ;;  %v665_v63 = vmul.f32 %v9265_v58, %v9264_v44  ;;  %v716_v13 = vmul.f32 %v6628_v23, %v9266_v36  ;;  %v9269_v2 = vld [vmem:[#allocation42_spill] sm:$0xff] }
 0x1d8   : > { %v2359_v17 = vadd.f32 %v2315_v39, %v1922_v15  ;;  %v3080_v11 = vadd.f32 %v3056_v12, %v3028_v41  ;;  %v482_v61 = vadd.f32 %v466_v27, %v446_v59  ;;  %v717_v15 = vmul.f32 %v9267_v49, %v9266_v36  ;;  %v6668_v27 = vld [vmem:[#allocation2 + $0xf8] sm:$0xff]  ;;  %v9273_v59 = vld [vmem:[#allocation39_spill] sm:$0xff] }
 0x1d9   : > { %v768_v19 = vmul.f32 %v6632_v4, %v9268_v24  ;;  %v9270_v51 = vrot.slane %v9269_v2, 5  ;;  %v688_v33 = vadd.f32 %v664_v8, %v636_v3  ;;  %v689_v1 = vadd.f32 %v665_v63, %v637_v45  ;;  %9272 = vst [vmem:[#allocation80_spill] sm:$0xff] %v6668_v27  ;;  %v6672_v2 = vld [vmem:[#allocation2 + $0xc8] sm:$0xff]  ;;  %v9275_v45 = vld [vmem:[#allocation40_spill] sm:$0xff] }
 0x1da   : > { %v769_v44 = vmul.f32 %v6664_v43, %v9268_v24  ;;  %v3132_v12 = vadd.f32 %v3108_v6, %v3080_v11  ;;  %v518_v41 = vadd.f32 %v502_v55, %v482_v61  ;;  %v820_v36 = vmul.f32 %v6636_v18, %v9273_v59  ;;  %9274 = vst [vmem:[#allocation81_spill] sm:$0xff] %v6672_v2  ;;  %v9277_v61 = vld [vmem:[#allocation41_spill] sm:$0xff] }
 0x1db   : > { %v2752_v39 = vsel %vm2732_vm4, %v9270_v51, %v2751_v26  ;;  %v740_v47 = vadd.f32 %v716_v13, %v688_v33  ;;  %v741_v22 = vadd.f32 %v717_v15, %v689_v1  ;;  %v821_v3 = vmul.f32 %v6672_v2, %v9273_v59  ;;  %v9278_v13 = vld [vmem:[#allocation29_spill] sm:$0xff] }
 0x1dc   : > { %v2796_v25 = vadd.f32 %v2752_v39, %v2359_v17  ;;  %v872_v26 = vmul.f32 %v9275_v45, %v6253_v57  ;;  %v3188_v8 = vrot.slane %v3132_v12, 6  ;;  %v554_v63 = vadd.f32 %v538_v42, %v518_v41  ;;  %v9276_v17 = vld [vmem:[#allocation82_spill] sm:$0xff]  ;;  %v9280_v41 = vld [vmem:[#allocation43_spill] sm:$0xff] }
 0x1dd   : > { %v873_v6 = vmul.f32 %v9275_v45, %v9276_v17  ;;  %v924_v55 = vmul.f32 %v9277_v61, %v6622_v40  ;;  %v792_v11 = vadd.f32 %v768_v19, %v740_v47  ;;  %v793_v51 = vadd.f32 %v769_v44, %v741_v22 }
 0x1de   : > { %v925_v1 = vmul.f32 %v9277_v61, %v6668_v27  ;;  %v1073_v15 = vmul.f32 %v6615_v35, %v9278_v13  ;;  %v9279_v39 = vrot.slane %v6520_v50, 6  ;;  %v590_v12 = vadd.f32 %v574_v48, %v554_v63  ;;  %v9282_v50 = vld [vmem:[#allocation44_spill] sm:$0xff] }
 0x1df   : > { %v1074_v42 = vmul.f32 %v6383_v5, %v9278_v13  ;;  %v1101_v45 = vmul.f32 %v6624_v16, %v9280_v41  ;;  %v844_v22 = vadd.f32 %v820_v36, %v792_v11  ;;  %v845_v47 = vadd.f32 %v821_v3, %v793_v51  ;;  %v9284_v51 = vld [vmem:[#allocation46_spill] sm:$0xff] }
 0x1e0   : > { %v3189_v33 = vsel %vm3169_vm5, %v9279_v39, %v3188_v8  ;;  %v1102_v44 = vmul.f32 %v9265_v58, %v9280_v41  ;;  %v612_v19 = vadd.f32 %v6568_v32, %v590_v12  ;;  %v1153_v8 = vmul.f32 %v6628_v23, %v9282_v50 }
 0x1e1   : > { %v6693_v59 = vadd.f32 %v3189_v33, %v2796_v25  ;;  %v1125_v61 = vadd.f32 %v1101_v45, %v1073_v15  ;;  %v1154_v48 = vmul.f32 %v9267_v49, %v9282_v50  ;;  %v896_v63 = vadd.f32 %v872_v26, %v844_v22  ;;  %v9283_v33 = vld [vmem:[#allocation45_spill] sm:$0xff]  ;;  %v9286_v26 = vld [vmem:[#allocation47_spill] sm:$0xff] }
 0x1e2   : > { %v897_v39 = vadd.f32 %v873_v6, %v845_v47  ;;  %v1126_v25 = vadd.f32 %v1102_v44, %v1074_v42  ;;  %v1205_v36 = vmul.f32 %v6632_v4, %v9283_v33  ;;  %v1206_v11 = vmul.f32 %v6664_v43, %v9283_v33  ;;  %v9289_v33 = vld [vmem:[#allocation52_spill] sm:$0xff] }
 0x1e3   : > { %9281 = vst [vmem:[#allocation83_spill] sm:$0xff] %v6693_v59  ;;  %3256 = vadd.xlane.f32.xlu1 %v6693_v59  ;;  %v1177_v3 = vadd.f32 %v1153_v8, %v1125_v61  ;;  %v1257_v45 = vmul.f32 %v6636_v18, %v9284_v51  ;;  %v1258_v15 = vmul.f32 %v6672_v2, %v9284_v51 }
 0x1e4   : > { %v948_v12 = vadd.f32 %v924_v55, %v896_v63  ;;  %v6711_v32 = vadd.f32 %v925_v1, %v897_v39  ;;  %v1178_v59 = vadd.f32 %v1154_v48, %v1126_v25  ;;  %v1309_v6 = vmul.f32 %v9286_v26, %v6253_v57  ;;  %v9287_v39 = vld [vmem:[#allocation50_spill] sm:$0xff] }
 0x1e5   : > { %v1229_v42 = vadd.f32 %v1205_v36, %v1177_v3  ;;  %v1310_v61 = vmul.f32 %v9286_v26, %v9276_v17  ;;  %v1361_v22 = vmul.f32 %v9242_v9, %v6622_v40  ;;  %v1362_v47 = vmul.f32 %v9242_v9, %v6668_v27  ;;  %v9288_v9 = vld [vmem:[#allocation51_spill] sm:$0xff] }
 0x1e6   : > { %9285 = vst [vmem:[#allocation72_spill] sm:$0xff] %v6711_v32  ;;  %v1005_v44 = vrot.slane %v948_v12, 1  ;;  %v8725_v8 = vrot.slane %v6711_v32, 1  ;;  %v1230_v55 = vadd.f32 %v1206_v11, %v1178_v59  ;;  %v1510_v1 = vmul.f32 %v6615_v35, %v9243_v30 }
 0x1e7   : > { %v1281_v48 = vadd.f32 %v1257_v45, %v1229_v42  ;;  %v1511_v63 = vmul.f32 %v6383_v5, %v9243_v30  ;;  %v1538_v25 = vmul.f32 %v6624_v16, %v9287_v39  ;;  %v1539_v36 = vmul.f32 %v9265_v58, %v9287_v39  ;;  %v9290_v39 = vld [vmem:[#allocation53_spill] sm:$0xff] }
 0x1e8   : > { %v1007_v3 = vsel %vm984_vm0, %v1005_v44, %v8725_v8  ;;  %v1282_v12 = vadd.f32 %v1258_v15, %v1230_v55  ;;  %v1590_v59 = vmul.f32 %v6628_v23, %v9288_v9  ;;  %v1591_v11 = vmul.f32 %v9267_v49, %v9288_v9 }
 0x1e9   : > { %v1049_v45 = vadd.f32 %v1007_v3, %v612_v19  ;;  %v1333_v42 = vadd.f32 %v1309_v6, %v1281_v48  ;;  %v1562_v30 = vadd.f32 %v1538_v25, %v1510_v1  ;;  %v1563_v26 = vadd.f32 %v1539_v36, %v1511_v63  ;;  %v9292_v6 = vld [vmem:[#allocation55_spill] sm:$0xff]  ;;  %v9293_v48 = vld [vmem:[#allocation56_spill] sm:$0xff] }
 0x1ea   : > { %v1334_v51 = vadd.f32 %v1310_v61, %v1282_v12  ;;  %v1642_v50 = vmul.f32 %v6632_v4, %v9289_v33  ;;  %v1643_v32 = vmul.f32 %v6664_v43, %v9289_v33  ;;  %v1694_v15 = vmul.f32 %v6636_v18, %v9290_v39  ;;  %v9295_v12 = vld [vmem:[#allocation58_spill] sm:$0xff] }
 0x1eb   : > { %v1385_v44 = vadd.f32 %v1361_v22, %v1333_v42  ;;  %v1614_v55 = vadd.f32 %v1590_v59, %v1562_v30  ;;  %v1615_v8 = vadd.f32 %v1591_v11, %v1563_v26  ;;  %v1695_v9 = vmul.f32 %v6672_v2, %v9290_v39  ;;  %v9294_v22 = vld [vmem:[#allocation57_spill] sm:$0xff] }
 0x1ec   : > { %v6745_v19 = vadd.f32 %v1362_v47, %v1334_v51  ;;  %v1746_v61 = vmul.f32 %v9292_v6, %v6253_v57  ;;  %v1747_v1 = vmul.f32 %v9292_v6, %v9276_v17  ;;  %v1798_v63 = vmul.f32 %v9293_v48, %v6622_v40 }
 0x1ed   : > { %v1442_v25 = vrot.slane %v1385_v44, 2  ;;  %v1666_v36 = vadd.f32 %v1642_v50, %v1614_v55  ;;  %v1667_v3 = vadd.f32 %v1643_v32, %v1615_v8  ;;  %v1799_v30 = vmul.f32 %v9293_v48, %v6668_v27 }
 0x1ee   : > { %9291 = vst [vmem:[#allocation76_spill] sm:$0xff] %v6745_v19  ;;  %v8732_v26 = vrot.slane %v6745_v19, 2  ;;  %v1947_v51 = vmul.f32 %v6615_v35, %v9294_v22  ;;  %v1948_v47 = vmul.f32 %v6383_v5, %v9294_v22  ;;  %v1975_v59 = vmul.f32 %v6624_v16, %v9295_v12  ;;  %v9296_v22 = vld [vmem:[#allocation60_spill] sm:$0xff] }
 0x1ef   : > { %v1718_v11 = vadd.f32 %v1694_v15, %v1666_v36  ;;  %v1719_v42 = vadd.f32 %v1695_v9, %v1667_v3  ;;  %v1976_v50 = vmul.f32 %v9265_v58, %v9295_v12  ;;  %v2027_v32 = vmul.f32 %v6628_v23, %v9252_v34 }
 0x1f0   : > { %v1444_v8 = vsel %vm1421_vm1, %v1442_v25, %v8732_v26  ;;  %v1999_v44 = vadd.f32 %v1975_v59, %v1947_v51  ;;  %v2028_v55 = vmul.f32 %v9267_v49, %v9252_v34  ;;  %v2079_v48 = vmul.f32 %v6632_v4, %v9296_v22  ;;  %v9298_v34 = vld [vmem:[#allocation63_spill] sm:$0xff] }
 0x1f1   : > { %v1486_v6 = vadd.f32 %v1444_v8, %v1049_v45  ;;  %v1770_v15 = vadd.f32 %v1746_v61, %v1718_v11  ;;  %v1771_v9 = vadd.f32 %v1747_v1, %v1719_v42  ;;  %v2000_v36 = vadd.f32 %v1976_v50, %v1948_v47  ;;  %v9299_v47 = vld [vmem:[#allocation64_spill] sm:$0xff] }
 0x1f2   : > { %v2051_v3 = vadd.f32 %v2027_v32, %v1999_v44  ;;  %v2080_v12 = vmul.f32 %v6664_v43, %v9296_v22  ;;  %v2131_v19 = vmul.f32 %v6636_v18, %v9217_v14  ;;  %v2132_v25 = vmul.f32 %v6672_v2, %v9217_v14 }
 0x1f3   : > { %v1822_v51 = vadd.f32 %v1798_v63, %v1770_v15  ;;  %v6779_v59 = vadd.f32 %v1799_v30, %v1771_v9  ;;  %v2052_v26 = vadd.f32 %v2028_v55, %v2000_v36  ;;  %v2183_v45 = vmul.f32 %v9298_v34, %v6253_v57  ;;  %v9300_v30 = vld [vmem:[#allocation65_spill] sm:$0xff]  ;;  %v9301_v55 = vld [vmem:[#allocation66_spill] sm:$0xff] }
 0x1f4   : > { %v2103_v61 = vadd.f32 %v2079_v48, %v2051_v3  ;;  %v2184_v1 = vmul.f32 %v9298_v34, %v9276_v17  ;;  %v2235_v11 = vmul.f32 %v9299_v47, %v6622_v40  ;;  %v2236_v42 = vmul.f32 %v9299_v47, %v6668_v27 }
 0x1f5   : > { %9297 = vst [vmem:[#allocation79_spill] sm:$0xff] %v6779_v59  ;;  %v1879_v50 = vrot.slane %v1822_v51, 3  ;;  %v8738_v32 = vrot.slane %v6779_v59, 3  ;;  %v2104_v63 = vadd.f32 %v2080_v12, %v2052_v26  ;;  %v2384_v8 = vmul.f32 %v6615_v35, %v9300_v30 }
 0x1f6   : > { %v2155_v44 = vadd.f32 %v2131_v19, %v2103_v61  ;;  %v2385_v48 = vmul.f32 %v6383_v5, %v9300_v30  ;;  %v2412_v15 = vmul.f32 %v6624_v16, %v9301_v55  ;;  %v2413_v9 = vmul.f32 %v9265_v58, %v9301_v55 }
 0x1f7   : > { %v1881_v36 = vsel %vm1858_vm2, %v1879_v50, %v8738_v32  ;;  %v2156_v3 = vadd.f32 %v2132_v25, %v2104_v63  ;;  %v2464_v26 = vmul.f32 %v6628_v23, %v9256_v20  ;;  %v2465_v19 = vmul.f32 %v9267_v49, %v9256_v20 }
 0x1f8   : > { %v1923_v12 = vadd.f32 %v1881_v36, %v1486_v6  ;;  %v2207_v51 = vadd.f32 %v2183_v45, %v2155_v44  ;;  %v2436_v61 = vadd.f32 %v2412_v15, %v2384_v8  ;;  %v2437_v30 = vadd.f32 %v2413_v9, %v2385_v48 }
 0x1f9   : > { %v2208_v47 = vadd.f32 %v2184_v1, %v2156_v3  ;;  %v2516_v34 = vmul.f32 %v6632_v4, %v9084_v10  ;;  %v2517_v59 = vmul.f32 %v6664_v43, %v9084_v10  ;;  %v2568_v25 = vmul.f32 %v6636_v18, %v5290_v53 }
 0x1fa   : > { %v2259_v50 = vadd.f32 %v2235_v11, %v2207_v51  ;;  %v2488_v63 = vadd.f32 %v2464_v26, %v2436_v61  ;;  %v2489_v32 = vadd.f32 %v2465_v19, %v2437_v30  ;;  %v2569_v20 = vmul.f32 %v6672_v2, %v5290_v53 }
 0x1fb   : > { %v6813_v6 = vadd.f32 %v2236_v42, %v2208_v47  ;;  %v2620_v45 = vmul.f32 %v5294_v60, %v6253_v57  ;;  %v2621_v1 = vmul.f32 %v5294_v60, %v9276_v17  ;;  %v2672_v8 = vmul.f32 %v5298_v37, %v6622_v40 }
 0x1fc   : > { %v2316_v44 = vrot.slane %v2259_v50, 4  ;;  %v2540_v48 = vadd.f32 %v2516_v34, %v2488_v63  ;;  %v2541_v15 = vadd.f32 %v2517_v59, %v2489_v32  ;;  %v2673_v11 = vmul.f32 %v5298_v37, %v6668_v27 }
 0x1fd   : > { %9302 = vst [vmem:[#allocation77_spill] sm:$0xff] %v6813_v6  ;;  %v8740_v30 = vrot.slane %v6813_v6, 4  ;;  %v2821_v47 = vmul.f32 %v6615_v35, %v5332_v54  ;;  %v2822_v42 = vmul.f32 %v6383_v5, %v5332_v54  ;;  %v2849_v9 = vmul.f32 %v6624_v16, %v5336_v0 }
 0x1fe   : > { %v2592_v36 = vadd.f32 %v2568_v25, %v2540_v48  ;;  %v2593_v3 = vadd.f32 %v2569_v20, %v2541_v15  ;;  %v2850_v34 = vmul.f32 %v9265_v58, %v5336_v0  ;;  %v2901_v59 = vmul.f32 %v6628_v23, %v5340_v38 }
 0x1ff   : > { %v2318_v32 = vsel %vm2295_vm3, %v2316_v44, %v8740_v30  ;;  %v2873_v26 = vadd.f32 %v2849_v9, %v2821_v47  ;;  %v2902_v35 = vmul.f32 %v9267_v49, %v5340_v38  ;;  %v2953_v19 = vmul.f32 %v6632_v4, %v5344_v31 }
 0x200   : > { %v2360_v51 = vadd.f32 %v2318_v32, %v1923_v12  ;;  %v2644_v61 = vadd.f32 %v2620_v45, %v2592_v36  ;;  %v2645_v20 = vadd.f32 %v2621_v1, %v2593_v3  ;;  %v2874_v25 = vadd.f32 %v2850_v34, %v2822_v42 }
 0x201   : > { %v2925_v50 = vadd.f32 %v2901_v59, %v2873_v26  ;;  %v2954_v63 = vmul.f32 %v6664_v43, %v5344_v31  ;;  %v3005_v48 = vmul.f32 %v6636_v18, %v5364_v52  ;;  %v3006_v44 = vmul.f32 %v6672_v2, %v5364_v52 }
 0x202   : > { %v2696_v15 = vadd.f32 %v2672_v8, %v2644_v61  ;;  %v6847_v47 = vadd.f32 %v2673_v11, %v2645_v20  ;;  %v2926_v9 = vadd.f32 %v2902_v35, %v2874_v25  ;;  %v3057_v12 = vmul.f32 %v5368_v56, %v6253_v57 }
 0x203   : > { %v2977_v45 = vadd.f32 %v2953_v19, %v2925_v50  ;;  %v3058_v1 = vmul.f32 %v5368_v56, %v9276_v17  ;;  %v3109_v42 = vmul.f32 %v5372_v46, %v6622_v40  ;;  %v3110_v36 = vmul.f32 %v5372_v46, %v6668_v27 }
 0x204   : > { %9303 = vst [vmem:[#allocation71_spill] sm:$0xff] %v6847_v47  ;;  %v2753_v3 = vrot.slane %v2696_v15, 5  ;;  %v8741_v34 = vrot.slane %v6847_v47, 5  ;;  %v2978_v8 = vadd.f32 %v2954_v63, %v2926_v9  ;;  %v375_v11 = vmul.f32 %v6383_v5, %v4975_v21  ;;  %v9304_v5 = vld [vmem:[#allocation35_spill] sm:$0xff]  ;;  %v9307_v9 = vld [vmem:[#allocation28_spill] sm:$0xff] }
 0x205   : > { %v3029_v59 = vadd.f32 %v3005_v48, %v2977_v45  ;;  %v395_v57 = vmul.f32 %v9265_v58, %v4995_v28  ;;  %v431_v32 = vmul.f32 %v9267_v49, %v4998_v29  ;;  %v467_v26 = vmul.f32 %v6664_v43, %v9223_v62  ;;  %v6873_v58 = vld [vmem:[#allocation2 + $0x100] sm:$0xff]  ;;  %v9306_v49 = vld [vmem:[#allocation36_spill] sm:$0xff] }
 0x206   : > { %v2755_v35 = vsel %vm2732_vm4, %v2753_v3, %v8741_v34  ;;  %v3030_v19 = vadd.f32 %v3006_v44, %v2978_v8  ;;  %v503_v61 = vmul.f32 %v6672_v2, %v9224_v7  ;;  %v539_v20 = vmul.f32 %v9304_v5, %v9276_v17  ;;  %9305 = vst [vmem:[#allocation42_spill] sm:$0xff] %v6873_v58  ;;  %v9308_v45 = vld [vmem:[#allocation54_spill] sm:$0xff]  ;;  %v6879_v3 = vld [vmem:[#allocation2 + $0x88] sm:$0xff]  ;;  %v9310_v44 = vld [vmem:[#allocation33_spill] sm:$0xff] }
 0x207   : > { %v2797_v25 = vadd.f32 %v2755_v35, %v2360_v51  ;;  %v3081_v50 = vadd.f32 %v3057_v12, %v3029_v59  ;;  %v411_v63 = vadd.f32 %v395_v57, %v375_v11  ;;  %v575_v48 = vmul.f32 %v9306_v49, %v6668_v27  ;;  %9309 = vst [vmem:[#allocation82_spill] sm:$0xff] %v6879_v3  ;;  %v9311_v34 = vld [vmem:[#allocation37_spill] sm:$0xff]  ;;  %v6887_v57 = vld [vmem:[#allocation2 + $0xd0] sm:$0xff]  ;;  %v9315_v35 = vld [vmem:[#allocation39_spill] sm:$0xff] }
 0x208   : > { %v3082_v15 = vadd.f32 %v3058_v1, %v3030_v19  ;;  %v638_v30 = vmul.f32 %v9308_v45, %v9307_v9  ;;  %v666_v8 = vmul.f32 %v6879_v3, %v9310_v44  ;;  %v9312_v2 = vld [vmem:[#allocation73_spill] sm:$0xff]  ;;  %9314 = vst [vmem:[#allocation54_spill] sm:$0xff] %v6887_v57  ;;  %v822_v1 = vmul.f32 %v6887_v57, %v9315_v35  ;;  %v9317_v47 = vld [vmem:[#allocation48_spill] sm:$0xff] }
 0x209   : > { %v718_v17 = vmul.f32 %v9312_v2, %v9311_v34  ;;  %v3133_v51 = vadd.f32 %v3109_v42, %v3081_v50  ;;  %v447_v12 = vadd.f32 %v431_v32, %v411_v63  ;;  %v9313_v59 = vld [vmem:[#allocation61_spill] sm:$0xff]  ;;  %v9318_v43 = vld [vmem:[#allocation40_spill] sm:$0xff]  ;;  %v1075_v32 = vmul.f32 %v9308_v45, %v9278_v13 }
 0x20a   : > { %v770_v11 = vmul.f32 %v9313_v59, %v9268_v24  ;;  %v6891_v19 = vadd.f32 %v3110_v36, %v3082_v15  ;;  %v690_v27 = vadd.f32 %v666_v8, %v638_v30  ;;  %v874_v9 = vmul.f32 %v9318_v43, %v9317_v47  ;;  %v9319_v44 = vld [vmem:[#allocation41_spill] sm:$0xff]  ;;  %v9320_v36 = vld [vmem:[#allocation44_spill] sm:$0xff] }
 0x20b   : > { %v926_v49 = vmul.f32 %v9319_v44, %v6873_v58  ;;  %v3190_v34 = vrot.slane %v3133_v51, 6  ;;  %v483_v42 = vadd.f32 %v467_v26, %v447_v12  ;;  %v1103_v50 = vmul.f32 %v6879_v3, %v9280_v41  ;;  %v9321_v15 = vld [vmem:[#allocation45_spill] sm:$0xff]  ;;  %v9322_v44 = vld [vmem:[#allocation46_spill] sm:$0xff]  ;;  %v9323_v51 = vld [vmem:[#allocation47_spill] sm:$0xff] }
 0x20c   : > { %9316 = vst [vmem:[#allocation73_spill] sm:$0xff] %v6891_v19  ;;  %v8754_v63 = vrot.slane %v6891_v19, 6  ;;  %v742_v35 = vadd.f32 %v718_v17, %v690_v27  ;;  %v1155_v30 = vmul.f32 %v9312_v2, %v9320_v36  ;;  %v1207_v8 = vmul.f32 %v9313_v59, %v9321_v15  ;;  %v9324_v27 = vld [vmem:[#allocation49_spill] sm:$0xff]  ;;  %v9325_v36 = vld [vmem:[#allocation30_spill] sm:$0xff] }
 0x20d   : > { %v519_v43 = vadd.f32 %v503_v61, %v483_v42  ;;  %v1127_v24 = vadd.f32 %v1103_v50, %v1075_v32  ;;  %v1259_v26 = vmul.f32 %v6887_v57, %v9322_v44  ;;  %v1311_v12 = vmul.f32 %v9323_v51, %v9317_v47  ;;  %v9327_v32 = vld [vmem:[#allocation50_spill] sm:$0xff]  ;;  %v9328_v51 = vld [vmem:[#allocation51_spill] sm:$0xff] }
 0x20e   : > { %v3192_v41 = vsel %vm3169_vm5, %v3190_v34, %v8754_v63  ;;  %v794_v13 = vadd.f32 %v770_v11, %v742_v35  ;;  %v1363_v17 = vmul.f32 %v9324_v27, %v6873_v58  ;;  %v1512_v6 = vmul.f32 %v9308_v45, %v9325_v36 }
 0x20f   : > { %v6917_v15 = vadd.f32 %v3192_v41, %v2797_v25  ;;  %v555_v61 = vadd.f32 %v539_v20, %v519_v43  ;;  %v1179_v42 = vadd.f32 %v1155_v30, %v1127_v24  ;;  %v1540_v50 = vmul.f32 %v6879_v3, %v9327_v32  ;;  %v9329_v43 = vld [vmem:[#allocation55_spill] sm:$0xff]  ;;  %v9331_v30 = vld [vmem:[#allocation57_spill] sm:$0xff]  ;;  %v9333_v32 = vld [vmem:[#allocation68_spill] sm:$0xff] }
 0x210   : > { %v846_v44 = vadd.f32 %v822_v1, %v794_v13  ;;  %v1592_v19 = vmul.f32 %v9312_v2, %v9328_v51  ;;  %v1644_v34 = vmul.f32 %v9313_v59, %v9289_v33  ;;  %v1696_v11 = vmul.f32 %v6887_v57, %v9290_v39  ;;  %v9330_v13 = vld [vmem:[#allocation56_spill] sm:$0xff]  ;;  %v9332_v51 = vld [vmem:[#allocation58_spill] sm:$0xff] }
 0x211   : > { %9326 = vst [vmem:[#allocation61_spill] sm:$0xff] %v6917_v15  ;;  %3258 = vadd.xlane.f32.xlu0 %v6917_v15  ;;  %v591_v35 = vadd.f32 %v575_v48, %v555_v61  ;;  %v1231_v41 = vadd.f32 %v1207_v8, %v1179_v42  ;;  %v1564_v25 = vadd.f32 %v1540_v50, %v1512_v6  ;;  %v9334_v48 = vld [vmem:[#allocation59_spill] sm:$0xff] }
 0x212   : > { %v1748_v24 = vmul.f32 %v9329_v43, %v9317_v47  ;;  %v898_v20 = vadd.f32 %v874_v9, %v846_v44  ;;  %v1800_v1 = vmul.f32 %v9330_v13, %v6873_v58  ;;  %v1949_v63 = vmul.f32 %v9308_v45, %v9331_v30  ;;  %v9335_v30 = vld [vmem:[#allocation63_spill] sm:$0xff] }
 0x213   : > { %v1977_v33 = vmul.f32 %v6879_v3, %v9332_v51  ;;  %v613_v39 = vadd.f32 %v9333_v32, %v591_v35  ;;  %v1283_v36 = vadd.f32 %v1259_v26, %v1231_v41  ;;  %v1616_v15 = vadd.f32 %v1592_v19, %v1564_v25  ;;  %v9336_v35 = vld [vmem:[#allocation64_spill] sm:$0xff]  ;;  %v9337_v25 = vld [vmem:[#allocation65_spill] sm:$0xff] }
 0x214   : > { %v2029_v6 = vmul.f32 %v9312_v2, %v9334_v48  ;;  %v950_v8 = vadd.f32 %v926_v49, %v898_v20  ;;  %v2081_v9 = vmul.f32 %v9313_v59, %v9296_v22  ;;  %v2133_v44 = vmul.f32 %v6887_v57, %v9217_v14  ;;  %v9338_v22 = vld [vmem:[#allocation67_spill] sm:$0xff] }
 0x215   : > { %v2001_v61 = vadd.f32 %v1977_v33, %v1949_v63  ;;  %v1335_v42 = vadd.f32 %v1311_v12, %v1283_v36  ;;  %v1668_v50 = vadd.f32 %v1644_v34, %v1616_v15  ;;  %v2185_v51 = vmul.f32 %v9335_v30, %v9317_v47  ;;  %v9339_v12 = vld [vmem:[#allocation72_spill] sm:$0xff] }
 0x216   : > { %v2237_v26 = vmul.f32 %v9336_v35, %v6873_v58  ;;  %v1008_v19 = vrot.slane %v950_v8, 1  ;;  %v2386_v49 = vmul.f32 %v9308_v45, %v9337_v25  ;;  %v2414_v33 = vmul.f32 %v6879_v3, %v9301_v55 }
 0x217   : > { %v2053_v41 = vadd.f32 %v2029_v6, %v2001_v61  ;;  %v1387_v63 = vadd.f32 %v1363_v17, %v1335_v42  ;;  %v1720_v20 = vadd.f32 %v1696_v11, %v1668_v50  ;;  %v2466_v36 = vmul.f32 %v9312_v2, %v9338_v22 }
 0x218   : > { %v2518_v15 = vmul.f32 %v9313_v59, %v9084_v10  ;;  %v9340_v34 = vrot.slane %v9339_v12, 1  ;;  %v2438_v6 = vadd.f32 %v2414_v33, %v2386_v49  ;;  %v2570_v61 = vmul.f32 %v6887_v57, %v5290_v53 }
 0x219   : > { %v2105_v8 = vadd.f32 %v2081_v9, %v2053_v41  ;;  %v1445_v30 = vrot.slane %v1387_v63, 2  ;;  %v1772_v55 = vadd.f32 %v1748_v24, %v1720_v20  ;;  %v2622_v17 = vmul.f32 %v5294_v60, %v9317_v47 }
 0x21a   : > { %v1009_v35 = vsel %vm984_vm0, %v9340_v34, %v1008_v19  ;;  %v2490_v42 = vadd.f32 %v2466_v36, %v2438_v6  ;;  %v2674_v50 = vmul.f32 %v5298_v37, %v6873_v58  ;;  %v2823_v12 = vmul.f32 %v9308_v45, %v5332_v54  ;;  %v9341_v19 = vld [vmem:[#allocation76_spill] sm:$0xff] }
 0x21b   : > { %v1050_v25 = vadd.f32 %v1009_v35, %v613_v39  ;;  %v2157_v11 = vadd.f32 %v2133_v44, %v2105_v8  ;;  %v9342_v9 = vrot.slane %v9341_v19, 2  ;;  %v1824_v49 = vadd.f32 %v1800_v1, %v1772_v55  ;;  %v6986_v8 = vld [vmem:[#allocation2 + $0x108] sm:$0xff] }
 0x21c   : > { %v2851_v39 = vmul.f32 %v6879_v3, %v5336_v0  ;;  %v2903_v24 = vmul.f32 %v9312_v2, %v5340_v38  ;;  %v2542_v33 = vadd.f32 %v2518_v15, %v2490_v42  ;;  %v2955_v63 = vmul.f32 %v9313_v59, %v5344_v31  ;;  %v9356_v3 = vld [vmem:[#allocation81_spill] sm:$0xff] }
 0x21d   : > { %v1446_v41 = vsel %vm1421_vm1, %v9342_v9, %v1445_v30  ;;  %v2209_v44 = vadd.f32 %v2185_v51, %v2157_v11  ;;  %v1882_v20 = vrot.slane %v1824_v49, 3  ;;  %v3007_v45 = vmul.f32 %v6887_v57, %v5364_v52  ;;  %v9343_v51 = vld [vmem:[#allocation79_spill] sm:$0xff]  ;;  %v6994_v9 = vld [vmem:[#allocation2 + $0xd8] sm:$0xff] }
 0x21e   : > { %v1487_v35 = vadd.f32 %v1446_v41, %v1050_v25  ;;  %v2875_v36 = vadd.f32 %v2851_v39, %v2823_v12  ;;  %v3059_v55 = vmul.f32 %v5368_v56, %v9317_v47  ;;  %v2594_v30 = vadd.f32 %v2570_v61, %v2542_v33  ;;  %v9345_v39 = vld [vmem:[#allocation77_spill] sm:$0xff] }
 0x21f   : > { %v2261_v1 = vadd.f32 %v2237_v26, %v2209_v44  ;;  %v3111_v34 = vmul.f32 %v5372_v46, %v6873_v58  ;;  %v376_v2 = vmul.f32 %v6624_v16, %v4975_v21  ;;  %v9344_v25 = vrot.slane %v9343_v51, 3 }
 0x220   : > { %v2927_v15 = vadd.f32 %v2903_v24, %v2875_v36  ;;  %v396_v6 = vmul.f32 %v6628_v23, %v4995_v28  ;;  %v432_v47 = vmul.f32 %v6632_v4, %v4998_v29  ;;  %v2646_v11 = vadd.f32 %v2622_v17, %v2594_v30  ;;  %v9347_v17 = vld [vmem:[#allocation36_spill] sm:$0xff] }
 0x221   : > { %v1883_v59 = vsel %vm1858_vm2, %v9344_v25, %v1882_v20  ;;  %v2319_v61 = vrot.slane %v2261_v1, 4  ;;  %v468_v42 = vmul.f32 %v6636_v18, %v9223_v62  ;;  %v504_v41 = vmul.f32 %v6994_v9, %v9224_v7  ;;  %v9348_v20 = vld [vmem:[#allocation28_spill] sm:$0xff]  ;;  %v7032_v7 = vld [vmem:[#allocation2 + $0xe0] sm:$0xff] }
 0x222   : > { %v1924_v26 = vadd.f32 %v1883_v59, %v1487_v35  ;;  %v2979_v12 = vadd.f32 %v2955_v63, %v2927_v15  ;;  %v412_v19 = vadd.f32 %v396_v6, %v376_v2  ;;  %v540_v49 = vmul.f32 %v9304_v5, %v6622_v40  ;;  %v7007_v2 = vld [vmem:[#allocation2 + $0x80] sm:$0xff]  ;;  %v9349_v59 = vld [vmem:[#allocation33_spill] sm:$0xff]  ;;  %v7028_v5 = vld [vmem:[#allocation2 + $0x110] sm:$0xff]  ;;  %9359 = vst [vmem:[#allocation72_spill] sm:$0xff] %v7032_v7 }
 0x223   : > { %v9346_v24 = vrot.slane %v9345_v39, 4  ;;  %v2698_v35 = vadd.f32 %v2674_v50, %v2646_v11  ;;  %v576_v33 = vmul.f32 %v9347_v17, %v6986_v8  ;;  %v639_v63 = vmul.f32 %v6624_v16, %v9348_v20  ;;  %v7013_v6 = vld [vmem:[#allocation2 + $0x98] sm:$0xff]  ;;  %9357 = vst [vmem:[#allocation68_spill] sm:$0xff] %v7028_v5 }
 0x224   : > { %v3031_v1 = vadd.f32 %v3007_v45, %v2979_v12  ;;  %v448_v30 = vadd.f32 %v432_v47, %v412_v19  ;;  %v640_v51 = vmul.f32 %v7007_v2, %v9348_v20  ;;  %v667_v15 = vmul.f32 %v6628_v23, %v9349_v59  ;;  %9350 = vst [vmem:[#allocation48_spill] sm:$0xff] %v7013_v6  ;;  %v9352_v47 = vld [vmem:[#allocation62_spill] sm:$0xff] }
 0x225   : > { %v2320_v44 = vsel %vm2295_vm3, %v9346_v24, %v2319_v61  ;;  %v2756_v25 = vrot.slane %v2698_v35, 5  ;;  %v668_v50 = vmul.f32 %v7013_v6, %v9349_v59  ;;  %v9351_v61 = vld [vmem:[#allocation37_spill] sm:$0xff]  ;;  %v9353_v19 = vld [vmem:[#allocation38_spill] sm:$0xff]  ;;  %v9354_v24 = vld [vmem:[#allocation71_spill] sm:$0xff] }
 0x226   : > { %v2361_v36 = vadd.f32 %v2320_v44, %v1924_v26  ;;  %v719_v11 = vmul.f32 %v6632_v4, %v9351_v61  ;;  %v3083_v26 = vadd.f32 %v3059_v55, %v3031_v1  ;;  %v484_v45 = vadd.f32 %v468_v42, %v448_v30  ;;  %v9358_v42 = vld [vmem:[#allocation39_spill] sm:$0xff] }
 0x227   : > { %v720_v12 = vmul.f32 %v9352_v47, %v9351_v61  ;;  %v771_v39 = vmul.f32 %v6636_v18, %v9353_v19  ;;  %v9355_v44 = vrot.slane %v9354_v24, 5  ;;  %v691_v58 = vadd.f32 %v667_v15, %v639_v63  ;;  %v9360_v63 = vld [vmem:[#allocation40_spill] sm:$0xff] }
 0x228   : > { %v692_v57 = vadd.f32 %v668_v50, %v640_v51  ;;  %v772_v59 = vmul.f32 %v9356_v3, %v9353_v19  ;;  %v3135_v17 = vadd.f32 %v3111_v34, %v3083_v26  ;;  %v520_v55 = vadd.f32 %v504_v41, %v484_v45  ;;  %v9362_v41 = vld [vmem:[#allocation41_spill] sm:$0xff] }
 0x229   : > { %v2757_v35 = vsel %vm2732_vm4, %v9355_v44, %v2756_v25  ;;  %v823_v1 = vmul.f32 %v6994_v9, %v9358_v42  ;;  %v743_v30 = vadd.f32 %v719_v11, %v691_v58  ;;  %v824_v25 = vmul.f32 %v7032_v7, %v9358_v42 }
 0x22a   : > { %v2798_v20 = vadd.f32 %v2757_v35, %v2361_v36  ;;  %v744_v61 = vadd.f32 %v720_v12, %v692_v57  ;;  %v875_v51 = vmul.f32 %v9360_v63, %v6622_v40  ;;  %v3193_v15 = vrot.slane %v3135_v17, 6  ;;  %v9361_v36 = vld [vmem:[#allocation80_spill] sm:$0xff]  ;;  %v9363_v57 = vld [vmem:[#allocation29_spill] sm:$0xff] }
 0x22b   : > { %v556_v50 = vadd.f32 %v540_v49, %v520_v55  ;;  %v876_v34 = vmul.f32 %v9360_v63, %v9361_v36  ;;  %v927_v26 = vmul.f32 %v9362_v41, %v6986_v8  ;;  %v795_v45 = vadd.f32 %v771_v39, %v743_v30  ;;  %v9364_v12 = vld [vmem:[#allocation73_spill] sm:$0xff]  ;;  %v9366_v55 = vld [vmem:[#allocation43_spill] sm:$0xff] }
 0x22c   : > { %v796_v24 = vadd.f32 %v772_v59, %v744_v61  ;;  %v928_v58 = vmul.f32 %v9362_v41, %v7028_v5  ;;  %v1076_v11 = vmul.f32 %v6624_v16, %v9363_v57  ;;  %v9365_v44 = vrot.slane %v9364_v12, 6  ;;  %v9368_v12 = vld [vmem:[#allocation44_spill] sm:$0xff] }
 0x22d   : > { %v592_v17 = vadd.f32 %v576_v33, %v556_v50  ;;  %v1077_v49 = vmul.f32 %v7007_v2, %v9363_v57  ;;  %v1104_v63 = vmul.f32 %v6628_v23, %v9366_v55  ;;  %v847_v59 = vadd.f32 %v823_v1, %v795_v45 }
 0x22e   : > { %v3194_v35 = vsel %vm3169_vm5, %v9365_v44, %v3193_v15  ;;  %v848_v61 = vadd.f32 %v824_v25, %v796_v24  ;;  %v1105_v39 = vmul.f32 %v7013_v6, %v9366_v55  ;;  %v1156_v15 = vmul.f32 %v6632_v4, %v9368_v12 }
 0x22f   : > { %v7053_v42 = vadd.f32 %v3194_v35, %v2798_v20  ;;  %v614_v30 = vadd.f32 %v9333_v32, %v592_v17  ;;  %v1128_v41 = vadd.f32 %v1104_v63, %v1076_v11  ;;  %v1157_v33 = vmul.f32 %v9352_v47, %v9368_v12  ;;  %v9369_v35 = vld [vmem:[#allocation45_spill] sm:$0xff]  ;;  %v9370_v32 = vld [vmem:[#allocation46_spill] sm:$0xff]  ;;  %v9376_v12 = vld [vmem:[#allocation52_spill] sm:$0xff] }
 0x230   : > { %v899_v50 = vadd.f32 %v875_v51, %v847_v59  ;;  %v900_v44 = vadd.f32 %v876_v34, %v848_v61  ;;  %v1129_v20 = vadd.f32 %v1105_v39, %v1077_v49  ;;  %v1208_v1 = vmul.f32 %v6636_v18, %v9369_v35  ;;  %v9372_v51 = vld [vmem:[#allocation47_spill] sm:$0xff] }
 0x231   : > { %9367 = vst [vmem:[#allocation76_spill] sm:$0xff] %v7053_v42  ;;  %3260 = vadd.xlane.f32.xlu1 %v7053_v42  ;;  %v1180_v25 = vadd.f32 %v1156_v15, %v1128_v41  ;;  %v1209_v45 = vmul.f32 %v9356_v3, %v9369_v35  ;;  %v1260_v63 = vmul.f32 %v6994_v9, %v9370_v32 }
 0x232   : > { %v1261_v24 = vmul.f32 %v7032_v7, %v9370_v32  ;;  %v951_v11 = vadd.f32 %v927_v26, %v899_v50  ;;  %v7071_v17 = vadd.f32 %v928_v58, %v900_v44  ;;  %v1181_v42 = vadd.f32 %v1157_v33, %v1129_v20  ;;  %v9373_v58 = vld [vmem:[#allocation30_spill] sm:$0xff] }
 0x233   : > { %v1312_v34 = vmul.f32 %v9372_v51, %v6622_v40  ;;  %v1232_v49 = vadd.f32 %v1208_v1, %v1180_v25  ;;  %v1313_v41 = vmul.f32 %v9372_v51, %v9361_v36  ;;  %v1364_v59 = vmul.f32 %v9324_v27, %v6986_v8  ;;  %v9374_v20 = vld [vmem:[#allocation50_spill] sm:$0xff]  ;;  %v9375_v51 = vld [vmem:[#allocation51_spill] sm:$0xff] }
 0x234   : > { %9371 = vst [vmem:[#allocation79_spill] sm:$0xff] %v7071_v17  ;;  %v1365_v61 = vmul.f32 %v9324_v27, %v7028_v5  ;;  %v1010_v39 = vrot.slane %v951_v11, 1  ;;  %v8784_v15 = vrot.slane %v7071_v17, 1  ;;  %v1233_v26 = vadd.f32 %v1209_v45, %v1181_v42 }
 0x235   : > { %v1513_v33 = vmul.f32 %v6624_v16, %v9373_v58  ;;  %v1284_v50 = vadd.f32 %v1260_v63, %v1232_v49  ;;  %v1514_v44 = vmul.f32 %v7007_v2, %v9373_v58  ;;  %v1541_v1 = vmul.f32 %v6628_v23, %v9374_v20 }
 0x236   : > { %v1542_v25 = vmul.f32 %v7013_v6, %v9374_v20  ;;  %v1012_v11 = vsel %vm984_vm0, %v1010_v39, %v8784_v15  ;;  %v1285_v27 = vadd.f32 %v1261_v24, %v1233_v26  ;;  %v1593_v42 = vmul.f32 %v6632_v4, %v9375_v51  ;;  %v9377_v20 = vld [vmem:[#allocation53_spill] sm:$0xff] }
 0x237   : > { %v1594_v45 = vmul.f32 %v9352_v47, %v9375_v51  ;;  %v1051_v63 = vadd.f32 %v1012_v11, %v614_v30  ;;  %v1336_v49 = vadd.f32 %v1312_v34, %v1284_v50  ;;  %v1565_v58 = vadd.f32 %v1541_v1, %v1513_v33  ;;  %v9380_v1 = vld [vmem:[#allocation58_spill] sm:$0xff] }
 0x238   : > { %v1566_v32 = vadd.f32 %v1542_v25, %v1514_v44  ;;  %v1337_v35 = vadd.f32 %v1313_v41, %v1285_v27  ;;  %v1645_v55 = vmul.f32 %v6636_v18, %v9376_v12  ;;  %v1646_v17 = vmul.f32 %v9356_v3, %v9376_v12 }
 0x239   : > { %v1697_v24 = vmul.f32 %v6994_v9, %v9377_v20  ;;  %v1388_v39 = vadd.f32 %v1364_v59, %v1336_v49  ;;  %v1617_v26 = vadd.f32 %v1593_v42, %v1565_v58  ;;  %v1698_v51 = vmul.f32 %v7032_v7, %v9377_v20  ;;  %v9379_v58 = vld [vmem:[#allocation57_spill] sm:$0xff] }
 0x23a   : > { %v1618_v15 = vadd.f32 %v1594_v45, %v1566_v32  ;;  %v7105_v30 = vadd.f32 %v1365_v61, %v1337_v35  ;;  %v1749_v27 = vmul.f32 %v9329_v43, %v6622_v40  ;;  %v1750_v34 = vmul.f32 %v9329_v43, %v9361_v36 }
 0x23b   : > { %v1801_v41 = vmul.f32 %v9330_v13, %v6986_v8  ;;  %v1447_v33 = vrot.slane %v1388_v39, 2  ;;  %v1669_v50 = vadd.f32 %v1645_v55, %v1617_v26  ;;  %v1802_v32 = vmul.f32 %v9330_v13, %v7028_v5  ;;  %v9381_v39 = vld [vmem:[#allocation60_spill] sm:$0xff] }
 0x23c   : > { %9378 = vst [vmem:[#allocation77_spill] sm:$0xff] %v7105_v30  ;;  %v1670_v44 = vadd.f32 %v1646_v17, %v1618_v15  ;;  %v8789_v59 = vrot.slane %v7105_v30, 2  ;;  %v1950_v35 = vmul.f32 %v6624_v16, %v9379_v58  ;;  %v1951_v61 = vmul.f32 %v7007_v2, %v9379_v58 }
 0x23d   : > { %v1978_v25 = vmul.f32 %v6628_v23, %v9380_v1  ;;  %v1721_v11 = vadd.f32 %v1697_v24, %v1669_v50  ;;  %v1979_v55 = vmul.f32 %v7013_v6, %v9380_v1  ;;  %v2030_v17 = vmul.f32 %v6632_v4, %v9334_v48 }
 0x23e   : > { %v1722_v42 = vadd.f32 %v1698_v51, %v1670_v44  ;;  %v1449_v15 = vsel %vm1421_vm1, %v1447_v33, %v8789_v59  ;;  %v2031_v49 = vmul.f32 %v9352_v47, %v9334_v48  ;;  %v2082_v26 = vmul.f32 %v6636_v18, %v9381_v39  ;;  %v9383_v48 = vld [vmem:[#allocation63_spill] sm:$0xff] }
 0x23f   : > { %v2002_v45 = vadd.f32 %v1978_v25, %v1950_v35  ;;  %v1488_v58 = vadd.f32 %v1449_v15, %v1051_v63  ;;  %v1773_v24 = vadd.f32 %v1749_v27, %v1721_v11  ;;  %v2003_v50 = vadd.f32 %v1979_v55, %v1951_v61  ;;  %v9384_v61 = vld [vmem:[#allocation64_spill] sm:$0xff] }
 0x240   : > { %v1774_v51 = vadd.f32 %v1750_v34, %v1722_v42  ;;  %v2083_v1 = vmul.f32 %v9356_v3, %v9381_v39  ;;  %v2134_v30 = vmul.f32 %v6994_v9, %v9217_v14  ;;  %v2135_v33 = vmul.f32 %v7032_v7, %v9217_v14 }
 0x241   : > { %v2054_v44 = vadd.f32 %v2030_v17, %v2002_v45  ;;  %v1825_v35 = vadd.f32 %v1801_v41, %v1773_v24  ;;  %v2055_v59 = vadd.f32 %v2031_v49, %v2003_v50  ;;  %v2186_v63 = vmul.f32 %v9383_v48, %v6622_v40 }
 0x242   : > { %v7139_v25 = vadd.f32 %v1802_v32, %v1774_v51  ;;  %v2187_v34 = vmul.f32 %v9383_v48, %v9361_v36  ;;  %v2238_v11 = vmul.f32 %v9384_v61, %v6986_v8  ;;  %v2239_v42 = vmul.f32 %v9384_v61, %v7028_v5  ;;  %v9385_v32 = vld [vmem:[#allocation65_spill] sm:$0xff] }
 0x243   : > { %v2106_v27 = vadd.f32 %v2082_v26, %v2054_v44  ;;  %v1884_v55 = vrot.slane %v1825_v35, 3  ;;  %v2107_v41 = vadd.f32 %v2083_v1, %v2055_v59  ;;  %v2387_v15 = vmul.f32 %v6624_v16, %v9385_v32  ;;  %v9386_v26 = vld [vmem:[#allocation66_spill] sm:$0xff] }
 0x244   : > { %9382 = vst [vmem:[#allocation62_spill] sm:$0xff] %v7139_v25  ;;  %v8795_v17 = vrot.slane %v7139_v25, 3  ;;  %v2388_v49 = vmul.f32 %v7007_v2, %v9385_v32  ;;  %v2415_v24 = vmul.f32 %v6628_v23, %v9386_v26  ;;  %v2416_v51 = vmul.f32 %v7013_v6, %v9386_v26 }
 0x245   : > { %v2158_v45 = vadd.f32 %v2134_v30, %v2106_v27  ;;  %v2159_v44 = vadd.f32 %v2135_v33, %v2107_v41  ;;  %v2467_v59 = vmul.f32 %v6632_v4, %v9338_v22  ;;  %v2468_v30 = vmul.f32 %v9352_v47, %v9338_v22 }
 0x246   : > { %v1886_v50 = vsel %vm1858_vm2, %v1884_v55, %v8795_v17  ;;  %v2439_v27 = vadd.f32 %v2415_v24, %v2387_v15  ;;  %v2440_v32 = vadd.f32 %v2416_v51, %v2388_v49  ;;  %v2519_v48 = vmul.f32 %v6636_v18, %v9084_v10 }
 0x247   : > { %v1925_v1 = vadd.f32 %v1886_v50, %v1488_v58  ;;  %v2210_v35 = vadd.f32 %v2186_v63, %v2158_v45  ;;  %v2211_v61 = vadd.f32 %v2187_v34, %v2159_v44  ;;  %v2520_v25 = vmul.f32 %v9356_v3, %v9084_v10 }
 0x248   : > { %v2571_v33 = vmul.f32 %v6994_v9, %v5290_v53  ;;  %v2491_v41 = vadd.f32 %v2467_v59, %v2439_v27  ;;  %v2492_v17 = vadd.f32 %v2468_v30, %v2440_v32  ;;  %v2572_v22 = vmul.f32 %v7032_v7, %v5290_v53 }
 0x249   : > { %v2262_v55 = vadd.f32 %v2238_v11, %v2210_v35  ;;  %v7173_v58 = vadd.f32 %v2239_v42, %v2211_v61  ;;  %v2623_v63 = vmul.f32 %v5294_v60, %v6622_v40  ;;  %v2624_v34 = vmul.f32 %v5294_v60, %v9361_v36 }
 0x24a   : > { %v2675_v15 = vmul.f32 %v5298_v37, %v6986_v8  ;;  %v2543_v49 = vadd.f32 %v2519_v48, %v2491_v41  ;;  %v2544_v24 = vadd.f32 %v2520_v25, %v2492_v17  ;;  %v2676_v11 = vmul.f32 %v5298_v37, %v7028_v5 }
 0x24b   : > { %v2321_v45 = vrot.slane %v2262_v55, 4  ;;  %v8798_v32 = vrot.slane %v7173_v58, 4  ;;  %v2824_v61 = vmul.f32 %v6624_v16, %v5332_v54  ;;  %v2825_v42 = vmul.f32 %v7007_v2, %v5332_v54 }
 0x24c   : > { %v2852_v51 = vmul.f32 %v6628_v23, %v5336_v0  ;;  %v2595_v50 = vadd.f32 %v2571_v33, %v2543_v49  ;;  %v2596_v44 = vadd.f32 %v2572_v22, %v2544_v24  ;;  %v2853_v48 = vmul.f32 %v7013_v6, %v5336_v0 }
 0x24d   : > { %v2904_v25 = vmul.f32 %v6632_v4, %v5340_v38  ;;  %v2323_v17 = vsel %vm2295_vm3, %v2321_v45, %v8798_v32  ;;  %v2905_v16 = vmul.f32 %v9352_v47, %v5340_v38  ;;  %v2956_v30 = vmul.f32 %v6636_v18, %v5344_v31 }
 0x24e   : > { %v2876_v59 = vadd.f32 %v2852_v51, %v2824_v61  ;;  %v2362_v23 = vadd.f32 %v2323_v17, %v1925_v1  ;;  %v2647_v35 = vadd.f32 %v2623_v63, %v2595_v50  ;;  %v2648_v22 = vadd.f32 %v2624_v34, %v2596_v44 }
 0x24f   : > { %v2877_v27 = vadd.f32 %v2853_v48, %v2825_v42  ;;  %v2957_v55 = vmul.f32 %v9356_v3, %v5344_v31  ;;  %v3008_v4 = vmul.f32 %v6994_v9, %v5364_v52  ;;  %v3009_v41 = vmul.f32 %v7032_v7, %v5364_v52 }
 0x250   : > { %v2928_v33 = vadd.f32 %v2904_v25, %v2876_v59  ;;  %v2699_v45 = vadd.f32 %v2675_v15, %v2647_v35  ;;  %v7207_v49 = vadd.f32 %v2676_v11, %v2648_v22  ;;  %v3060_v18 = vmul.f32 %v5368_v56, %v6622_v40  ;;  %v9388_v59 = vld [vmem:[#allocation34_spill] sm:$0xff] }
 0x251   : > { %v2929_v24 = vadd.f32 %v2905_v16, %v2877_v27  ;;  %v3061_v63 = vmul.f32 %v5368_v56, %v9361_v36  ;;  %v3112_v34 = vmul.f32 %v5372_v46, %v6986_v8  ;;  %v3113_v61 = vmul.f32 %v5372_v46, %v7028_v5  ;;  %v7233_v27 = vld [vmem:[#allocation2 + $0x118] sm:$0xff] }
 0x252   : > { %9387 = vst [vmem:[#allocation71_spill] sm:$0xff] %v7207_v49  ;;  %v2980_v1 = vadd.f32 %v2956_v30, %v2928_v33  ;;  %v2758_v42 = vrot.slane %v2699_v45, 5  ;;  %v8797_v51 = vrot.slane %v7207_v49, 5  ;;  %v377_v11 = vmul.f32 %v7007_v2, %v4975_v21  ;;  %v9389_v2 = vld [vmem:[#allocation35_spill] sm:$0xff]  ;;  %9390 = vst [vmem:[#allocation81_spill] sm:$0xff] %v7233_v27  ;;  %v9393_v45 = vld [vmem:[#allocation82_spill] sm:$0xff] }
 0x253   : > { %v2981_v15 = vadd.f32 %v2957_v55, %v2929_v24  ;;  %v397_v40 = vmul.f32 %v7013_v6, %v4995_v28  ;;  %v433_v44 = vmul.f32 %v9352_v47, %v4998_v29  ;;  %v469_v48 = vmul.f32 %v9356_v3, %v9223_v62  ;;  %v9391_v47 = vld [vmem:[#allocation36_spill] sm:$0xff] }
 0x254   : > { %v3032_v50 = vadd.f32 %v3008_v4, %v2980_v1  ;;  %v2760_v25 = vsel %vm2732_vm4, %v2758_v42, %v8797_v51  ;;  %v505_v16 = vmul.f32 %v7032_v7, %v9388_v59  ;;  %v541_v30 = vmul.f32 %v9389_v2, %v9361_v36  ;;  %v9392_v4 = vld [vmem:[#allocation28_spill] sm:$0xff]  ;;  %v7239_v1 = vld [vmem:[#allocation2 + $0xa0] sm:$0xff]  ;;  %v9397_v36 = vld [vmem:[#allocation37_spill] sm:$0xff] }
 0x255   : > { %v3033_v17 = vadd.f32 %v3009_v41, %v2981_v15  ;;  %v2799_v35 = vadd.f32 %v2760_v25, %v2362_v23  ;;  %v413_v33 = vadd.f32 %v397_v40, %v377_v11  ;;  %v577_v55 = vmul.f32 %v9391_v47, %v7028_v5  ;;  %9394 = vst [vmem:[#allocation80_spill] sm:$0xff] %v7239_v1  ;;  %v9395_v41 = vld [vmem:[#allocation33_spill] sm:$0xff]  ;;  %v9398_v11 = vld [vmem:[#allocation54_spill] sm:$0xff]  ;;  %v7249_v25 = vld [vmem:[#allocation2 + $0xe8] sm:$0xff] }
 0x256   : > { %v3084_v22 = vadd.f32 %v3060_v18, %v3032_v50  ;;  %v641_v24 = vmul.f32 %v9393_v45, %v9392_v4  ;;  %v669_v42 = vmul.f32 %v7239_v1, %v9395_v41  ;;  %v7243_v15 = vld [vmem:[#allocation2 + $0xb8] sm:$0xff]  ;;  %v773_v40 = vmul.f32 %v9398_v11, %v9353_v19  ;;  %9399 = vst [vmem:[#allocation82_spill] sm:$0xff] %v7249_v25  ;;  %v9402_v5 = vld [vmem:[#allocation42_spill] sm:$0xff]  ;;  %v9403_v7 = vld [vmem:[#allocation40_spill] sm:$0xff] }
 0x257   : > { %v3085_v3 = vadd.f32 %v3061_v63, %v3033_v17  ;;  %9396 = vst [vmem:[#allocation73_spill] sm:$0xff] %v7243_v15  ;;  %v721_v23 = vmul.f32 %v7243_v15, %v9397_v36  ;;  %v449_v50 = vadd.f32 %v433_v44, %v413_v33  ;;  %v9400_v63 = vld [vmem:[#allocation39_spill] sm:$0xff]  ;;  %v877_v49 = vmul.f32 %v9403_v7, %v9402_v5  ;;  %v9404_v41 = vld [vmem:[#allocation41_spill] sm:$0xff] }
 0x258   : > { %v3136_v18 = vadd.f32 %v3112_v34, %v3084_v22  ;;  %v825_v17 = vmul.f32 %v7249_v25, %v9400_v63  ;;  %v693_v32 = vadd.f32 %v669_v42, %v641_v24  ;;  %v929_v6 = vmul.f32 %v9404_v41, %v7233_v27  ;;  %v9405_v22 = vld [vmem:[#allocation43_spill] sm:$0xff]  ;;  %v9407_v24 = vld [vmem:[#allocation45_spill] sm:$0xff]  ;;  %v9408_v41 = vld [vmem:[#allocation46_spill] sm:$0xff] }
 0x259   : > { %v7253_v51 = vadd.f32 %v3113_v61, %v3085_v3  ;;  %v485_v34 = vadd.f32 %v469_v48, %v449_v50  ;;  %v1078_v44 = vmul.f32 %v9393_v45, %v9363_v57  ;;  %v1106_v33 = vmul.f32 %v7239_v1, %v9405_v22  ;;  %v9406_v61 = vld [vmem:[#allocation44_spill] sm:$0xff] }
 0x25a   : > { %v3195_v36 = vrot.slane %v3136_v18, 6  ;;  %v745_v63 = vadd.f32 %v721_v23, %v693_v32  ;;  %v1158_v3 = vmul.f32 %v7243_v15, %v9406_v61  ;;  %v1210_v42 = vmul.f32 %v9398_v11, %v9407_v24  ;;  %v9409_v18 = vld [vmem:[#allocation47_spill] sm:$0xff]  ;;  %v9410_v32 = vld [vmem:[#allocation49_spill] sm:$0xff]  ;;  %v9411_v61 = vld [vmem:[#allocation30_spill] sm:$0xff] }
 0x25b   : > { %9401 = vst [vmem:[#allocation54_spill] sm:$0xff] %v7253_v51  ;;  %v8809_v19 = vrot.slane %v7253_v51, 6  ;;  %v521_v7 = vadd.f32 %v505_v16, %v485_v34  ;;  %v1130_v4 = vadd.f32 %v1106_v33, %v1078_v44  ;;  %v1262_v48 = vmul.f32 %v7249_v25, %v9408_v41  ;;  %v9413_v44 = vld [vmem:[#allocation50_spill] sm:$0xff] }
 0x25c   : > { %v1314_v50 = vmul.f32 %v9409_v18, %v9402_v5  ;;  %v797_v57 = vadd.f32 %v773_v40, %v745_v63  ;;  %v1366_v23 = vmul.f32 %v9410_v32, %v7233_v27  ;;  %v1515_v47 = vmul.f32 %v9393_v45, %v9411_v61  ;;  %v9414_v18 = vld [vmem:[#allocation51_spill] sm:$0xff] }
 0x25d   : > { %v3197_v22 = vsel %vm3169_vm5, %v3195_v36, %v8809_v19  ;;  %v557_v16 = vadd.f32 %v541_v30, %v521_v7  ;;  %v1182_v34 = vadd.f32 %v1158_v3, %v1130_v4  ;;  %v1543_v33 = vmul.f32 %v7239_v1, %v9413_v44  ;;  %v9415_v4 = vld [vmem:[#allocation57_spill] sm:$0xff]  ;;  %v9416_v3 = vld [vmem:[#allocation58_spill] sm:$0xff] }
 0x25e   : > { %v7279_v24 = vadd.f32 %v3197_v22, %v2799_v35  ;;  %v849_v41 = vadd.f32 %v825_v17, %v797_v57  ;;  %v1595_v51 = vmul.f32 %v7243_v15, %v9414_v18  ;;  %v1647_v36 = vmul.f32 %v9398_v11, %v9376_v12 }
 0x25f   : > { %v1699_v40 = vmul.f32 %v7249_v25, %v9377_v20  ;;  %v593_v63 = vadd.f32 %v577_v55, %v557_v16  ;;  %v1234_v35 = vadd.f32 %v1210_v42, %v1182_v34  ;;  %v1567_v22 = vadd.f32 %v1543_v33, %v1515_v47  ;;  %v9418_v16 = vld [vmem:[#allocation59_spill] sm:$0xff] }
 0x260   : > { %9412 = vst [vmem:[#allocation42_spill] sm:$0xff] %v7279_v24  ;;  %3262 = vadd.xlane.f32.xlu0 %v7279_v24  ;;  %v1751_v7 = vmul.f32 %v9329_v43, %v9402_v5  ;;  %v901_v30 = vadd.f32 %v877_v49, %v849_v41  ;;  %v1803_v57 = vmul.f32 %v9330_v13, %v7233_v27  ;;  %v7301_v24 = vld [vmem:[%s8419_s2] ss:$0 sm:$0xff]  ;;  %v9419_v43 = vld [vmem:[#allocation63_spill] sm:$0xff] }
 0x261   : > { %v1952_v17 = vmul.f32 %v9393_v45, %v9415_v4  ;;  %v1980_v19 = vmul.f32 %v7239_v1, %v9416_v3  ;;  %9417 = vst [vmem:[#allocation85_spill] sm:$0xff] %v7301_v24  ;;  %v615_v47 = vadd.f32 %v7301_v24, %v593_v63  ;;  %v1286_v55 = vadd.f32 %v1262_v48, %v1234_v35  ;;  %v9420_v63 = vld [vmem:[#allocation64_spill] sm:$0xff] }
 0x262   : > { %v1619_v42 = vadd.f32 %v1595_v51, %v1567_v22  ;;  %v2032_v49 = vmul.f32 %v7243_v15, %v9418_v16  ;;  %v953_v41 = vadd.f32 %v929_v6, %v901_v30  ;;  %v2084_v33 = vmul.f32 %v9398_v11, %v9381_v39  ;;  %v9421_v22 = vld [vmem:[#allocation65_spill] sm:$0xff]  ;;  %v9422_v39 = vld [vmem:[#allocation67_spill] sm:$0xff] }
 0x263   : > { %v2004_v34 = vadd.f32 %v1980_v19, %v1952_v17  ;;  %v2136_v3 = vmul.f32 %v7249_v25, %v9217_v14  ;;  %v1338_v4 = vadd.f32 %v1314_v50, %v1286_v55  ;;  %v2188_v20 = vmul.f32 %v9419_v43, %v9402_v5  ;;  %v9423_v55 = vld [vmem:[#allocation79_spill] sm:$0xff] }
 0x264   : > { %v1671_v13 = vadd.f32 %v1647_v36, %v1619_v42  ;;  %v2240_v48 = vmul.f32 %v9420_v63, %v7233_v27  ;;  %v1013_v51 = vrot.slane %v953_v41, 1  ;;  %v2389_v6 = vmul.f32 %v9393_v45, %v9421_v22 }
 0x265   : > { %v2056_v35 = vadd.f32 %v2032_v49, %v2004_v34  ;;  %v2417_v19 = vmul.f32 %v7239_v1, %v9386_v26  ;;  %v1390_v30 = vadd.f32 %v1366_v23, %v1338_v4  ;;  %v2469_v50 = vmul.f32 %v7243_v15, %v9422_v39 }
 0x266   : > { %v1723_v17 = vadd.f32 %v1699_v40, %v1671_v13  ;;  %v2521_v36 = vmul.f32 %v9398_v11, %v9084_v10  ;;  %v9424_v42 = vrot.slane %v9423_v55, 1  ;;  %v2573_v34 = vmul.f32 %v7249_v25, %v5290_v53 }
 0x267   : > { %v2108_v41 = vadd.f32 %v2084_v33, %v2056_v35  ;;  %v2441_v49 = vadd.f32 %v2417_v19, %v2389_v6  ;;  %v1450_v43 = vrot.slane %v1390_v30, 2  ;;  %v2625_v13 = vmul.f32 %v5294_v60, %v9402_v5 }
 0x268   : > { %v1014_v63 = vsel %vm984_vm0, %v9424_v42, %v1013_v51  ;;  %v1775_v26 = vadd.f32 %v1751_v7, %v1723_v17  ;;  %v2677_v4 = vmul.f32 %v5298_v37, %v7233_v27  ;;  %v2826_v55 = vmul.f32 %v9393_v45, %v5332_v54  ;;  %v9425_v51 = vld [vmem:[#allocation77_spill] sm:$0xff] }
 0x269   : > { %v1052_v22 = vadd.f32 %v1014_v63, %v615_v47  ;;  %v2160_v23 = vadd.f32 %v2136_v3, %v2108_v41  ;;  %v2493_v40 = vadd.f32 %v2469_v50, %v2441_v49  ;;  %v9426_v33 = vrot.slane %v9425_v51, 2  ;;  %v7348_v41 = vld [vmem:[#allocation2 + $0x90] sm:$0xff] }
 0x26a   : > { %v1827_v6 = vadd.f32 %v1803_v57, %v1775_v26  ;;  %v2854_v47 = vmul.f32 %v7239_v1, %v5336_v0  ;;  %v2906_v7 = vmul.f32 %v7243_v15, %v5340_v38  ;;  %v2958_v30 = vmul.f32 %v9398_v11, %v5344_v31 }
 0x26b   : > { %v1451_v35 = vsel %vm1421_vm1, %v9426_v33, %v1450_v43  ;;  %v2212_v3 = vadd.f32 %v2188_v20, %v2160_v23  ;;  %v2545_v19 = vadd.f32 %v2521_v36, %v2493_v40  ;;  %v3010_v45 = vmul.f32 %v7249_v25, %v5364_v52  ;;  %v7355_v23 = vld [vmem:[#allocation2 + $0x120] sm:$0xff]  ;;  %v7357_v40 = vld [vmem:[#allocation2 + $0xa8] sm:$0xff] }
 0x26c   : > { %v1489_v63 = vadd.f32 %v1451_v35, %v1052_v22  ;;  %v1887_v17 = vrot.slane %v1827_v6, 3  ;;  %v2878_v50 = vadd.f32 %v2854_v47, %v2826_v55  ;;  %v3062_v43 = vmul.f32 %v5368_v56, %v9402_v5  ;;  %v9427_v22 = vld [vmem:[#allocation62_spill] sm:$0xff] }
 0x26d   : > { %v2264_v26 = vadd.f32 %v2240_v48, %v2212_v3  ;;  %v2597_v57 = vadd.f32 %v2573_v34, %v2545_v19  ;;  %v3114_v42 = vmul.f32 %v5372_v46, %v7233_v27  ;;  %v378_v20 = vmul.f32 %v7348_v41, %v4975_v21  ;;  %v7361_v48 = vld [vmem:[#allocation2 + $0xc0] sm:$0xff]  ;;  %v9433_v27 = vld [vmem:[#allocation33_spill] sm:$0xff] }
 0x26e   : > { %v9428_v11 = vrot.slane %v9427_v22, 3  ;;  %v2930_v49 = vadd.f32 %v2906_v7, %v2878_v50  ;;  %v398_v5 = vmul.f32 %v7357_v40, %v4995_v28  ;;  %v434_v34 = vmul.f32 %v7361_v48, %v4998_v29  ;;  %v7367_v7 = vld [vmem:[#allocation2 + $0xf0] sm:$0xff]  ;;  %v7405_v29 = vld [vmem:[#allocation2 + $0xf8] sm:$0xff] }
 0x26f   : > { %v2324_v51 = vrot.slane %v2264_v26, 4  ;;  %v2649_v33 = vadd.f32 %v2625_v13, %v2597_v57  ;;  %v470_v35 = vmul.f32 %v6994_v9, %v9223_v62  ;;  %v506_v3 = vmul.f32 %v7367_v7, %v9388_v59  ;;  %v9430_v13 = vld [vmem:[#allocation36_spill] sm:$0xff] }
 0x270   : > { %v1888_v36 = vsel %vm1858_vm2, %v9428_v11, %v1887_v17  ;;  %v2982_v6 = vadd.f32 %v2958_v30, %v2930_v49  ;;  %v414_v47 = vadd.f32 %v398_v5, %v378_v20  ;;  %v542_v19 = vmul.f32 %v9389_v2, %v6986_v8  ;;  %v9431_v57 = vld [vmem:[#allocation28_spill] sm:$0xff] }
 0x271   : > { %v1926_v55 = vadd.f32 %v1888_v36, %v1489_v63  ;;  %v9429_v17 = vrot.slane %v7173_v58, 4  ;;  %v2701_v63 = vadd.f32 %v2677_v4, %v2649_v33  ;;  %v578_v26 = vmul.f32 %v9430_v13, %v7355_v23  ;;  %v9432_v36 = vld [vmem:[#allocation48_spill] sm:$0xff] }
 0x272   : > { %v642_v30 = vmul.f32 %v7348_v41, %v9431_v57  ;;  %v3034_v22 = vadd.f32 %v3010_v45, %v2982_v6  ;;  %v450_v11 = vadd.f32 %v434_v34, %v414_v47  ;;  %v643_v49 = vmul.f32 %v9432_v36, %v9431_v57  ;;  %v7384_v58 = vld [vmem:[#allocation2 + $0xb0] sm:$0xff]  ;;  %v9437_v34 = vld [vmem:[#allocation38_spill] sm:$0xff]  ;;  %v9438_v47 = vld [vmem:[#allocation71_spill] sm:$0xff]  ;;  %9443 = vst [vmem:[#allocation48_spill] sm:$0xff] %v7405_v29 }
 0x273   : > { %v2325_v50 = vsel %vm2295_vm3, %v9429_v17, %v2324_v51  ;;  %v2761_v5 = vrot.slane %v2701_v63, 5  ;;  %v670_v25 = vmul.f32 %v7357_v40, %v9433_v27  ;;  %9434 = vst [vmem:[#allocation79_spill] sm:$0xff] %v7384_v58  ;;  %v671_v4 = vmul.f32 %v7384_v58, %v9433_v27  ;;  %v9435_v51 = vld [vmem:[#allocation37_spill] sm:$0xff]  ;;  %v9440_v27 = vld [vmem:[#allocation72_spill] sm:$0xff] }
 0x274   : > { %v2363_v20 = vadd.f32 %v2325_v50, %v1926_v55  ;;  %v722_v33 = vmul.f32 %v7361_v48, %v9435_v51  ;;  %v3086_v17 = vadd.f32 %v3062_v43, %v3034_v22  ;;  %v486_v15 = vadd.f32 %v470_v35, %v450_v11  ;;  %v7390_v55 = vld [vmem:[#allocation2 + $0xc8] sm:$0xff] }
 0x275   : > { %9436 = vst [vmem:[#allocation77_spill] sm:$0xff] %v7390_v55  ;;  %v723_v45 = vmul.f32 %v7390_v55, %v9435_v51  ;;  %v774_v6 = vmul.f32 %v6994_v9, %v9437_v34  ;;  %v9439_v50 = vrot.slane %v9438_v47, 5  ;;  %v694_v1 = vadd.f32 %v670_v25, %v642_v30  ;;  %v7401_v35 = vld [vmem:[#allocation2 + $0x128] sm:$0xff]  ;;  %v9444_v25 = vld [vmem:[#allocation40_spill] sm:$0xff] }
 0x276   : > { %v695_v57 = vadd.f32 %v671_v4, %v643_v49  ;;  %v775_v13 = vmul.f32 %v9440_v27, %v9437_v34  ;;  %v3138_v43 = vadd.f32 %v3114_v42, %v3086_v17  ;;  %9441 = vst [vmem:[#allocation62_spill] sm:$0xff] %v7401_v35  ;;  %v522_v22 = vadd.f32 %v506_v3, %v486_v15  ;;  %v9442_v11 = vld [vmem:[#allocation39_spill] sm:$0xff]  ;;  %v9446_v15 = vld [vmem:[#allocation41_spill] sm:$0xff] }
 0x277   : > { %v2762_v63 = vsel %vm2732_vm4, %v9439_v50, %v2761_v5  ;;  %v826_v51 = vmul.f32 %v7367_v7, %v9442_v11  ;;  %v746_v59 = vadd.f32 %v722_v33, %v694_v1  ;;  %v827_v5 = vmul.f32 %v7405_v29, %v9442_v11 }
 0x278   : > { %v2800_v2 = vadd.f32 %v2762_v63, %v2363_v20  ;;  %v747_v62 = vadd.f32 %v723_v45, %v695_v57  ;;  %v878_v30 = vmul.f32 %v9444_v25, %v6986_v8  ;;  %v3198_v49 = vrot.slane %v3138_v43, 6  ;;  %v9445_v20 = vld [vmem:[#allocation68_spill] sm:$0xff]  ;;  %v9447_v57 = vld [vmem:[#allocation29_spill] sm:$0xff]  ;;  %v9448_v45 = vld [vmem:[#allocation54_spill] sm:$0xff] }
 0x279   : > { %v558_v4 = vadd.f32 %v542_v19, %v522_v22  ;;  %v879_v42 = vmul.f32 %v9444_v25, %v9445_v20  ;;  %v930_v3 = vmul.f32 %v9446_v15, %v7355_v23  ;;  %v798_v17 = vadd.f32 %v774_v6, %v746_v59  ;;  %v9450_v22 = vld [vmem:[#allocation43_spill] sm:$0xff] }
 0x27a   : > { %v799_v47 = vadd.f32 %v775_v13, %v747_v62  ;;  %v931_v1 = vmul.f32 %v9446_v15, %v7401_v35  ;;  %v1079_v33 = vmul.f32 %v7348_v41, %v9447_v57  ;;  %v9449_v50 = vrot.slane %v9448_v45, 6  ;;  %v9452_v45 = vld [vmem:[#allocation44_spill] sm:$0xff] }
 0x27b   : > { %v594_v43 = vadd.f32 %v578_v26, %v558_v4  ;;  %v1080_v19 = vmul.f32 %v9432_v36, %v9447_v57  ;;  %v1107_v25 = vmul.f32 %v7357_v40, %v9450_v22  ;;  %v850_v62 = vadd.f32 %v826_v51, %v798_v17 }
 0x27c   : > { %v3199_v63 = vsel %vm3169_vm5, %v9449_v50, %v3198_v49  ;;  %v851_v59 = vadd.f32 %v827_v5, %v799_v47  ;;  %v1108_v13 = vmul.f32 %v7384_v58, %v9450_v22  ;;  %v1159_v49 = vmul.f32 %v7361_v48, %v9452_v45  ;;  %v9454_v47 = vld [vmem:[#allocation46_spill] sm:$0xff] }
 0x27d   : > { %v7426_v11 = vadd.f32 %v3199_v63, %v2800_v2  ;;  %v616_v6 = vadd.f32 %v7301_v24, %v594_v43  ;;  %v1131_v15 = vadd.f32 %v1107_v25, %v1079_v33  ;;  %v1160_v26 = vmul.f32 %v7390_v55, %v9452_v45  ;;  %v9453_v63 = vld [vmem:[#allocation45_spill] sm:$0xff] }
 0x27e   : > { %v902_v4 = vadd.f32 %v878_v30, %v850_v62  ;;  %v903_v50 = vadd.f32 %v879_v42, %v851_v59  ;;  %v1132_v2 = vadd.f32 %v1108_v13, %v1080_v19  ;;  %v1211_v51 = vmul.f32 %v6994_v9, %v9453_v63  ;;  %v9456_v30 = vld [vmem:[#allocation47_spill] sm:$0xff] }
 0x27f   : > { %9451 = vst [vmem:[#allocation38_spill] sm:$0xff] %v7426_v11  ;;  %3264 = vadd.xlane.f32.xlu1 %v7426_v11  ;;  %v1183_v5 = vadd.f32 %v1159_v49, %v1131_v15  ;;  %v1212_v17 = vmul.f32 %v9440_v27, %v9453_v63  ;;  %v1263_v25 = vmul.f32 %v7367_v7, %v9454_v47 }
 0x280   : > { %v1264_v33 = vmul.f32 %v7405_v29, %v9454_v47  ;;  %v954_v43 = vadd.f32 %v930_v3, %v902_v4  ;;  %v7444_v24 = vadd.f32 %v931_v1, %v903_v50  ;;  %v1184_v11 = vadd.f32 %v1160_v26, %v1132_v2 }
 0x281   : > { %v1315_v42 = vmul.f32 %v9456_v30, %v6986_v8  ;;  %v1235_v19 = vadd.f32 %v1211_v51, %v1183_v5  ;;  %v1316_v15 = vmul.f32 %v9456_v30, %v9445_v20  ;;  %v1367_v62 = vmul.f32 %v9410_v32, %v7355_v23 }
 0x282   : > { %9455 = vst [vmem:[#allocation71_spill] sm:$0xff] %v7444_v24  ;;  %v1368_v59 = vmul.f32 %v9410_v32, %v7401_v35  ;;  %v1015_v13 = vrot.slane %v954_v43, 1  ;;  %v8843_v49 = vrot.slane %v7444_v24, 1  ;;  %v1236_v3 = vadd.f32 %v1212_v17, %v1184_v11 }
 0x283   : > { %v1516_v1 = vmul.f32 %v7348_v41, %v9411_v61  ;;  %v1287_v26 = vadd.f32 %v1263_v25, %v1235_v19  ;;  %v1517_v4 = vmul.f32 %v9432_v36, %v9411_v61  ;;  %v1544_v50 = vmul.f32 %v7357_v40, %v9413_v44 }
 0x284   : > { %v1545_v2 = vmul.f32 %v7384_v58, %v9413_v44  ;;  %v1017_v51 = vsel %vm984_vm0, %v1015_v13, %v8843_v49  ;;  %v1288_v5 = vadd.f32 %v1264_v33, %v1236_v3  ;;  %v1596_v11 = vmul.f32 %v7361_v48, %v9414_v18  ;;  %v9457_v44 = vld [vmem:[#allocation53_spill] sm:$0xff] }
 0x285   : > { %v1597_v17 = vmul.f32 %v7390_v55, %v9414_v18  ;;  %v1053_v25 = vadd.f32 %v1017_v51, %v616_v6  ;;  %v1339_v43 = vadd.f32 %v1315_v42, %v1287_v26  ;;  %v1568_v19 = vadd.f32 %v1544_v50, %v1516_v1  ;;  %v9459_v42 = vld [vmem:[#allocation55_spill] sm:$0xff]  ;;  %v9460_v26 = vld [vmem:[#allocation56_spill] sm:$0xff] }
 0x286   : > { %v1569_v61 = vadd.f32 %v1545_v2, %v1517_v4  ;;  %v1340_v32 = vadd.f32 %v1316_v15, %v1288_v5  ;;  %v1648_v30 = vmul.f32 %v6994_v9, %v9376_v12  ;;  %v1649_v24 = vmul.f32 %v9440_v27, %v9376_v12  ;;  %v9461_v5 = vld [vmem:[#allocation57_spill] sm:$0xff] }
 0x287   : > { %v1700_v33 = vmul.f32 %v7367_v7, %v9457_v44  ;;  %v1391_v13 = vadd.f32 %v1367_v62, %v1339_v43  ;;  %v1620_v3 = vadd.f32 %v1596_v11, %v1568_v19  ;;  %v1701_v18 = vmul.f32 %v7405_v29, %v9457_v44  ;;  %v9462_v11 = vld [vmem:[#allocation58_spill] sm:$0xff] }
 0x288   : > { %v1621_v49 = vadd.f32 %v1597_v17, %v1569_v61  ;;  %v7478_v6 = vadd.f32 %v1368_v59, %v1340_v32  ;;  %v1752_v15 = vmul.f32 %v9459_v42, %v6986_v8  ;;  %v1753_v1 = vmul.f32 %v9459_v42, %v9445_v20 }
 0x289   : > { %v1804_v4 = vmul.f32 %v9460_v26, %v7355_v23  ;;  %v1452_v50 = vrot.slane %v1391_v13, 2  ;;  %v1672_v2 = vadd.f32 %v1648_v30, %v1620_v3  ;;  %v1805_v61 = vmul.f32 %v9460_v26, %v7401_v35 }
 0x28a   : > { %9458 = vst [vmem:[#allocation72_spill] sm:$0xff] %v7478_v6  ;;  %v1673_v51 = vadd.f32 %v1649_v24, %v1621_v49  ;;  %v8850_v62 = vrot.slane %v7478_v6, 2  ;;  %v1953_v32 = vmul.f32 %v7348_v41, %v9461_v5  ;;  %v1954_v59 = vmul.f32 %v9432_v36, %v9461_v5  ;;  %v9463_v5 = vld [vmem:[#allocation60_spill] sm:$0xff] }
 0x28b   : > { %v1981_v17 = vmul.f32 %v7357_v40, %v9462_v11  ;;  %v1724_v43 = vadd.f32 %v1700_v33, %v1672_v2  ;;  %v1982_v30 = vmul.f32 %v7384_v58, %v9462_v11  ;;  %v2033_v24 = vmul.f32 %v7361_v48, %v9418_v16 }
 0x28c   : > { %v1725_v19 = vadd.f32 %v1701_v18, %v1673_v51  ;;  %v1454_v49 = vsel %vm1421_vm1, %v1452_v50, %v8850_v62  ;;  %v2034_v3 = vmul.f32 %v7390_v55, %v9418_v16  ;;  %v2085_v26 = vmul.f32 %v6994_v9, %v9463_v5  ;;  %v9465_v16 = vld [vmem:[#allocation63_spill] sm:$0xff] }
 0x28d   : > { %v2005_v13 = vadd.f32 %v1981_v17, %v1953_v32  ;;  %v1490_v42 = vadd.f32 %v1454_v49, %v1053_v25  ;;  %v1776_v33 = vadd.f32 %v1752_v15, %v1724_v43  ;;  %v2006_v2 = vadd.f32 %v1982_v30, %v1954_v59  ;;  %v9466_v59 = vld [vmem:[#allocation64_spill] sm:$0xff] }
 0x28e   : > { %v1777_v18 = vadd.f32 %v1753_v1, %v1725_v19  ;;  %v2086_v11 = vmul.f32 %v9440_v27, %v9463_v5  ;;  %v2137_v6 = vmul.f32 %v7367_v7, %v9217_v14  ;;  %v2138_v50 = vmul.f32 %v7405_v29, %v9217_v14 }
 0x28f   : > { %v2057_v51 = vadd.f32 %v2033_v24, %v2005_v13  ;;  %v1828_v32 = vadd.f32 %v1804_v4, %v1776_v33  ;;  %v2058_v62 = vadd.f32 %v2034_v3, %v2006_v2  ;;  %v2189_v25 = vmul.f32 %v9465_v16, %v6986_v8  ;;  %v9468_v3 = vld [vmem:[#allocation66_spill] sm:$0xff] }
 0x290   : > { %v7512_v17 = vadd.f32 %v1805_v61, %v1777_v18  ;;  %v2190_v1 = vmul.f32 %v9465_v16, %v9445_v20  ;;  %v2241_v43 = vmul.f32 %v9466_v59, %v7355_v23  ;;  %v2242_v19 = vmul.f32 %v9466_v59, %v7401_v35  ;;  %v9467_v61 = vld [vmem:[#allocation65_spill] sm:$0xff] }
 0x291   : > { %v2109_v15 = vadd.f32 %v2085_v26, %v2057_v51  ;;  %v1889_v30 = vrot.slane %v1828_v32, 3  ;;  %v2110_v4 = vadd.f32 %v2086_v11, %v2058_v62  ;;  %v2390_v49 = vmul.f32 %v7348_v41, %v9467_v61 }
 0x292   : > { %9464 = vst [vmem:[#allocation68_spill] sm:$0xff] %v7512_v17  ;;  %v8856_v24 = vrot.slane %v7512_v17, 3  ;;  %v2391_v26 = vmul.f32 %v9432_v36, %v9467_v61  ;;  %v2418_v33 = vmul.f32 %v7357_v40, %v9468_v3  ;;  %v2419_v18 = vmul.f32 %v7384_v58, %v9468_v3 }
 0x293   : > { %v2161_v13 = vadd.f32 %v2137_v6, %v2109_v15  ;;  %v2162_v51 = vadd.f32 %v2138_v50, %v2110_v4  ;;  %v2470_v62 = vmul.f32 %v7361_v48, %v9422_v39  ;;  %v2471_v6 = vmul.f32 %v7390_v55, %v9422_v39 }
 0x294   : > { %v1891_v2 = vsel %vm1858_vm2, %v1889_v30, %v8856_v24  ;;  %v2442_v15 = vadd.f32 %v2418_v33, %v2390_v49  ;;  %v2443_v61 = vadd.f32 %v2419_v18, %v2391_v26  ;;  %v2522_v16 = vmul.f32 %v6994_v9, %v9084_v10 }
 0x295   : > { %v1927_v11 = vadd.f32 %v1891_v2, %v1490_v42  ;;  %v2213_v32 = vadd.f32 %v2189_v25, %v2161_v13  ;;  %v2214_v59 = vadd.f32 %v2190_v1, %v2162_v51  ;;  %v2523_v17 = vmul.f32 %v9440_v27, %v9084_v10 }
 0x296   : > { %v2574_v50 = vmul.f32 %v7367_v7, %v5290_v53  ;;  %v2494_v4 = vadd.f32 %v2470_v62, %v2442_v15  ;;  %v2495_v24 = vadd.f32 %v2471_v6, %v2443_v61  ;;  %v2575_v39 = vmul.f32 %v7405_v29, %v5290_v53 }
 0x297   : > { %v2265_v30 = vadd.f32 %v2241_v43, %v2213_v32  ;;  %v7546_v42 = vadd.f32 %v2242_v19, %v2214_v59  ;;  %v2626_v25 = vmul.f32 %v5294_v60, %v6986_v8  ;;  %v2627_v1 = vmul.f32 %v5294_v60, %v9445_v20 }
 0x298   : > { %v2678_v49 = vmul.f32 %v5298_v37, %v7355_v23  ;;  %v2546_v26 = vadd.f32 %v2522_v16, %v2494_v4  ;;  %v2547_v33 = vadd.f32 %v2523_v17, %v2495_v24  ;;  %v2679_v43 = vmul.f32 %v5298_v37, %v7401_v35 }
 0x299   : > { %9469 = vst [vmem:[#allocation54_spill] sm:$0xff] %v7546_v42  ;;  %v2326_v13 = vrot.slane %v2265_v30, 4  ;;  %v8858_v61 = vrot.slane %v7546_v42, 4  ;;  %v2827_v59 = vmul.f32 %v7348_v41, %v5332_v54  ;;  %v2828_v19 = vmul.f32 %v9432_v36, %v5332_v54  ;;  %v9489_v42 = vld [vmem:[#allocation41_spill] sm:$0xff] }
 0x29a   : > { %v2855_v18 = vmul.f32 %v7357_v40, %v5336_v0  ;;  %v2598_v2 = vadd.f32 %v2574_v50, %v2546_v26  ;;  %v2599_v51 = vadd.f32 %v2575_v39, %v2547_v33  ;;  %v2856_v16 = vmul.f32 %v7384_v58, %v5336_v0 }
 0x29b   : > { %v2907_v17 = vmul.f32 %v7361_v48, %v5340_v38  ;;  %v2328_v24 = vsel %vm2295_vm3, %v2326_v13, %v8858_v61  ;;  %v2908_v41 = vmul.f32 %v7390_v55, %v5340_v38  ;;  %v2959_v6 = vmul.f32 %v6994_v9, %v5344_v31 }
 0x29c   : > { %v2879_v62 = vadd.f32 %v2855_v18, %v2827_v59  ;;  %v2364_v32 = vadd.f32 %v2328_v24, %v1927_v11  ;;  %v2650_v15 = vadd.f32 %v2626_v25, %v2598_v2  ;;  %v2651_v39 = vadd.f32 %v2627_v1, %v2599_v51 }
 0x29d   : > { %v2880_v50 = vadd.f32 %v2856_v16, %v2828_v19  ;;  %v2960_v4 = vmul.f32 %v9440_v27, %v5344_v31  ;;  %v3011_v26 = vmul.f32 %v7367_v7, %v5364_v52  ;;  %v3012_v13 = vmul.f32 %v7405_v29, %v5364_v52 }
 0x29e   : > { %v2931_v30 = vadd.f32 %v2907_v17, %v2879_v62  ;;  %v2702_v33 = vadd.f32 %v2678_v49, %v2650_v15  ;;  %v7580_v59 = vadd.f32 %v2679_v43, %v2651_v39  ;;  %v3063_v9 = vmul.f32 %v5368_v56, %v6986_v8  ;;  %v9471_v17 = vld [vmem:[#allocation31_spill] sm:$0xff]  ;;  %v9472_v62 = vld [vmem:[#allocation32_spill] sm:$0xff]  ;;  %v9473_v39 = vld [vmem:[#allocation34_spill] sm:$0xff] }
 0x29f   : > { %v2932_v18 = vadd.f32 %v2908_v41, %v2880_v50  ;;  %v3064_v25 = vmul.f32 %v5368_v56, %v9445_v20  ;;  %v3115_v1 = vmul.f32 %v5372_v46, %v7355_v23  ;;  %v3116_v19 = vmul.f32 %v5372_v46, %v7401_v35 }
 0x2a0   : > { %9470 = vst [vmem:[#allocation86_spill] sm:$0xff] %v7580_v59  ;;  %v2983_v11 = vadd.f32 %v2959_v6, %v2931_v30  ;;  %v2763_v2 = vrot.slane %v2702_v33, 5  ;;  %v8864_v51 = vrot.slane %v7580_v59, 5  ;;  %v379_v43 = vmul.f32 %v9432_v36, %v4975_v21  ;;  %v9474_v36 = vld [vmem:[#allocation35_spill] sm:$0xff]  ;;  %v7606_v33 = vld [vmem:[#allocation2 + $0x130] sm:$0xff] }
 0x2a1   : > { %v2984_v49 = vadd.f32 %v2960_v4, %v2932_v18  ;;  %v399_v8 = vmul.f32 %v7384_v58, %v4995_v28  ;;  %v435_v24 = vmul.f32 %v7390_v55, %v9471_v17  ;;  %v471_v41 = vmul.f32 %v9440_v27, %v9472_v62  ;;  %9475 = vst [vmem:[#allocation31_spill] sm:$0xff] %v7606_v33  ;;  %v9477_v55 = vld [vmem:[#allocation28_spill] sm:$0xff] }
 0x2a2   : > { %v3035_v16 = vadd.f32 %v3011_v26, %v2983_v11  ;;  %v2765_v6 = vsel %vm2732_vm4, %v2763_v2, %v8864_v51  ;;  %v507_v50 = vmul.f32 %v7405_v29, %v9473_v39  ;;  %v543_v30 = vmul.f32 %v9474_v36, %v9445_v20  ;;  %v9476_v11 = vld [vmem:[#allocation36_spill] sm:$0xff]  ;;  %v9479_v2 = vld [vmem:[#allocation33_spill] sm:$0xff] }
 0x2a3   : > { %v3036_v15 = vadd.f32 %v3012_v13, %v2984_v49  ;;  %v2801_v4 = vadd.f32 %v2765_v6, %v2364_v32  ;;  %v415_v18 = vadd.f32 %v399_v8, %v379_v43  ;;  %v579_v61 = vmul.f32 %v9476_v11, %v7401_v35  ;;  %v9478_v59 = vld [vmem:[#allocation80_spill] sm:$0xff]  ;;  %v9480_v13 = vld [vmem:[#allocation73_spill] sm:$0xff]  ;;  %v7620_v8 = vld [vmem:[#allocation2 + $0x100] sm:$0xff] }
 0x2a4   : > { %v3087_v26 = vadd.f32 %v3063_v9, %v3035_v16  ;;  %v644_v58 = vmul.f32 %v9478_v59, %v9477_v55  ;;  %v672_v49 = vmul.f32 %v9480_v13, %v9479_v2  ;;  %v7614_v51 = vld [vmem:[#allocation2 + $0xd0] sm:$0xff]  ;;  %v9482_v29 = vld [vmem:[#allocation37_spill] sm:$0xff]  ;;  %v9483_v16 = vld [vmem:[#allocation82_spill] sm:$0xff]  ;;  %9484 = vst [vmem:[#allocation73_spill] sm:$0xff] %v7620_v8  ;;  %v932_v36 = vmul.f32 %v9489_v42, %v7606_v33 }
 0x2a5   : > { %v3088_v27 = vadd.f32 %v3064_v25, %v3036_v15  ;;  %9481 = vst [vmem:[#allocation80_spill] sm:$0xff] %v7614_v51  ;;  %v724_v20 = vmul.f32 %v7614_v51, %v9482_v29  ;;  %v451_v9 = vadd.f32 %v435_v24, %v415_v18  ;;  %v776_v43 = vmul.f32 %v9483_v16, %v9437_v34  ;;  %v9485_v6 = vld [vmem:[#allocation39_spill] sm:$0xff]  ;;  %v9487_v55 = vld [vmem:[#allocation81_spill] sm:$0xff]  ;;  %v9488_v2 = vld [vmem:[#allocation40_spill] sm:$0xff] }
 0x2a6   : > { %v3139_v32 = vadd.f32 %v3115_v1, %v3087_v26  ;;  %v828_v25 = vmul.f32 %v7620_v8, %v9485_v6  ;;  %v696_v35 = vadd.f32 %v672_v49, %v644_v58  ;;  %v880_v11 = vmul.f32 %v9488_v2, %v9487_v55 }
 0x2a7   : > { %v7624_v15 = vadd.f32 %v3116_v19, %v3088_v27  ;;  %v487_v1 = vadd.f32 %v471_v41, %v451_v9  ;;  %v1081_v24 = vmul.f32 %v9478_v59, %v9447_v57  ;;  %v1109_v26 = vmul.f32 %v9480_v13, %v9450_v22 }
 0x2a8   : > { %v3200_v29 = vrot.slane %v3139_v32, 6  ;;  %v748_v6 = vadd.f32 %v724_v20, %v696_v35  ;;  %v1161_v58 = vmul.f32 %v7614_v51, %v9452_v45  ;;  %v1213_v19 = vmul.f32 %v9483_v16, %v9453_v63  ;;  %v9490_v32 = vld [vmem:[#allocation47_spill] sm:$0xff]  ;;  %v9491_v35 = vld [vmem:[#allocation49_spill] sm:$0xff]  ;;  %v9492_v45 = vld [vmem:[#allocation30_spill] sm:$0xff] }
 0x2a9   : > { %9486 = vst [vmem:[#allocation82_spill] sm:$0xff] %v7624_v15  ;;  %v8876_v18 = vrot.slane %v7624_v15, 6  ;;  %v523_v27 = vadd.f32 %v507_v50, %v487_v1  ;;  %v1133_v49 = vadd.f32 %v1109_v26, %v1081_v24  ;;  %v1265_v41 = vmul.f32 %v7620_v8, %v9454_v47  ;;  %v9494_v24 = vld [vmem:[#allocation50_spill] sm:$0xff] }
 0x2aa   : > { %v1317_v9 = vmul.f32 %v9490_v32, %v9487_v55  ;;  %v800_v57 = vadd.f32 %v776_v43, %v748_v6  ;;  %v1369_v20 = vmul.f32 %v9491_v35, %v7606_v33  ;;  %v1518_v42 = vmul.f32 %v9478_v59, %v9492_v45  ;;  %v9495_v32 = vld [vmem:[#allocation51_spill] sm:$0xff] }
 0x2ab   : > { %v3202_v22 = vsel %vm3169_vm5, %v3200_v29, %v8876_v18  ;;  %v559_v50 = vadd.f32 %v543_v30, %v523_v27  ;;  %v1185_v1 = vadd.f32 %v1161_v58, %v1133_v49  ;;  %v1546_v26 = vmul.f32 %v9480_v13, %v9494_v24  ;;  %v9496_v30 = vld [vmem:[#allocation55_spill] sm:$0xff]  ;;  %v9498_v49 = vld [vmem:[#allocation57_spill] sm:$0xff] }
 0x2ac   : > { %v7650_v63 = vadd.f32 %v3202_v22, %v2801_v4  ;;  %v852_v47 = vadd.f32 %v828_v25, %v800_v57  ;;  %v1598_v15 = vmul.f32 %v7614_v51, %v9495_v32  ;;  %v1650_v29 = vmul.f32 %v9483_v16, %v9376_v12  ;;  %v9497_v57 = vld [vmem:[#allocation56_spill] sm:$0xff]  ;;  %v9499_v32 = vld [vmem:[#allocation58_spill] sm:$0xff]  ;;  %v9500_v24 = vld [vmem:[#allocation85_spill] sm:$0xff] }
 0x2ad   : > { %v1702_v43 = vmul.f32 %v7620_v8, %v9457_v44  ;;  %v595_v6 = vadd.f32 %v579_v61, %v559_v50  ;;  %v1237_v22 = vadd.f32 %v1213_v19, %v1185_v1  ;;  %v1570_v4 = vadd.f32 %v1546_v26, %v1518_v42  ;;  %v9501_v61 = vld [vmem:[#allocation59_spill] sm:$0xff] }
 0x2ae   : > { %9493 = vst [vmem:[#allocation81_spill] sm:$0xff] %v7650_v63  ;;  %3266 = vadd.xlane.f32.xlu0 %v7650_v63  ;;  %v1754_v58 = vmul.f32 %v9496_v30, %v9487_v55  ;;  %v904_v27 = vadd.f32 %v880_v11, %v852_v47  ;;  %v1806_v25 = vmul.f32 %v9497_v57, %v7606_v33 }
 0x2af   : > { %v1955_v18 = vmul.f32 %v9478_v59, %v9498_v49  ;;  %v1983_v12 = vmul.f32 %v9480_v13, %v9499_v32  ;;  %v617_v44 = vadd.f32 %v9500_v24, %v595_v6  ;;  %v1289_v45 = vadd.f32 %v1265_v41, %v1237_v22  ;;  %v9502_v49 = vld [vmem:[#allocation63_spill] sm:$0xff]  ;;  %v9503_v6 = vld [vmem:[#allocation64_spill] sm:$0xff] }
 0x2b0   : > { %v1622_v63 = vadd.f32 %v1598_v15, %v1570_v4  ;;  %v2035_v42 = vmul.f32 %v7614_v51, %v9501_v61  ;;  %v956_v19 = vadd.f32 %v932_v36, %v904_v27  ;;  %v2087_v47 = vmul.f32 %v9483_v16, %v9463_v5  ;;  %v9504_v4 = vld [vmem:[#allocation65_spill] sm:$0xff]  ;;  %v9505_v5 = vld [vmem:[#allocation67_spill] sm:$0xff] }
 0x2b1   : > { %v2007_v50 = vadd.f32 %v1983_v12, %v1955_v18  ;;  %v2139_v11 = vmul.f32 %v7620_v8, %v9217_v14  ;;  %v1341_v1 = vadd.f32 %v1317_v9, %v1289_v45  ;;  %v2191_v32 = vmul.f32 %v9502_v49, %v9487_v55  ;;  %v9506_v9 = vld [vmem:[#allocation71_spill] sm:$0xff] }
 0x2b2   : > { %v1674_v26 = vadd.f32 %v1650_v29, %v1622_v63  ;;  %v2243_v41 = vmul.f32 %v9503_v6, %v7606_v33  ;;  %v1018_v15 = vrot.slane %v956_v19, 1  ;;  %v2392_v36 = vmul.f32 %v9478_v59, %v9504_v4 }
 0x2b3   : > { %v2059_v22 = vadd.f32 %v2035_v42, %v2007_v50  ;;  %v2420_v12 = vmul.f32 %v9480_v13, %v9468_v3  ;;  %v1393_v18 = vadd.f32 %v1369_v20, %v1341_v1  ;;  %v2472_v45 = vmul.f32 %v7614_v51, %v9505_v5 }
 0x2b4   : > { %v1726_v27 = vadd.f32 %v1702_v43, %v1674_v26  ;;  %v2524_v63 = vmul.f32 %v9483_v16, %v9084_v10  ;;  %v9507_v29 = vrot.slane %v9506_v9, 1  ;;  %v2576_v50 = vmul.f32 %v7620_v8, %v5290_v53 }
 0x2b5   : > { %v2111_v19 = vadd.f32 %v2087_v47, %v2059_v22  ;;  %v2444_v42 = vadd.f32 %v2420_v12, %v2392_v36  ;;  %v1455_v49 = vrot.slane %v1393_v18, 2  ;;  %v2628_v20 = vmul.f32 %v5294_v60, %v9487_v55 }
 0x2b6   : > { %v1019_v6 = vsel %vm984_vm0, %v9507_v29, %v1018_v15  ;;  %v1778_v3 = vadd.f32 %v1754_v58, %v1726_v27  ;;  %v2680_v26 = vmul.f32 %v5298_v37, %v7606_v33  ;;  %v2829_v9 = vmul.f32 %v9478_v59, %v5332_v54  ;;  %v9508_v15 = vld [vmem:[#allocation72_spill] sm:$0xff] }
 0x2b7   : > { %v1054_v4 = vadd.f32 %v1019_v6, %v617_v44  ;;  %v2163_v43 = vadd.f32 %v2139_v11, %v2111_v19  ;;  %v2496_v1 = vadd.f32 %v2472_v45, %v2444_v42  ;;  %v9509_v47 = vrot.slane %v9508_v15, 2  ;;  %v7719_v19 = vld [vmem:[#allocation2 + $0x138] sm:$0xff] }
 0x2b8   : > { %v1830_v36 = vadd.f32 %v1806_v25, %v1778_v3  ;;  %v2857_v44 = vmul.f32 %v9480_v13, %v5336_v0  ;;  %v2909_v58 = vmul.f32 %v7614_v51, %v5340_v38  ;;  %v2961_v18 = vmul.f32 %v9483_v16, %v5344_v31  ;;  %v9523_v51 = vld [vmem:[#allocation48_spill] sm:$0xff] }
 0x2b9   : > { %v1456_v22 = vsel %vm1421_vm1, %v9509_v47, %v1455_v49  ;;  %v2215_v11 = vadd.f32 %v2191_v32, %v2163_v43  ;;  %v2548_v12 = vadd.f32 %v2524_v63, %v2496_v1  ;;  %v3013_v59 = vmul.f32 %v7620_v8, %v5364_v52  ;;  %v7723_v43 = vld [vmem:[#allocation2 + $0xd8] sm:$0xff] }
 0x2ba   : > { %v1491_v6 = vadd.f32 %v1456_v22, %v1054_v4  ;;  %v1892_v27 = vrot.slane %v1830_v36, 3  ;;  %v2881_v45 = vadd.f32 %v2857_v44, %v2829_v9  ;;  %v3065_v3 = vmul.f32 %v5368_v56, %v9487_v55  ;;  %v9510_v4 = vld [vmem:[#allocation68_spill] sm:$0xff]  ;;  %v7729_v22 = vld [vmem:[#allocation2 + $0x108] sm:$0xff] }
 0x2bb   : > { %v2267_v25 = vadd.f32 %v2243_v41, %v2215_v11  ;;  %v2600_v49 = vadd.f32 %v2576_v50, %v2548_v12  ;;  %v3117_v13 = vmul.f32 %v5372_v46, %v7606_v33  ;;  %v380_v32 = vmul.f32 %v7357_v40, %v4975_v21  ;;  %v9512_v44 = vld [vmem:[#allocation35_spill] sm:$0xff]  ;;  %v9513_v11 = vld [vmem:[#allocation54_spill] sm:$0xff] }
 0x2bc   : > { %v9511_v63 = vrot.slane %v9510_v4, 3  ;;  %v2933_v29 = vadd.f32 %v2909_v58, %v2881_v45  ;;  %v400_v42 = vmul.f32 %v7361_v48, %v4995_v28  ;;  %v436_v55 = vmul.f32 %v7723_v43, %v9471_v17 }
 0x2bd   : > { %v2329_v50 = vrot.slane %v2267_v25, 4  ;;  %v2652_v1 = vadd.f32 %v2628_v20, %v2600_v49  ;;  %v472_v9 = vmul.f32 %v7367_v7, %v9472_v62  ;;  %v508_v36 = vmul.f32 %v7729_v22, %v9473_v39  ;;  %v9515_v20 = vld [vmem:[#allocation36_spill] sm:$0xff] }
 0x2be   : > { %v1893_v16 = vsel %vm1858_vm2, %v9511_v63, %v1892_v27  ;;  %v2985_v15 = vadd.f32 %v2961_v18, %v2933_v29  ;;  %v416_v47 = vadd.f32 %v400_v42, %v380_v32  ;;  %v544_v58 = vmul.f32 %v9512_v44, %v7355_v23  ;;  %v9516_v25 = vld [vmem:[#allocation28_spill] sm:$0xff]  ;;  %v9517_v63 = vld [vmem:[#allocation79_spill] sm:$0xff]  ;;  %v9518_v42 = vld [vmem:[#allocation33_spill] sm:$0xff] }
 0x2bf   : > { %v1928_v41 = vadd.f32 %v1893_v16, %v1491_v6  ;;  %v9514_v12 = vrot.slane %v9513_v11, 4  ;;  %v2704_v6 = vadd.f32 %v2680_v26, %v2652_v1  ;;  %v580_v45 = vmul.f32 %v9515_v20, %v7719_v19  ;;  %v9519_v11 = vld [vmem:[#allocation77_spill] sm:$0xff]  ;;  %v7750_v20 = vld [vmem:[#allocation2 + $0xe0] sm:$0xff]  ;;  %v7765_v62 = vld [vmem:[#allocation2 + $0x110] sm:$0xff] }
 0x2c0   : > { %v645_v18 = vmul.f32 %v7357_v40, %v9516_v25  ;;  %v3037_v32 = vadd.f32 %v3013_v59, %v2985_v15  ;;  %v452_v4 = vadd.f32 %v436_v55, %v416_v47  ;;  %v646_v16 = vmul.f32 %v9517_v63, %v9516_v25  ;;  %v9520_v26 = vld [vmem:[#allocation37_spill] sm:$0xff] }
 0x2c1   : > { %v2330_v27 = vsel %vm2295_vm3, %v9514_v12, %v2329_v50  ;;  %v2766_v29 = vrot.slane %v2704_v6, 5  ;;  %v673_v33 = vmul.f32 %v7361_v48, %v9518_v42  ;;  %v674_v50 = vmul.f32 %v9519_v11, %v9518_v42 }
 0x2c2   : > { %v2365_v49 = vadd.f32 %v2330_v27, %v1928_v41  ;;  %v725_v1 = vmul.f32 %v7723_v43, %v9520_v26  ;;  %v3089_v12 = vadd.f32 %v3065_v3, %v3037_v32  ;;  %v488_v8 = vadd.f32 %v472_v9, %v452_v4  ;;  %v9521_v41 = vld [vmem:[#allocation86_spill] sm:$0xff]  ;;  %v9524_v4 = vld [vmem:[#allocation39_spill] sm:$0xff] }
 0x2c3   : > { %v726_v59 = vmul.f32 %v7750_v20, %v9520_v26  ;;  %v777_v55 = vmul.f32 %v7367_v7, %v9437_v34  ;;  %v9522_v15 = vrot.slane %v9521_v41, 5  ;;  %v697_v27 = vadd.f32 %v673_v33, %v645_v18  ;;  %v7761_v9 = vld [vmem:[#allocation2 + $0x140] sm:$0xff] }
 0x2c4   : > { %v698_v6 = vadd.f32 %v674_v50, %v646_v16  ;;  %v778_v42 = vmul.f32 %v9523_v51, %v9437_v34  ;;  %v3141_v3 = vadd.f32 %v3117_v13, %v3089_v12  ;;  %v524_v32 = vadd.f32 %v508_v36, %v488_v8  ;;  %v9526_v8 = vld [vmem:[#allocation41_spill] sm:$0xff] }
 0x2c5   : > { %v2767_v47 = vsel %vm2732_vm4, %v9522_v15, %v2766_v29  ;;  %v829_v26 = vmul.f32 %v7729_v22, %v9524_v4  ;;  %v749_v44 = vadd.f32 %v725_v1, %v697_v27  ;;  %v830_v29 = vmul.f32 %v7765_v62, %v9524_v4  ;;  %v9528_v15 = vld [vmem:[#allocation82_spill] sm:$0xff] }
 0x2c6   : > { %v2802_v25 = vadd.f32 %v2767_v47, %v2365_v49  ;;  %v750_v39 = vadd.f32 %v726_v59, %v698_v6  ;;  %v881_v33 = vmul.f32 %v9488_v2, %v7355_v23  ;;  %v3203_v18 = vrot.slane %v3141_v3, 6  ;;  %v9525_v49 = vld [vmem:[#allocation62_spill] sm:$0xff]  ;;  %v9527_v59 = vld [vmem:[#allocation29_spill] sm:$0xff]  ;;  %v9530_v3 = vld [vmem:[#allocation43_spill] sm:$0xff] }
 0x2c7   : > { %v560_v16 = vadd.f32 %v544_v58, %v524_v32  ;;  %v882_v13 = vmul.f32 %v9488_v2, %v9525_v49  ;;  %v933_v36 = vmul.f32 %v9526_v8, %v7719_v19  ;;  %v801_v50 = vadd.f32 %v777_v55, %v749_v44 }
 0x2c8   : > { %v802_v12 = vadd.f32 %v778_v42, %v750_v39  ;;  %v934_v1 = vmul.f32 %v9526_v8, %v7761_v9  ;;  %v1082_v41 = vmul.f32 %v7357_v40, %v9527_v59  ;;  %v9529_v47 = vrot.slane %v9528_v15, 6  ;;  %v9532_v15 = vld [vmem:[#allocation44_spill] sm:$0xff] }
 0x2c9   : > { %v596_v6 = vadd.f32 %v580_v45, %v560_v16  ;;  %v1083_v58 = vmul.f32 %v9517_v63, %v9527_v59  ;;  %v1110_v32 = vmul.f32 %v7361_v48, %v9530_v3  ;;  %v853_v39 = vadd.f32 %v829_v26, %v801_v50 }
 0x2ca   : > { %v3204_v27 = vsel %vm3169_vm5, %v9529_v47, %v3203_v18  ;;  %v854_v44 = vadd.f32 %v830_v29, %v802_v12  ;;  %v1111_v42 = vmul.f32 %v9519_v11, %v9530_v3  ;;  %v1162_v18 = vmul.f32 %v7723_v43, %v9532_v15 }
 0x2cb   : > { %v7786_v2 = vadd.f32 %v3204_v27, %v2802_v25  ;;  %v618_v55 = vadd.f32 %v9500_v24, %v596_v6  ;;  %v1134_v8 = vadd.f32 %v1110_v32, %v1082_v41  ;;  %v1163_v45 = vmul.f32 %v7750_v20, %v9532_v15  ;;  %v9533_v27 = vld [vmem:[#allocation45_spill] sm:$0xff]  ;;  %v9534_v24 = vld [vmem:[#allocation46_spill] sm:$0xff]  ;;  %v9540_v15 = vld [vmem:[#allocation52_spill] sm:$0xff] }
 0x2cc   : > { %v905_v16 = vadd.f32 %v881_v33, %v853_v39  ;;  %v906_v47 = vadd.f32 %v882_v13, %v854_v44  ;;  %v1135_v25 = vadd.f32 %v1111_v42, %v1083_v58  ;;  %v1214_v26 = vmul.f32 %v7367_v7, %v9533_v27  ;;  %v9536_v33 = vld [vmem:[#allocation47_spill] sm:$0xff] }
 0x2cd   : > { %9531 = vst [vmem:[#allocation85_spill] sm:$0xff] %v7786_v2  ;;  %3268 = vadd.xlane.f32.xlu1 %v7786_v2  ;;  %v1186_v29 = vadd.f32 %v1162_v18, %v1134_v8  ;;  %v1215_v50 = vmul.f32 %v9523_v51, %v9533_v27  ;;  %v1266_v12 = vmul.f32 %v7729_v22, %v9534_v24 }
 0x2ce   : > { %v1267_v41 = vmul.f32 %v7765_v62, %v9534_v24  ;;  %v957_v6 = vadd.f32 %v933_v36, %v905_v16  ;;  %v7804_v32 = vadd.f32 %v934_v1, %v906_v47  ;;  %v1187_v2 = vadd.f32 %v1163_v45, %v1135_v25  ;;  %v9537_v1 = vld [vmem:[#allocation30_spill] sm:$0xff] }
 0x2cf   : > { %v1318_v13 = vmul.f32 %v9536_v33, %v7355_v23  ;;  %v1238_v58 = vadd.f32 %v1214_v26, %v1186_v29  ;;  %v1319_v8 = vmul.f32 %v9536_v33, %v9525_v49  ;;  %v1370_v39 = vmul.f32 %v9491_v35, %v7719_v19  ;;  %v9538_v25 = vld [vmem:[#allocation50_spill] sm:$0xff]  ;;  %v9539_v33 = vld [vmem:[#allocation51_spill] sm:$0xff] }
 0x2d0   : > { %9535 = vst [vmem:[#allocation59_spill] sm:$0xff] %v7804_v32  ;;  %v1371_v44 = vmul.f32 %v9491_v35, %v7761_v9  ;;  %v1020_v42 = vrot.slane %v957_v6, 1  ;;  %v8905_v18 = vrot.slane %v7804_v32, 1  ;;  %v1239_v36 = vadd.f32 %v1215_v50, %v1187_v2 }
 0x2d1   : > { %v1519_v45 = vmul.f32 %v7357_v40, %v9537_v1  ;;  %v1290_v16 = vadd.f32 %v1266_v12, %v1238_v58  ;;  %v1520_v47 = vmul.f32 %v9517_v63, %v9537_v1  ;;  %v1547_v26 = vmul.f32 %v7361_v48, %v9538_v25 }
 0x2d2   : > { %v1548_v29 = vmul.f32 %v9519_v11, %v9538_v25  ;;  %v1022_v6 = vsel %vm984_vm0, %v1020_v42, %v8905_v18  ;;  %v1291_v35 = vadd.f32 %v1267_v41, %v1239_v36  ;;  %v1599_v2 = vmul.f32 %v7723_v43, %v9539_v33  ;;  %v9541_v25 = vld [vmem:[#allocation53_spill] sm:$0xff] }
 0x2d3   : > { %v1600_v50 = vmul.f32 %v7750_v20, %v9539_v33  ;;  %v1055_v12 = vadd.f32 %v1022_v6, %v618_v55  ;;  %v1342_v58 = vadd.f32 %v1318_v13, %v1290_v16  ;;  %v1571_v1 = vadd.f32 %v1547_v26, %v1519_v45  ;;  %v9544_v26 = vld [vmem:[#allocation58_spill] sm:$0xff] }
 0x2d4   : > { %v1572_v24 = vadd.f32 %v1548_v29, %v1520_v47  ;;  %v1343_v27 = vadd.f32 %v1319_v8, %v1291_v35  ;;  %v1651_v3 = vmul.f32 %v7367_v7, %v9540_v15  ;;  %v1652_v32 = vmul.f32 %v9523_v51, %v9540_v15 }
 0x2d5   : > { %v1703_v41 = vmul.f32 %v7729_v22, %v9541_v25  ;;  %v1394_v42 = vadd.f32 %v1370_v39, %v1342_v58  ;;  %v1623_v36 = vadd.f32 %v1599_v2, %v1571_v1  ;;  %v1704_v33 = vmul.f32 %v7765_v62, %v9541_v25  ;;  %v9543_v1 = vld [vmem:[#allocation57_spill] sm:$0xff] }
 0x2d6   : > { %v1624_v18 = vadd.f32 %v1600_v50, %v1572_v24  ;;  %v7838_v55 = vadd.f32 %v1371_v44, %v1343_v27  ;;  %v1755_v35 = vmul.f32 %v9496_v30, %v7355_v23  ;;  %v1756_v13 = vmul.f32 %v9496_v30, %v9525_v49 }
 0x2d7   : > { %v1807_v8 = vmul.f32 %v9497_v57, %v7719_v19  ;;  %v1457_v45 = vrot.slane %v1394_v42, 2  ;;  %v1675_v16 = vadd.f32 %v1651_v3, %v1623_v36  ;;  %v1808_v24 = vmul.f32 %v9497_v57, %v7761_v9  ;;  %v9545_v42 = vld [vmem:[#allocation60_spill] sm:$0xff] }
 0x2d8   : > { %9542 = vst [vmem:[#allocation71_spill] sm:$0xff] %v7838_v55  ;;  %v1676_v47 = vadd.f32 %v1652_v32, %v1624_v18  ;;  %v8911_v39 = vrot.slane %v7838_v55, 2  ;;  %v1956_v27 = vmul.f32 %v7357_v40, %v9543_v1  ;;  %v1957_v44 = vmul.f32 %v9517_v63, %v9543_v1 }
 0x2d9   : > { %v1984_v29 = vmul.f32 %v7361_v48, %v9544_v26  ;;  %v1727_v6 = vadd.f32 %v1703_v41, %v1675_v16  ;;  %v1985_v3 = vmul.f32 %v9519_v11, %v9544_v26  ;;  %v2036_v32 = vmul.f32 %v7723_v43, %v9501_v61 }
 0x2da   : > { %v1728_v2 = vadd.f32 %v1704_v33, %v1676_v47  ;;  %v1459_v18 = vsel %vm1421_vm1, %v1457_v45, %v8911_v39  ;;  %v2037_v58 = vmul.f32 %v7750_v20, %v9501_v61  ;;  %v2088_v36 = vmul.f32 %v7367_v7, %v9545_v42 }
 0x2db   : > { %v2008_v50 = vadd.f32 %v1984_v29, %v1956_v27  ;;  %v1779_v57 = vadd.f32 %v1755_v35, %v1727_v6  ;;  %v2009_v33 = vadd.f32 %v1985_v3, %v1957_v44  ;;  %v1492_v16 = vadd.f32 %v1459_v18, %v1055_v12  ;;  %v9547_v35 = vld [vmem:[#allocation63_spill] sm:$0xff]  ;;  %v9548_v44 = vld [vmem:[#allocation64_spill] sm:$0xff] }
 0x2dc   : > { %v1780_v41 = vadd.f32 %v1756_v13, %v1728_v2  ;;  %v2089_v30 = vmul.f32 %v9523_v51, %v9545_v42  ;;  %v2140_v55 = vmul.f32 %v7729_v22, %v9217_v14  ;;  %v2141_v29 = vmul.f32 %v7765_v62, %v9217_v14 }
 0x2dd   : > { %v2060_v47 = vadd.f32 %v2036_v32, %v2008_v50  ;;  %v1831_v26 = vadd.f32 %v1807_v8, %v1779_v57  ;;  %v2061_v27 = vadd.f32 %v2037_v58, %v2009_v33  ;;  %v2192_v13 = vmul.f32 %v9547_v35, %v7355_v23  ;;  %v9549_v8 = vld [vmem:[#allocation65_spill] sm:$0xff]  ;;  %v9550_v50 = vld [vmem:[#allocation66_spill] sm:$0xff] }
 0x2de   : > { %v7870_v45 = vadd.f32 %v1808_v24, %v1780_v41  ;;  %v2193_v12 = vmul.f32 %v9547_v35, %v9525_v49  ;;  %v2244_v6 = vmul.f32 %v9548_v44, %v7719_v19  ;;  %v2393_v24 = vmul.f32 %v7357_v40, %v9549_v8 }
 0x2df   : > { %v2112_v39 = vadd.f32 %v2088_v36, %v2060_v47  ;;  %v1894_v2 = vrot.slane %v1831_v26, 3  ;;  %v2113_v57 = vadd.f32 %v2089_v30, %v2061_v27  ;;  %v2394_v18 = vmul.f32 %v9517_v63, %v9549_v8 }
 0x2e0   : > { %9546 = vst [vmem:[#allocation72_spill] sm:$0xff] %v7870_v45  ;;  %v1895_v3 = vrot.slane %v7870_v45, 3  ;;  %v2421_v58 = vmul.f32 %v7361_v48, %v9550_v50  ;;  %v2422_v36 = vmul.f32 %v9519_v11, %v9550_v50  ;;  %v2245_v26 = vmul.f32 %v9548_v44, %v7761_v9 }
 0x2e1   : > { %v2164_v32 = vadd.f32 %v2140_v55, %v2112_v39  ;;  %v2165_v41 = vadd.f32 %v2141_v29, %v2113_v57  ;;  %v2473_v30 = vmul.f32 %v7723_v43, %v9505_v5  ;;  %v2474_v33 = vmul.f32 %v7750_v20, %v9505_v5 }
 0x2e2   : > { %v1896_v55 = vsel %vm1858_vm2, %v1894_v2, %v1895_v3  ;;  %v2445_v47 = vadd.f32 %v2421_v58, %v2393_v24  ;;  %v2446_v27 = vadd.f32 %v2422_v36, %v2394_v18  ;;  %v2525_v29 = vmul.f32 %v7367_v7, %v9084_v10 }
 0x2e3   : > { %v2216_v39 = vadd.f32 %v2192_v13, %v2164_v32  ;;  %v2217_v35 = vadd.f32 %v2193_v12, %v2165_v41  ;;  %v2526_v57 = vmul.f32 %v9523_v51, %v9084_v10  ;;  %v2577_v44 = vmul.f32 %v7729_v22, %v5290_v53 }
 0x2e4   : > { %v2497_v8 = vadd.f32 %v2473_v30, %v2445_v47  ;;  %v2498_v5 = vadd.f32 %v2474_v33, %v2446_v27  ;;  %v2578_v45 = vmul.f32 %v7765_v62, %v5290_v53  ;;  %v2629_v13 = vmul.f32 %v5294_v60, %v7355_v23 }
 0x2e5   : > { %v2268_v50 = vadd.f32 %v2244_v6, %v2216_v39  ;;  %v7906_v2 = vadd.f32 %v2245_v26, %v2217_v35  ;;  %v2630_v12 = vmul.f32 %v5294_v60, %v9525_v49  ;;  %v2681_v24 = vmul.f32 %v5298_v37, %v7719_v19 }
 0x2e6   : > { %v2549_v18 = vadd.f32 %v2525_v29, %v2497_v8  ;;  %v2550_v58 = vadd.f32 %v2526_v57, %v2498_v5  ;;  %v2682_v6 = vmul.f32 %v5298_v37, %v7761_v9  ;;  %v2830_v35 = vmul.f32 %v7357_v40, %v5332_v54 }
 0x2e7   : > { %v2331_v32 = vrot.slane %v2268_v50, 4  ;;  %v2332_v36 = vrot.slane %v7906_v2, 4  ;;  %v2831_v41 = vmul.f32 %v9517_v63, %v5332_v54  ;;  %v2858_v26 = vmul.f32 %v7361_v48, %v5336_v0 }
 0x2e8   : > { %v2601_v30 = vadd.f32 %v2577_v44, %v2549_v18  ;;  %v2602_v33 = vadd.f32 %v2578_v45, %v2550_v58  ;;  %v2859_v8 = vmul.f32 %v9519_v11, %v5336_v0  ;;  %v2910_v5 = vmul.f32 %v7723_v43, %v5340_v38 }
 0x2e9   : > { %v1929_v50 = vadd.f32 %v1896_v55, %v1492_v16  ;;  %v2882_v39 = vadd.f32 %v2858_v26, %v2830_v35  ;;  %v2911_v47 = vmul.f32 %v7750_v20, %v5340_v38  ;;  %v2962_v40 = vmul.f32 %v7367_v7, %v5344_v31 }
 0x2ea   : > { %v2333_v48 = vsel %vm2295_vm3, %v2331_v32, %v2332_v36  ;;  %v2653_v44 = vadd.f32 %v2629_v13, %v2601_v30  ;;  %v2654_v45 = vadd.f32 %v2630_v12, %v2602_v33  ;;  %v2883_v27 = vadd.f32 %v2859_v8, %v2831_v41 }
 0x2eb   : > { %v2934_v29 = vadd.f32 %v2910_v5, %v2882_v39  ;;  %v2963_v57 = vmul.f32 %v9523_v51, %v5344_v31  ;;  %v3014_v43 = vmul.f32 %v7729_v22, %v5364_v52  ;;  %v3015_v7 = vmul.f32 %v7765_v62, %v5364_v52 }
 0x2ec   : > { %v2705_v16 = vadd.f32 %v2681_v24, %v2653_v44  ;;  %v7938_v55 = vadd.f32 %v2682_v6, %v2654_v45  ;;  %v2935_v18 = vadd.f32 %v2911_v47, %v2883_v27  ;;  %v2366_v58 = vadd.f32 %v2333_v48, %v1929_v50  ;;  %v9551_v50 = vld [vmem:[#allocation32_spill] sm:$0xff]  ;;  %v9555_v44 = vld [vmem:[#allocation33_spill] sm:$0xff] }
 0x2ed   : > { %v2986_v35 = vadd.f32 %v2962_v40, %v2934_v29  ;;  %v3066_v13 = vmul.f32 %v5368_v56, %v7355_v23  ;;  %v3067_v12 = vmul.f32 %v5368_v56, %v9525_v49  ;;  %v381_v22 = vmul.f32 %v9517_v63, %v4975_v21  ;;  %v9554_v40 = vld [vmem:[#allocation28_spill] sm:$0xff]  ;;  %v7972_v29 = vld [vmem:[#allocation2 + $0xe8] sm:$0xff] }
 0x2ee   : > { %v2768_v32 = vrot.slane %v2705_v16, 5  ;;  %v2769_v41 = vrot.slane %v7938_v55, 5  ;;  %v2987_v26 = vadd.f32 %v2963_v57, %v2935_v18  ;;  %v3118_v6 = vmul.f32 %v5372_v46, %v7719_v19  ;;  %v9552_v19 = vld [vmem:[#allocation34_spill] sm:$0xff]  ;;  %v9556_v45 = vld [vmem:[#allocation80_spill] sm:$0xff] }
 0x2ef   : > { %v3038_v24 = vadd.f32 %v3014_v43, %v2986_v35  ;;  %v401_v30 = vmul.f32 %v9519_v11, %v4995_v28  ;;  %v437_v23 = vmul.f32 %v7750_v20, %v9471_v17  ;;  %v3119_v5 = vmul.f32 %v5372_v46, %v7761_v9  ;;  %v9553_v28 = vld [vmem:[#allocation35_spill] sm:$0xff]  ;;  %v7966_v20 = vld [vmem:[#allocation2 + $0xb8] sm:$0xff]  ;;  %v9558_v18 = vld [vmem:[#allocation36_spill] sm:$0xff] }
 0x2f0   : > { %v2770_v33 = vsel %vm2732_vm4, %v2768_v32, %v2769_v41  ;;  %v3039_v8 = vadd.f32 %v3015_v7, %v2987_v26  ;;  %v473_v21 = vmul.f32 %v9523_v51, %v9551_v50  ;;  %v509_v47 = vmul.f32 %v7765_v62, %v9552_v19  ;;  %v9557_v51 = vld [vmem:[#allocation37_spill] sm:$0xff]  ;;  %v7980_v35 = vld [vmem:[#allocation2 + $0x148] sm:$0xff] }
 0x2f1   : > { %v3090_v63 = vadd.f32 %v3066_v13, %v3038_v24  ;;  %v417_v39 = vadd.f32 %v401_v30, %v381_v22  ;;  %v545_v11 = vmul.f32 %v9553_v28, %v9525_v49  ;;  %v647_v48 = vmul.f32 %v7966_v20, %v9554_v40  ;;  %v7984_v26 = vld [vmem:[#allocation2 + $0x118] sm:$0xff]  ;;  %v9560_v30 = vld [vmem:[#allocation43_spill] sm:$0xff] }
 0x2f2   : > { %v3091_v17 = vadd.f32 %v3067_v12, %v3039_v8  ;;  %v675_v27 = vmul.f32 %v9556_v45, %v9555_v44  ;;  %v727_v57 = vmul.f32 %v7972_v29, %v9557_v51  ;;  %v2803_v43 = vadd.f32 %v2770_v33, %v2366_v58  ;;  %v9559_v12 = vld [vmem:[#allocation73_spill] sm:$0xff]  ;;  %v9561_v8 = vld [vmem:[#allocation31_spill] sm:$0xff]  ;;  %v9566_v44 = vld [vmem:[#allocation46_spill] sm:$0xff] }
 0x2f3   : > { %v3142_v16 = vadd.f32 %v3118_v6, %v3090_v63  ;;  %v453_v62 = vadd.f32 %v437_v23, %v417_v39  ;;  %v581_v49 = vmul.f32 %v9558_v18, %v7761_v9  ;;  %v779_v32 = vmul.f32 %v9559_v12, %v9437_v34  ;;  %v9563_v34 = vld [vmem:[#allocation44_spill] sm:$0xff]  ;;  %v9565_v28 = vld [vmem:[#allocation45_spill] sm:$0xff]  ;;  %v9567_v51 = vld [vmem:[#allocation30_spill] sm:$0xff] }
 0x2f4   : > { %v7978_v7 = vadd.f32 %v3119_v5, %v3091_v17  ;;  %v699_v13 = vadd.f32 %v675_v27, %v647_v48  ;;  %v831_v22 = vmul.f32 %v7984_v26, %v9524_v4  ;;  %v1084_v6 = vmul.f32 %v7966_v20, %v9527_v59  ;;  %v9562_v5 = vld [vmem:[#allocation40_spill] sm:$0xff]  ;;  %v9564_v4 = vld [vmem:[#allocation41_spill] sm:$0xff]  ;;  %v8001_v17 = vpop.xlane.xlu0 %3242  ;;  %v9568_v18 = vld [vmem:[#allocation50_spill] sm:$0xff] }
 0x2f5   : > { %v3205_v24 = vrot.slane %v3142_v16, 6  ;;  %v489_v58 = vadd.f32 %v473_v21, %v453_v62  ;;  %v1112_v9 = vmul.f32 %v9556_v45, %v9560_v30  ;;  %v883_v50 = vmul.f32 %v9562_v5, %v9561_v8 }
 0x2f6   : > { %v3206_v23 = vrot.slane %v7978_v7, 6  ;;  %v751_v33 = vadd.f32 %v727_v57, %v699_v13  ;;  %v1164_v63 = vmul.f32 %v7972_v29, %v9563_v34  ;;  %v935_v19 = vmul.f32 %v9564_v4, %v7980_v35  ;;  %v9572_v4 = vld [vmem:[#allocation58_spill] sm:$0xff] }
 0x2f7   : > { %v525_v39 = vadd.f32 %v509_v47, %v489_v58  ;;  %v1136_v21 = vadd.f32 %v1112_v9, %v1084_v6  ;;  %v1216_v59 = vmul.f32 %v9559_v12, %v9565_v28  ;;  %v1268_v27 = vmul.f32 %v7984_v26, %v9566_v44  ;;  %v9569_v6 = vld [vmem:[#allocation47_spill] sm:$0xff] }
 0x2f8   : > { %v3207_v40 = vsel %vm3169_vm5, %v3205_v24, %v3206_v23  ;;  %v803_v48 = vadd.f32 %v779_v32, %v751_v33  ;;  %v1521_v47 = vmul.f32 %v7966_v20, %v9567_v51  ;;  %v1549_v13 = vmul.f32 %v9556_v45, %v9568_v18  ;;  %v9570_v24 = vld [vmem:[#allocation49_spill] sm:$0xff]  ;;  %v9571_v9 = vld [vmem:[#allocation51_spill] sm:$0xff]  ;;  %v3245_v44 = vpop.xlane.xlu0 %3244 }
 0x2f9   : > { %v8010_v57 = vadd.f32 %v3207_v40, %v2803_v43  ;;  %v561_v16 = vadd.f32 %v545_v11, %v525_v39  ;;  %v1188_v62 = vadd.f32 %v1164_v63, %v1136_v21  ;;  %v1320_v30 = vmul.f32 %v9569_v6, %v9561_v8 }
 0x2fa   : > { %v855_v58 = vadd.f32 %v831_v22, %v803_v48  ;;  %v1372_v32 = vmul.f32 %v9570_v24, %v7980_v35  ;;  %v1601_v33 = vmul.f32 %v7972_v29, %v9571_v9  ;;  %v1573_v34 = vadd.f32 %v1549_v13, %v1521_v47  ;;  %v9573_v48 = vld [vmem:[#allocation55_spill] sm:$0xff]  ;;  %v9576_v24 = vld [vmem:[#allocation66_spill] sm:$0xff] }
 0x2fb   : > { %3270 = vadd.xlane.f32.xlu0 %v8010_v57  ;;  %v597_v5 = vadd.f32 %v581_v49, %v561_v16  ;;  %v1240_v43 = vadd.f32 %v1216_v59, %v1188_v62  ;;  %v1653_v11 = vmul.f32 %v9559_v12, %v9540_v15  ;;  %v1705_v22 = vmul.f32 %v7984_v26, %v9541_v25 }
 0x2fc   : > { %v907_v63 = vadd.f32 %v883_v50, %v855_v58  ;;  %v1958_v39 = vmul.f32 %v7966_v20, %v9543_v1  ;;  %v1986_v21 = vmul.f32 %v9556_v45, %v9572_v4  ;;  %v1625_v40 = vadd.f32 %v1601_v33, %v1573_v34  ;;  %v9574_v50 = vld [vmem:[#allocation56_spill] sm:$0xff]  ;;  %v9575_v58 = vld [vmem:[#allocation65_spill] sm:$0xff] }
 0x2fd   : > { %v1292_v28 = vadd.f32 %v1268_v27, %v1240_v43  ;;  %v1757_v49 = vmul.f32 %v9573_v48, %v9561_v8  ;;  %v2038_v59 = vmul.f32 %v7972_v29, %v9501_v61  ;;  %v1809_v51 = vmul.f32 %v9574_v50, %v7980_v35  ;;  %v4493_v27 = vld [vmem:[%s8419_s2] ss:$0 sm:$0xff]  ;;  %v3247_v61 = vpop.xlane.xlu1 %3246  ;;  %v9577_v43 = vld [vmem:[#allocation63_spill] sm:$0xff] }
 0x2fe   : > { %v959_v15 = vadd.f32 %v935_v19, %v907_v63  ;;  %v2010_v25 = vadd.f32 %v1986_v21, %v1958_v39  ;;  %v2090_v1 = vmul.f32 %v9559_v12, %v9545_v42  ;;  %v619_v47 = vadd.f32 %v4493_v27, %v597_v5  ;;  %v9578_v5 = vld [vmem:[#allocation67_spill] sm:$0xff] }
 0x2ff   : > { %v1344_v16 = vadd.f32 %v1320_v30, %v1292_v28  ;;  %v1677_v62 = vadd.f32 %v1653_v11, %v1625_v40  ;;  %v2142_v18 = vmul.f32 %v7984_v26, %v9217_v14  ;;  %v2395_v6 = vmul.f32 %v7966_v20, %v9575_v58  ;;  %v9579_v11 = vld [vmem:[#allocation59_spill] sm:$0xff] }
 0x300   : > { %v1023_v13 = vrot.slane %v959_v15, 1  ;;  %v2062_v19 = vadd.f32 %v2038_v59, %v2010_v25  ;;  %v2423_v9 = vmul.f32 %v9556_v45, %v9576_v24  ;;  %v2194_v34 = vmul.f32 %v9577_v43, %v9561_v8  ;;  %v3251_v59 = vpop.xlane.xlu0 %3250 }
 0x301   : > { %v1396_v42 = vadd.f32 %v1372_v32, %v1344_v16  ;;  %v1729_v33 = vadd.f32 %v1705_v22, %v1677_v62  ;;  %v2475_v30 = vmul.f32 %v7972_v29, %v9578_v5  ;;  %v9580_v63 = vrot.slane %v9579_v11, 1  ;;  %v9581_v32 = vld [vmem:[#allocation64_spill] sm:$0xff] }
 0x302   : > { %v2114_v39 = vadd.f32 %v2090_v1, %v2062_v19  ;;  %v2447_v4 = vadd.f32 %v2423_v9, %v2395_v6  ;;  %v2527_v21 = vmul.f32 %v9559_v12, %v9084_v10  ;;  %v2246_v22 = vmul.f32 %v9581_v32, %v7980_v35  ;;  %v9582_v1 = vld [vmem:[#allocation71_spill] sm:$0xff]  ;;  %v9586_v11 = vld [vmem:[#allocation84_spill] sm:$0xff] }
 0x303   : > { %v1024_v14 = vsel %vm984_vm0, %v9580_v63, %v1023_v13  ;;  %v1460_v40 = vrot.slane %v1396_v42, 2  ;;  %v1781_v48 = vadd.f32 %v1757_v49, %v1729_v33  ;;  %v2579_v25 = vmul.f32 %v7984_v26, %v5290_v53  ;;  %v3249_v13 = vpop.xlane.xlu1 %3248  ;;  %v9589_v32 = vld [vmem:[#allocation27_spill] sm:$0xff] }
 0x304   : > { %v1056_v28 = vadd.f32 %v1024_v14, %v619_v47  ;;  %v2166_v15 = vadd.f32 %v2142_v18, %v2114_v39  ;;  %v2499_v50 = vadd.f32 %v2475_v30, %v2447_v4  ;;  %v2832_v27 = vmul.f32 %v7966_v20, %v5332_v54  ;;  %v3255_v33 = vpop.xlane.xlu0 %3254  ;;  %v9585_v30 = vld [vmem:[#allocation74_spill] sm:$0xff] }
 0x305   : > { %v9583_v16 = vrot.slane %v9582_v1, 2  ;;  %v1833_v10 = vadd.f32 %v1809_v51, %v1781_v48  ;;  %v2860_v49 = vmul.f32 %v9556_v45, %v5336_v0  ;;  %v2912_v47 = vmul.f32 %v7972_v29, %v5340_v38 }
 0x306   : > { %v2218_v19 = vadd.f32 %v2194_v34, %v2166_v15  ;;  %v2551_v58 = vadd.f32 %v2527_v21, %v2499_v50  ;;  %v2631_v53 = vmul.f32 %v5294_v60, %v9561_v8  ;;  %v2964_v20 = vmul.f32 %v9559_v12, %v5344_v31 }
 0x307   : > { %v1461_v62 = vsel %vm1421_vm1, %v9583_v16, %v1460_v40  ;;  %v1897_v6 = vrot.slane %v1833_v10, 3  ;;  %v2884_v54 = vadd.f32 %v2860_v49, %v2832_v27  ;;  %v2683_v0 = vmul.f32 %v5298_v37, %v7980_v35  ;;  %v3253_v14 = vpop.xlane.xlu1 %3252  ;;  %v9590_v10 = vld [vmem:[#allocation75_spill] sm:$0xff] }
 0x308   : > { %v1493_v18 = vadd.f32 %v1461_v62, %v1056_v28  ;;  %v2270_v24 = vadd.f32 %v2246_v22, %v2218_v19  ;;  %v2603_v51 = vadd.f32 %v2579_v25, %v2551_v58  ;;  %v3274_v45 = vmul.f32 0.03125, %v8001_v17 }
 0x309   : > { %v1898_v29 = vsel %vm1858_vm2, %v1895_v3, %v1897_v6  ;;  %v2936_v9 = vadd.f32 %v2912_v47, %v2884_v54  ;;  %v3016_v60 = vmul.f32 %v7984_v26, %v5364_v52  ;;  %v3276_v42 = vmul.f32 0.03125, %v3247_v61 }
 0x30a   : > { %v1930_v43 = vadd.f32 %v1898_v29, %v1493_v18  ;;  %v2334_v34 = vrot.slane %v2270_v24, 4  ;;  %v2655_v31 = vadd.f32 %v2631_v53, %v2603_v51  ;;  %v3275_v12 = vmul.f32 0.03125, %v3245_v44  ;;  %v9593_v29 = vld [vmem:[#allocation61_spill] sm:$0xff] }
 0x30b   : > { %v2988_v5 = vadd.f32 %v2964_v20, %v2936_v9  ;;  %v3068_v37 = vmul.f32 %v5368_v56, %v9561_v8  ;;  %v3290_v17 = vsub.f32 %v9585_v30, %v3274_v45  ;;  %v3292_v63 = vsub.f32 %v9586_v11, %v3276_v42  ;;  %v9588_v56 = vld [vmem:[#allocation70_spill] sm:$0xff]  ;;  %v3257_v27 = vpop.xlane.xlu1 %3256  ;;  %v9592_v20 = vld [vmem:[#allocation69_spill] sm:$0xff]  ;;  %v9594_v42 = vld [vmem:[#allocation83_spill] sm:$0xff] }
 0x30c   : > { %v2335_v3 = vsel %vm2295_vm3, %v2332_v36, %v2334_v34  ;;  %v2707_v52 = vadd.f32 %v2683_v0, %v2655_v31  ;;  %v3278_v26 = vmul.f32 0.03125, %v3251_v59  ;;  %v9587_v61 = vlaneseq  ;;  %v3259_v36 = vpop.xlane.xlu0 %3258  ;;  %v9596_v11 = vld [vmem:[#allocation76_spill] sm:$0xff] }
 0x30d   : > { %v3040_v4 = vadd.f32 %v3016_v60, %v2988_v5  ;;  %v3120_v44 = vmul.f32 %v5372_v46, %v7980_v35  ;;  %v2367_v21 = vadd.f32 %v2335_v3, %v1930_v43  ;;  %v3291_v8 = vsub.f32 %v9588_v56, %v3275_v12  ;;  %v9595_v12 = vld [vmem:[#allocation42_spill] sm:$0xff] }
 0x30e   : > { %v3307_v39 = vand.u32 127, %v9587_v61  ;;  %v2771_v28 = vrot.slane %v2707_v52, 5  ;;  %v3277_v48 = vmul.f32 0.03125, %v3249_v13  ;;  %v3294_v22 = vsub.f32 %v9589_v32, %v3278_v26  ;;  %v4357_v32 = vld [vmem:[#allocation7 + $0x8] sm:$0xff]  }
 0x30f   : > { %v3092_v40 = vadd.f32 %v3068_v37, %v3040_v4  ;;  %v4716_v2 = vmov 0.0   ;;  %v3280_v46 = vmul.f32 0.03125, %v3255_v33  ;;  %v3279_v47 = vmul.f32 0.03125, %v3253_v14  ;;  %v3261_v38 = vpop.xlane.xlu1 %3260  ;;  %v9597_v4 = vld [vmem:[#allocation38_spill] sm:$0xff] }
 0x310   : > { %vm3308_vm6 = vcmp.lt.s32.totalorder %v3307_v39, 32  ;;  %v2772_v59 = vsel %vm2732_vm4, %v2769_v41, %v2771_v28  ;;  %v3293_v49 = vsub.f32 %v9590_v10, %v3277_v48  ;;  %v9591_v41 = vld [vmem:[#allocation78_spill] sm:$0xff]  ;;  %v3282_v19 = vmul.f32 0.03125, %v3259_v36  ;;  %v3263_v6 = vpop.xlane.xlu0 %3262  ;;  %v4356_v48 = vld [vmem:[#allocation7] sm:$0xff]  }
 0x311   : > { %v8092_v15 = vsel %vm3308_vm6, 1.0, %v4716_v2  ;;  %v3144_v25 = vadd.f32 %v3120_v44, %v3092_v40  ;;  %v2804_v1 = vadd.f32 %v2772_v59, %v2367_v21  ;;  %v3296_v13 = vsub.f32 %v9591_v41, %v3280_v46  ;;  %4182 = vmatprep.subr.bf16.mxu0 %v4356_v48  ;;  %v4359_v2 = vld [vmem:[#allocation7 + $0x18] sm:$0xff]   ;;  %v4360_v36 = vld [vmem:[#allocation7 + $0x20] sm:$0xff]  }
 0x312   : > { %v8098_v50 = vmul.f32 %v8092_v15, %v3290_v17  ;;  %v8101_v35 = vmul.f32 %v8092_v15, %v3292_v63  ;;  %v8107_v55 = vmul.f32 %v8092_v15, %v3291_v8  ;;  %v8113_v58 = vmul.f32 %v8092_v15, %v3294_v22  ;;  %4183 = vmatpush3.bf16.msra.mxu0 %v4356_v48  ;;  %v4358_v22 = vld [vmem:[#allocation7 + $0x10] sm:$0xff]  }
 0x313   : > { %v3208_v62 = vrot.slane %v3144_v25, 6  ;;  %v3295_v24 = vsub.f32 %v9592_v20, %v3279_v47  ;;  %v3281_v0 = vmul.f32 0.03125, %v3257_v27  ;;  %v8124_v45 = vmul.f32 %v8092_v15, %v3293_v49  ;;  %v3265_v17 = vpop.xlane.xlu1 %3264  ;;  %4184 = vmatprep.subr.bf16.mxu0 %v4357_v32  ;;  %v4361_v25 = vld [vmem:[#allocation7 + $0x28] sm:$0xff]   ;;  %v9598_v27 = vld [vmem:[#allocation81_spill] sm:$0xff]  ;;  %v4363_v49 = vld [vmem:[#allocation7 + $0x38] sm:$0xff]  }
 0x314   : > { %v3327_v16 = vmul.f32 %v8098_v50, %v8098_v50  ;;  %v3329_v18 = vmul.f32 %v8101_v35, %v8101_v35  ;;  %v3328_v51 = vmul.f32 %v8107_v55, %v8107_v55  ;;  %v3298_v7 = vsub.f32 %v9593_v29, %v3282_v19 }
 0x315   : > { %v3209_v53 = vsel %vm3169_vm5, %v3206_v23, %v3208_v62  ;;  %v3331_v23 = vmul.f32 %v8113_v58, %v8113_v58  ;;  %v3284_v9 = vmul.f32 0.03125, %v3263_v6  ;;  %v8131_v60 = vmul.f32 %v8092_v15, %v3296_v13  ;;  %v4362_v62 = vld [vmem:[#allocation7 + $0x30] sm:$0xff]  }
 0x316   : > { %3343 = vadd.xlane.f32.xlu0 %v3327_v16  ;;  %v8118_v54 = vadd.f32 %v3209_v53, %v2804_v1  ;;  %v3297_v33 = vsub.f32 %v9594_v42, %v3281_v0  ;;  %v3330_v43 = vmul.f32 %v8124_v45, %v8124_v45  ;;  %v3283_v34 = vmul.f32 0.03125, %v3261_v38  ;;  %4185 = vmatpush3.bf16.msra.mxu0 %v4357_v32  ;;  %v9599_v13 = vld [vmem:[#allocation85_spill] sm:$0xff] }
 0x317   : > { %v8137_v31 = vmul.f32 %v8092_v15, %v3295_v24  ;;  %v3300_v5 = vsub.f32 %v9595_v12, %v3284_v9  ;;  %v3333_v37 = vmul.f32 %v8131_v60, %v8131_v60  ;;  %v8143_v30 = vmul.f32 %v8092_v15, %v3298_v7  ;;  %4186 = vmatprep.subr.bf16.mxu0 %v4358_v22 }
 0x318   : > { %3272 = vadd.xlane.f32.xlu1 %v8118_v54  ;;  %v3299_v63 = vsub.f32 %v9596_v11, %v3283_v34  ;;  %v3285_v3 = vmul.f32 0.03125, %v3265_v17  ;;  %v8149_v52 = vmul.f32 %v8092_v15, %v3297_v33 }
 0x319   : > { %v3332_v14 = vmul.f32 %v8137_v31, %v8137_v31  ;;  %v3335_v26 = vmul.f32 %v8143_v30, %v8143_v30  ;;  %v8154_v61 = vmul.f32 %v8092_v15, %v3300_v5 }
 0x31a   : > { %3347 = vadd.xlane.f32.xlu0 %v3329_v18  ;;  %v8157_v39 = vmul.f32 %v8092_v15, %v3299_v63  ;;  %v3301_v44 = vsub.f32 %v9597_v4, %v3285_v3  ;;  %v3334_v21 = vmul.f32 %v8149_v52, %v8149_v52  ;;  %4187 = vmatpush3.bf16.msra.mxu0 %v4358_v22 }
 0x31b   : > { %v3337_v28 = vmul.f32 %v8154_v61, %v8154_v61  ;;  %4188 = vmatprep.subr.bf16.mxu0 %v4359_v2 }
 0x31c   : > { %3345 = vadd.xlane.f32.xlu1 %v3328_v51  ;;  %v3336_v56 = vmul.f32 %v8157_v39, %v8157_v39  ;;  %v8167_v8 = vmul.f32 %v8092_v15, %v3301_v44 }
 0x31e   : > { %3351 = vadd.xlane.f32.xlu0 %v3331_v23  ;;  %v3338_v40 = vmul.f32 %v8167_v8, %v8167_v8  ;;  %4189 = vmatpush3.bf16.msra.mxu0 %v4359_v2 }
 0x31f   : > { %4190 = vmatprep.subr.bf16.mxu0 %v4360_v36 }
 0x320   : > { %3349 = vadd.xlane.f32.xlu1 %v3330_v43 }
 0x322   : > { %3355 = vadd.xlane.f32.xlu0 %v3333_v37  ;;  %4191 = vmatpush3.bf16.msra.mxu0 %v4360_v36 }
 0x323   : > { %4192 = vmatprep.subr.bf16.mxu0 %v4361_v25 }
 0x324   : > { %3353 = vadd.xlane.f32.xlu1 %v3332_v14 }
 0x326   : > { %3359 = vadd.xlane.f32.xlu0 %v3335_v26  ;;  %4193 = vmatpush3.bf16.msra.mxu0 %v4361_v25 }
 0x327   : > { %4194 = vmatprep.subr.bf16.mxu0 %v4362_v62 }
 0x328   : > { %3357 = vadd.xlane.f32.xlu1 %v3334_v21 }
 0x32a   : > { %3363 = vadd.xlane.f32.xlu0 %v3337_v28  ;;  %4195 = vmatpush3.bf16.msra.mxu0 %v4362_v62 }
 0x32b   : > { %4196 = vmatprep.subr.bf16.mxu0 %v4363_v49 }
 0x32c   : > { %3361 = vadd.xlane.f32.xlu1 %v3336_v56 }
 0x32e   : > { %4197 = vmatpush3.bf16.msra.mxu0 %v4363_v49 }
 0x330   : > { %3365 = vadd.xlane.f32.xlu1 %v3338_v40 }
 0x33b   : > { %v3267_v59 = vpop.xlane.xlu0 %3266 }
 0x33c   : > { %v3286_v46 = vmul.f32 0.03125, %v3267_v59 }
 0x33e   : > { %v3302_v1 = vsub.f32 %v9598_v27, %v3286_v46 }
 0x340   : > { %v8173_v16 = vmul.f32 %v8092_v15, %v3302_v1 }
 0x342   : > { %v3339_v10 = vmul.f32 %v8173_v16, %v8173_v16 }
 0x344   : > { %3367 = vadd.xlane.f32.xlu0 %v3339_v10 }
 0x35a   : > { %v3269_v47 = vpop.xlane.xlu1 %3268 }
 0x35b   : > { %v3287_v41 = vmul.f32 0.03125, %v3269_v47 }
 0x35d   : > { %v3303_v18 = vsub.f32 %v9599_v13, %v3287_v41 }
 0x35f   : > { %v8179_v19 = vmul.f32 %v8092_v15, %v3303_v18 }
 0x361   : > { %v3340_v53 = vmul.f32 %v8179_v19, %v8179_v19 }
 0x363   : > { %3369 = vadd.xlane.f32.xlu1 %v3340_v53 }
 0x388   : > { %v3271_v6 = vpop.xlane.xlu0 %3270 }
 0x389   : > { %v3288_v20 = vmul.f32 0.03125, %v3271_v6 }
 0x38b   : > { %v3304_v24 = vsub.f32 %v8010_v57, %v3288_v20 }
 0x38d   : > { %v8185_v51 = vmul.f32 %v8092_v15, %v3304_v24 }
 0x38f   : > { %v3341_v0 = vmul.f32 %v8185_v51, %v8185_v51 }
 0x391   : > { %3371 = vadd.xlane.f32.xlu0 %v3341_v0 }
 0x3a3   : > { %v3344_v38 = vpop.xlane.xlu0 %3343 }
 0x3a4   : > { %v3375_v29 = vmul.f32 0.03125, %v3344_v38 }
 0x3a5   : > { %v3273_v7 = vpop.xlane.xlu1 %3272 }
 0x3a6   : > { %v3289_v9 = vmul.f32 0.03125, %v3273_v7  ;;  %v3391_v42 = vadd.f32 1e-06, %v3375_v29 }
 0x3a7   : > { %v3348_v23 = vpop.xlane.xlu0 %3347 }
 0x3a8   : > { %v3305_v33 = vsub.f32 %v8118_v54, %v3289_v9  ;;  %v3377_v43 = vmul.f32 0.03125, %v3348_v23  ;;  %4372 = vrsqrt.f32 %v3391_v42 }
 0x3a9   : > { %v3346_v34 = vpop.xlane.xlu1 %3345 }
 0x3aa   : > { %v8191_v57 = vmul.f32 %v8092_v15, %v3305_v33  ;;  %v3376_v5 = vmul.f32 0.03125, %v3346_v34  ;;  %v3393_v11 = vadd.f32 1e-06, %v3377_v43 }
 0x3ab   : > { %v3352_v12 = vpop.xlane.xlu0 %3351 }
 0x3ac   : > { %v3342_v37 = vmul.f32 %v8191_v57, %v8191_v57  ;;  %v3392_v17 = vadd.f32 1e-06, %v3376_v5  ;;  %v3379_v63 = vmul.f32 0.03125, %v3352_v12 }
 0x3ad   : > { %v3350_v14 = vpop.xlane.xlu1 %3349 }
 0x3ae   : > { %3373 = vadd.xlane.f32.xlu1 %v3342_v37  ;;  %4374 = vrsqrt.f32 %v3392_v17  ;;  %v3378_v26 = vmul.f32 0.03125, %v3350_v14  ;;  %v3395_v4 = vadd.f32 1e-06, %v3379_v63 }
 0x3af   : > { %v3356_v3 = vpop.xlane.xlu0 %3355  ;;  %4376 = vrsqrt.f32 %v3393_v11 }
 0x3b0   : > { %v3394_v54 = vadd.f32 1e-06, %v3378_v26  ;;  %v3381_v44 = vmul.f32 0.03125, %v3356_v3 }
 0x3b1   : > { %v3354_v21 = vpop.xlane.xlu1 %3353 }
 0x3b2   : > { %4378 = vrsqrt.f32 %v3394_v54  ;;  %v3380_v28 = vmul.f32 0.03125, %v3354_v21  ;;  %v3397_v40 = vadd.f32 1e-06, %v3381_v44  ;;  %v4373_v32 = vpop.eup %4372 }
 0x3b3   : > { %v3360_v15 = vpop.xlane.xlu0 %3359  ;;  %4380 = vrsqrt.f32 %v3395_v4  ;;  %v3423_v62 = vmul.f32 %v4373_v32, %v8098_v50 }
 0x3b4   : > { %v3396_v56 = vadd.f32 1e-06, %v3380_v28  ;;  %v3383_v48 = vmul.f32 0.03125, %v3360_v15  ;;  %v4366_v28 = vld [vmem:[#allocation9 + $0x10] sm:$0xff]  }
 0x3b5   : > { %v3358_v22 = vpop.xlane.xlu1 %3357 }
 0x3b6   : > { %4382 = vrsqrt.f32 %v3396_v56  ;;  %v3382_v36 = vmul.f32 0.03125, %v3358_v22  ;;  %v3399_v25 = vadd.f32 1e-06, %v3383_v48  ;;  %v4367_v56 = vld [vmem:[#allocation9 + $0x18] sm:$0xff]   ;;  %v4368_v48 = vld [vmem:[#allocation9 + $0x20] sm:$0xff]  }
 0x3b7   : > { %v3364_v2 = vpop.xlane.xlu0 %3363  ;;  %4384 = vrsqrt.f32 %v3397_v40 }
 0x3b8   : > { %v4375_v59 = vpop.eup %4374  ;;  %v3398_v46 = vadd.f32 1e-06, %v3382_v36  ;;  %v3385_v27 = vmul.f32 0.03125, %v3364_v2 }
 0x3b9   : > { %v3362_v1 = vpop.xlane.xlu1 %3361  ;;  %v3424_v10 = vmul.f32 %v4375_v59, %v8107_v55  ;;  %v4377_v49 = vpop.eup %4376 }
 0x3ba   : > { %4386 = vrsqrt.f32 %v3398_v46  ;;  %v3384_v47 = vmul.f32 0.03125, %v3362_v1  ;;  %v3401_v53 = vadd.f32 1e-06, %v3385_v27  ;;  %v3425_v20 = vmul.f32 %v4377_v49, %v8101_v35  ;;  %v8214_v1 = vld [vmem:[%s8421_s4] ss:$0 sm:$0xff] }
 0x3bb   : > { %v3439_v41 = vpack.c.bf16 %v3424_v10, %v3423_v62  ;;  %4388 = vrsqrt.f32 %v3399_v25 }
 0x3bc   : > { %v4379_v13 = vpop.eup %4378  ;;  %v3400_v18 = vadd.f32 1e-06, %v3384_v47 }
 0x3bd   : > { %v3366_v6 = vpop.xlane.xlu1 %3365  ;;  %4198 = vmatprep.mubr.bf16.mxu0 %v3439_v41  ;;  %v3426_v24 = vmul.f32 %v4379_v13, %v8124_v45  ;;  %v4381_v0 = vpop.eup %4380 }
 0x3be   : > { %4390 = vrsqrt.f32 %v3400_v18  ;;  %v3386_v38 = vmul.f32 0.03125, %v3366_v6  ;;  %v3427_v7 = vmul.f32 %v4381_v0, %v8113_v58 }
 0x3bf   : > { %v3440_v50 = vpack.c.bf16 %v3426_v24, %v3425_v20  ;;  %4392 = vrsqrt.f32 %v3401_v53 }
 0x3c0   : > { %v4383_v29 = vpop.eup %4382  ;;  %v3402_v55 = vadd.f32 1e-06, %v3386_v38 }
 0x3c1   : > { %4199 = vmatmul.mubr.bf16.vlgmr.msra.gmra.mrb[0].mxu0 %v3440_v50  ;;  %v3428_v23 = vmul.f32 %v4383_v29, %v8137_v31  ;;  %v4385_v9 = vpop.eup %4384 }
 0x3c2   : > { %4394 = vrsqrt.f32 %v3402_v55  ;;  %v3429_v35 = vmul.f32 %v4385_v9, %v8131_v60 }
 0x3c3   : > { %v3441_v42 = vpack.c.bf16 %v3428_v23, %v3427_v7 }
 0x3c4   : > { %v4387_v33 = vpop.eup %4386 }
 0x3c5   : > { %4202 = vmatprep.mubr.bf16.mxu0 %v3441_v42  ;;  %v3430_v45 = vmul.f32 %v4387_v33, %v8149_v52  ;;  %v4389_v43 = vpop.eup %4388 }
 0x3c6   : > { %v3431_v5 = vmul.f32 %v4389_v43, %v8143_v30 }
 0x3c7   : > { %v3442_v34 = vpack.c.bf16 %v3430_v45, %v3429_v35 }
 0x3c8   : > { %v4391_v12 = vpop.eup %4390 }
 0x3c9   : > { %4203 = vmatmul.mubr.bf16.gmra.mrb[4].mxu0 %v3442_v34  ;;  %v3432_v37 = vmul.f32 %v4391_v12, %v8157_v39  ;;  %v4393_v58 = vpop.eup %4392 }
 0x3ca   : > { %v3433_v11 = vmul.f32 %v4393_v58, %v8154_v61  ;;  %v4364_v61 = vld [vmem:[#allocation9] sm:$0xff]  }
 0x3cb   : > { %v3443_v17 = vpack.c.bf16 %v3432_v37, %v3431_v5  ;;  %4214 = vmatprep.subr.bf16.mxu1 %v4364_v61 }
 0x3cc   : > { %v4395_v31 = vpop.eup %4394  ;;  %4215 = vmatpush3.bf16.msra.mxu1 %v4364_v61 }
 0x3cd   : > { %4206 = vmatprep.mubr.bf16.mxu0 %v3443_v17  ;;  %v3434_v63 = vmul.f32 %v4395_v31, %v8167_v8  ;;  %v4365_v8 = vld [vmem:[#allocation9 + $0x8] sm:$0xff]  }
 0x3ce   : > { %4216 = vmatprep.subr.bf16.mxu1 %v4365_v8 }
 0x3cf   : > { %v3444_v14 = vpack.c.bf16 %v3434_v63, %v3433_v11  ;;  %v4369_v63 = vld [vmem:[#allocation9 + $0x28] sm:$0xff]  }
 0x3d0   : > { %4217 = vmatpush3.bf16.msra.mxu1 %v4365_v8  ;;  %v4370_v8 = vld [vmem:[#allocation9 + $0x30] sm:$0xff]  }
 0x3d1   : > { %4207 = vmatmul.mubr.bf16.gmra.mrb[8].mxu0 %v3444_v14  ;;  %v3368_v60 = vpop.xlane.xlu0 %3367  ;;  %4218 = vmatprep.subr.bf16.mxu1 %v4366_v28 }
 0x3d2   : > { %v3387_v52 = vmul.f32 0.03125, %v3368_v60 }
 0x3d4   : > { %v3403_v3 = vadd.f32 1e-06, %v3387_v52  ;;  %4219 = vmatpush3.bf16.msra.mxu1 %v4366_v28 }
 0x3d5   : > { %4220 = vmatprep.subr.bf16.mxu1 %v4367_v56 }
 0x3d6   : > { %4396 = vrsqrt.f32 %v3403_v3 }
 0x3d8   : > { %4221 = vmatpush3.bf16.msra.mxu1 %v4367_v56 }
 0x3d9   : > { %4222 = vmatprep.subr.bf16.mxu1 %v4368_v48 }
 0x3dc   : > { %4223 = vmatpush3.bf16.msra.mxu1 %v4368_v48 }
 0x3dd   : > { %4224 = vmatprep.subr.bf16.mxu1 %v4369_v63 }
 0x3e0   : > { %v4397_v30 = vpop.eup %4396  ;;  %4225 = vmatpush3.bf16.msra.mxu1 %v4369_v63 }
 0x3e1   : > { %v3435_v44 = vmul.f32 %v4397_v30, %v8173_v16  ;;  %4226 = vmatprep.subr.bf16.mxu1 %v4370_v8 }
 0x3e4   : > { %4227 = vmatpush3.bf16.msra.mxu1 %v4370_v8 }
 0x3f0   : > { %v3370_v26 = vpop.xlane.xlu1 %3369 }
 0x3f1   : > { %v3388_v54 = vmul.f32 0.03125, %v3370_v26 }
 0x3f3   : > { %v3404_v4 = vadd.f32 1e-06, %v3388_v54 }
 0x3f5   : > { %4398 = vrsqrt.f32 %v3404_v4 }
 0x3ff   : > { %v4399_v39 = vpop.eup %4398 }
 0x400   : > { %v3436_v21 = vmul.f32 %v4399_v39, %v8179_v19 }
 0x402   : > { %v3445_v15 = vpack.c.bf16 %v3436_v21, %v3435_v44 }
 0x404   : > { %4210 = vmatprep.mubr.bf16.mxu0 %v3445_v15 }
 0x41e   : > { %v3372_v40 = vpop.xlane.xlu0 %3371 }
 0x41f   : > { %v3389_v32 = vmul.f32 0.03125, %v3372_v40 }
 0x421   : > { %v3405_v16 = vadd.f32 1e-06, %v3389_v32 }
 0x423   : > { %4400 = vrsqrt.f32 %v3405_v16 }
 0x42d   : > { %v4401_v36 = vpop.eup %4400 }
 0x42e   : > { %v3437_v46 = vmul.f32 %v4401_v36, %v8185_v51 }
 0x43b   : > { %v3374_v19 = vpop.xlane.xlu1 %3373 }
 0x43c   : > { %v3390_v22 = vmul.f32 0.03125, %v3374_v19 }
 0x43e   : > { %v3406_v2 = vadd.f32 1e-06, %v3390_v22 }
 0x440   : > { %4402 = vrsqrt.f32 %v3406_v2 }
 0x44a   : > { %v4403_v59 = vpop.eup %4402 }
 0x44b   : > { %v3438_v25 = vmul.f32 %v4403_v59, %v8191_v57 }
 0x44d   : > { %v3446_v27 = vpack.c.bf16 %v3438_v25, %v3437_v46 }
 0x44f   : > { %4211 = vmatmul.mubr.bf16.gmra.mrb[12].mxu0 %v3446_v27 }
 0x494   : > { %v4200_v62 = vpop.f32.mrb[0].mxu0 }
 0x495   : > { %v8217_v10 = vadd.f32 %v4200_v62, %v8214_v1  ;;  %v3552_v49 = vpop.f32.mrb[1].mxu0 }
 0x496   : > { %v8220_v47 = vadd.f32 %v8214_v1, %v3552_v49  ;;  %v4201_v41 = vpop.f32.mrb[2].mxu0 }
 0x497   : > { %v3617_v51 = vmul.f32 %v8217_v10, %v8217_v10  ;;  %v8225_v57 = vadd.f32 %v4201_v41, %v8214_v1  ;;  %v3555_v13 = vpop.f32.mrb[3].mxu0 }
 0x498   : > { %v3615_v18 = vmul.f32 %v8220_v47, %v8220_v47  ;;  %v8230_v53 = vadd.f32 %v8214_v1, %v3555_v13 }
 0x499   : > { %v3633_v6 = vmul.f32 %v3617_v51, %v8217_v10  ;;  %v3618_v20 = vmul.f32 %v8225_v57, %v8225_v57  ;;  %v4371_v51 = vld [vmem:[#allocation9 + $0x38] sm:$0xff]  }
 0x49a   : > { %v3631_v24 = vmul.f32 %v3615_v18, %v8220_v47  ;;  %v3616_v0 = vmul.f32 %v8230_v53, %v8230_v53  ;;  %4228 = vmatprep.subr.bf16.mxu1 %v4371_v51 }
 0x49b   : > { %v3649_v38 = vmul.f32 0.044715, %v3633_v6  ;;  %v3634_v50 = vmul.f32 %v3618_v20, %v8225_v57  ;;  %4229 = vmatpush3.bf16.msra.mxu1 %v4371_v51 }
 0x49c   : > { %v3647_v29 = vmul.f32 0.044715, %v3631_v24  ;;  %v3632_v55 = vmul.f32 %v3616_v0, %v8230_v53  ;;  %v4204_v7 = vpop.f32.mrb[4].mxu0 }
 0x49d   : > { %v3665_v23 = vadd.f32 %v3649_v38, %v8217_v10  ;;  %v3650_v9 = vmul.f32 0.044715, %v3634_v50  ;;  %v8242_v42 = vadd.f32 %v4204_v7, %v8214_v1  ;;  %v3568_v33 = vpop.f32.mrb[5].mxu0 }
 0x49e   : > { %v3648_v35 = vmul.f32 0.044715, %v3632_v55  ;;  %v8245_v45 = vadd.f32 %v8214_v1, %v3568_v33  ;;  %v4205_v43 = vpop.f32.mrb[6].mxu0  ;;  %v3663_v34 = vadd.f32 %v3647_v29, %v8220_v47 }
 0x49f   : > { %v3681_v12 = vmul.f32 0.7978846, %v3665_v23  ;;  %v3666_v5 = vadd.f32 %v3650_v9, %v8225_v57  ;;  %v3621_v37 = vmul.f32 %v8242_v42, %v8242_v42  ;;  %v8252_v58 = vadd.f32 %v4205_v43, %v8214_v1  ;;  %v3571_v17 = vpop.f32.mrb[7].mxu0 }
 0x4a0   : > { %v3619_v31 = vmul.f32 %v8245_v45, %v8245_v45  ;;  %v8257_v11 = vadd.f32 %v8214_v1, %v3571_v17  ;;  %v3664_v14 = vadd.f32 %v3648_v35, %v8230_v53  ;;  %v3679_v60 = vmul.f32 0.7978846, %v3663_v34 }
 0x4a1   : > { %4404 = vtanh.f32 %v3681_v12  ;;  %v3682_v52 = vmul.f32 0.7978846, %v3666_v5  ;;  %v3637_v3 = vmul.f32 %v3621_v37, %v8242_v42  ;;  %v3622_v26 = vmul.f32 %v8252_v58, %v8252_v58 }
 0x4a2   : > { %v3635_v54 = vmul.f32 %v3619_v31, %v8245_v45  ;;  %v3620_v4 = vmul.f32 %v8257_v11, %v8257_v11  ;;  %v3680_v30 = vmul.f32 0.7978846, %v3664_v14  ;;  %4406 = vtanh.f32 %v3679_v60 }
 0x4a3   : > { %4408 = vtanh.f32 %v3682_v52  ;;  %v3653_v39 = vmul.f32 0.044715, %v3637_v3  ;;  %v3638_v44 = vmul.f32 %v3622_v26, %v8252_v58 }
 0x4a4   : > { %v3651_v21 = vmul.f32 0.044715, %v3635_v54  ;;  %v3636_v15 = vmul.f32 %v3620_v4, %v8257_v11  ;;  %v4208_v61 = vpop.f32.mrb[8].mxu0  ;;  %4410 = vtanh.f32 %v3680_v30 }
 0x4a5   : > { %v3669_v28 = vadd.f32 %v3653_v39, %v8242_v42  ;;  %v3654_v56 = vmul.f32 0.044715, %v3638_v44  ;;  %v8270_v40 = vadd.f32 %v4208_v61, %v8214_v1  ;;  %v3584_v48 = vpop.f32.mrb[9].mxu0 }
 0x4a6   : > { %v3667_v32 = vadd.f32 %v3651_v21, %v8245_v45  ;;  %v3652_v16 = vmul.f32 0.044715, %v3636_v15  ;;  %v8274_v19 = vadd.f32 %v8214_v1, %v3584_v48  ;;  %v4209_v22 = vpop.f32.mrb[10].mxu0 }
 0x4a7   : > { %v3685_v2 = vmul.f32 0.7978846, %v3669_v28  ;;  %v3670_v36 = vadd.f32 %v3654_v56, %v8252_v58  ;;  %v3625_v59 = vmul.f32 %v8270_v40, %v8270_v40  ;;  %v8280_v46 = vadd.f32 %v4209_v22, %v8214_v1  ;;  %v3587_v25 = vpop.f32.mrb[11].mxu0 }
 0x4a8   : > { %v3683_v27 = vmul.f32 0.7978846, %v3667_v32  ;;  %v3668_v62 = vadd.f32 %v3652_v16, %v8257_v11  ;;  %v3623_v49 = vmul.f32 %v8274_v19, %v8274_v19  ;;  %v8286_v41 = vadd.f32 %v8214_v1, %v3587_v25 }
 0x4a9   : > { %4412 = vtanh.f32 %v3685_v2  ;;  %v3686_v13 = vmul.f32 0.7978846, %v3670_v36  ;;  %v3641_v18 = vmul.f32 %v3625_v59, %v8270_v40  ;;  %v3626_v6 = vmul.f32 %v8280_v46, %v8280_v46 }
 0x4aa   : > { %4414 = vtanh.f32 %v3683_v27  ;;  %v3684_v20 = vmul.f32 0.7978846, %v3668_v62  ;;  %v3639_v24 = vmul.f32 %v3623_v49, %v8274_v19  ;;  %v3624_v0 = vmul.f32 %v8286_v41, %v8286_v41 }
 0x4ab   : > { %v4405_v38 = vpop.eup %4404  ;;  %4416 = vtanh.f32 %v3686_v13  ;;  %v3657_v50 = vmul.f32 0.044715, %v3641_v18  ;;  %v3642_v29 = vmul.f32 %v3626_v6, %v8280_v46 }
 0x4ac   : > { %v4407_v55 = vpop.eup %4406  ;;  %4418 = vtanh.f32 %v3684_v20  ;;  %v3655_v7 = vmul.f32 0.044715, %v3639_v24  ;;  %v3640_v23 = vmul.f32 %v3624_v0, %v8286_v41  ;;  %v3713_v9 = vadd.f32 1.0, %v4405_v38 }
 0x4ad   : > { %v4409_v33 = vpop.eup %4408  ;;  %v3673_v35 = vadd.f32 %v3657_v50, %v8270_v40  ;;  %v3658_v43 = vmul.f32 0.044715, %v3642_v29  ;;  %v3711_v34 = vadd.f32 1.0, %v4407_v55 }
 0x4ae   : > { %v4411_v12 = vpop.eup %4410  ;;  %v3671_v5 = vadd.f32 %v3655_v7, %v8274_v19  ;;  %v3656_v37 = vmul.f32 0.044715, %v3640_v23  ;;  %v3714_v17 = vadd.f32 1.0, %v4409_v33  ;;  %v3729_v31 = vmul.f32 0.5, %v3713_v9 }
 0x4af   : > { %v3689_v63 = vmul.f32 0.7978846, %v3673_v35  ;;  %v3674_v14 = vadd.f32 %v3658_v43, %v8280_v46  ;;  %v3712_v60 = vadd.f32 1.0, %v4411_v12  ;;  %v3727_v52 = vmul.f32 0.5, %v3711_v34 }
 0x4b0   : > { %v3687_v3 = vmul.f32 0.7978846, %v3671_v5  ;;  %v3672_v26 = vadd.f32 %v3656_v37, %v8286_v41  ;;  %v3730_v54 = vmul.f32 0.5, %v3714_v17  ;;  %v3745_v44 = vmul.f32 %v3729_v31, %v8217_v10 }
 0x4b1   : > { %4420 = vtanh.f32 %v3689_v63  ;;  %v3690_v4 = vmul.f32 0.7978846, %v3674_v14  ;;  %v3728_v30 = vmul.f32 0.5, %v3712_v60  ;;  %v3743_v61 = vmul.f32 %v3727_v52, %v8220_v47 }
 0x4b2   : > { %4422 = vtanh.f32 %v3687_v3  ;;  %v3688_v39 = vmul.f32 0.7978846, %v3672_v26  ;;  %v3746_v21 = vmul.f32 %v3730_v54, %v8225_v57 }
 0x4b3   : > { %v4413_v15 = vpop.eup %4412  ;;  %4424 = vtanh.f32 %v3690_v4  ;;  %v3744_v8 = vmul.f32 %v3728_v30, %v8230_v53 }
 0x4b4   : > { %v4415_v28 = vpop.eup %4414  ;;  %4426 = vtanh.f32 %v3688_v39  ;;  %v3760_v56 = vpack.c.bf16 %v3746_v21, %v3745_v44  ;;  %v3717_v48 = vadd.f32 1.0, %v4413_v15 }
 0x4b5   : > { %v4417_v32 = vpop.eup %4416  ;;  %v3759_v16 = vpack.c.bf16 %v3744_v8, %v3743_v61  ;;  %v3715_v22 = vadd.f32 1.0, %v4415_v28 }
 0x4b6   : > { %v4419_v2 = vpop.eup %4418  ;;  %v3718_v36 = vadd.f32 1.0, %v4417_v32  ;;  %v3733_v59 = vmul.f32 0.5, %v3717_v48 }
 0x4b7   : > { %4230 = vmatprep.mubr.bf16.mxu1 %v3759_v16  ;;  %v3716_v10 = vadd.f32 1.0, %v4419_v2  ;;  %v3731_v25 = vmul.f32 0.5, %v3715_v22 }
 0x4b8   : > { %4231 = vmatmul.mubr.bf16.vlgmr.msra.gmra.mrb[0].mxu1 %v3760_v56  ;;  %v3734_v57 = vmul.f32 0.5, %v3718_v36  ;;  %v3749_v47 = vmul.f32 %v3733_v59, %v8242_v42 }
 0x4b9   : > { %v3732_v27 = vmul.f32 0.5, %v3716_v10  ;;  %v3747_v49 = vmul.f32 %v3731_v25, %v8245_v45 }
 0x4ba   : > { %v3750_v53 = vmul.f32 %v3734_v57, %v8252_v58 }
 0x4bb   : > { %v4421_v62 = vpop.eup %4420  ;;  %v3748_v51 = vmul.f32 %v3732_v27, %v8257_v11 }
 0x4bc   : > { %v4423_v13 = vpop.eup %4422  ;;  %v3762_v18 = vpack.c.bf16 %v3750_v53, %v3749_v47  ;;  %v3721_v6 = vadd.f32 1.0, %v4421_v62 }
 0x4bd   : > { %v4425_v20 = vpop.eup %4424  ;;  %v3761_v24 = vpack.c.bf16 %v3748_v51, %v3747_v49  ;;  %v3719_v0 = vadd.f32 1.0, %v4423_v13 }
 0x4be   : > { %v4427_v38 = vpop.eup %4426  ;;  %v3722_v50 = vadd.f32 1.0, %v4425_v20  ;;  %v3737_v29 = vmul.f32 0.5, %v3721_v6  ;;  %v3938_v20 = vld [vmem:[#allocation2 + $0x63] sm:$0xff] }
 0x4bf   : > { %4234 = vmatprep.mubr.bf16.mxu1 %v3761_v24  ;;  %v3720_v55 = vadd.f32 1.0, %v4427_v38  ;;  %v3735_v7 = vmul.f32 0.5, %v3719_v0  ;;  %v3936_v38 = vld [vmem:[#allocation2 + $0x4b] sm:$0xff] }
 0x4c0   : > { %4235 = vmatmul.mubr.bf16.gmra.mrb[4].mxu1 %v3762_v18  ;;  %v3738_v42 = vmul.f32 0.5, %v3722_v50  ;;  %v3753_v23 = vmul.f32 %v3737_v29, %v8270_v40  ;;  %v8319_v18 = vld [vmem:[%s8423_s6] ss:$0 sm:$0xff] }
 0x4c1   : > { %v3736_v58 = vmul.f32 0.5, %v3720_v55  ;;  %v3751_v11 = vmul.f32 %v3735_v7, %v8274_v19  ;;  %v3939_v55 = vld [vmem:[#allocation2 + $0x6b] sm:$0xff] }
 0x4c2   : > { %v3754_v45 = vmul.f32 %v3738_v42, %v8280_v46 }
 0x4c3   : > { %v3752_v9 = vmul.f32 %v3736_v58, %v8286_v41 }
 0x4c4   : > { %v3764_v33 = vpack.c.bf16 %v3754_v45, %v3753_v23  ;;  %v3937_v23 = vld [vmem:[#allocation2 + $0x53] sm:$0xff] }
 0x4c5   : > { %v3763_v35 = vpack.c.bf16 %v3752_v9, %v3751_v11 }
 0x4c7   : > { %4238 = vmatprep.mubr.bf16.mxu1 %v3763_v35 }
 0x4c8   : > { %4239 = vmatmul.mubr.bf16.gmra.mrb[8].mxu1 %v3764_v33 }
 0x522   : > { %v4212_v43 = vpop.f32.mrb[12].mxu0 }
 0x523   : > { %v3609_v34 = vadd.f32 %v4212_v43, %v8214_v1  ;;  %v3600_v12 = vpop.f32.mrb[13].mxu0  ;;  %v3942_v43 = vld [vmem:[#allocation2 + $0x93] sm:$0xff] }
 0x524   : > { %v3601_v5 = vadd.f32 %v8214_v1, %v3600_v12  ;;  %v4213_v37 = vpop.f32.mrb[14].mxu0 }
 0x525   : > { %v3629_v17 = vmul.f32 %v3609_v34, %v3609_v34  ;;  %v3612_v40 = vadd.f32 %v4213_v37, %v8214_v1  ;;  %v3603_v31 = vpop.f32.mrb[15].mxu0 }
 0x526   : > { %v3627_v46 = vmul.f32 %v3601_v5, %v3601_v5  ;;  %v3604_v19 = vadd.f32 %v8214_v1, %v3603_v31 }
 0x527   : > { %v3645_v63 = vmul.f32 %v3629_v17, %v3609_v34  ;;  %v3630_v41 = vmul.f32 %v3612_v40, %v3612_v40 }
 0x528   : > { %v3643_v14 = vmul.f32 %v3627_v46, %v3601_v5  ;;  %v3628_v60 = vmul.f32 %v3604_v19, %v3604_v19 }
 0x529   : > { %v3661_v52 = vmul.f32 0.044715, %v3645_v63  ;;  %v3646_v3 = vmul.f32 %v3630_v41, %v3612_v40  ;;  %v3941_v63 = vld [vmem:[#allocation2 + $0x83] sm:$0xff] }
 0x52a   : > { %v3659_v26 = vmul.f32 0.044715, %v3643_v14  ;;  %v3644_v54 = vmul.f32 %v3628_v60, %v3604_v19 }
 0x52b   : > { %v3677_v4 = vadd.f32 %v3661_v52, %v3609_v34  ;;  %v3662_v30 = vmul.f32 0.044715, %v3646_v3 }
 0x52c   : > { %v3675_v39 = vadd.f32 %v3659_v26, %v3601_v5  ;;  %v3660_v44 = vmul.f32 0.044715, %v3644_v54  ;;  %v3946_v26 = vld [vmem:[#allocation2 + $0xc3] sm:$0xff] }
 0x52d   : > { %v3693_v21 = vmul.f32 0.7978846, %v3677_v4  ;;  %v3678_v15 = vadd.f32 %v3662_v30, %v3612_v40  ;;  %v3944_v30 = vld [vmem:[#allocation2 + $0xab] sm:$0xff] }
 0x52e   : > { %v3691_v61 = vmul.f32 0.7978846, %v3675_v39  ;;  %v3676_v8 = vadd.f32 %v3660_v44, %v3604_v19 }
 0x52f   : > { %4428 = vtanh.f32 %v3693_v21  ;;  %v3694_v28 = vmul.f32 0.7978846, %v3678_v15  ;;  %v3947_v21 = vld [vmem:[#allocation2 + $0xcb] sm:$0xff] }
 0x530   : > { %4430 = vtanh.f32 %v3691_v61  ;;  %v3692_v1 = vmul.f32 0.7978846, %v3676_v8 }
 0x531   : > { %4432 = vtanh.f32 %v3694_v28  ;;  %v3945_v28 = vld [vmem:[#allocation2 + $0xb3] sm:$0xff] }
 0x532   : > { %4434 = vtanh.f32 %v3692_v1 }
 0x539   : > { %v4429_v56 = vpop.eup %4428 }
 0x53a   : > { %v4431_v48 = vpop.eup %4430  ;;  %v3725_v32 = vadd.f32 1.0, %v4429_v56 }
 0x53b   : > { %v4433_v16 = vpop.eup %4432  ;;  %v3723_v22 = vadd.f32 1.0, %v4431_v48 }
 0x53c   : > { %v4435_v2 = vpop.eup %4434  ;;  %v3726_v36 = vadd.f32 1.0, %v4433_v16  ;;  %v3741_v59 = vmul.f32 0.5, %v3725_v32 }
 0x53d   : > { %v3724_v10 = vadd.f32 1.0, %v4435_v2  ;;  %v3739_v25 = vmul.f32 0.5, %v3723_v22  ;;  %v3950_v22 = vld [vmem:[#allocation2 + $0xf3] sm:$0xff] }
 0x53e   : > { %v3742_v57 = vmul.f32 0.5, %v3726_v36  ;;  %v3757_v47 = vmul.f32 %v3741_v59, %v3609_v34  ;;  %v3948_v59 = vld [vmem:[#allocation2 + $0xdb] sm:$0xff] }
 0x53f   : > { %v3740_v27 = vmul.f32 0.5, %v3724_v10  ;;  %v3755_v62 = vmul.f32 %v3739_v25, %v3601_v5  ;;  %v3940_v5 = vld [vmem:[#allocation2 + $0x7b] sm:$0xff] }
 0x540   : > { %v3758_v53 = vmul.f32 %v3742_v57, %v3612_v40  ;;  %v3943_v40 = vld [vmem:[#allocation2 + $0x9b] sm:$0xff] }
 0x541   : > { %v3756_v49 = vmul.f32 %v3740_v27, %v3604_v19  ;;  %v3951_v57 = vld [vmem:[#allocation2 + $0xfb] sm:$0xff] }
 0x542   : > { %v3766_v51 = vpack.c.bf16 %v3758_v53, %v3757_v47 }
 0x543   : > { %v3765_v13 = vpack.c.bf16 %v3756_v49, %v3755_v62  ;;  %v3949_v62 = vld [vmem:[#allocation2 + $0xe3] sm:$0xff] }
 0x545   : > { %4242 = vmatprep.mubr.bf16.mxu1 %v3765_v13 }
 0x546   : > { %4243 = vmatmul.mubr.bf16.gmra.mrb[12].mxu1 %v3766_v51 }
 0x58b   : > { %v4232_v6 = vpop.f32.mrb[0].mxu1 }
 0x58c   : > { %v3881_v24 = vadd.f32 %v4232_v6, %v8319_v18  ;;  %v3872_v0 = vpop.f32.mrb[1].mxu1 }
 0x58d   : > { %v3873_v50 = vadd.f32 %v8319_v18, %v3872_v0  ;;  %v4233_v29 = vpop.f32.mrb[2].mxu1 }
 0x58e   : > { %v3954_v7 = vadd.f32 %v3938_v20, %v3881_v24  ;;  %v3884_v42 = vadd.f32 %v4233_v29, %v8319_v18  ;;  %v3875_v58 = vpop.f32.mrb[3].mxu1 }
 0x58f   : > { %v3952_v45 = vadd.f32 %v3936_v38, %v3873_v50  ;;  %v3876_v11 = vadd.f32 %v8319_v18, %v3875_v58 }
 0x590   : > { %3970 = vst [vmem:[%s4937_s13 + $0x10] sm:$0xff] %v3954_v7  ;;  %v3955_v9 = vadd.f32 %v3939_v55, %v3884_v42 }
 0x591   : > { %3968 = vst [vmem:[%s4937_s13] sm:$0xff] %v3952_v45  ;;  %v3953_v33 = vadd.f32 %v3937_v23, %v3876_v11 }
 0x592   : > { %3971 = vst [vmem:[%s4937_s13 + $0x18] sm:$0xff] %v3955_v9 }
 0x593   : > { %3969 = vst [vmem:[%s4937_s13 + $0x8] sm:$0xff] %v3953_v33  ;;  %v4236_v35 = vpop.f32.mrb[4].mxu1 }
 0x594   : > { %v3897_v34 = vadd.f32 %v4236_v35, %v8319_v18  ;;  %v3888_v12 = vpop.f32.mrb[5].mxu1 }
 0x595   : > { %v3889_v37 = vadd.f32 %v8319_v18, %v3888_v12  ;;  %v4237_v17 = vpop.f32.mrb[6].mxu1 }
 0x596   : > { %v3958_v31 = vadd.f32 %v3942_v43, %v3897_v34  ;;  %v3900_v46 = vadd.f32 %v4237_v17, %v8319_v18  ;;  %v3891_v19 = vpop.f32.mrb[7].mxu1 }
 0x597   : > { %v3956_v41 = vadd.f32 %v3940_v5, %v3889_v37  ;;  %v3892_v14 = vadd.f32 %v8319_v18, %v3891_v19 }
 0x598   : > { %3974 = vst [vmem:[%s4937_s13 + $0x30] sm:$0xff] %v3958_v31  ;;  %v3959_v60 = vadd.f32 %v3943_v40, %v3900_v46 }
 0x599   : > { %3972 = vst [vmem:[%s4937_s13 + $0x20] sm:$0xff] %v3956_v41  ;;  %v3957_v52 = vadd.f32 %v3941_v63, %v3892_v14 }
 0x59a   : > { %3975 = vst [vmem:[%s4937_s13 + $0x38] sm:$0xff] %v3959_v60 }
 0x59b   : > { %3973 = vst [vmem:[%s4937_s13 + $0x28] sm:$0xff] %v3957_v52  ;;  %v4240_v3 = vpop.f32.mrb[8].mxu1 }
 0x59c   : > { %v3913_v54 = vadd.f32 %v4240_v3, %v8319_v18  ;;  %v3904_v4 = vpop.f32.mrb[9].mxu1 }
 0x59d   : > { %v3905_v39 = vadd.f32 %v8319_v18, %v3904_v4  ;;  %v4241_v44 = vpop.f32.mrb[10].mxu1 }
 0x59e   : > { %v3962_v15 = vadd.f32 %v3946_v26, %v3913_v54  ;;  %v3916_v61 = vadd.f32 %v4241_v44, %v8319_v18  ;;  %v3907_v8 = vpop.f32.mrb[11].mxu1 }
 0x59f   : > { %v3960_v1 = vadd.f32 %v3944_v30, %v3905_v39  ;;  %v3908_v56 = vadd.f32 %v8319_v18, %v3907_v8 }
 0x5a0   : > { %3978 = vst [vmem:[%s4937_s13 + $0x50] sm:$0xff] %v3962_v15  ;;  %v3963_v48 = vadd.f32 %v3947_v21, %v3916_v61 }
 0x5a1   : > { %3976 = vst [vmem:[%s4937_s13 + $0x40] sm:$0xff] %v3960_v1  ;;  %v3961_v32 = vadd.f32 %v3945_v28, %v3908_v56 }
 0x5a2   : > { %3979 = vst [vmem:[%s4937_s13 + $0x58] sm:$0xff] %v3963_v48 }
 0x5a3   : > { %3977 = vst [vmem:[%s4937_s13 + $0x48] sm:$0xff] %v3961_v32 }
 0x619   : > { %v4244_v16 = vpop.f32.mrb[12].mxu1 }
 0x61a   : > { %v3929_v2 = vadd.f32 %v4244_v16, %v8319_v18  ;;  %v3920_v36 = vpop.f32.mrb[13].mxu1 }
 0x61b   : > { %v3921_v10 = vadd.f32 %v8319_v18, %v3920_v36  ;;  %v4245_v25 = vpop.f32.mrb[14].mxu1 }
 0x61c   : > { %v3966_v27 = vadd.f32 %v3950_v22, %v3929_v2  ;;  %v3932_v47 = vadd.f32 %v4245_v25, %v8319_v18  ;;  %v3923_v53 = vpop.f32.mrb[15].mxu1 }
 0x61d   : > { %v3964_v49 = vadd.f32 %v3948_v59, %v3921_v10  ;;  %v3924_v51 = vadd.f32 %v8319_v18, %v3923_v53 }
 0x61e   : > { %3982 = vst [vmem:[%s4937_s13 + $0x70] sm:$0xff] %v3966_v27  ;;  %v3967_v13 = vadd.f32 %v3951_v57, %v3932_v47 }
 0x61f   : > { %3980 = vst [vmem:[%s4937_s13 + $0x60] sm:$0xff] %v3964_v49  ;;  %v3965_v6 = vadd.f32 %v3949_v62, %v3924_v51 }
 0x620   : > { %3983 = vst [vmem:[%s4937_s13 + $0x78] sm:$0xff] %v3967_v13 }
 0x621   : > { %3981 = vst [vmem:[%s4937_s13 + $0x68] sm:$0xff] %v3965_v6 }
 0x622   : > { %4615 = shalt.err (!%p4612_p4)
}
 0x623   : > { %s4616_s22 = scalar_lea.hbm %s8356_s16, 2048  ;;  %s4620_s10 = scalar_lea.hbm %s8424_s7, 8192 }
 0x624   : > { %p4617_p5 = scmp.ne.s32.totalorder %s8356_s16, %s4616_s22  ;;  %p4621_p9 = scmp.lt.u32.totalorder %s8356_s16, %s8424_s7 }
 0x625   : > { %p4622_p11 = scmp.lt.u32.totalorder %s4620_s10, %s4616_s22  ;;  %p4624_p3 = scmp.lt.u32.totalorder %s4616_s22, %s8356_s16 }
 0x626   : > { %p4618_p6 = pnand %p4617_p5, %p9600_p2 }
 0x627   : > { %p4623_p13 = por %p4622_p11, %p4621_p9 }
 0x628   : > { %p4619_p7 = pneg %p4618_p6 }
 0x629   : > { %p4625_p0 = por %p4624_p3, %p4623_p13 }
 0x62b   : > { %p4626_p8 = pnand %p4625_p0, %p4619_p7 }
 0x62d   : > { %4629 = shalt.err (!%p4626_p8)
}
 0x62e   : > { %s4718_s30 = smov 128   ;;  %s4719_s12 = smov 8  }
 0x62f   : > { %4258 = dma.vmem_to_hbm [thread:$0]  (%p9600_p2), %s8358_s29, 2048, %s8356_s16, %s8365_s21, %s4718_s30, %s4718_s30, %s4719_s12  }
 0x630 PF: > { %s9601_s17 = sld [smem:[#allocation19_spill]]  ;;  %s9602_s19 = sld [smem:[#allocation25_spill]] }
 0x631   : > { %p4280_p10 = scmp.ge.s32.totalorder %s4706_s8, 2 }
 0x636   : > { %s4016_s24 = sand.u32 1, %s9601_s17   ;;  %p9603_p12 = scmp.ne.s32.totalorder %s9602_s19, 0 }
 0x637   : > { %s4017_s27 = scalar_lea.sflag [#allocation6], %s4016_s24 }
 0x638   : > { %p4271_p1 = pnand %p4280_p10, %p9603_p12 }
 0x63a   : > { %4673 = dma.done.wait (!%p4271_p1), %s4017_s27, 2048  }
 0x63b   : > { %4675 = vsyncadd (!%p4271_p1), %s4017_s27, 4294965248  ;;  %s22_s8 = sadd.s32 1, %s4706_s8   ;;  %s9604_s28 = sld [smem:[#allocation20_spill]] }
 0x63c   : > { %p19_p4 = scmp.ge.s32.totalorder %s22_s8, 6   ;;  %s9605_s26 = sld [smem:[#allocation26_spill]] }
 0x63d   : > { %s9606_s27 = sld [smem:[#allocation21_spill]]  ;;  %s9607_s15 = sld [smem:[#allocation22_spill]] }
 0x63e   : > { %s9608_s29 = sld [smem:[#allocation23_spill]]  ;;  %s9609_s30 = sld [smem:[#allocation24_spill]] }
 0x63f   : > { %s9610_s24 = smov %s4682_s25  ;;  %21 = sbr.rel (!%p19_p4) target bundleno = 7 (0x7), region = 95 }
 0x641   : > { %s9611_s25 = smov %s9604_s28 }
 0x643   : > { %s9612_s28 = smov %s9607_s15 }
 0x646   :  { %4022 = vsyncpa [#allocation5], 1 }
 0x647   :  { %4024 = vsyncpa [#allocation5 + $0x1], 1 }
 0x648   :  { %4025 = vsyncpa [#allocation8], 1 }
 0x649   :  { %4026 = vsyncpa [#allocation6], 1 }
 0x64a   :  { %4028 = vsyncpa [#allocation6 + $0x1], 1 }
 0x64b   :  { %4029 = vsyncmov [#allocation3] }
 0x64e   :  { %s4030_s16 = vpop.sfrf %4029 }
 0x64f   :  { %p4148_p2 = scmp.ne.s32.totalorder %s4030_s16, 0 }
 0x651   :  { %4034 = shalt.err (%p4148_p2)  }

</bundles_post_ra>
